<compile_context>
chip_gen: v7x
topology: tpu7x:2x2x1
jax: 0.10.0
libtpu: 0.0.40
codegen_flags: <defaults>
</compile_context>

<pallas_src>
import functools

import jax
import jax.numpy as jnp
from jax.experimental import pallas as pl
from jax.experimental.pallas import tpu as pltpu


# ----------------------------------------------------------------------------
# In-kernel helpers
# ----------------------------------------------------------------------------
def _layernorm(v, g, b, eps=1e-5):
    mu = jnp.mean(v, axis=-1, keepdims=True)
    var = jnp.mean(jnp.square(v - mu), axis=-1, keepdims=True)
    return (v - mu) * jax.lax.rsqrt(var + eps) * g + b


# ----------------------------------------------------------------------------
# Fused CLIP text-encoder kernel: one grid step = (batch block, layer)
# ----------------------------------------------------------------------------
def clip_stack_kernel(x_ref,
                      ln1g_ref, ln1b_ref, wqkv_ref, bqkv_ref, wo_ref, bo_ref,
                      ln2g_ref, ln2b_ref, w1_ref, b1_ref, w2_ref, b2_ref,
                      lnfg_ref, lnfb_ref, wout_ref, bout_ref,
                      o_ref, x_vmem,
                      *, num_heads, act):
    li = pl.program_id(1)                       # layer index (innermost, "arbitrary")
    Bt, Sp, D = x_vmem.shape
    H = num_heads
    hd = D // H
    scale = float(hd) ** -0.5
    bf16 = jnp.bfloat16

    # Load embeddings into the VMEM activation carry at the first layer.
    @pl.when(li == 0)
    def _():
        x_vmem[...] = x_ref[...]

    x = x_vmem[...]                             # (Bt, Sp, D) f32 residual stream

    # ---------------- causal self-attention (pre-LN) ----------------
    h = _layernorm(x, ln1g_ref[0], ln1b_ref[0])
    hb = h.reshape(Bt * Sp, D).astype(bf16)
    # fused QKV projection: (Bt*Sp, D) @ (D, 3D), bf16 -> f32 accumulate
    qkv = jnp.dot(hb, wqkv_ref[0], preferred_element_type=jnp.float32) + bqkv_ref[0]
    q = (qkv[:, 0 * D:1 * D] * scale).reshape(Bt, Sp, D).astype(bf16)
    k = qkv[:, 1 * D:2 * D].reshape(Bt, Sp, D).astype(bf16)
    v = qkv[:, 2 * D:3 * D].reshape(Bt, Sp, D).astype(bf16)

    # causal additive bias, hoisted out of the head loop (padded key columns are
    # > query row for all real queries, so they are masked automatically)
    row = jax.lax.broadcasted_iota(jnp.int32, (Sp, Sp), 0)
    col = jax.lax.broadcasted_iota(jnp.int32, (Sp, Sp), 1)
    causal_bias = jnp.where(col <= row, 0.0, -1e9).astype(jnp.float32)  # (Sp, Sp)

    wo = wo_ref[0]                              # (D, D) bf16
    attn = jnp.zeros((Bt * Sp, D), jnp.float32)
    for hi in range(H):                         # static unroll over heads
        sl = slice(hi * hd, (hi + 1) * hd)
        qh = q[:, :, sl]                        # (Bt, Sp, hd) bf16
        kh = k[:, :, sl]
        vh = v[:, :, sl]
        s = jnp.einsum('bqd,bkd->bqk', qh, kh,
                       preferred_element_type=jnp.float32)       # (Bt, Sp, Sp)
        s = s + causal_bias
        s = s - jnp.max(s, axis=-1, keepdims=True)
        p = jnp.exp(s)
        p = p * pl.reciprocal(jnp.sum(p, axis=-1, keepdims=True), approx=True)
        ctx = jnp.einsum('bqk,bkd->bqd', p.astype(bf16), vh,
                         preferred_element_type=jnp.float32)      # (Bt, Sp, hd)
        # fuse the output projection per head -> no concatenate, short live ranges
        attn = attn + jnp.dot(ctx.reshape(Bt * Sp, hd).astype(bf16), wo[sl, :],
                              preferred_element_type=jnp.float32)
    x = x + (attn + bo_ref[0]).reshape(Bt, Sp, D)

    # ---------------- MLP (pre-LN) ----------------
    h = _layernorm(x, ln2g_ref[0], ln2b_ref[0])
    hb = h.reshape(Bt * Sp, D).astype(bf16)
    h1 = jnp.dot(hb, w1_ref[0], preferred_element_type=jnp.float32) + b1_ref[0]
    if act == "quick_gelu":
        # HF CLIP ViT-L text encoder activation; sigmoid runs on the EUP.
        # (SDXL's text_encoder_2 / OpenCLIP-bigG config uses "gelu"; pass act="gelu".)
        h1 = h1 * jax.nn.sigmoid(1.702 * h1)
    else:
        h1 = jax.nn.gelu(h1, approximate=True)
    h2 = jnp.dot(h1.astype(bf16), w2_ref[0], preferred_element_type=jnp.float32) + b2_ref[0]
    x = x + h2.reshape(Bt, Sp, D)

    # carry the residual stream to the next layer (VMEM-resident)
    x_vmem[...] = x

    # ---------------- final LN + TextEmbedder output projection ----------------
    @pl.when(li == pl.num_programs(1) - 1)
    def _():
        z = _layernorm(x, lnfg_ref[...], lnfb_ref[...])
        y = jnp.dot(z.reshape(Bt * Sp, D).astype(bf16), wout_ref[...],
                    preferred_element_type=jnp.float32) + bout_ref[...]
        o_ref[...] = y.reshape(o_ref.shape)


# ----------------------------------------------------------------------------
# pallas_call wrapper
# ----------------------------------------------------------------------------
def _clip_text_encoder_pallas(x, params, *, batch_block=1, act="quick_gelu"):
    B, Sp, D = x.shape
    L = params["wqkv"].shape[0]
    F = params["w1"].shape[2]
    Dout = params["w_out"].shape[1]
    Bt = batch_block
    assert B % Bt == 0, "batch must be divisible by batch_block"

    # stacked per-layer weights: block index = layer (prefetched layer-by-layer)
    w3 = lambda d0, d1: pl.BlockSpec((1, d0, d1), lambda b, l: (l, 0, 0))
    # layer-invariant tensors (final LN / output projection): fetched once
    c2 = lambda d0, d1: pl.BlockSpec((d0, d1), lambda b, l: (0, 0))

    kernel = functools.partial(clip_stack_kernel,
                               num_heads=params["num_heads"], act=act)
    return pl.pallas_call(
        kernel,
        out_shape=jax.ShapeDtypeStruct((B, Sp, Dout), jnp.float32),
        grid=(B // Bt, L),
        in_specs=[
            pl.BlockSpec((Bt, Sp, D), lambda b, l: (b, 0, 0)),    # embeddings
            w3(1, D), w3(1, D),                                   # ln1 gamma/beta
            w3(D, 3 * D), w3(1, 3 * D),                           # Wqkv, bqkv
            w3(D, D), w3(1, D),                                   # Wo, bo
            w3(1, D), w3(1, D),                                   # ln2 gamma/beta
            w3(D, F), w3(1, F),                                   # W1, b1
            w3(F, D), w3(1, D),                                   # W2, b2
            c2(1, D), c2(1, D),                                   # final LN gamma/beta
            c2(D, Dout), c2(1, Dout),                             # output projection
        ],
        out_specs=pl.BlockSpec((Bt, Sp, Dout), lambda b, l: (b, 0, 0)),
        scratch_shapes=[pltpu.VMEM((Bt, Sp, D), jnp.float32)],    # residual-stream carry
        compiler_params=pltpu.CompilerParams(
            dimension_semantics=("parallel", "arbitrary"),
            vmem_limit_bytes=64 * 1024 * 1024),
    )(x,
      params["ln1_g"], params["ln1_b"], params["wqkv"], params["bqkv"],
      params["wo"], params["bo"], params["ln2_g"], params["ln2_b"],
      params["w1"], params["b1"], params["w2"], params["b2"],
      params["ln_f_g"], params["ln_f_b"], params["w_out"], params["b_out"])


def text_embedder_forward(tokens, params, *, batch_block=1, act="quick_gelu"):
    """TextEmbedder.forward given already-tokenized ids -> (B, max_length, hidden)."""
    B, S = tokens.shape
    # Embedding gather is data-dependent; done in plain JAX (glue code).
    x = (params["wte"][tokens] + params["wpe"][:S][None, :, :]).astype(jnp.float32)
    # Pad sequence to a multiple of 128 so scores/softmax are lane-dense; the
    # causal mask guarantees padded positions never influence real positions.
    Sp = ((S + 127) // 128) * 128
    if Sp != S:
        x = jnp.pad(x, ((0, 0), (0, Sp - S), (0, 0)))
    y = _clip_text_encoder_pallas(x, params, batch_block=batch_block, act=act)
    return y[:, :S, :]


# ----------------------------------------------------------------------------
# Deterministic parameters + pure-JAX reference (same bf16/f32 math)
# ----------------------------------------------------------------------------
def make_params(key, *, vocab, max_len, hidden, ffn, n_layers, n_heads, out_dim):
    D, F, L = hidden, ffn, n_layers
    ki = iter(jax.random.split(key, 8))
    nrm = lambda k, shape: 0.02 * jax.random.normal(k, shape, jnp.float32)
    bf = lambda a: a.astype(jnp.bfloat16)
    return {
        "num_heads": n_heads,
        "wte": nrm(next(ki), (vocab, D)),
        "wpe": nrm(next(ki), (max_len, D)),
        "ln1_g": jnp.ones((L, 1, D), jnp.float32),
        "ln1_b": jnp.zeros((L, 1, D), jnp.float32),
        "wqkv": bf(nrm(next(ki), (L, D, 3 * D))),
        "bqkv": jnp.zeros((L, 1, 3 * D), jnp.float32),
        "wo": bf(nrm(next(ki), (L, D, D))),
        "bo": jnp.zeros((L, 1, D), jnp.float32),
        "ln2_g": jnp.ones((L, 1, D), jnp.float32),
        "ln2_b": jnp.zeros((L, 1, D), jnp.float32),
        "w1": bf(nrm(next(ki), (L, D, F))),
        "b1": jnp.zeros((L, 1, F), jnp.float32),
        "w2": bf(nrm(next(ki), (L, F, D))),
        "b2": jnp.zeros((L, 1, D), jnp.float32),
        "ln_f_g": jnp.ones((1, D), jnp.float32),
        "ln_f_b": jnp.zeros((1, D), jnp.float32),
        "w_out": bf(nrm(next(ki), (D, out_dim))),
        "b_out": jnp.zeros((1, out_dim), jnp.float32),
    }


def reference_forward(tokens, params, act="quick_gelu"):
    """Plain-JAX mirror of the kernel math (bf16 matmuls, f32 accumulation)."""
    B, S = tokens.shape
    D = params["wte"].shape[1]
    H = params["num_heads"]
    hd = D // H
    L = params["wqkv"].shape[0]
    bf = jnp.bfloat16
    x = (params["wte"][tokens] + params["wpe"][:S][None]).astype(jnp.float32)
    mask = jnp.tril(jnp.ones((S, S), bool))
    for l in range(L):
        h = _layernorm(x, params["ln1_g"][l], params["ln1_b"][l])
        qkv = jnp.einsum('bsd,de->bse', h.astype(bf), params["wqkv"][l],
                         preferred_element_type=jnp.float32) + params["bqkv"][l]
        q = qkv[..., :D] * (float(hd) ** -0.5)
        k = qkv[..., D:2 * D]
        v = qkv[..., 2 * D:]
        attn = jnp.zeros_like(x)
        for hi in range(H):
            sl = slice(hi * hd, (hi + 1) * hd)
            s = jnp.einsum('bqd,bkd->bqk', q[..., sl].astype(bf), k[..., sl].astype(bf),
                           preferred_element_type=jnp.float32)
            s = jnp.where(mask, s, -1e9)
            p = jax.nn.softmax(s, axis=-1)
            ctx = jnp.einsum('bqk,bkd->bqd', p.astype(bf), v[..., sl].astype(bf),
                             preferred_element_type=jnp.float32)
            attn = attn + jnp.einsum('bqd,de->bqe', ctx.astype(bf),
                                     params["wo"][l][sl, :],
                                     preferred_element_type=jnp.float32)
        x = x + attn + params["bo"][l]
        h = _layernorm(x, params["ln2_g"][l], params["ln2_b"][l])
        h1 = jnp.einsum('bsd,df->bsf', h.astype(bf), params["w1"][l],
                        preferred_element_type=jnp.float32) + params["b1"][l]
        h1 = h1 * jax.nn.sigmoid(1.702 * h1) if act == "quick_gelu" else \
            jax.nn.gelu(h1, approximate=True)
        h2 = jnp.einsum('bsf,fd->bsd', h1.astype(bf), params["w2"][l],
                        preferred_element_type=jnp.float32) + params["b2"][l]
        x = x + h2
    z = _layernorm(x, params["ln_f_g"], params["ln_f_b"])
    return jnp.einsum('bsd,de->bse', z.astype(bf), params["w_out"],
                      preferred_element_type=jnp.float32) + params["b_out"]


# ----------------------------------------------------------------------------
# Demo
# ----------------------------------------------------------------------------
if __name__ == "__main__":
    # Small CLIP-style text encoder: max_length=77 (as in the module), D=128,
    # 4 heads, FFN=512, 2 layers; TextEmbedder output hidden_size=128.
    V, MAXLEN, D, H, F, L, HIDDEN_OUT, B = 1000, 77, 128, 4, 512, 2, 128, 2

    key = jax.random.PRNGKey(0)
    k_params, k_tok = jax.random.split(key)
    params = make_params(k_params, vocab=V, max_len=MAXLEN, hidden=D, ffn=F,
                         n_layers=L, n_heads=H, out_dim=HIDDEN_OUT)

    # TODO(synk): deterministic stand-in for the CLIP BPE tokenizer output
    # (padded to max_length); string tokenization / prompt dropout are not kernels.
    tokens = jax.random.randint(k_tok, (B, MAXLEN), 0, V, dtype=jnp.int32)

    y = text_embedder_forward(tokens, params)
    jax.block_until_ready(y)
    assert y.shape == (B, MAXLEN, HIDDEN_OUT) and y.dtype == jnp.float32

    y_ref = reference_forward(tokens, params)
    err = float(jnp.max(jnp.abs(y - y_ref)))
    assert jnp.allclose(y, y_ref, atol=1e-2, rtol=1e-2), f"max abs err {err}"
    print("KERNEL_OK")
</pallas_src>

<mosaic_0001>
module attributes {stable_mosaic.version = 11 : i64} {
  func.func @clip_stack_kernel(%arg0: i32, %arg1: i32, %arg2: memref<1x128x128xf32, #tpu.memory_space<vmem>>, %arg3: memref<1x1x128xf32, #tpu.memory_space<vmem>>, %arg4: memref<1x1x128xf32, #tpu.memory_space<vmem>>, %arg5: memref<1x128x384xbf16, #tpu.memory_space<vmem>>, %arg6: memref<1x1x384xf32, #tpu.memory_space<vmem>>, %arg7: memref<1x128x128xbf16, #tpu.memory_space<vmem>>, %arg8: memref<1x1x128xf32, #tpu.memory_space<vmem>>, %arg9: memref<1x1x128xf32, #tpu.memory_space<vmem>>, %arg10: memref<1x1x128xf32, #tpu.memory_space<vmem>>, %arg11: memref<1x128x512xbf16, #tpu.memory_space<vmem>>, %arg12: memref<1x1x512xf32, #tpu.memory_space<vmem>>, %arg13: memref<1x512x128xbf16, #tpu.memory_space<vmem>>, %arg14: memref<1x1x128xf32, #tpu.memory_space<vmem>>, %arg15: memref<1x128xf32, #tpu.memory_space<vmem>>, %arg16: memref<1x128xf32, #tpu.memory_space<vmem>>, %arg17: memref<128x128xbf16, #tpu.memory_space<vmem>>, %arg18: memref<1x128xf32, #tpu.memory_space<vmem>>, %arg19: memref<1x128x128xf32, #tpu.memory_space<vmem>>, %arg20: memref<1x128x128xf32, #tpu.memory_space<vmem>>) attributes {dimension_semantics = [#tpu.dimension_semantics<parallel>, #tpu.dimension_semantics<arbitrary>], iteration_bounds = array<i64: 2, 2>, scalar_prefetch = 0 : i64, scratch_operands = 1 : i64, tpu.core_type = #tpu.core_type<tc>, window_params = [{transform_indices = @transform_0, window_bounds = array<i64: 1, 128, 128>}, {transform_indices = @transform_1, window_bounds = array<i64: 1, 1, 128>}, {transform_indices = @transform_2, window_bounds = array<i64: 1, 1, 128>}, {transform_indices = @transform_3, window_bounds = array<i64: 1, 128, 384>}, {transform_indices = @transform_4, window_bounds = array<i64: 1, 1, 384>}, {transform_indices = @transform_5, window_bounds = array<i64: 1, 128, 128>}, {transform_indices = @transform_6, window_bounds = array<i64: 1, 1, 128>}, {transform_indices = @transform_7, window_bounds = array<i64: 1, 1, 128>}, {transform_indices = @transform_8, window_bounds = array<i64: 1, 1, 128>}, {transform_indices = @transform_9, window_bounds = array<i64: 1, 128, 512>}, {transform_indices = @transform_10, window_bounds = array<i64: 1, 1, 512>}, {transform_indices = @transform_11, window_bounds = array<i64: 1, 512, 128>}, {transform_indices = @transform_12, window_bounds = array<i64: 1, 1, 128>}, {pipeline_mode = #tpu.pipeline_mode<synchronous>, transform_indices = @transform_13, window_bounds = array<i64: 1, 128>}, {pipeline_mode = #tpu.pipeline_mode<synchronous>, transform_indices = @transform_14, window_bounds = array<i64: 1, 128>}, {pipeline_mode = #tpu.pipeline_mode<synchronous>, transform_indices = @transform_15, window_bounds = array<i64: 128, 128>}, {pipeline_mode = #tpu.pipeline_mode<synchronous>, transform_indices = @transform_16, window_bounds = array<i64: 1, 128>}, {transform_indices = @transform_17, window_bounds = array<i64: 1, 128, 128>}]} {
    %c0_i32 = arith.constant 0 : i32
    %0 = arith.cmpi eq, %arg1, %c0_i32 : i32
    %1 = arith.extui %0 : i1 to i32
    %c0_i32_0 = arith.constant 0 : i32
    %2 = arith.cmpi ne, %1, %c0_i32_0 : i32
    scf.if %2 {
      %c0_81 = arith.constant 0 : index
      %c0_82 = arith.constant 0 : index
      %c0_83 = arith.constant 0 : index
      %218 = vector.load %arg2[%c0_81, %c0_82, %c0_83] : memref<1x128x128xf32, #tpu.memory_space<vmem>>, vector<1x128x128xf32>
      %c0_84 = arith.constant 0 : index
      %c0_85 = arith.constant 0 : index
      %c0_86 = arith.constant 0 : index
      %219 = vector.load %arg20[%c0_84, %c0_85, %c0_86] : memref<1x128x128xf32, #tpu.memory_space<vmem>>, vector<1x128x128xf32>
      tpu.vector_store %arg20[%c0_84, %c0_85, %c0_86], %218 {strides = array<i32>} : memref<1x128x128xf32, #tpu.memory_space<vmem>>, vector<1x128x128xf32>,
    } else {
    }
    %c0 = arith.constant 0 : index
    %c0_1 = arith.constant 0 : index
    %c0_2 = arith.constant 0 : index
    %3 = vector.load %arg20[%c0, %c0_1, %c0_2] : memref<1x128x128xf32, #tpu.memory_space<vmem>>, vector<1x128x128xf32>
    %c0_3 = arith.constant 0 : index
    %c0_4 = arith.constant 0 : index
    %c0_5 = arith.constant 0 : index
    %4 = vector.load %arg3[%c0_3, %c0_4, %c0_5] : memref<1x1x128xf32, #tpu.memory_space<vmem>>, vector<1x1x128xf32>
    %5 = vector.shape_cast %4 : vector<1x1x128xf32> to vector<1x128xf32>
    %c0_6 = arith.constant 0 : index
    %c0_7 = arith.constant 0 : index
    %c0_8 = arith.constant 0 : index
    %6 = vector.load %arg4[%c0_6, %c0_7, %c0_8] : memref<1x1x128xf32, #tpu.memory_space<vmem>>, vector<1x1x128xf32>
    %7 = vector.shape_cast %6 : vector<1x1x128xf32> to vector<1x128xf32>
    %cst = arith.constant dense<0.000000e+00> : vector<1x128xf32>
    %8 = vector.multi_reduction <add>, %3, %cst [2] : vector<1x128x128xf32> to vector<1x128xf32>
    %9 = vector.shape_cast %8 : vector<1x128xf32> to vector<1x128x1xf32>
    %cst_9 = arith.constant 1.280000e+02 : f32
    %10 = vector.broadcast %cst_9 : f32 to vector<1x128x1xf32>
    %11 = arith.divf %9, %10 : vector<1x128x1xf32>
    %12 = vector.broadcast %11 : vector<1x128x1xf32> to vector<1x128x128xf32>
    %13 = arith.subf %3, %12 : vector<1x128x128xf32>
    %14 = arith.mulf %13, %13 : vector<1x128x128xf32>
    %cst_10 = arith.constant dense<0.000000e+00> : vector<1x128xf32>
    %15 = vector.multi_reduction <add>, %14, %cst_10 [2] : vector<1x128x128xf32> to vector<1x128xf32>
    %16 = vector.shape_cast %15 : vector<1x128xf32> to vector<1x128x1xf32>
    %cst_11 = arith.constant 1.280000e+02 : f32
    %17 = vector.broadcast %cst_11 : f32 to vector<1x128x1xf32>
    %18 = arith.divf %16, %17 : vector<1x128x1xf32>
    %19 = vector.broadcast %11 : vector<1x128x1xf32> to vector<1x128x128xf32>
    %20 = arith.subf %3, %19 : vector<1x128x128xf32>
    %cst_12 = arith.constant 9.99999974E-6 : f32
    %21 = vector.broadcast %cst_12 : f32 to vector<1x128x1xf32>
    %22 = arith.addf %18, %21 : vector<1x128x1xf32>
    %23 = math.rsqrt %22 : vector<1x128x1xf32>
    %24 = vector.broadcast %23 : vector<1x128x1xf32> to vector<1x128x128xf32>
    %25 = arith.mulf %20, %24 : vector<1x128x128xf32>
    %26 = vector.shape_cast %5 : vector<1x128xf32> to vector<1x1x128xf32>
    %27 = vector.broadcast %26 : vector<1x1x128xf32> to vector<1x128x128xf32>
    %28 = arith.mulf %25, %27 : vector<1x128x128xf32>
    %29 = vector.shape_cast %7 : vector<1x128xf32> to vector<1x1x128xf32>
    %30 = vector.broadcast %29 : vector<1x1x128xf32> to vector<1x128x128xf32>
    %31 = arith.addf %28, %30 : vector<1x128x128xf32>
    %32 = vector.shape_cast %31 : vector<1x128x128xf32> to vector<128x128xf32>
    %33 = arith.truncf %32 : vector<128x128xf32> to vector<128x128xbf16>
    %c0_13 = arith.constant 0 : index
    %c0_14 = arith.constant 0 : index
    %c0_15 = arith.constant 0 : index
    %34 = vector.load %arg5[%c0_13, %c0_14, %c0_15] : memref<1x128x384xbf16, #tpu.memory_space<vmem>>, vector<1x128x384xbf16>
    %35 = vector.shape_cast %34 : vector<1x128x384xbf16> to vector<128x384xbf16>
    %cst_16 = arith.constant dense<0.000000e+00> : vector<128x384xf32>
    %36 = tpu.matmul %33, %35, %cst_16 {dimension_numbers = #tpu.dot_dimension_numbers<[1], [0], [0], [1], [0, 0, 1, 1], [], []>} : vector<128x128xbf16>, vector<128x384xbf16>, vector<128x384xf32> -> vector<128x384xf32>
    %c0_17 = arith.constant 0 : index
    %c0_18 = arith.constant 0 : index
    %c0_19 = arith.constant 0 : index
    %37 = vector.load %arg6[%c0_17, %c0_18, %c0_19] : memref<1x1x384xf32, #tpu.memory_space<vmem>>, vector<1x1x384xf32>
    %38 = vector.shape_cast %37 : vector<1x1x384xf32> to vector<1x384xf32>
    %39 = vector.broadcast %38 : vector<1x384xf32> to vector<128x384xf32>
    %40 = arith.addf %36, %39 : vector<128x384xf32>
    %41 = vector.extract_strided_slice %40 {offsets = [0, 0], sizes = [128, 128], strides = [1, 1]} : vector<128x384xf32> to vector<128x128xf32>
    %cst_20 = arith.constant 0.176776692 : f32
    %42 = vector.broadcast %cst_20 : f32 to vector<128x128xf32>
    %43 = arith.mulf %41, %42 : vector<128x128xf32>
    %44 = vector.shape_cast %43 : vector<128x128xf32> to vector<1x128x128xf32>
    %45 = arith.truncf %44 : vector<1x128x128xf32> to vector<1x128x128xbf16>
    %46 = vector.extract_strided_slice %40 {offsets = [0, 128], sizes = [128, 128], strides = [1, 1]} : vector<128x384xf32> to vector<128x128xf32>
    %47 = vector.shape_cast %46 : vector<128x128xf32> to vector<1x128x128xf32>
    %48 = arith.truncf %47 : vector<1x128x128xf32> to vector<1x128x128xbf16>
    %49 = vector.extract_strided_slice %40 {offsets = [0, 256], sizes = [128, 128], strides = [1, 1]} : vector<128x384xf32> to vector<128x128xf32>
    %50 = vector.shape_cast %49 : vector<128x128xf32> to vector<1x128x128xf32>
    %51 = arith.truncf %50 : vector<1x128x128xf32> to vector<1x128x128xbf16>
    %52 = tpu.iota {dimensions = array<i32: 0>} : vector<128x128xi32>
    %53 = tpu.iota {dimensions = array<i32: 1>} : vector<128x128xi32>
    %54 = arith.cmpi sle, %53, %52 : vector<128x128xi32>
    %cst_21 = arith.constant 0.000000e+00 : f32
    %cst_22 = arith.constant -1.000000e+09 : f32
    %55 = vector.broadcast %cst_21 : f32 to vector<128x128xf32>
    %56 = vector.broadcast %cst_22 : f32 to vector<128x128xf32>
    %57 = arith.select %54, %55, %56 : vector<128x128xi1>, vector<128x128xf32>
    %c0_23 = arith.constant 0 : index
    %c0_24 = arith.constant 0 : index
    %c0_25 = arith.constant 0 : index
    %58 = vector.load %arg7[%c0_23, %c0_24, %c0_25] : memref<1x128x128xbf16, #tpu.memory_space<vmem>>, vector<1x128x128xbf16>
    %59 = vector.shape_cast %58 : vector<1x128x128xbf16> to vector<128x128xbf16>
    %cst_26 = arith.constant 0.000000e+00 : f32
    %60 = vector.broadcast %cst_26 : f32 to vector<128x128xf32>
    %61 = vector.extract_strided_slice %45 {offsets = [0, 0, 0], sizes = [1, 128, 32], strides = [1, 1, 1]} : vector<1x128x128xbf16> to vector<1x128x32xbf16>
    %62 = vector.extract_strided_slice %48 {offsets = [0, 0, 0], sizes = [1, 128, 32], strides = [1, 1, 1]} : vector<1x128x128xbf16> to vector<1x128x32xbf16>
    %63 = vector.extract_strided_slice %51 {offsets = [0, 0, 0], sizes = [1, 128, 32], strides = [1, 1, 1]} : vector<1x128x128xbf16> to vector<1x128x32xbf16>
    "tpu.trace_start"() <{level = 10 : i32, message = "bqd,bkd->bqk"}> : () -> ()
    %cst_27 = arith.constant dense<0.000000e+00> : vector<1x128x128xf32>
    %64 = tpu.matmul %61, %62, %cst_27 {dimension_numbers = #tpu.dot_dimension_numbers<[2], [2], [1], [1], [0, 0, 0, 1, 1, 1], [0], [0]>} : vector<1x128x32xbf16>, vector<1x128x32xbf16>, vector<1x128x128xf32> -> vector<1x128x128xf32>
    "tpu.trace_stop"() : () -> ()
    %65 = vector.shape_cast %57 : vector<128x128xf32> to vector<1x128x128xf32>
    %66 = arith.addf %64, %65 : vector<1x128x128xf32>
    %cst_28 = arith.constant dense<0xFF800000> : vector<1x128xf32>
    %67 = vector.multi_reduction <maximumf>, %66, %cst_28 [2] : vector<1x128x128xf32> to vector<1x128xf32>
    %68 = vector.shape_cast %67 : vector<1x128xf32> to vector<1x128x1xf32>
    %69 = vector.broadcast %68 : vector<1x128x1xf32> to vector<1x128x128xf32>
    %70 = arith.subf %66, %69 : vector<1x128x128xf32>
    %71 = math.exp %70 : vector<1x128x128xf32>
    %cst_29 = arith.constant dense<0.000000e+00> : vector<1x128xf32>
    %72 = vector.multi_reduction <add>, %71, %cst_29 [2] : vector<1x128x128xf32> to vector<1x128xf32>
    %73 = vector.shape_cast %72 : vector<1x128xf32> to vector<1x128x1xf32>
    %74 = tpu.reciprocal %73 {approx = true} : vector<1x128x1xf32> -> vector<1x128x1xf32>
    %75 = vector.broadcast %74 : vector<1x128x1xf32> to vector<1x128x128xf32>
    %76 = arith.mulf %71, %75 : vector<1x128x128xf32>
    %77 = arith.truncf %76 : vector<1x128x128xf32> to vector<1x128x128xbf16>
    "tpu.trace_start"() <{level = 10 : i32, message = "bqk,bkd->bqd"}> : () -> ()
    %cst_30 = arith.constant dense<0.000000e+00> : vector<1x128x32xf32>
    %78 = tpu.matmul %77, %63, %cst_30 {dimension_numbers = #tpu.dot_dimension_numbers<[2], [1], [1], [2], [0, 0, 0, 1, 1, 2], [0], [0]>} : vector<1x128x128xbf16>, vector<1x128x32xbf16>, vector<1x128x32xf32> -> vector<1x128x32xf32>
    "tpu.trace_stop"() : () -> ()
    %79 = vector.shape_cast %78 : vector<1x128x32xf32> to vector<128x32xf32>
    %80 = arith.truncf %79 : vector<128x32xf32> to vector<128x32xbf16>
    %81 = vector.extract_strided_slice %59 {offsets = [0, 0], sizes = [32, 128], strides = [1, 1]} : vector<128x128xbf16> to vector<32x128xbf16>
    %cst_31 = arith.constant dense<0.000000e+00> : vector<128x128xf32>
    %82 = tpu.matmul %80, %81, %cst_31 {dimension_numbers = #tpu.dot_dimension_numbers<[1], [0], [0], [1], [0, 0, 1, 1], [], []>} : vector<128x32xbf16>, vector<32x128xbf16>, vector<128x128xf32> -> vector<128x128xf32>
    %83 = arith.addf %60, %82 : vector<128x128xf32>
    %84 = vector.extract_strided_slice %45 {offsets = [0, 0, 32], sizes = [1, 128, 32], strides = [1, 1, 1]} : vector<1x128x128xbf16> to vector<1x128x32xbf16>
    %85 = vector.extract_strided_slice %48 {offsets = [0, 0, 32], sizes = [1, 128, 32], strides = [1, 1, 1]} : vector<1x128x128xbf16> to vector<1x128x32xbf16>
    %86 = vector.extract_strided_slice %51 {offsets = [0, 0, 32], sizes = [1, 128, 32], strides = [1, 1, 1]} : vector<1x128x128xbf16> to vector<1x128x32xbf16>
    "tpu.trace_start"() <{level = 10 : i32, message = "bqd,bkd->bqk"}> : () -> ()
    %cst_32 = arith.constant dense<0.000000e+00> : vector<1x128x128xf32>
    %87 = tpu.matmul %84, %85, %cst_32 {dimension_numbers = #tpu.dot_dimension_numbers<[2], [2], [1], [1], [0, 0, 0, 1, 1, 1], [0], [0]>} : vector<1x128x32xbf16>, vector<1x128x32xbf16>, vector<1x128x128xf32> -> vector<1x128x128xf32>
    "tpu.trace_stop"() : () -> ()
    %88 = vector.shape_cast %57 : vector<128x128xf32> to vector<1x128x128xf32>
    %89 = arith.addf %87, %88 : vector<1x128x128xf32>
    %cst_33 = arith.constant dense<0xFF800000> : vector<1x128xf32>
    %90 = vector.multi_reduction <maximumf>, %89, %cst_33 [2] : vector<1x128x128xf32> to vector<1x128xf32>
    %91 = vector.shape_cast %90 : vector<1x128xf32> to vector<1x128x1xf32>
    %92 = vector.broadcast %91 : vector<1x128x1xf32> to vector<1x128x128xf32>
    %93 = arith.subf %89, %92 : vector<1x128x128xf32>
    %94 = math.exp %93 : vector<1x128x128xf32>
    %cst_34 = arith.constant dense<0.000000e+00> : vector<1x128xf32>
    %95 = vector.multi_reduction <add>, %94, %cst_34 [2] : vector<1x128x128xf32> to vector<1x128xf32>
    %96 = vector.shape_cast %95 : vector<1x128xf32> to vector<1x128x1xf32>
    %97 = tpu.reciprocal %96 {approx = true} : vector<1x128x1xf32> -> vector<1x128x1xf32>
    %98 = vector.broadcast %97 : vector<1x128x1xf32> to vector<1x128x128xf32>
    %99 = arith.mulf %94, %98 : vector<1x128x128xf32>
    %100 = arith.truncf %99 : vector<1x128x128xf32> to vector<1x128x128xbf16>
    "tpu.trace_start"() <{level = 10 : i32, message = "bqk,bkd->bqd"}> : () -> ()
    %cst_35 = arith.constant dense<0.000000e+00> : vector<1x128x32xf32>
    %101 = tpu.matmul %100, %86, %cst_35 {dimension_numbers = #tpu.dot_dimension_numbers<[2], [1], [1], [2], [0, 0, 0, 1, 1, 2], [0], [0]>} : vector<1x128x128xbf16>, vector<1x128x32xbf16>, vector<1x128x32xf32> -> vector<1x128x32xf32>
    "tpu.trace_stop"() : () -> ()
    %102 = vector.shape_cast %101 : vector<1x128x32xf32> to vector<128x32xf32>
    %103 = arith.truncf %102 : vector<128x32xf32> to vector<128x32xbf16>
    %104 = vector.extract_strided_slice %59 {offsets = [32, 0], sizes = [32, 128], strides = [1, 1]} : vector<128x128xbf16> to vector<32x128xbf16>
    %cst_36 = arith.constant dense<0.000000e+00> : vector<128x128xf32>
    %105 = tpu.matmul %103, %104, %cst_36 {dimension_numbers = #tpu.dot_dimension_numbers<[1], [0], [0], [1], [0, 0, 1, 1], [], []>} : vector<128x32xbf16>, vector<32x128xbf16>, vector<128x128xf32> -> vector<128x128xf32>
    %106 = arith.addf %83, %105 : vector<128x128xf32>
    %107 = vector.extract_strided_slice %45 {offsets = [0, 0, 64], sizes = [1, 128, 32], strides = [1, 1, 1]} : vector<1x128x128xbf16> to vector<1x128x32xbf16>
    %108 = vector.extract_strided_slice %48 {offsets = [0, 0, 64], sizes = [1, 128, 32], strides = [1, 1, 1]} : vector<1x128x128xbf16> to vector<1x128x32xbf16>
    %109 = vector.extract_strided_slice %51 {offsets = [0, 0, 64], sizes = [1, 128, 32], strides = [1, 1, 1]} : vector<1x128x128xbf16> to vector<1x128x32xbf16>
    "tpu.trace_start"() <{level = 10 : i32, message = "bqd,bkd->bqk"}> : () -> ()
    %cst_37 = arith.constant dense<0.000000e+00> : vector<1x128x128xf32>
    %110 = tpu.matmul %107, %108, %cst_37 {dimension_numbers = #tpu.dot_dimension_numbers<[2], [2], [1], [1], [0, 0, 0, 1, 1, 1], [0], [0]>} : vector<1x128x32xbf16>, vector<1x128x32xbf16>, vector<1x128x128xf32> -> vector<1x128x128xf32>
    "tpu.trace_stop"() : () -> ()
    %111 = vector.shape_cast %57 : vector<128x128xf32> to vector<1x128x128xf32>
    %112 = arith.addf %110, %111 : vector<1x128x128xf32>
    %cst_38 = arith.constant dense<0xFF800000> : vector<1x128xf32>
    %113 = vector.multi_reduction <maximumf>, %112, %cst_38 [2] : vector<1x128x128xf32> to vector<1x128xf32>
    %114 = vector.shape_cast %113 : vector<1x128xf32> to vector<1x128x1xf32>
    %115 = vector.broadcast %114 : vector<1x128x1xf32> to vector<1x128x128xf32>
    %116 = arith.subf %112, %115 : vector<1x128x128xf32>
    %117 = math.exp %116 : vector<1x128x128xf32>
    %cst_39 = arith.constant dense<0.000000e+00> : vector<1x128xf32>
    %118 = vector.multi_reduction <add>, %117, %cst_39 [2] : vector<1x128x128xf32> to vector<1x128xf32>
    %119 = vector.shape_cast %118 : vector<1x128xf32> to vector<1x128x1xf32>
    %120 = tpu.reciprocal %119 {approx = true} : vector<1x128x1xf32> -> vector<1x128x1xf32>
    %121 = vector.broadcast %120 : vector<1x128x1xf32> to vector<1x128x128xf32>
    %122 = arith.mulf %117, %121 : vector<1x128x128xf32>
    %123 = arith.truncf %122 : vector<1x128x128xf32> to vector<1x128x128xbf16>
    "tpu.trace_start"() <{level = 10 : i32, message = "bqk,bkd->bqd"}> : () -> ()
    %cst_40 = arith.constant dense<0.000000e+00> : vector<1x128x32xf32>
    %124 = tpu.matmul %123, %109, %cst_40 {dimension_numbers = #tpu.dot_dimension_numbers<[2], [1], [1], [2], [0, 0, 0, 1, 1, 2], [0], [0]>} : vector<1x128x128xbf16>, vector<1x128x32xbf16>, vector<1x128x32xf32> -> vector<1x128x32xf32>
    "tpu.trace_stop"() : () -> ()
    %125 = vector.shape_cast %124 : vector<1x128x32xf32> to vector<128x32xf32>
    %126 = arith.truncf %125 : vector<128x32xf32> to vector<128x32xbf16>
    %127 = vector.extract_strided_slice %59 {offsets = [64, 0], sizes = [32, 128], strides = [1, 1]} : vector<128x128xbf16> to vector<32x128xbf16>
    %cst_41 = arith.constant dense<0.000000e+00> : vector<128x128xf32>
    %128 = tpu.matmul %126, %127, %cst_41 {dimension_numbers = #tpu.dot_dimension_numbers<[1], [0], [0], [1], [0, 0, 1, 1], [], []>} : vector<128x32xbf16>, vector<32x128xbf16>, vector<128x128xf32> -> vector<128x128xf32>
    %129 = arith.addf %106, %128 : vector<128x128xf32>
    %130 = vector.extract_strided_slice %45 {offsets = [0, 0, 96], sizes = [1, 128, 32], strides = [1, 1, 1]} : vector<1x128x128xbf16> to vector<1x128x32xbf16>
    %131 = vector.extract_strided_slice %48 {offsets = [0, 0, 96], sizes = [1, 128, 32], strides = [1, 1, 1]} : vector<1x128x128xbf16> to vector<1x128x32xbf16>
    %132 = vector.extract_strided_slice %51 {offsets = [0, 0, 96], sizes = [1, 128, 32], strides = [1, 1, 1]} : vector<1x128x128xbf16> to vector<1x128x32xbf16>
    "tpu.trace_start"() <{level = 10 : i32, message = "bqd,bkd->bqk"}> : () -> ()
    %cst_42 = arith.constant dense<0.000000e+00> : vector<1x128x128xf32>
    %133 = tpu.matmul %130, %131, %cst_42 {dimension_numbers = #tpu.dot_dimension_numbers<[2], [2], [1], [1], [0, 0, 0, 1, 1, 1], [0], [0]>} : vector<1x128x32xbf16>, vector<1x128x32xbf16>, vector<1x128x128xf32> -> vector<1x128x128xf32>
    "tpu.trace_stop"() : () -> ()
    %134 = vector.shape_cast %57 : vector<128x128xf32> to vector<1x128x128xf32>
    %135 = arith.addf %133, %134 : vector<1x128x128xf32>
    %cst_43 = arith.constant dense<0xFF800000> : vector<1x128xf32>
    %136 = vector.multi_reduction <maximumf>, %135, %cst_43 [2] : vector<1x128x128xf32> to vector<1x128xf32>
    %137 = vector.shape_cast %136 : vector<1x128xf32> to vector<1x128x1xf32>
    %138 = vector.broadcast %137 : vector<1x128x1xf32> to vector<1x128x128xf32>
    %139 = arith.subf %135, %138 : vector<1x128x128xf32>
    %140 = math.exp %139 : vector<1x128x128xf32>
    %cst_44 = arith.constant dense<0.000000e+00> : vector<1x128xf32>
    %141 = vector.multi_reduction <add>, %140, %cst_44 [2] : vector<1x128x128xf32> to vector<1x128xf32>
    %142 = vector.shape_cast %141 : vector<1x128xf32> to vector<1x128x1xf32>
    %143 = tpu.reciprocal %142 {approx = true} : vector<1x128x1xf32> -> vector<1x128x1xf32>
    %144 = vector.broadcast %143 : vector<1x128x1xf32> to vector<1x128x128xf32>
    %145 = arith.mulf %140, %144 : vector<1x128x128xf32>
    %146 = arith.truncf %145 : vector<1x128x128xf32> to vector<1x128x128xbf16>
    "tpu.trace_start"() <{level = 10 : i32, message = "bqk,bkd->bqd"}> : () -> ()
    %cst_45 = arith.constant dense<0.000000e+00> : vector<1x128x32xf32>
    %147 = tpu.matmul %146, %132, %cst_45 {dimension_numbers = #tpu.dot_dimension_numbers<[2], [1], [1], [2], [0, 0, 0, 1, 1, 2], [0], [0]>} : vector<1x128x128xbf16>, vector<1x128x32xbf16>, vector<1x128x32xf32> -> vector<1x128x32xf32>
    "tpu.trace_stop"() : () -> ()
    %148 = vector.shape_cast %147 : vector<1x128x32xf32> to vector<128x32xf32>
    %149 = arith.truncf %148 : vector<128x32xf32> to vector<128x32xbf16>
    %150 = vector.extract_strided_slice %59 {offsets = [96, 0], sizes = [32, 128], strides = [1, 1]} : vector<128x128xbf16> to vector<32x128xbf16>
    %cst_46 = arith.constant dense<0.000000e+00> : vector<128x128xf32>
    %151 = tpu.matmul %149, %150, %cst_46 {dimension_numbers = #tpu.dot_dimension_numbers<[1], [0], [0], [1], [0, 0, 1, 1], [], []>} : vector<128x32xbf16>, vector<32x128xbf16>, vector<128x128xf32> -> vector<128x128xf32>
    %152 = arith.addf %129, %151 : vector<128x128xf32>
    %c0_47 = arith.constant 0 : index
    %c0_48 = arith.constant 0 : index
    %c0_49 = arith.constant 0 : index
    %153 = vector.load %arg8[%c0_47, %c0_48, %c0_49] : memref<1x1x128xf32, #tpu.memory_space<vmem>>, vector<1x1x128xf32>
    %154 = vector.shape_cast %153 : vector<1x1x128xf32> to vector<1x128xf32>
    %155 = vector.broadcast %154 : vector<1x128xf32> to vector<128x128xf32>
    %156 = arith.addf %152, %155 : vector<128x128xf32>
    %157 = vector.shape_cast %156 : vector<128x128xf32> to vector<1x128x128xf32>
    %158 = arith.addf %3, %157 : vector<1x128x128xf32>
    %c0_50 = arith.constant 0 : index
    %c0_51 = arith.constant 0 : index
    %c0_52 = arith.constant 0 : index
    %159 = vector.load %arg9[%c0_50, %c0_51, %c0_52] : memref<1x1x128xf32, #tpu.memory_space<vmem>>, vector<1x1x128xf32>
    %160 = vector.shape_cast %159 : vector<1x1x128xf32> to vector<1x128xf32>
    %c0_53 = arith.constant 0 : index
    %c0_54 = arith.constant 0 : index
    %c0_55 = arith.constant 0 : index
    %161 = vector.load %arg10[%c0_53, %c0_54, %c0_55] : memref<1x1x128xf32, #tpu.memory_space<vmem>>, vector<1x1x128xf32>
    %162 = vector.shape_cast %161 : vector<1x1x128xf32> to vector<1x128xf32>
    %cst_56 = arith.constant dense<0.000000e+00> : vector<1x128xf32>
    %163 = vector.multi_reduction <add>, %158, %cst_56 [2] : vector<1x128x128xf32> to vector<1x128xf32>
    %164 = vector.shape_cast %163 : vector<1x128xf32> to vector<1x128x1xf32>
    %cst_57 = arith.constant 1.280000e+02 : f32
    %165 = vector.broadcast %cst_57 : f32 to vector<1x128x1xf32>
    %166 = arith.divf %164, %165 : vector<1x128x1xf32>
    %167 = vector.broadcast %166 : vector<1x128x1xf32> to vector<1x128x128xf32>
    %168 = arith.subf %158, %167 : vector<1x128x128xf32>
    %169 = arith.mulf %168, %168 : vector<1x128x128xf32>
    %cst_58 = arith.constant dense<0.000000e+00> : vector<1x128xf32>
    %170 = vector.multi_reduction <add>, %169, %cst_58 [2] : vector<1x128x128xf32> to vector<1x128xf32>
    %171 = vector.shape_cast %170 : vector<1x128xf32> to vector<1x128x1xf32>
    %cst_59 = arith.constant 1.280000e+02 : f32
    %172 = vector.broadcast %cst_59 : f32 to vector<1x128x1xf32>
    %173 = arith.divf %171, %172 : vector<1x128x1xf32>
    %174 = vector.broadcast %166 : vector<1x128x1xf32> to vector<1x128x128xf32>
    %175 = arith.subf %158, %174 : vector<1x128x128xf32>
    %cst_60 = arith.constant 9.99999974E-6 : f32
    %176 = vector.broadcast %cst_60 : f32 to vector<1x128x1xf32>
    %177 = arith.addf %173, %176 : vector<1x128x1xf32>
    %178 = math.rsqrt %177 : vector<1x128x1xf32>
    %179 = vector.broadcast %178 : vector<1x128x1xf32> to vector<1x128x128xf32>
    %180 = arith.mulf %175, %179 : vector<1x128x128xf32>
    %181 = vector.shape_cast %160 : vector<1x128xf32> to vector<1x1x128xf32>
    %182 = vector.broadcast %181 : vector<1x1x128xf32> to vector<1x128x128xf32>
    %183 = arith.mulf %180, %182 : vector<1x128x128xf32>
    %184 = vector.shape_cast %162 : vector<1x128xf32> to vector<1x1x128xf32>
    %185 = vector.broadcast %184 : vector<1x1x128xf32> to vector<1x128x128xf32>
    %186 = arith.addf %183, %185 : vector<1x128x128xf32>
    %187 = vector.shape_cast %186 : vector<1x128x128xf32> to vector<128x128xf32>
    %188 = arith.truncf %187 : vector<128x128xf32> to vector<128x128xbf16>
    %c0_61 = arith.constant 0 : index
    %c0_62 = arith.constant 0 : index
    %c0_63 = arith.constant 0 : index
    %189 = vector.load %arg11[%c0_61, %c0_62, %c0_63] : memref<1x128x512xbf16, #tpu.memory_space<vmem>>, vector<1x128x512xbf16>
    %190 = vector.shape_cast %189 : vector<1x128x512xbf16> to vector<128x512xbf16>
    %cst_64 = arith.constant dense<0.000000e+00> : vector<128x512xf32>
    %191 = tpu.matmul %188, %190, %cst_64 {dimension_numbers = #tpu.dot_dimension_numbers<[1], [0], [0], [1], [0, 0, 1, 1], [], []>} : vector<128x128xbf16>, vector<128x512xbf16>, vector<128x512xf32> -> vector<128x512xf32>
    %c0_65 = arith.constant 0 : index
    %c0_66 = arith.constant 0 : index
    %c0_67 = arith.constant 0 : index
    %192 = vector.load %arg12[%c0_65, %c0_66, %c0_67] : memref<1x1x512xf32, #tpu.memory_space<vmem>>, vector<1x1x512xf32>
    %193 = vector.shape_cast %192 : vector<1x1x512xf32> to vector<1x512xf32>
    %194 = vector.broadcast %193 : vector<1x512xf32> to vector<128x512xf32>
    %195 = arith.addf %191, %194 : vector<128x512xf32>
    %cst_68 = arith.constant 1.702000e+00 : f32
    %196 = vector.broadcast %cst_68 : f32 to vector<128x512xf32>
    %197 = arith.mulf %196, %195 : vector<128x512xf32>
    %198 = arith.negf %197 : vector<128x512xf32>
    %199 = math.exp %198 : vector<128x512xf32>
    %cst_69 = arith.constant 1.000000e+00 : f32
    %200 = vector.broadcast %cst_69 : f32 to vector<128x512xf32>
    %201 = arith.addf %200, %199 : vector<128x512xf32>
    %202 = arith.divf %200, %201 : vector<128x512xf32>
    %203 = arith.mulf %195, %202 : vector<128x512xf32>
    %204 = arith.truncf %203 : vector<128x512xf32> to vector<128x512xbf16>
    %c0_70 = arith.constant 0 : index
    %c0_71 = arith.constant 0 : index
    %c0_72 = arith.constant 0 : index
    %205 = vector.load %arg13[%c0_70, %c0_71, %c0_72] : memref<1x512x128xbf16, #tpu.memory_space<vmem>>, vector<1x512x128xbf16>
    %206 = vector.shape_cast %205 : vector<1x512x128xbf16> to vector<512x128xbf16>
    %cst_73 = arith.constant dense<0.000000e+00> : vector<128x128xf32>
    %207 = tpu.matmul %204, %206, %cst_73 {dimension_numbers = #tpu.dot_dimension_numbers<[1], [0], [0], [1], [0, 0, 1, 1], [], []>} : vector<128x512xbf16>, vector<512x128xbf16>, vector<128x128xf32> -> vector<128x128xf32>
    %c0_74 = arith.constant 0 : index
    %c0_75 = arith.constant 0 : index
    %c0_76 = arith.constant 0 : index
    %208 = vector.load %arg14[%c0_74, %c0_75, %c0_76] : memref<1x1x128xf32, #tpu.memory_space<vmem>>, vector<1x1x128xf32>
    %209 = vector.shape_cast %208 : vector<1x1x128xf32> to vector<1x128xf32>
    %210 = vector.broadcast %209 : vector<1x128xf32> to vector<128x128xf32>
    %211 = arith.addf %207, %210 : vector<128x128xf32>
    %212 = vector.shape_cast %211 : vector<128x128xf32> to vector<1x128x128xf32>
    %213 = arith.addf %158, %212 : vector<1x128x128xf32>
    %c0_77 = arith.constant 0 : index
    %c0_78 = arith.constant 0 : index
    %c0_79 = arith.constant 0 : index
    %214 = vector.load %arg20[%c0_77, %c0_78, %c0_79] : memref<1x128x128xf32, #tpu.memory_space<vmem>>, vector<1x128x128xf32>
    tpu.vector_store %arg20[%c0_77, %c0_78, %c0_79], %213 {strides = array<i32>} : memref<1x128x128xf32, #tpu.memory_space<vmem>>, vector<1x128x128xf32>,
    %c1_i32 = arith.constant 1 : i32
    %215 = arith.cmpi eq, %arg1, %c1_i32 : i32
    %216 = arith.extui %215 : i1 to i32
    %c0_i32_80 = arith.constant 0 : i32
    %217 = arith.cmpi ne, %216, %c0_i32_80 : i32
    scf.if %217 {
      %c0_81 = arith.constant 0 : index
      %c0_82 = arith.constant 0 : index
      %218 = vector.load %arg15[%c0_81, %c0_82] : memref<1x128xf32, #tpu.memory_space<vmem>>, vector<1x128xf32>
      %c0_83 = arith.constant 0 : index
      %c0_84 = arith.constant 0 : index
      %219 = vector.load %arg16[%c0_83, %c0_84] : memref<1x128xf32, #tpu.memory_space<vmem>>, vector<1x128xf32>
      %cst_85 = arith.constant dense<0.000000e+00> : vector<1x128xf32>
      %220 = vector.multi_reduction <add>, %213, %cst_85 [2] : vector<1x128x128xf32> to vector<1x128xf32>
      %221 = vector.shape_cast %220 : vector<1x128xf32> to vector<1x128x1xf32>
      %cst_86 = arith.constant 1.280000e+02 : f32
      %222 = vector.broadcast %cst_86 : f32 to vector<1x128x1xf32>
      %223 = arith.divf %221, %222 : vector<1x128x1xf32>
      %224 = vector.broadcast %223 : vector<1x128x1xf32> to vector<1x128x128xf32>
      %225 = arith.subf %213, %224 : vector<1x128x128xf32>
      %226 = arith.mulf %225, %225 : vector<1x128x128xf32>
      %cst_87 = arith.constant dense<0.000000e+00> : vector<1x128xf32>
      %227 = vector.multi_reduction <add>, %226, %cst_87 [2] : vector<1x128x128xf32> to vector<1x128xf32>
      %228 = vector.shape_cast %227 : vector<1x128xf32> to vector<1x128x1xf32>
      %cst_88 = arith.constant 1.280000e+02 : f32
      %229 = vector.broadcast %cst_88 : f32 to vector<1x128x1xf32>
      %230 = arith.divf %228, %229 : vector<1x128x1xf32>
      %231 = vector.broadcast %223 : vector<1x128x1xf32> to vector<1x128x128xf32>
      %232 = arith.subf %213, %231 : vector<1x128x128xf32>
      %cst_89 = arith.constant 9.99999974E-6 : f32
      %233 = vector.broadcast %cst_89 : f32 to vector<1x128x1xf32>
      %234 = arith.addf %230, %233 : vector<1x128x1xf32>
      %235 = math.rsqrt %234 : vector<1x128x1xf32>
      %236 = vector.broadcast %235 : vector<1x128x1xf32> to vector<1x128x128xf32>
      %237 = arith.mulf %232, %236 : vector<1x128x128xf32>
      %238 = vector.shape_cast %218 : vector<1x128xf32> to vector<1x1x128xf32>
      %239 = vector.broadcast %238 : vector<1x1x128xf32> to vector<1x128x128xf32>
      %240 = arith.mulf %237, %239 : vector<1x128x128xf32>
      %241 = vector.shape_cast %219 : vector<1x128xf32> to vector<1x1x128xf32>
      %242 = vector.broadcast %241 : vector<1x1x128xf32> to vector<1x128x128xf32>
      %243 = arith.addf %240, %242 : vector<1x128x128xf32>
      %244 = vector.shape_cast %243 : vector<1x128x128xf32> to vector<128x128xf32>
      %245 = arith.truncf %244 : vector<128x128xf32> to vector<128x128xbf16>
      %c0_90 = arith.constant 0 : index
      %c0_91 = arith.constant 0 : index
      %246 = vector.load %arg17[%c0_90, %c0_91] : memref<128x128xbf16, #tpu.memory_space<vmem>>, vector<128x128xbf16>
      %cst_92 = arith.constant dense<0.000000e+00> : vector<128x128xf32>
      %247 = tpu.matmul %245, %246, %cst_92 {dimension_numbers = #tpu.dot_dimension_numbers<[1], [0], [0], [1], [0, 0, 1, 1], [], []>} : vector<128x128xbf16>, vector<128x128xbf16>, vector<128x128xf32> -> vector<128x128xf32>
      %c0_93 = arith.constant 0 : index
      %c0_94 = arith.constant 0 : index
      %248 = vector.load %arg18[%c0_93, %c0_94] : memref<1x128xf32, #tpu.memory_space<vmem>>, vector<1x128xf32>
      %249 = vector.broadcast %248 : vector<1x128xf32> to vector<128x128xf32>
      %250 = arith.addf %247, %249 : vector<128x128xf32>
      %251 = vector.shape_cast %250 : vector<128x128xf32> to vector<1x128x128xf32>
      %c0_95 = arith.constant 0 : index
      %c0_96 = arith.constant 0 : index
      %c0_97 = arith.constant 0 : index
      %252 = vector.load %arg19[%c0_95, %c0_96, %c0_97] : memref<1x128x128xf32, #tpu.memory_space<vmem>>, vector<1x128x128xf32>
      tpu.vector_store %arg19[%c0_95, %c0_96, %c0_97], %251 {strides = array<i32>} : memref<1x128x128xf32, #tpu.memory_space<vmem>>, vector<1x128x128xf32>,
    } else {
    }
    return
  }
  func.func @transform_0(%arg0: i32, %arg1: i32) -> (i32, i32, i32) {
    %c0_i32 = arith.constant 0 : i32
    %c0_i32_0 = arith.constant 0 : i32
    %c0_i32_1 = arith.constant 0 : i32
    return %arg0, %c0_i32, %c0_i32_0 : i32, i32, i32
  }
  func.func @transform_1(%arg0: i32, %arg1: i32) -> (i32, i32, i32) {
    %c0_i32 = arith.constant 0 : i32
    %c0_i32_0 = arith.constant 0 : i32
    %c0_i32_1 = arith.constant 0 : i32
    return %arg1, %c0_i32, %c0_i32_0 : i32, i32, i32
  }
  func.func @transform_2(%arg0: i32, %arg1: i32) -> (i32, i32, i32) {
    %c0_i32 = arith.constant 0 : i32
    %c0_i32_0 = arith.constant 0 : i32
    %c0_i32_1 = arith.constant 0 : i32
    return %arg1, %c0_i32, %c0_i32_0 : i32, i32, i32
  }
  func.func @transform_3(%arg0: i32, %arg1: i32) -> (i32, i32, i32) {
    %c0_i32 = arith.constant 0 : i32
    %c0_i32_0 = arith.constant 0 : i32
    %c0_i32_1 = arith.constant 0 : i32
    return %arg1, %c0_i32, %c0_i32_0 : i32, i32, i32
  }
  func.func @transform_4(%arg0: i32, %arg1: i32) -> (i32, i32, i32) {
    %c0_i32 = arith.constant 0 : i32
    %c0_i32_0 = arith.constant 0 : i32
    %c0_i32_1 = arith.constant 0 : i32
    return %arg1, %c0_i32, %c0_i32_0 : i32, i32, i32
  }
  func.func @transform_5(%arg0: i32, %arg1: i32) -> (i32, i32, i32) {
    %c0_i32 = arith.constant 0 : i32
    %c0_i32_0 = arith.constant 0 : i32
    %c0_i32_1 = arith.constant 0 : i32
    return %arg1, %c0_i32, %c0_i32_0 : i32, i32, i32
  }
  func.func @transform_6(%arg0: i32, %arg1: i32) -> (i32, i32, i32) {
    %c0_i32 = arith.constant 0 : i32
    %c0_i32_0 = arith.constant 0 : i32
    %c0_i32_1 = arith.constant 0 : i32
    return %arg1, %c0_i32, %c0_i32_0 : i32, i32, i32
  }
  func.func @transform_7(%arg0: i32, %arg1: i32) -> (i32, i32, i32) {
    %c0_i32 = arith.constant 0 : i32
    %c0_i32_0 = arith.constant 0 : i32
    %c0_i32_1 = arith.constant 0 : i32
    return %arg1, %c0_i32, %c0_i32_0 : i32, i32, i32
  }
  func.func @transform_8(%arg0: i32, %arg1: i32) -> (i32, i32, i32) {
    %c0_i32 = arith.constant 0 : i32
    %c0_i32_0 = arith.constant 0 : i32
    %c0_i32_1 = arith.constant 0 : i32
    return %arg1, %c0_i32, %c0_i32_0 : i32, i32, i32
  }
  func.func @transform_9(%arg0: i32, %arg1: i32) -> (i32, i32, i32) {
    %c0_i32 = arith.constant 0 : i32
    %c0_i32_0 = arith.constant 0 : i32
    %c0_i32_1 = arith.constant 0 : i32
    return %arg1, %c0_i32, %c0_i32_0 : i32, i32, i32
  }
  func.func @transform_10(%arg0: i32, %arg1: i32) -> (i32, i32, i32) {
    %c0_i32 = arith.constant 0 : i32
    %c0_i32_0 = arith.constant 0 : i32
    %c0_i32_1 = arith.constant 0 : i32
    return %arg1, %c0_i32, %c0_i32_0 : i32, i32, i32
  }
  func.func @transform_11(%arg0: i32, %arg1: i32) -> (i32, i32, i32) {
    %c0_i32 = arith.constant 0 : i32
    %c0_i32_0 = arith.constant 0 : i32
    %c0_i32_1 = arith.constant 0 : i32
    return %arg1, %c0_i32, %c0_i32_0 : i32, i32, i32
  }
  func.func @transform_12(%arg0: i32, %arg1: i32) -> (i32, i32, i32) {
    %c0_i32 = arith.constant 0 : i32
    %c0_i32_0 = arith.constant 0 : i32
    %c0_i32_1 = arith.constant 0 : i32
    return %arg1, %c0_i32, %c0_i32_0 : i32, i32, i32
  }
  func.func @transform_13(%arg0: i32, %arg1: i32) -> (i32, i32) {
    %c0_i32 = arith.constant 0 : i32
    %c0_i32_0 = arith.constant 0 : i32
    %c0_i32_1 = arith.constant 0 : i32
    return %c0_i32, %c0_i32_0 : i32, i32
  }
  func.func @transform_14(%arg0: i32, %arg1: i32) -> (i32, i32) {
    %c0_i32 = arith.constant 0 : i32
    %c0_i32_0 = arith.constant 0 : i32
    %c0_i32_1 = arith.constant 0 : i32
    return %c0_i32, %c0_i32_0 : i32, i32
  }
  func.func @transform_15(%arg0: i32, %arg1: i32) -> (i32, i32) {
    %c0_i32 = arith.constant 0 : i32
    %c0_i32_0 = arith.constant 0 : i32
    %c0_i32_1 = arith.constant 0 : i32
    return %c0_i32, %c0_i32_0 : i32, i32
  }
  func.func @transform_16(%arg0: i32, %arg1: i32) -> (i32, i32) {
    %c0_i32 = arith.constant 0 : i32
    %c0_i32_0 = arith.constant 0 : i32
    %c0_i32_1 = arith.constant 0 : i32
    return %c0_i32, %c0_i32_0 : i32, i32
  }
  func.func @transform_17(%arg0: i32, %arg1: i32) -> (i32, i32, i32) {
    %c0_i32 = arith.constant 0 : i32
    %c0_i32_0 = arith.constant 0 : i32
    %c0_i32_1 = arith.constant 0 : i32
    return %arg0, %c0_i32, %c0_i32_0 : i32, i32, i32
  }
}

</mosaic_0001>

<bundles_post_ra>
// kernel: tpu_custom_call.1
= control target key start
LH: loop header
LB: loop body
LE: loop exit
PB: predicated region body
PF: predicated region fallthrough
CT: control target
= control target key end

     0   :  { %s12949_s0 = inlined_call_operand.hbm [shape: f32[2,128,128], index: 0, kind: input, shape index: {}]   ;;  %s12950_s1 = inlined_call_operand.hbm [shape: f32[2,1,128], index: 1, kind: input, shape index: {}]   ;;  %s12951_s2 = inlined_call_operand.hbm [shape: f32[2,1,128], index: 2, kind: input, shape index: {}]   ;;  %s12952_s3 = inlined_call_operand.hbm [shape: bf16[2,128,384], index: 3, kind: input, shape index: {}]   ;;  %s12953_s4 = inlined_call_operand.hbm [shape: f32[2,1,384], index: 4, kind: input, shape index: {}]   ;;  %s12954_s5 = inlined_call_operand.hbm [shape: bf16[2,128,128], index: 5, kind: input, shape index: {}]   ;;  %s12955_s6 = inlined_call_operand.hbm [shape: f32[2,1,128], index: 6, kind: input, shape index: {}]   ;;  %s12956_s7 = inlined_call_operand.hbm [shape: f32[2,1,128], index: 7, kind: input, shape index: {}]   ;;  %s12957_s8 = inlined_call_operand.hbm [shape: f32[2,1,128], index: 8, kind: input, shape index: {}]   ;;  %s12958_s9 = inlined_call_operand.hbm [shape: bf16[2,128,512], index: 9, kind: input, shape index: {}]   ;;  %s12959_s10 = inlined_call_operand.hbm [shape: f32[2,1,512], index: 10, kind: input, shape index: {}]   ;;  %s12960_s11 = inlined_call_operand.hbm [shape: bf16[2,512,128], index: 11, kind: input, shape index: {}]   ;;  %s12961_s12 = inlined_call_operand.hbm [shape: f32[2,1,128], index: 12, kind: input, shape index: {}]   ;;  %s12962_s13 = inlined_call_operand.hbm [shape: f32[1,128], index: 13, kind: input, shape index: {}]   ;;  %s12963_s14 = inlined_call_operand.hbm [shape: f32[1,128], index: 14, kind: input, shape index: {}]   ;;  %s12964_s15 = inlined_call_operand.hbm [shape: bf16[128,128], index: 15, kind: input, shape index: {}]   ;;  %s12965_s16 = inlined_call_operand.hbm [shape: f32[1,128], index: 16, kind: input, shape index: {}]   ;;  %s12966_s17 = inlined_call_operand.hbm [shape: f32[2,128,128], index: 17, kind: output, shape index: {}]  }
   0x1   :  { %13110 = sst [smem:[#allocation93_spill]] %s12949_s0 }
   0x2   :  { %13111 = sst [smem:[#allocation94_spill]] %s12950_s1 }
   0x3   :  { %13112 = sst [smem:[#allocation95_spill]] %s12951_s2 }
   0x4   :  { %13113 = sst [smem:[#allocation96_spill]] %s12952_s3 }
   0x5   :  { %13114 = sst [smem:[#allocation97_spill]] %s12953_s4 }
   0x6   :  { %13115 = sst [smem:[#allocation98_spill]] %s12954_s5 }
   0x7   :  { %13116 = sst [smem:[#allocation99_spill]] %s12955_s6 }
   0x8   :  { %13117 = sst [smem:[#allocation100_spill]] %s12956_s7 }
   0x9   :  { %13118 = sst [smem:[#allocation101_spill]] %s12957_s8 }
   0xa   :  { %13119 = sst [smem:[#allocation102_spill]] %s12958_s9 }
   0xb   :  { %13120 = sst [smem:[#allocation103_spill]] %s12959_s10 }
   0xc   :  { %13121 = sst [smem:[#allocation104_spill]] %s12960_s11 }
   0xd   :  { %13122 = sst [smem:[#allocation105_spill]] %s12961_s12 }
   0xe   :  { %13123 = sst [smem:[#allocation106_spill]] %s12962_s13 }
   0xf   :  { %13124 = sst [smem:[#allocation107_spill]] %s12963_s14 }
  0x10   :  { %13125 = sst [smem:[#allocation108_spill]] %s12964_s15 }
  0x11   :  { %13126 = sst [smem:[#allocation109_spill]] %s12965_s16 }
  0x12   :  { %13127 = sst [smem:[#allocation110_spill]] %s12966_s17 }
  0x13   :  { %22 = vsyncpa [#allocation4], 0 }
  0x14   :  { %24 = vsyncpa [#allocation4 + $0x1], 0 }
  0x15   :  { %25 = vsyncpa [#allocation7], 0 }
  0x16   :  { %27 = vsyncpa [#allocation7 + $0x1], 0 }
  0x17   :  { %28 = vsyncpa [#allocation10], 0 }
  0x18   :  { %30 = vsyncpa [#allocation10 + $0x1], 0 }
  0x19   :  { %31 = vsyncpa [#allocation13], 0 }
  0x1a   :  { %33 = vsyncpa [#allocation13 + $0x1], 0 }
  0x1b   :  { %34 = vsyncpa [#allocation16], 0 }
  0x1c   :  { %36 = vsyncpa [#allocation16 + $0x1], 0 }
  0x1d   :  { %37 = vsyncpa [#allocation19], 0 }
  0x1e   :  { %39 = vsyncpa [#allocation19 + $0x1], 0 }
  0x1f   :  { %40 = vsyncpa [#allocation22], 0 }
  0x20   :  { %42 = vsyncpa [#allocation22 + $0x1], 0 }
  0x21   :  { %43 = vsyncpa [#allocation25], 0 }
  0x22   :  { %44 = vsyncpa [#allocation28], 0 }
  0x23   :  { %45 = vsyncpa [#allocation5], 0 }
  0x24   :  { %47 = vsyncpa [#allocation5 + $0x1], 0  ;;  %s9609_s24 = smov 0   ;;  %s9611_s25 = smov 0  }
  0x25   :  { %s9613_s26 = smov 0   ;;  %s9615_s27 = smov 0  }
  0x26   :  { %s9617_s28 = smov 0   ;;  %s9619_s29 = smov 0  }
  0x27   :  { %s9621_s0 = smov 0   ;;  %s9623_s30 = smov 0  }
  0x28   :  { %s9625_s18 = smov 0   ;;  %s9627_s19 = smov 0  }
  0x29   :  { %s9629_s1 = smov 0  }
  0x2a LB: > { %13128 = sst [smem:[#allocation41_spill]] %s9448_s25  ;;  %s9663_s20 = sadd.s32 4294967295, %s9484_s1   ;;  %s9484_s1 = sphi %s9629_s1, %s53_s1   ;;  %s9480_s19 = sphi %s9627_s19, %s13404_s19   ;;  %s9476_s18 = sphi %s9625_s18, %s13409_s18   ;;  %s9472_s30 = sphi %s9623_s30, %s13402_s30   ;;  %s9468_s0 = sphi %s9621_s0, %s13408_s0   ;;  %s9464_s29 = sphi %s9619_s29, %s13407_s29   ;;  %s9460_s28 = sphi %s9617_s28, %s13406_s28   ;;  %s9456_s27 = sphi %s9615_s27, %s13401_s27   ;;  %s9452_s26 = sphi %s9613_s26, %s13405_s26   ;;  %s9448_s25 = sphi %s9611_s25, %s13400_s25   ;;  %s9444_s24 = sphi %s9609_s24, %s13399_s24  }
  0x2b   : > { %13129 = sst [smem:[#allocation42_spill]] %s9452_s26  ;;  %p12982_p0 = scmp.eq.s32.totalorder %s9484_s1, 0 }
  0x2c   : > { %13130 = sst [smem:[#allocation43_spill]] %s9456_s27  ;;  %p12981_p1 = scmp.eq.s32.totalorder %s9663_s20, 0 }
  0x2d   : > { %13131 = sst [smem:[#allocation44_spill]] %s9460_s28  ;;  %p105_p2 = scmp.ne.s32.totalorder %s9452_s26, %s9448_s25 }
  0x2e   : > { %13132 = sst [smem:[#allocation45_spill]] %s9468_s0  ;;  %p111_p3 = scmp.ne.s32.totalorder %s9448_s25, %s9444_s24 }
  0x2f   : > { %13133 = sst [smem:[#allocation46_spill]] %s9472_s30  ;;  %p107_p5 = por %p105_p2, %p12982_p0 }
  0x30   : > { %13134 = sst [smem:[#allocation47_spill]] %s9480_s19  ;;  %p6734_p6 = scmp.ge.s32.totalorder %s9484_s1, 1 }
  0x31   : > { %13135 = sst [smem:[#allocation48_spill]] %s9663_s20  ;;  %p9676_p7 = por %p111_p3, %p12981_p1 }
  0x32   : > { %p518_p8 = scmp.lt.s32.totalorder %s9484_s1, 5  ;;  %s9486_s23 = smov [#allocation24]  }
  0x33   : > { %s13136_s21 = scalar_select %p9676_p7, 1, 0 }
  0x34   : > { %p9681_p9 = pnand %p6734_p6, %p518_p8  ;;  %s531_s17 = sshll.u32 %s9486_s23, 4  ;;  %s532_s17 = int_to_ptr.vmem [resolvable:$true] %s531_s17 }
  0x35   : > { %13137 = sst [smem:[#allocation49_spill]] %s13136_s21  ;;  %p12980_p11 = scmp.lt.s32.totalorder %s9484_s1, 4 }
  0x36   : > { %s13138_s22 = scalar_select %p9681_p9, 1, 0 }
  0x37   : > { %p7902_p10 = pneg %p9681_p9  ;;  %s9689_s24 = sand.u32 1, %s9452_s26  }
  0x38   : > { %13139 = sst [smem:[#allocation50_spill]] %s13138_s22  ;;  %p9699_p13 = pnand %p12980_p11, %p107_p5 }
  0x39   : > { %p9693_p12 = pnand %p7902_p10, %p12981_p1  ;;  %s9487_s21 = smov [#allocation27]  }
  0x3a   : > { %s13141_s0 = scalar_select %p9699_p13, 1, 0 }
  0x3b   : > { %s13140_s30 = scalar_select %p9693_p12, 1, 0 }
  0x3c   : > { %s552_s25 = sshll.u32 %s9487_s21, 4  ;;  %s13142_s13 = sld [smem:[#allocation106_spill]]  ;;  %s553_s25 = int_to_ptr.vmem [resolvable:$true] %s552_s25 }
  0x3d   : > { %p9711_p3 = pneg %p9693_p12 }
  0x3f   : > { %s13143_s6 = scalar_select %p9711_p3, 1, 0 }
  0x42   : > { %s8828_s22 = scalar_lea.hbm %s13142_s13, 16 }
  0x43   : > { %p8829_p2 = scmp.ne.s32.totalorder %s13142_s13, %s8828_s22  ;;  %p8835_p8 = scmp.lt.u32.totalorder %s8828_s22, %s13142_s13 }
  0x45   : > { %p8831_p5 = pnand %p9711_p3, %p8829_p2 }
  0x47   : > { %p8832_p6 = pneg %p8831_p5 }
  0x49   : > { %p8837_p10 = pnand %p8835_p8, %p8832_p6 }
  0x4b   : > { %8840 = shalt.err (!%p8837_p10)
}
  0x4c   : > { %s8841_s12 = scalar_lea.vmem %s532_s17, 16  ;;  %s8848_s8 = scalar_lea.vmem %s532_s17, 32 }
  0x4d   : > { %p8842_p11 = scmp.ne.s32.totalorder %s532_s17, %s8841_s12  ;;  %p8849_p0 = scmp.lt.s32.totalorder %s532_s17, %s532_s17 }
  0x4e   : > { %p8850_p7 = scmp.lt.s32.totalorder %s8848_s8, %s8841_s12 }
  0x4f   : > { %p8844_p4 = pnand %p8842_p11, %p9711_p3 }
  0x50   : > { %p8851_p9 = por %p8850_p7, %p8849_p0 }
  0x51   : > { %p8845_p1 = pneg %p8844_p4 }
  0x53   : > { %p8852_p13 = pnand %p8851_p9, %p8845_p1 }
  0x55   : > { %8855 = shalt.err (!%p8852_p13)
}
  0x56   : > { %7905 = dma.hbm_to_vmem [thread:$0]  (!%p9693_p12), %s13142_s13, 16, %s532_s17, [#allocation25]  }
  0x57   : > { %s13144_s15 = sld [smem:[#allocation108_spill]] }
  0x5d   : > { %s8856_s22 = scalar_lea.hbm %s13144_s15, 1024 }
  0x5e   : > { %p8857_p4 = scmp.ne.s32.totalorder %s13144_s15, %s8856_s22  ;;  %p8863_p7 = scmp.lt.u32.totalorder %s8856_s22, %s13144_s15 }
  0x60   : > { %p8859_p0 = pnand %p8857_p4, %p9711_p3 }
  0x62   : > { %p8860_p1 = pneg %p8859_p0 }
  0x64   : > { %p8865_p9 = pnand %p8863_p7, %p8860_p1 }
  0x66   : > { %8868 = shalt.err (!%p8865_p9)
}
  0x67   : > { %s8869_s10 = scalar_lea.vmem %s553_s25, 1024  ;;  %p8877_p5 = scmp.lt.s32.totalorder %s553_s25, %s553_s25 }
  0x68   : > { %p8870_p11 = scmp.ne.s32.totalorder %s553_s25, %s8869_s10  ;;  %p8878_p6 = scmp.lt.s32.totalorder %s8869_s10, %s8869_s10 }
  0x6a   : > { %p8872_p13 = pnand %p8870_p11, %p9711_p3  ;;  %p8879_p8 = por %p8878_p6, %p8877_p5 }
  0x6c   : > { %p8873_p2 = pneg %p8872_p13 }
  0x6e   : > { %p8880_p10 = pnand %p8879_p8, %p8873_p2 }
  0x70   : > { %8883 = shalt.err (!%p8880_p10)
}
  0x71   : > { %s12991_s17 = smov 64   ;;  %s12993_s26 = smov 4  }
  0x72   : > { %7911 = dma.hbm_to_vmem [thread:$0]  (!%p9693_p12), %s13144_s15, 1024, %s553_s25, [#allocation28], %s12991_s17, %s12991_s17, %s12993_s26  }
  0x73   : > { %s9749_s4 = sand.u32 1, %s9484_s1   ;;  %s9752_s22 = sshll.u32 %s9476_s18, 4 }
  0x74   : > { %s13145_s8 = sld [smem:[#allocation94_spill]]  ;;  %s601_s13 = scalar_lea.vmem [#allocation6], %s9689_s24 }
  0x75   : > { %s608_s20 = sshll.u32 %s601_s13, 4  ;;  %p13146_p0 = scmp.ne.s32.totalorder %s13141_s0, 0  ;;  %s9761_s20 = int_to_ptr.vmem [resolvable:$true] %s608_s20 }
  0x77   : > { %p9768_p1 = pneg %p13146_p0 }
  0x79   : > { %s13147_s2 = scalar_select %p9768_p1, 1, 0 }
  0x7a   : > { %s9758_s10 = scalar_lea.hbm %s13145_s8, %s9752_s22  ;;  %s8889_s17 = scalar_lea.hbm %s13145_s8, 32 }
  0x7b   : > { %s8884_s21 = scalar_lea.hbm %s9758_s10, 16  ;;  %p8890_p11 = scmp.lt.u32.totalorder %s9758_s10, %s13145_s8 }
  0x7c   : > { %p8885_p4 = scmp.ne.s32.totalorder %s9758_s10, %s8884_s21  ;;  %p8891_p13 = scmp.lt.u32.totalorder %s8889_s17, %s8884_s21 }
  0x7d   : > { %p8893_p5 = scmp.lt.u32.totalorder %s8884_s21, %s9758_s10 }
  0x7e   : > { %p8887_p7 = pnand %p9768_p1, %p8885_p4  ;;  %p8892_p2 = por %p8891_p13, %p8890_p11 }
  0x80   : > { %p8888_p9 = pneg %p8887_p7  ;;  %p8894_p6 = por %p8893_p5, %p8892_p2 }
  0x82   : > { %p8895_p8 = pnand %p8894_p6, %p8888_p9 }
  0x84   : > { %8898 = shalt.err (!%p8895_p8)
}
  0x85   : > { %s8899_s25 = scalar_lea.vmem %s9761_s20, 16  ;;  %s9490_s23 = smov [#allocation6]  }
  0x86   : > { %p8900_p10 = scmp.ne.s32.totalorder %s9761_s20, %s8899_s25  ;;  %s8904_s12 = sshll.u32 %s9490_s23, 4  ;;  %s8905_s12 = int_to_ptr.vmem [resolvable:$false] %s8904_s12 }
  0x87   : > { %s8906_s26 = scalar_lea.vmem %s8905_s12, 32  ;;  %p8907_p12 = scmp.lt.s32.totalorder %s9761_s20, %s8905_s12 }
  0x88   : > { %p8902_p4 = pnand %p8900_p10, %p9768_p1  ;;  %p8908_p3 = scmp.lt.s32.totalorder %s8906_s26, %s8899_s25 }
  0x8a   : > { %p8903_p7 = pneg %p8902_p4  ;;  %p8909_p11 = por %p8908_p3, %p8907_p12 }
  0x8c   : > { %p8910_p13 = pnand %p8909_p11, %p8903_p7 }
  0x8e   : > { %8913 = shalt.err (!%p8910_p13)
}
  0x8f   : > { %s13148_s17 = scalar_lea.sflag [#allocation7], %s9749_s4  ;;  %s7852_s21 = smul.u32 192, %s9689_s24 }
  0x90   : > { %7921 = dma.hbm_to_vmem [thread:$0]  (!%p13146_p0), %s9758_s10, 16, %s9761_s20, %s13148_s17  }
  0x91   : > { %s7853_s13 = smul.u32 3072, %s9476_s18  ;;  %s13149_s3 = sld [smem:[#allocation96_spill]] }
  0x92   : > { %s636_s26 = scalar_lea.vmem [#allocation9], %s7852_s21  ;;  %s6747_s15 = sshll.u32 %s9689_s24, 6 }
  0x93   : > { %s643_s8 = sshll.u32 %s636_s26, 4  ;;  %s13003_s27 = scalar_lea.sflag [#allocation10], %s9749_s4  ;;  %s9800_s8 = int_to_ptr.vmem [resolvable:$true] %s643_s8 }
  0x97   : > { %s9798_s25 = scalar_lea.hbm %s13149_s3, %s7853_s13  ;;  %s8919_s17 = scalar_lea.hbm %s13149_s3, 6144 }
  0x98   : > { %s8914_s28 = scalar_lea.hbm %s9798_s25, 3072  ;;  %p8920_p2 = scmp.lt.u32.totalorder %s9798_s25, %s13149_s3 }
  0x99   : > { %p8915_p12 = scmp.ne.s32.totalorder %s9798_s25, %s8914_s28  ;;  %p8921_p5 = scmp.lt.u32.totalorder %s8919_s17, %s8914_s28 }
  0x9a   : > { %p8923_p8 = scmp.lt.u32.totalorder %s8914_s28, %s9798_s25 }
  0x9b   : > { %p8917_p3 = pnand %p8915_p12, %p9768_p1  ;;  %p8922_p6 = por %p8921_p5, %p8920_p2 }
  0x9d   : > { %p8918_p9 = pneg %p8917_p3  ;;  %p8924_p10 = por %p8923_p8, %p8922_p6 }
  0x9f   : > { %p8925_p4 = pnand %p8924_p10, %p8918_p9 }
  0xa1   : > { %8928 = shalt.err (!%p8925_p4)
}
  0xa2   : > { %s8929_s21 = scalar_lea.vmem %s9800_s8, 3072  ;;  %s9491_s12 = smov [#allocation9]  }
  0xa3   : > { %p8930_p7 = scmp.ne.s32.totalorder %s9800_s8, %s8929_s21  ;;  %s8934_s26 = sshll.u32 %s9491_s12, 4  ;;  %s8935_s26 = int_to_ptr.vmem [resolvable:$false] %s8934_s26 }
  0xa4   : > { %s8936_s20 = scalar_lea.vmem %s8935_s26, 6144  ;;  %p8937_p12 = scmp.lt.s32.totalorder %s9800_s8, %s8935_s26 }
  0xa5   : > { %p8932_p11 = pnand %p8930_p7, %p9768_p1  ;;  %p8938_p3 = scmp.lt.s32.totalorder %s8936_s20, %s8929_s21 }
  0xa7   : > { %p8933_p13 = pneg %p8932_p11  ;;  %p8939_p2 = por %p8938_p3, %p8937_p12 }
  0xa9   : > { %p8940_p5 = pnand %p8939_p2, %p8933_p13 }
  0xab   : > { %8943 = shalt.err (!%p8940_p5)
}
  0xac   : > { %s9492_s28 = smov 192   ;;  %s9493_s10 = smov 12  }
  0xad   : > { %7927 = dma.hbm_to_vmem [thread:$0]  (!%p13146_p0), %s9798_s25, 3072, %s9800_s8, %s13003_s27, %s9492_s28, %s9492_s28, %s9493_s10  }
  0xae   : > { %s7023_s17 = sshll.u32 %s9476_s18, 10  ;;  %s13150_s5 = sld [smem:[#allocation98_spill]] }
  0xaf   : > { %s676_s12 = scalar_lea.vmem [#allocation12], %s6747_s15  ;;  %s13002_s20 = scalar_lea.sflag [#allocation13], %s9749_s4 }
  0xb0   : > { %s683_s26 = sshll.u32 %s676_s12, 4  ;;  %s9835_s26 = int_to_ptr.vmem [resolvable:$true] %s683_s26 }
  0xb4   : > { %s9831_s21 = scalar_lea.hbm %s13150_s5, %s7023_s17  ;;  %s8949_s28 = scalar_lea.hbm %s13150_s5, 2048 }
  0xb5   : > { %s8944_s3 = scalar_lea.hbm %s9831_s21, 1024  ;;  %p8950_p10 = scmp.lt.u32.totalorder %s9831_s21, %s13150_s5 }
  0xb6   : > { %p8945_p9 = scmp.ne.s32.totalorder %s9831_s21, %s8944_s3  ;;  %p8951_p4 = scmp.lt.u32.totalorder %s8949_s28, %s8944_s3 }
  0xb7   : > { %p8953_p11 = scmp.lt.u32.totalorder %s8944_s3, %s9831_s21 }
  0xb8   : > { %p8947_p6 = pnand %p8945_p9, %p9768_p1  ;;  %p8952_p7 = por %p8951_p4, %p8950_p10 }
  0xba   : > { %p8948_p8 = pneg %p8947_p6  ;;  %p8954_p13 = por %p8953_p11, %p8952_p7 }
  0xbc   : > { %p8955_p12 = pnand %p8954_p13, %p8948_p8 }
  0xbe   : > { %8958 = shalt.err (!%p8955_p12)
}
  0xbf   : > { %s8959_s15 = scalar_lea.vmem %s9835_s26, 1024  ;;  %s9494_s13 = smov [#allocation12]  }
  0xc0   : > { %p8960_p3 = scmp.ne.s32.totalorder %s9835_s26, %s8959_s15  ;;  %s8964_s23 = sshll.u32 %s9494_s13, 4  ;;  %s8965_s23 = int_to_ptr.vmem [resolvable:$false] %s8964_s23 }
  0xc1   : > { %s8966_s12 = scalar_lea.vmem %s8965_s23, 2048  ;;  %p8967_p9 = scmp.lt.s32.totalorder %s9835_s26, %s8965_s23 }
  0xc2   : > { %p8962_p2 = pnand %p8960_p3, %p9768_p1  ;;  %p8968_p6 = scmp.lt.s32.totalorder %s8966_s12, %s8959_s15 }
  0xc4   : > { %p8963_p5 = pneg %p8962_p2  ;;  %p8969_p10 = por %p8968_p6, %p8967_p9 }
  0xc6   : > { %p8970_p4 = pnand %p8969_p10, %p8963_p5 }
  0xc8   : > { %8973 = shalt.err (!%p8970_p4)
}
  0xc9   : > { %s13151_s3 = smov 4   ;;  %s13152_s8 = smov 64  }
  0xca   : > { %7933 = dma.hbm_to_vmem [thread:$0]  (!%p13146_p0), %s9831_s21, 1024, %s9835_s26, %s13002_s20, %s13152_s8, %s13152_s8, %s13151_s3  }
  0xcb   : > { %s13153_s7 = sld [smem:[#allocation100_spill]]  ;;  %s713_s17 = scalar_lea.vmem [#allocation15], %s9689_s24 }
  0xcc   : > { %s720_s15 = sshll.u32 %s713_s17, 4  ;;  %s6753_s13 = sshll.u32 %s9689_s24, 8  ;;  %s9871_s15 = int_to_ptr.vmem [resolvable:$true] %s720_s15 }
  0xcd   : > { %s13004_s23 = scalar_lea.sflag [#allocation16], %s9749_s4 }
  0xd1   : > { %s9868_s10 = scalar_lea.hbm %s13153_s7, %s9752_s22  ;;  %s8979_s25 = scalar_lea.hbm %s13153_s7, 32 }
  0xd2   : > { %s8974_s12 = scalar_lea.hbm %s9868_s10, 16  ;;  %p8980_p13 = scmp.lt.u32.totalorder %s9868_s10, %s13153_s7 }
  0xd3   : > { %p8975_p8 = scmp.ne.s32.totalorder %s9868_s10, %s8974_s12  ;;  %p8981_p12 = scmp.lt.u32.totalorder %s8979_s25, %s8974_s12 }
  0xd4   : > { %p8983_p2 = scmp.lt.u32.totalorder %s8974_s12, %s9868_s10 }
  0xd5   : > { %p8977_p7 = pnand %p8975_p8, %p9768_p1  ;;  %p8982_p3 = por %p8981_p12, %p8980_p13 }
  0xd7   : > { %p8978_p11 = pneg %p8977_p7  ;;  %p8984_p5 = por %p8983_p2, %p8982_p3 }
  0xd9   : > { %p8985_p9 = pnand %p8984_p5, %p8978_p11 }
  0xdb   : > { %8988 = shalt.err (!%p8985_p9)
}
  0xdc   : > { %s8989_s17 = scalar_lea.vmem %s9871_s15, 16  ;;  %s9495_s21 = smov [#allocation15]  }
  0xdd   : > { %p8990_p6 = scmp.ne.s32.totalorder %s9871_s15, %s8989_s17  ;;  %s8994_s26 = sshll.u32 %s9495_s21, 4  ;;  %s8995_s26 = int_to_ptr.vmem [resolvable:$false] %s8994_s26 }
  0xde   : > { %s8996_s20 = scalar_lea.vmem %s8995_s26, 32  ;;  %p8997_p8 = scmp.lt.s32.totalorder %s9871_s15, %s8995_s26 }
  0xdf   : > { %p8992_p10 = pnand %p8990_p6, %p9768_p1  ;;  %p8998_p7 = scmp.lt.s32.totalorder %s8996_s20, %s8989_s17 }
  0xe1   : > { %p8993_p4 = pneg %p8992_p10  ;;  %p8999_p13 = por %p8998_p7, %p8997_p8 }
  0xe3   : > { %p9000_p12 = pnand %p8999_p13, %p8993_p4 }
  0xe5   : > { %9003 = shalt.err (!%p9000_p12)
}
  0xe6   : > { %7939 = dma.hbm_to_vmem [thread:$0]  (!%p13146_p0), %s9868_s10, 16, %s9871_s15, %s13004_s23  }
  0xe7   : > { %s7024_s12 = sshll.u32 %s9476_s18, 12  ;;  %s13154_s9 = sld [smem:[#allocation102_spill]] }
  0xe8   : > { %s748_s21 = scalar_lea.vmem [#allocation18], %s6753_s13  ;;  %s13009_s20 = scalar_lea.sflag [#allocation19], %s9749_s4 }
  0xe9   : > { %s755_s26 = sshll.u32 %s748_s21, 4  ;;  %s9908_s26 = int_to_ptr.vmem [resolvable:$true] %s755_s26 }
  0xed   : > { %s9904_s17 = scalar_lea.hbm %s13154_s9, %s7024_s12  ;;  %s9009_s25 = scalar_lea.hbm %s13154_s9, 8192 }
  0xee   : > { %s9004_s27 = scalar_lea.hbm %s9904_s17, 4096  ;;  %p9010_p5 = scmp.lt.u32.totalorder %s9904_s17, %s13154_s9 }
  0xef   : > { %p9005_p11 = scmp.ne.s32.totalorder %s9904_s17, %s9004_s27  ;;  %p9011_p9 = scmp.lt.u32.totalorder %s9009_s25, %s9004_s27 }
  0xf0   : > { %p9013_p10 = scmp.lt.u32.totalorder %s9004_s27, %s9904_s17 }
  0xf1   : > { %p9007_p3 = pnand %p9005_p11, %p9768_p1  ;;  %p9012_p6 = por %p9011_p9, %p9010_p5 }
  0xf3   : > { %p9008_p2 = pneg %p9007_p3  ;;  %p9014_p4 = por %p9013_p10, %p9012_p6 }
  0xf5   : > { %p9015_p8 = pnand %p9014_p4, %p9008_p2 }
  0xf7   : > { %9018 = shalt.err (!%p9015_p8)
}
  0xf8   : > { %s9019_s21 = scalar_lea.vmem %s9908_s26, 4096  ;;  %s9496_s10 = smov [#allocation18]  }
  0xf9   : > { %p9020_p7 = scmp.ne.s32.totalorder %s9908_s26, %s9019_s21  ;;  %s9024_s15 = sshll.u32 %s9496_s10, 4  ;;  %s9025_s15 = int_to_ptr.vmem [resolvable:$false] %s9024_s15 }
  0xfa   : > { %s9026_s23 = scalar_lea.vmem %s9025_s15, 8192  ;;  %p9027_p11 = scmp.lt.s32.totalorder %s9908_s26, %s9025_s15 }
  0xfb   : > { %p9022_p13 = pnand %p9020_p7, %p9768_p1  ;;  %p9028_p3 = scmp.lt.s32.totalorder %s9026_s23, %s9019_s21 }
  0xfd   : > { %p9023_p12 = pneg %p9022_p13  ;;  %p9029_p5 = por %p9028_p3, %p9027_p11 }
  0xff   : > { %p9030_p9 = pnand %p9029_p5, %p9023_p12 }
 0x101   : > { %9033 = shalt.err (!%p9030_p9)
}
 0x102   : > { %s9497_s27 = smov 256   ;;  %s9498_s25 = smov 16  }
 0x103   : > { %7945 = dma.hbm_to_vmem [thread:$0]  (!%p13146_p0), %s9904_s17, 4096, %s9908_s26, %s13009_s20, %s9497_s27, %s9497_s27, %s9498_s25  }
 0x104   : > { %s13155_s11 = sld [smem:[#allocation104_spill]]  ;;  %s788_s15 = scalar_lea.vmem [#allocation21], %s6753_s13 }
 0x105   : > { %s795_s23 = sshll.u32 %s788_s15, 4  ;;  %s9499_s5 = smov [#allocation26]   ;;  %s9943_s23 = int_to_ptr.vmem [resolvable:$true] %s795_s23 }
 0x106   : > { %s9945_s7 = sshll.u32 %s9499_s5, 4  ;;  %s13008_s9 = scalar_lea.sflag [#allocation22], %s9749_s4  ;;  %s543_s7 = int_to_ptr.vmem [resolvable:$true] %s9945_s7 }
 0x10a   : > { %s9939_s21 = scalar_lea.hbm %s13155_s11, %s7024_s12  ;;  %s9039_s27 = scalar_lea.hbm %s13155_s11, 8192 }
 0x10b   : > { %s9034_s17 = scalar_lea.hbm %s9939_s21, 4096  ;;  %p9040_p4 = scmp.lt.u32.totalorder %s9939_s21, %s13155_s11 }
 0x10c   : > { %p9035_p2 = scmp.ne.s32.totalorder %s9939_s21, %s9034_s17  ;;  %p9041_p8 = scmp.lt.u32.totalorder %s9039_s27, %s9034_s17 }
 0x10d   : > { %p9043_p13 = scmp.lt.u32.totalorder %s9034_s17, %s9939_s21 }
 0x10e   : > { %p9037_p6 = pnand %p9035_p2, %p9768_p1  ;;  %p9042_p7 = por %p9041_p8, %p9040_p4 }
 0x110   : > { %p9038_p10 = pneg %p9037_p6  ;;  %p9044_p12 = por %p9043_p13, %p9042_p7 }
 0x112   : > { %p9045_p11 = pnand %p9044_p12, %p9038_p10 }
 0x114   : > { %9048 = shalt.err (!%p9045_p11)
}
 0x115   : > { %s9049_s5 = scalar_lea.vmem %s9943_s23, 4096  ;;  %s9500_s13 = smov [#allocation21]  }
 0x116   : > { %p9050_p3 = scmp.ne.s32.totalorder %s9943_s23, %s9049_s5  ;;  %s9054_s10 = sshll.u32 %s9500_s13, 4  ;;  %s9055_s10 = int_to_ptr.vmem [resolvable:$false] %s9054_s10 }
 0x117   : > { %s9056_s15 = scalar_lea.vmem %s9055_s10, 8192  ;;  %p9057_p2 = scmp.lt.s32.totalorder %s9943_s23, %s9055_s10 }
 0x118   : > { %p9052_p5 = pnand %p9050_p3, %p9768_p1  ;;  %p9058_p6 = scmp.lt.s32.totalorder %s9056_s15, %s9049_s5 }
 0x11a   : > { %p9053_p9 = pneg %p9052_p5  ;;  %p9059_p4 = por %p9058_p6, %p9057_p2 }
 0x11c   : > { %p9060_p8 = pnand %p9059_p4, %p9053_p9 }
 0x11e   : > { %9063 = shalt.err (!%p9060_p8)
}
 0x11f   : > { %7951 = dma.hbm_to_vmem [thread:$0]  (!%p13146_p0), %s9939_s21, 4096, %s9943_s23, %s13008_s9, %s13152_s8, %s13152_s8, %s13151_s3  }
 0x120   : > { %s13156_s14 = sld [smem:[#allocation107_spill]]  ;;  %p13157_p7 = scmp.ne.s32.totalorder %s13143_s6, 0 }
 0x126   : > { %s9064_s26 = scalar_lea.hbm %s13156_s14, 16 }
 0x127   : > { %p9065_p10 = scmp.ne.s32.totalorder %s13156_s14, %s9064_s26  ;;  %p9071_p11 = scmp.lt.u32.totalorder %s9064_s26, %s13156_s14 }
 0x129   : > { %p9067_p13 = pnand %p9065_p10, %p13157_p7 }
 0x12b   : > { %p9068_p12 = pneg %p9067_p13 }
 0x12d   : > { %p9073_p3 = pnand %p9071_p11, %p9068_p12 }
 0x12f   : > { %9076 = shalt.err (!%p9073_p3)
}
 0x130   : > { %s9077_s13 = scalar_lea.vmem %s543_s7, 16  ;;  %s9084_s3 = scalar_lea.vmem %s543_s7, 32 }
 0x131   : > { %p9078_p5 = scmp.ne.s32.totalorder %s543_s7, %s9077_s13  ;;  %p9085_p6 = scmp.lt.s32.totalorder %s543_s7, %s543_s7 }
 0x132   : > { %p9086_p4 = scmp.lt.s32.totalorder %s9084_s3, %s9077_s13 }
 0x133   : > { %p9080_p9 = pnand %p9078_p5, %p13157_p7 }
 0x134   : > { %p9087_p8 = por %p9086_p4, %p9085_p6 }
 0x135   : > { %p9081_p2 = pneg %p9080_p9 }
 0x137   : > { %p9088_p0 = pnand %p9087_p8, %p9081_p2 }
 0x139   : > { %9091 = shalt.err (!%p9088_p0)
}
 0x13a   : > { %p13158_p10 = scmp.ne.s32.totalorder %s13140_s30, 0  ;;  %s9501_s23 = smov [#allocation29]  }
 0x13b   : > { %s566_s10 = sshll.u32 %s9501_s23, 4  ;;  %s13159_s16 = sld [smem:[#allocation109_spill]]  ;;  %s567_s10 = int_to_ptr.vmem [resolvable:$true] %s566_s10 }
 0x13c   : > { %7908 = dma.hbm_to_vmem [thread:$0]  (!%p13158_p10), %s13156_s14, 16, %s543_s7, [#allocation25]  }
 0x141   : > { %s9092_s12 = scalar_lea.hbm %s13159_s16, 16 }
 0x142   : > { %p9093_p13 = scmp.ne.s32.totalorder %s13159_s16, %s9092_s12  ;;  %p9099_p11 = scmp.lt.u32.totalorder %s9092_s12, %s13159_s16 }
 0x144   : > { %p9095_p0 = pnand %p9093_p13, %p13157_p7 }
 0x146   : > { %p9096_p12 = pneg %p9095_p0 }
 0x148   : > { %p9101_p3 = pnand %p9099_p11, %p9096_p12 }
 0x14a   : > { %9104 = shalt.err (!%p9101_p3)
}
 0x14b   : > { %s9105_s7 = scalar_lea.vmem %s567_s10, 16  ;;  %s9112_s5 = scalar_lea.vmem %s567_s10, 32 }
 0x14c   : > { %p9106_p5 = scmp.ne.s32.totalorder %s567_s10, %s9105_s7  ;;  %p9113_p6 = scmp.lt.s32.totalorder %s567_s10, %s567_s10 }
 0x14d   : > { %p9114_p4 = scmp.lt.s32.totalorder %s9112_s5, %s9105_s7 }
 0x14e   : > { %p9108_p9 = pnand %p9106_p5, %p13157_p7 }
 0x14f   : > { %p9115_p8 = por %p9114_p4, %p9113_p6 }
 0x150   : > { %p9109_p2 = pneg %p9108_p9 }
 0x152   : > { %p9116_p1 = pnand %p9115_p8, %p9109_p2 }
 0x154   : > { %9119 = shalt.err (!%p9116_p1)
}
 0x155   : > { %s13160_s8 = sld [smem:[#allocation44_spill]]  ;;  %s13161_s6 = sld [smem:[#allocation43_spill]] }
 0x156   : > { %s13162_s21 = sld [smem:[#allocation48_spill]]  ;;  %s6733_s30 = sadd.s32 4294967294, %s9484_s1  }
 0x157   : > { %7914 = dma.hbm_to_vmem [thread:$0]  (!%p13158_p10), %s13159_s16, 16, %s567_s10, [#allocation28]  }
 0x158   : > { %s13163_s23 = sld [smem:[#allocation42_spill]]  ;;  %s62_s15 = sadd.s32 1, %s9476_s18 }
 0x159   : > { %p63_p1 = scmp.ge.s32.totalorder %s62_s15, 2  ;;  %s65_s17 = sadd.s32 1, %s9480_s19 }
 0x15a   : > { %s72_s12 = sadd.s32 1, %s9464_s29  ;;  %p13165_p13 = scmp.eq.s32.totalorder %s9484_s1, 0 }
 0x15b   : > { %p79_p7 = scmp.ne.s32.totalorder %s9464_s29, %s13160_s8  ;;  %s13411_s15 = smov (%p63_p1, %s62_s15), 0 }
 0x15c   : > { %13164 = sst [smem:[#allocation51_spill]] %s13411_s15  ;;  %s13413_s17 = smov (!%p63_p1, %s65_s17), %s9480_s19 }
 0x15d   : > { %p10022_p10 = por %p13165_p13, %p79_p7  ;;  %p85_p0 = scmp.ne.s32.totalorder %s13160_s8, %s13161_s6 }
 0x15e   : > { %p67_p12 = scmp.ge.s32.totalorder %s13413_s17, 2  ;;  %s95_s26 = ssub.s32 %s9476_s18, %s13411_s15 }
 0x15f   : > { %p13167_p11 = scmp.eq.s32.totalorder %s13162_s21, 0  ;;  %p96_p5 = scmp.eq.s32.totalorder %s95_s26, 0 }
 0x160   : > { %s13415_s17 = smov (%p67_p12, %s13413_s17), 0  ;;  %s98_s25 = sadd.s32 1, %s13163_s23 }
 0x161   : > { %p10035_p3 = por %p13167_p11, %p85_p0  ;;  %13169 = sst [smem:[#allocation52_spill]] %s13415_s17 }
 0x162   : > { %p13170_p9 = scmp.eq.s32.totalorder %s13162_s21, 3  ;;  %s69_s7 = ssub.s32 %s9480_s19, %s13415_s17 }
 0x163   : > { %s13168_s27 = scalar_select %p10035_p3, 1, 0 }
 0x164   : > { %p10044_p2 = por %p13170_p9, %p79_p7  ;;  %p511_p6 = scmp.eq.s32.totalorder %s6733_s30, 3 }
 0x165   : > { %p70_p4 = scmp.eq.s32.totalorder %s69_s7, 0  ;;  %s577_s5 = sand.u32 1, %s9464_s29  }
 0x166   : > { %s13171_s28 = scalar_select %p10044_p2, 1, 0 }
 0x167   : > { %s13417_s23 = smov (!%p96_p5, %s13163_s23), %s98_s25  ;;  %p10060_p8 = por %p511_p6, %p85_p0 }
 0x168   : > { %s10055_s13 = scalar_select %p70_p4, %s9464_s29, %s72_s12  }
 0x169   : > { %s13172_s3 = scalar_select %p10060_p8, 1, 0 }
 0x16a   : > { %s6740_s26 = sshll.u32 %s577_s5, 7  ;;  %s7022_s9 = sshll.u32 %s9480_s19, 11 }
 0x16b   : > { %s13173_s11 = sld [smem:[#allocation93_spill]]  ;;  %s581_s30 = scalar_lea.vmem [#allocation3], %s6740_s26 }
 0x16c   : > { %s588_s25 = sshll.u32 %s581_s30, 4  ;;  %p13174_p1 = scmp.lt.s32.totalorder %s9484_s1, 4  ;;  %s10078_s25 = int_to_ptr.vmem [resolvable:$true] %s588_s25 }
 0x16d   : > { %s10080_s6 = scalar_lea.sflag [#allocation4], %s577_s5 }
 0x16e   : > { %p10074_p7 = pnand %p13174_p1, %p10022_p10 }
 0x170   : > { %p9122_p0 = pneg %p10074_p7 }
 0x171   : > { %s10068_s14 = scalar_lea.hbm %s13173_s11, %s7022_s9  ;;  %s9125_s10 = scalar_lea.hbm %s13173_s11, 4096 }
 0x172   : > { %s9120_s9 = scalar_lea.hbm %s10068_s14, 2048  ;;  %p9126_p10 = scmp.lt.u32.totalorder %s10068_s14, %s13173_s11 }
 0x173   : > { %p9121_p13 = scmp.ne.s32.totalorder %s10068_s14, %s9120_s9  ;;  %p9127_p5 = scmp.lt.u32.totalorder %s9125_s10, %s9120_s9 }
 0x174   : > { %p9129_p6 = scmp.lt.u32.totalorder %s9120_s9, %s10068_s14 }
 0x175   : > { %p9123_p12 = pnand %p9122_p0, %p9121_p13  ;;  %p9128_p9 = por %p9127_p5, %p9126_p10 }
 0x177   : > { %p9124_p11 = pneg %p9123_p12  ;;  %p9130_p4 = por %p9129_p6, %p9128_p9 }
 0x179   : > { %p9131_p1 = pnand %p9130_p4, %p9124_p11 }
 0x17b   : > { %9134 = shalt.err (!%p9131_p1)
}
 0x17c   : > { %s9135_s5 = scalar_lea.vmem %s10078_s25, 2048  ;;  %s9502_s21 = smov [#allocation3]  }
 0x17d   : > { %p9136_p13 = scmp.ne.s32.totalorder %s10078_s25, %s9135_s5  ;;  %s9140_s30 = sshll.u32 %s9502_s21, 4  ;;  %s9141_s30 = int_to_ptr.vmem [resolvable:$false] %s9140_s30 }
 0x17e   : > { %s9142_s20 = scalar_lea.vmem %s9141_s30, 4096  ;;  %p9143_p2 = scmp.lt.s32.totalorder %s10078_s25, %s9141_s30 }
 0x17f   : > { %p9138_p12 = pnand %p9136_p13, %p9122_p0  ;;  %p9144_p10 = scmp.lt.s32.totalorder %s9142_s20, %s9135_s5 }
 0x181   : > { %p9139_p8 = pneg %p9138_p12  ;;  %p9145_p5 = por %p9144_p10, %p9143_p2 }
 0x183   : > { %p9146_p9 = pnand %p9145_p5, %p9139_p8 }
 0x185   : > { %9149 = shalt.err (!%p9146_p9)
}
 0x186   : > { %s9503_s9 = smov 128   ;;  %s9504_s12 = smov 8  }
 0x187   : > { %7918 = dma.hbm_to_vmem [thread:$0]  (!%p10074_p7), %s10068_s14, 2048, %s10078_s25, %s10080_s6, %s9503_s9, %s9503_s9, %s9504_s12  }
 0x188   : > { %s13176_s26 = sld [smem:[#allocation95_spill]]  ;;  %s618_s30 = scalar_lea.vmem [#allocation8], %s9689_s24 }
 0x189   : > { %s625_s20 = sshll.u32 %s618_s30, 4  ;;  %s7854_s11 = smul.u32 3, %s9689_s24  ;;  %s626_s20 = int_to_ptr.vmem [resolvable:$true] %s625_s20 }
 0x18a   : > { %s7855_s16 = smul.u32 48, %s9476_s18  ;;  %p13178_p8 = scmp.ne.s32.totalorder %s13147_s2, 0 }
 0x18e   : > { %s13177_s21 = smov %s13176_s26  ;;  %s10112_s5 = scalar_lea.hbm %s13176_s26, %s9752_s22 }
 0x18f   : > { %s9150_s17 = scalar_lea.hbm %s10112_s5, 16  ;;  %s9155_s8 = scalar_lea.hbm %s13177_s21, 32 }
 0x190   : > { %p9151_p2 = scmp.ne.s32.totalorder %s10112_s5, %s9150_s17  ;;  %p9156_p7 = scmp.lt.u32.totalorder %s10112_s5, %s13177_s21 }
 0x191   : > { %p9157_p6 = scmp.lt.u32.totalorder %s9155_s8, %s9150_s17  ;;  %p9159_p1 = scmp.lt.u32.totalorder %s9150_s17, %s10112_s5 }
 0x192   : > { %p9153_p0 = pnand %p9151_p2, %p13178_p8 }
 0x193   : > { %p9158_p4 = por %p9157_p6, %p9156_p7 }
 0x194   : > { %p9154_p11 = pneg %p9153_p0 }
 0x195   : > { %p9160_p13 = por %p9159_p1, %p9158_p4 }
 0x197   : > { %p9161_p12 = pnand %p9160_p13, %p9154_p11 }
 0x199   : > { %9164 = shalt.err (!%p9161_p12)
}
 0x19a   : > { %s9165_s12 = scalar_lea.vmem %s626_s20, 16  ;;  %s9505_s10 = smov [#allocation8]  }
 0x19b   : > { %p9166_p10 = scmp.ne.s32.totalorder %s626_s20, %s9165_s12  ;;  %s9170_s7 = sshll.u32 %s9505_s10, 4  ;;  %s9171_s7 = int_to_ptr.vmem [resolvable:$false] %s9170_s7 }
 0x19c   : > { %s9172_s26 = scalar_lea.vmem %s9171_s7, 32  ;;  %p9173_p2 = scmp.lt.s32.totalorder %s626_s20, %s9171_s7 }
 0x19d   : > { %p9168_p5 = pnand %p9166_p10, %p13178_p8  ;;  %p9174_p0 = scmp.lt.s32.totalorder %s9172_s26, %s9165_s12 }
 0x19f   : > { %p9169_p9 = pneg %p9168_p5  ;;  %p9175_p3 = por %p9174_p0, %p9173_p2 }
 0x1a1   : > { %p9176_p6 = pnand %p9175_p3, %p9169_p9 }
 0x1a3   : > { %9179 = shalt.err (!%p9176_p6)
}
 0x1a4   : > { %p13179_p7 = scmp.ne.s32.totalorder %s13141_s0, 0  ;;  %s13180_s17 = scalar_lea.sflag [#allocation7], %s9749_s4 }
 0x1a5   : > { %s13181_s25 = sld [smem:[#allocation97_spill]]  ;;  %s657_s9 = scalar_lea.vmem [#allocation11], %s7854_s11 }
 0x1a6   : > { %7924 = dma.hbm_to_vmem [thread:$0]  (!%p13179_p7), %s10112_s5, 16, %s626_s20, %s13180_s17  }
 0x1a7   : > { %s665_s12 = sshll.u32 %s657_s9, 4  ;;  %s13183_s26 = sld [smem:[#allocation99_spill]]  ;;  %s666_s12 = int_to_ptr.vmem [resolvable:$true] %s665_s12 }
 0x1ab   : > { %s13182_s8 = smov %s13181_s25  ;;  %s10139_s6 = scalar_lea.hbm %s13181_s25, %s7855_s16 }
 0x1ac   : > { %s9180_s19 = scalar_lea.hbm %s10139_s6, 48  ;;  %s9185_s20 = scalar_lea.hbm %s13182_s8, 96 }
 0x1ad   : > { %s13184_s21 = smov %s13183_s26  ;;  %s10147_s15 = scalar_lea.hbm %s13183_s26, %s9752_s22 }
 0x1ae   : > { %p9181_p3 = scmp.ne.s32.totalorder %s10139_s6, %s9180_s19  ;;  %p9186_p1 = scmp.lt.u32.totalorder %s10139_s6, %s13182_s8 }
 0x1af   : > { %p9187_p13 = scmp.lt.u32.totalorder %s9185_s20, %s9180_s19  ;;  %p9189_p10 = scmp.lt.u32.totalorder %s9180_s19, %s10139_s6 }
 0x1b0   : > { %p9183_p11 = pnand %p9181_p3, %p13178_p8 }
 0x1b1   : > { %p9188_p12 = por %p9187_p13, %p9186_p1 }
 0x1b2   : > { %p9184_p4 = pneg %p9183_p11 }
 0x1b3   : > { %p9190_p5 = por %p9189_p10, %p9188_p12 }
 0x1b5   : > { %p9191_p9 = pnand %p9190_p5, %p9184_p4 }
 0x1b7   : > { %9194 = shalt.err (!%p9191_p9)
}
 0x1b8   : > { %s9195_s11 = scalar_lea.vmem %s666_s12, 48  ;;  %s9506_s14 = smov [#allocation11]  }
 0x1b9   : > { %p9196_p2 = scmp.ne.s32.totalorder %s666_s12, %s9195_s11  ;;  %s9200_s25 = sshll.u32 %s9506_s14, 4  ;;  %s9201_s25 = int_to_ptr.vmem [resolvable:$false] %s9200_s25 }
 0x1ba   : > { %s9202_s9 = scalar_lea.vmem %s9201_s25, 96  ;;  %p9203_p3 = scmp.lt.s32.totalorder %s666_s12, %s9201_s25 }
 0x1bb   : > { %p9198_p0 = pnand %p9196_p2, %p13178_p8  ;;  %p9204_p11 = scmp.lt.s32.totalorder %s9202_s9, %s9195_s11 }
 0x1bd   : > { %p9199_p6 = pneg %p9198_p0  ;;  %p9205_p7 = por %p9204_p11, %p9203_p3 }
 0x1bf   : > { %p9206_p1 = pnand %p9205_p7, %p9199_p6 }
 0x1c1   : > { %9209 = shalt.err (!%p9206_p1)
}
 0x1c2   : > { %p13185_p13 = scmp.ne.s32.totalorder %s13141_s0, 0  ;;  %s13186_s19 = scalar_lea.sflag [#allocation10], %s9749_s4 }
 0x1c3   : > { %s696_s10 = scalar_lea.vmem [#allocation14], %s9689_s24  ;;  %s13187_s5 = sld [smem:[#allocation101_spill]] }
 0x1c4   : > { %7930 = dma.hbm_to_vmem [thread:$0]  (!%p13185_p13), %s10139_s6, 48, %s666_s12, %s13186_s19  }
 0x1c5   : > { %s703_s7 = sshll.u32 %s696_s10, 4  ;;  %s9210_s17 = scalar_lea.hbm %s10147_s15, 16  ;;  %s704_s7 = int_to_ptr.vmem [resolvable:$true] %s703_s7 }
 0x1c6   : > { %p9211_p7 = scmp.ne.s32.totalorder %s10147_s15, %s9210_s17  ;;  %s9215_s14 = scalar_lea.hbm %s13184_s21, 32 }
 0x1c7   : > { %p9216_p10 = scmp.lt.u32.totalorder %s10147_s15, %s13184_s21  ;;  %p9217_p5 = scmp.lt.u32.totalorder %s9215_s14, %s9210_s17 }
 0x1c8   : > { %p9213_p4 = pnand %p9211_p7, %p13178_p8  ;;  %p9219_p2 = scmp.lt.u32.totalorder %s9210_s17, %s10147_s15 }
 0x1c9   : > { %s10173_s20 = scalar_lea.hbm %s13187_s5, %s9752_s22  ;;  %p9218_p9 = por %p9217_p5, %p9216_p10 }
 0x1ca   : > { %p9214_p12 = pneg %p9213_p4 }
 0x1cb   : > { %p9220_p0 = por %p9219_p2, %p9218_p9 }
 0x1cd   : > { %p9221_p6 = pnand %p9220_p0, %p9214_p12 }
 0x1cf   : > { %9224 = shalt.err (!%p9221_p6)
}
 0x1d0   : > { %s9225_s6 = scalar_lea.vmem %s704_s7, 16  ;;  %s9507_s12 = smov [#allocation14]  }
 0x1d1   : > { %p9226_p3 = scmp.ne.s32.totalorder %s704_s7, %s9225_s6  ;;  %s9230_s19 = sshll.u32 %s9507_s12, 4  ;;  %s9231_s19 = int_to_ptr.vmem [resolvable:$false] %s9230_s19 }
 0x1d2   : > { %s9232_s10 = scalar_lea.vmem %s9231_s19, 32  ;;  %p9233_p7 = scmp.lt.s32.totalorder %s704_s7, %s9231_s19 }
 0x1d3   : > { %p9228_p11 = pnand %p9226_p3, %p13178_p8  ;;  %p9234_p4 = scmp.lt.s32.totalorder %s9232_s10, %s9225_s6 }
 0x1d5   : > { %p9229_p1 = pneg %p9228_p11  ;;  %p9235_p13 = por %p9234_p4, %p9233_p7 }
 0x1d7   : > { %p9236_p5 = pnand %p9235_p13, %p9229_p1 }
 0x1d9   : > { %9239 = shalt.err (!%p9236_p5)
}
 0x1da   : > { %p13188_p10 = scmp.ne.s32.totalorder %s13141_s0, 0  ;;  %s13189_s26 = scalar_lea.sflag [#allocation13], %s9749_s4 }
 0x1db   : > { %s730_s16 = scalar_lea.vmem [#allocation17], %s9689_s24  ;;  %s6756_s30 = sshll.u32 %s9689_s24, 2 }
 0x1dc   : > { %7936 = dma.hbm_to_vmem [thread:$0]  (!%p13188_p10), %s10147_s15, 16, %s704_s7, %s13189_s26  }
 0x1dd   : > { %s737_s17 = sshll.u32 %s730_s16, 4  ;;  %s9240_s11 = scalar_lea.hbm %s10173_s20, 16  ;;  %s738_s17 = int_to_ptr.vmem [resolvable:$true] %s737_s17 }
 0x1de   : > { %p9241_p13 = scmp.ne.s32.totalorder %s10173_s20, %s9240_s11  ;;  %s9245_s9 = scalar_lea.hbm %s13187_s5, 32 }
 0x1df   : > { %p9246_p2 = scmp.lt.u32.totalorder %s10173_s20, %s13187_s5  ;;  %p9247_p0 = scmp.lt.u32.totalorder %s9245_s9, %s9240_s11 }
 0x1e0   : > { %p9243_p12 = pnand %p9241_p13, %p13178_p8  ;;  %p9249_p3 = scmp.lt.u32.totalorder %s9240_s11, %s10173_s20 }
 0x1e1   : > { %p9248_p6 = por %p9247_p0, %p9246_p2 }
 0x1e2   : > { %p9244_p9 = pneg %p9243_p12 }
 0x1e3   : > { %p9250_p11 = por %p9249_p3, %p9248_p6 }
 0x1e5   : > { %p9251_p1 = pnand %p9250_p11, %p9244_p9 }
 0x1e7   : > { %9254 = shalt.err (!%p9251_p1)
}
 0x1e8   : > { %s9255_s15 = scalar_lea.vmem %s738_s17, 16  ;;  %s9508_s7 = smov [#allocation17]  }
 0x1e9   : > { %p9256_p7 = scmp.ne.s32.totalorder %s738_s17, %s9255_s15  ;;  %s9260_s19 = sshll.u32 %s9508_s7, 4  ;;  %s9261_s19 = int_to_ptr.vmem [resolvable:$false] %s9260_s19 }
 0x1ea   : > { %s9262_s10 = scalar_lea.vmem %s9261_s19, 32  ;;  %p9263_p13 = scmp.lt.s32.totalorder %s738_s17, %s9261_s19 }
 0x1eb   : > { %p9258_p4 = pnand %p9256_p7, %p13178_p8  ;;  %p9264_p12 = scmp.lt.s32.totalorder %s9262_s10, %s9255_s15 }
 0x1ed   : > { %p9259_p5 = pneg %p9258_p4  ;;  %p9265_p10 = por %p9264_p12, %p9263_p13 }
 0x1ef   : > { %p9266_p0 = pnand %p9265_p10, %p9259_p5 }
 0x1f1   : > { %9269 = shalt.err (!%p9266_p0)
}
 0x1f2   : > { %p13190_p2 = scmp.ne.s32.totalorder %s13141_s0, 0  ;;  %s13191_s26 = scalar_lea.sflag [#allocation16], %s9749_s4 }
 0x1f3   : > { %s7025_s16 = sshll.u32 %s9476_s18, 6  ;;  %s769_s11 = scalar_lea.vmem [#allocation20], %s6756_s30 }
 0x1f4   : > { %7942 = dma.hbm_to_vmem [thread:$0]  (!%p13190_p2), %s10173_s20, 16, %s738_s17, %s13191_s26  }
 0x1f5   : > { %s777_s14 = sshll.u32 %s769_s11, 4  ;;  %s13192_s6 = sld [smem:[#allocation103_spill]]  ;;  %s778_s14 = int_to_ptr.vmem [resolvable:$true] %s777_s14 }
 0x1fb   : > { %s775_s12 = scalar_lea.hbm %s13192_s6, %s7025_s16  ;;  %s9275_s10 = scalar_lea.hbm %s13192_s6, 128 }
 0x1fc   : > { %s9270_s15 = scalar_lea.hbm %s775_s12, 64  ;;  %p9276_p3 = scmp.lt.u32.totalorder %s775_s12, %s13192_s6 }
 0x1fd   : > { %p9271_p10 = scmp.ne.s32.totalorder %s775_s12, %s9270_s15  ;;  %p9277_p11 = scmp.lt.u32.totalorder %s9275_s10, %s9270_s15 }
 0x1fe   : > { %p9279_p7 = scmp.lt.u32.totalorder %s9270_s15, %s775_s12 }
 0x1ff   : > { %p9273_p9 = pnand %p9271_p10, %p13178_p8  ;;  %p9278_p1 = por %p9277_p11, %p9276_p3 }
 0x201   : > { %p9274_p6 = pneg %p9273_p9  ;;  %p9280_p4 = por %p9279_p7, %p9278_p1 }
 0x203   : > { %p9281_p5 = pnand %p9280_p4, %p9274_p6 }
 0x205   : > { %9284 = shalt.err (!%p9281_p5)
}
 0x206   : > { %s9285_s17 = scalar_lea.vmem %s778_s14, 64  ;;  %s9509_s30 = smov [#allocation20]  }
 0x207   : > { %p9286_p13 = scmp.ne.s32.totalorder %s778_s14, %s9285_s17  ;;  %s9290_s26 = sshll.u32 %s9509_s30, 4  ;;  %s9291_s26 = int_to_ptr.vmem [resolvable:$false] %s9290_s26 }
 0x208   : > { %s9292_s16 = scalar_lea.vmem %s9291_s26, 128  ;;  %p9293_p10 = scmp.lt.s32.totalorder %s778_s14, %s9291_s26 }
 0x209   : > { %p9288_p12 = pnand %p9286_p13, %p13178_p8  ;;  %p9294_p9 = scmp.lt.s32.totalorder %s9292_s16, %s9285_s17 }
 0x20b   : > { %p9289_p0 = pneg %p9288_p12  ;;  %p9295_p2 = por %p9294_p9, %p9293_p10 }
 0x20d   : > { %p9296_p3 = pnand %p9295_p2, %p9289_p0 }
 0x20f   : > { %9299 = shalt.err (!%p9296_p3)
}
 0x210   : > { %p13193_p11 = scmp.ne.s32.totalorder %s13141_s0, 0  ;;  %s13194_s5 = scalar_lea.sflag [#allocation19], %s9749_s4 }
 0x211   : > { %s13195_s9 = sld [smem:[#allocation105_spill]]  ;;  %s808_s7 = scalar_lea.vmem [#allocation23], %s9689_s24 }
 0x212   : > { %7948 = dma.hbm_to_vmem [thread:$0]  (!%p13193_p11), %s775_s12, 64, %s778_s14, %s13194_s5  }
 0x213   : > { %s815_s19 = sshll.u32 %s808_s7, 4  ;;  %s816_s19 = int_to_ptr.vmem [resolvable:$true] %s815_s19 }
 0x217   : > { %s10239_s15 = scalar_lea.hbm %s13195_s9, %s9752_s22  ;;  %s9305_s14 = scalar_lea.hbm %s13195_s9, 32 }
 0x218   : > { %s9300_s10 = scalar_lea.hbm %s10239_s15, 16  ;;  %p9306_p7 = scmp.lt.u32.totalorder %s10239_s15, %s13195_s9 }
 0x219   : > { %p9301_p2 = scmp.ne.s32.totalorder %s10239_s15, %s9300_s10  ;;  %p9307_p4 = scmp.lt.u32.totalorder %s9305_s14, %s9300_s10 }
 0x21a   : > { %p9309_p13 = scmp.lt.u32.totalorder %s9300_s10, %s10239_s15 }
 0x21b   : > { %p9303_p6 = pnand %p9301_p2, %p13178_p8  ;;  %p9308_p5 = por %p9307_p4, %p9306_p7 }
 0x21d   : > { %p9304_p1 = pneg %p9303_p6  ;;  %p9310_p12 = por %p9309_p13, %p9308_p5 }
 0x21f   : > { %p9311_p0 = pnand %p9310_p12, %p9304_p1 }
 0x221   : > { %9314 = shalt.err (!%p9311_p0)
}
 0x222   : > { %s9315_s24 = scalar_lea.vmem %s816_s19, 16  ;;  %s9510_s22 = smov [#allocation23]  }
 0x223   : > { %p9316_p10 = scmp.ne.s32.totalorder %s816_s19, %s9315_s24  ;;  %s9320_s26 = sshll.u32 %s9510_s22, 4  ;;  %s9321_s26 = int_to_ptr.vmem [resolvable:$false] %s9320_s26 }
 0x224   : > { %s9322_s16 = scalar_lea.vmem %s9321_s26, 32  ;;  %p9323_p2 = scmp.lt.s32.totalorder %s816_s19, %s9321_s26 }
 0x225   : > { %p9318_p9 = pnand %p9316_p10, %p13178_p8  ;;  %p9324_p6 = scmp.lt.s32.totalorder %s9322_s16, %s9315_s24 }
 0x227   : > { %p9319_p3 = pneg %p9318_p9  ;;  %p9325_p11 = por %p9324_p6, %p9323_p2 }
 0x229   : > { %p9326_p4 = pnand %p9325_p11, %p9319_p3 }
 0x22b   : > { %9329 = shalt.err (!%p9326_p4)
}
 0x22c   : > { %p13196_p7 = scmp.ne.s32.totalorder %s13141_s0, 0  ;;  %s13197_s5 = scalar_lea.sflag [#allocation22], %s9749_s4 }
 0x22d   : > { %s13198_s11 = sld [smem:[#allocation50_spill]] }
 0x22e   : > { %7954 = dma.hbm_to_vmem [thread:$0]  (!%p13196_p7), %s10239_s15, 16, %s816_s19, %s13197_s5  }
 0x233   : > { %p13199_p1 = scmp.ne.s32.totalorder %s13198_s11, 0 }
 0x235   : > { %824 = sbr.rel (%p13199_p1) target bundleno = 5216 (0x1460), region = 88 }
 0x23c   : > { %s13200_s2 = sld [smem:[#allocation44_spill]]  ;;  %p13201_p8 = scmp.ne.s32.totalorder %s13168_s27, 0 }
 0x242   : > { %s10264_s25 = sand.u32 1, %s13200_s2  }
 0x243   : > { %s6764_s7 = sshll.u32 %s10264_s25, 7  ;;  %s827_s10 = scalar_lea.sflag [#allocation4], %s10264_s25 }
 0x244   : > { %s10270_s20 = scalar_lea.vmem [#allocation3], %s6764_s7 }
 0x245   : > { %9403 = dma.done.wait (%p13201_p8), %s827_s10, 2048  }
 0x246   : > { %9405 = vsyncadd (%p13201_p8), %s827_s10, 4294965248  ;;  %s13202_s0 = sld [smem:[#allocation48_spill]]  ;;  %s13203_s4 = sld [smem:[#allocation41_spill]] }
 0x247   : > { %s13204_s15 = sld [smem:[#allocation49_spill]] }
 0x24c   : > { %s10277_s19 = sand.u32 1, %s13202_s0   ;;  %s10280_s17 = sand.u32 1, %s13203_s4  }
 0x24d   : > { %s836_s14 = scalar_lea.sflag [#allocation7], %s10277_s19  ;;  %s838_s12 = scalar_lea.vmem [#allocation6], %s10280_s17 }
 0x24e   : > { %p13205_p11 = scmp.ne.s32.totalorder %s13204_s15, 0 }
 0x250   : > { %9407 = dma.done.wait (%p13205_p11), %s836_s14, 32  }
 0x251   : > { %9409 = vsyncadd (%p13205_p11), %s836_s14, 4294967264  ;;  %s7856_s27 = smul.u32 192, %s10280_s17  ;;  %s846_s30 = scalar_lea.vmem [#allocation8], %s10280_s17 }
 0x252   : > { %s852_s24 = scalar_lea.sflag [#allocation10], %s10277_s19 }
 0x253   : > { %s10291_s22 = scalar_lea.vmem [#allocation9], %s7856_s27 }
 0x254   : > { %9411 = dma.done.wait (%p13205_p11), %s852_s24, 3120  }
 0x255   : > { %9413 = vsyncadd (%p13205_p11), %s852_s24, 4294964176  ;;  %s7857_s26 = smul.u32 3, %s10280_s17  ;;  %s6765_s16 = sshll.u32 %s10280_s17, 6 }
 0x256   : > { %s870_s11 = scalar_lea.sflag [#allocation13], %s10277_s19  ;;  %s10302_s2 = scalar_lea.vmem [#allocation12], %s6765_s16 }
 0x257   : > { %s10299_s5 = scalar_lea.vmem [#allocation11], %s7857_s26 }
 0x258   : > { %9415 = dma.done.wait (%p13205_p11), %s870_s11, 1040  }
 0x259   : > { %9417 = vsyncadd (%p13205_p11), %s870_s11, 4294966256  ;;  %s887_s4 = scalar_lea.sflag [#allocation16], %s10277_s19 }
 0x25a   : > { %9419 = dma.done.wait (%p13205_p11), %s887_s4, 32  }
 0x25b   : > { %9421 = vsyncadd (%p13205_p11), %s887_s4, 4294967264  ;;  %s6766_s27 = sshll.u32 %s10280_s17, 8  ;;  %s903_s26 = scalar_lea.sflag [#allocation19], %s10277_s19 }
 0x25c   : > { %s10318_s16 = scalar_lea.vmem [#allocation18], %s6766_s27 }
 0x25d   : > { %9423 = dma.done.wait (%p13205_p11), %s903_s26, 4160  }
 0x25e   : > { %9425 = vsyncadd (%p13205_p11), %s903_s26, 4294963136  ;;  %s6767_s11 = sshll.u32 %s10280_s17, 2  ;;  %s921_s4 = scalar_lea.sflag [#allocation22], %s10277_s19 }
 0x25f   : > { %s10325_s14 = scalar_lea.vmem [#allocation20], %s6767_s11  ;;  %s10328_s10 = scalar_lea.vmem [#allocation21], %s6766_s27 }
 0x260   : > { %9427 = dma.done.wait (%p13205_p11), %s921_s4, 4112  }
 0x261   : > { %9429 = vsyncadd (%p13205_p11), %s921_s4, 4294963184  ;;  %s932_s24 = scalar_lea.vmem [#allocation23], %s10280_s17  ;;  %p13206_p5 = scmp.eq.s32.totalorder %s13202_s0, 0 }
 0x263   : > { %9431 = dma.done.wait (%p13206_p5), [#allocation25], 32   ;;  %p13207_p13 = pmov %p13206_p5 }
 0x264   : > { %p13208_p12 = pmov %p13206_p5 }
 0x265   : > { %9433 = vsyncadd (%p13207_p13), [#allocation25], 4294967264 }
 0x266   : > { %9435 = dma.done.wait (%p13208_p12), [#allocation28], 1040   ;;  %p13209_p0 = pmov %p13206_p5 }
 0x267   : > { %s10345_s19 = scalar_lea.vmem [#allocation30], %s6764_s7  ;;  %s13210_s15 = sld [smem:[#allocation45_spill]] }
 0x268   : > { %9437 = vsyncadd (%p13209_p0), [#allocation28], 4294966256 }
 0x26d   : > { %p6774_p10 = scmp.ne.s32.totalorder %s13210_s15, 0 }
 0x26e   : > { %v1058_v0 = vld [vmem:[%s10270_s20] sm:$0xff] (!%p6774_p10)  ;;  %v1059_v1 = vld [vmem:[%s10270_s20 + $0x8] sm:$0xff] (!%p6774_p10)  ;;  %v1060_v2 = vld [vmem:[%s10270_s20 + $0x10] sm:$0xff] (!%p6774_p10) }
 0x26f   : > { %1057 = sbr.rel (%p6774_p10) target bundleno = 631 (0x277), region = 160  ;;  %1074 = vst [vmem:[#allocation2] sm:$0xff] (!%p6774_p10), %v1058_v0  ;;  %1075 = vst [vmem:[#allocation2 + $0x8] sm:$0xff] (!%p6774_p10), %v1059_v1  ;;  %v1061_v3 = vld [vmem:[%s10270_s20 + $0x18] sm:$0xff] (!%p6774_p10)  ;;  %v1062_v4 = vld [vmem:[%s10270_s20 + $0x20] sm:$0xff] (!%p6774_p10) }
 0x270   : > { %1076 = vst [vmem:[#allocation2 + $0x10] sm:$0xff] (!%p6774_p10), %v1060_v2  ;;  %v1063_v5 = vld [vmem:[%s10270_s20 + $0x28] sm:$0xff] (!%p6774_p10)  ;;  %1077 = vst [vmem:[#allocation2 + $0x18] sm:$0xff] (!%p6774_p10), %v1061_v3  ;;  %v1064_v6 = vld [vmem:[%s10270_s20 + $0x30] sm:$0xff] (!%p6774_p10) }
 0x271   : > { %1078 = vst [vmem:[#allocation2 + $0x20] sm:$0xff] (!%p6774_p10), %v1062_v4  ;;  %1079 = vst [vmem:[#allocation2 + $0x28] sm:$0xff] (!%p6774_p10), %v1063_v5  ;;  %v1065_v7 = vld [vmem:[%s10270_s20 + $0x38] sm:$0xff] (!%p6774_p10)  ;;  %v1066_v8 = vld [vmem:[%s10270_s20 + $0x40] sm:$0xff] (!%p6774_p10) }
 0x272   : > { %1080 = vst [vmem:[#allocation2 + $0x30] sm:$0xff] (!%p6774_p10), %v1064_v6  ;;  %1081 = vst [vmem:[#allocation2 + $0x38] sm:$0xff] (!%p6774_p10), %v1065_v7  ;;  %v1067_v9 = vld [vmem:[%s10270_s20 + $0x48] sm:$0xff] (!%p6774_p10)  ;;  %v1068_v10 = vld [vmem:[%s10270_s20 + $0x50] sm:$0xff] (!%p6774_p10) }
 0x273   : > { %1082 = vst [vmem:[#allocation2 + $0x40] sm:$0xff] (!%p6774_p10), %v1066_v8  ;;  %v1069_v11 = vld [vmem:[%s10270_s20 + $0x58] sm:$0xff] (!%p6774_p10)  ;;  %1083 = vst [vmem:[#allocation2 + $0x48] sm:$0xff] (!%p6774_p10), %v1067_v9  ;;  %v1070_v12 = vld [vmem:[%s10270_s20 + $0x60] sm:$0xff] (!%p6774_p10) }
 0x274   : > { %1084 = vst [vmem:[#allocation2 + $0x50] sm:$0xff] (!%p6774_p10), %v1068_v10  ;;  %1085 = vst [vmem:[#allocation2 + $0x58] sm:$0xff] (!%p6774_p10), %v1069_v11  ;;  %v1071_v13 = vld [vmem:[%s10270_s20 + $0x68] sm:$0xff] (!%p6774_p10)  ;;  %v1072_v14 = vld [vmem:[%s10270_s20 + $0x70] sm:$0xff] (!%p6774_p10) }
 0x275   : > { %1086 = vst [vmem:[#allocation2 + $0x60] sm:$0xff] (!%p6774_p10), %v1070_v12  ;;  %1087 = vst [vmem:[#allocation2 + $0x68] sm:$0xff] (!%p6774_p10), %v1071_v13  ;;  %v1073_v15 = vld [vmem:[%s10270_s20 + $0x78] sm:$0xff] (!%p6774_p10) }
 0x276   : > { %1088 = vst [vmem:[#allocation2 + $0x70] sm:$0xff] %v1072_v14  ;;  %1089 = vst [vmem:[#allocation2 + $0x78] sm:$0xff] %v1073_v15 }
 0x277 PF: > { %v1090_v16 = vld [vmem:[#allocation2] sm:$0xff]  ;;  %v1091_v18 = vld [vmem:[#allocation2 + $0x8] sm:$0xff]  ;;  %vm1831_vm0 = vcmask 261120   ;;  %s9512_s7 = smov 96   ;;  %s9514_s20 = smov 64  }
 0x278   : > { %v1092_v17 = vld [vmem:[#allocation2 + $0x10] sm:$0xff]  ;;  %1108 = vadd.xlane.f32.xlu0 %v1090_v16  ;;  %v1093_v19 = vld [vmem:[#allocation2 + $0x18] sm:$0xff]  ;;  %v8079_v34 = vld [vmem:[%s10291_s22 + $0x1c] ss:$12 sps:$4 sm:$0xff]   ;;  %s9515_s0 = smov 32  }
 0x279   : > { %1112 = vadd.xlane.f32.xlu1 %v1092_v17  ;;  %v1094_v20 = vld [vmem:[#allocation2 + $0x20] sm:$0xff]  ;;  %v1095_v21 = vld [vmem:[#allocation2 + $0x28] sm:$0xff] }
 0x27a   : > { %v10364_v22 = vld [vmem:[#allocation2 + $0x30] sm:$0xff]  ;;  %v10366_v23 = vld [vmem:[#allocation2 + $0x38] sm:$0xff] }
 0x27b   : > { %v10368_v24 = vld [vmem:[#allocation2 + $0x40] sm:$0xff]  ;;  %v10370_v25 = vld [vmem:[#allocation2 + $0x48] sm:$0xff] }
 0x27c   : > { %1110 = vadd.xlane.f32.xlu0 %v1091_v18  ;;  %v10374_v26 = vld [vmem:[#allocation2 + $0x50] sm:$0xff]  ;;  %v10376_v27 = vld [vmem:[#allocation2 + $0x58] sm:$0xff] }
 0x27d   : > { %1114 = vadd.xlane.f32.xlu1 %v1093_v19  ;;  %v10380_v28 = vld [vmem:[#allocation2 + $0x60] sm:$0xff]  ;;  %v10382_v29 = vld [vmem:[#allocation2 + $0x68] sm:$0xff]  ;;  %v10386_v30 = vld [vmem:[#allocation2 + $0x70] sm:$0xff] }
 0x27e   : > { %v10388_v31 = vld [vmem:[#allocation2 + $0x78] sm:$0xff]  ;;  %v8076_v32 = vld [vmem:[%s10291_s22 + $0x4] ss:$12 sps:$4 sm:$0xff]   ;;  %v8078_v33 = vld [vmem:[%s10291_s22] ss:$12 sps:$4 sm:$0xff]  }
 0x27f   : > { %v8081_v35 = vld [vmem:[%s10291_s22 + $0x8] ss:$12 sps:$4 sm:$0xff]   ;;  %1514 = vmatprep.subr.bf16.mxu0 %v8076_v32  ;;  %v8082_v10 = vld [vmem:[%s10291_s22 + $0x18] ss:$12 sps:$4 sm:$0xff]  }
 0x280   : > { %1116 = vadd.xlane.f32.xlu0 %v1094_v20  ;;  %1515 = vmatpush1.bf16.msra.mxu0 %v8078_v33 }
 0x281   : > { %1118 = vadd.xlane.f32.xlu1 %v1095_v21  ;;  %7356 = vmatprep.subr.bf16.mxu1 %v8081_v35 }
 0x282   : > { %1516 = vmatprep.subr.bf16.mxu0 %v8079_v34  ;;  %7357 = vmatpush3.bf16.msra.mxu1 %v8081_v35  ;;  %v8087_v34 = vld [vmem:[%s10291_s22 + $0x4c] ss:$12 sps:$4 sm:$0xff]  }
 0x283   : > { %v8089_v35 = vld [vmem:[%s10291_s22 + $0x38] ss:$12 sps:$4 sm:$0xff]  }
 0x284   : > { %1120 = vadd.xlane.f32.xlu0 %v10364_v22  ;;  %1517 = vmatpush1.bf16.msra.mxu0 %v8082_v10 }
 0x285   : > { %1122 = vadd.xlane.f32.xlu1 %v10366_v23 }
 0x288   : > { %1124 = vadd.xlane.f32.xlu0 %v10368_v24 }
 0x289   : > { %1126 = vadd.xlane.f32.xlu1 %v10370_v25 }
 0x28c   : > { %1128 = vadd.xlane.f32.xlu0 %v10374_v26 }
 0x28d   : > { %1130 = vadd.xlane.f32.xlu1 %v10376_v27 }
 0x290   : > { %1132 = vadd.xlane.f32.xlu0 %v10380_v28 }
 0x291   : > { %1134 = vadd.xlane.f32.xlu1 %v10382_v29 }
 0x294   : > { %1136 = vadd.xlane.f32.xlu0 %v10386_v30 }
 0x295   : > { %1138 = vadd.xlane.f32.xlu1 %v10388_v31 }
 0x305   : > { %v1109_v36 = vpop.xlane.xlu0 %1108 }
 0x306   : > { %v1113_v37 = vpop.xlane.xlu1 %1112  ;;  %v1141_v38 = vmul.f32 0.0078125, %v1109_v36 }
 0x307   : > { %v1143_v39 = vmul.f32 0.0078125, %v1113_v37 }
 0x308   : > { %v10398_v40 = vsub.f32 %v1090_v16, %v1141_v38  ;;  %v8083_v16 = vld [vmem:[%s10291_s22 + $0x34] ss:$12 sps:$4 sm:$0xff]  }
 0x309   : > { %v10400_v41 = vsub.f32 %v1092_v17, %v1143_v39  ;;  %v1111_v42 = vpop.xlane.xlu0 %1110  ;;  %v8085_v17 = vld [vmem:[%s10291_s22 + $0x20] ss:$12 sps:$4 sm:$0xff]   ;;  %1518 = vmatprep.subr.bf16.mxu0 %v8083_v16  ;;  %v8090_v38 = vld [vmem:[%s10291_s22 + $0x48] ss:$12 sps:$4 sm:$0xff]  }
 0x30a   : > { %v1115_v43 = vpop.xlane.xlu1 %1114  ;;  %v1142_v44 = vmul.f32 0.0078125, %v1111_v42  ;;  %v1173_v45 = vmul.f32 %v10398_v40, %v10398_v40  ;;  %7358 = vmatprep.subr.bf16.mxu1 %v8085_v17 }
 0x30b   : > { %v1144_v46 = vmul.f32 0.0078125, %v1115_v43  ;;  %v1175_v47 = vmul.f32 %v10400_v41, %v10400_v41  ;;  %7359 = vmatpush3.bf16.msra.mxu1 %v8085_v17 }
 0x30c   : > { %1189 = vadd.xlane.f32.xlu0 %v1173_v45  ;;  %v10406_v48 = vsub.f32 %v1091_v18, %v1142_v44  ;;  %7360 = vmatprep.subr.bf16.mxu1 %v8089_v35  ;;  %v8091_v45 = vld [vmem:[%s10291_s22 + $0x64] ss:$12 sps:$4 sm:$0xff]  }
 0x30d   : > { %v10408_v49 = vsub.f32 %v1093_v19, %v1144_v46  ;;  %v1117_v50 = vpop.xlane.xlu0 %1116  ;;  %v8093_v46 = vld [vmem:[%s10291_s22 + $0x50] ss:$12 sps:$4 sm:$0xff]  }
 0x30e   : > { %v1119_v51 = vpop.xlane.xlu1 %1118  ;;  %v1145_v52 = vmul.f32 0.0078125, %v1117_v50  ;;  %v1174_v53 = vmul.f32 %v10406_v48, %v10406_v48 }
 0x30f   : > { %v1146_v54 = vmul.f32 0.0078125, %v1119_v51  ;;  %v1176_v55 = vmul.f32 %v10408_v49, %v10408_v49  ;;  %7361 = vmatpush3.bf16.msra.mxu1 %v8089_v35  ;;  %v8097_v51 = vld [vmem:[%s10291_s22 + $0x68] ss:$12 sps:$4 sm:$0xff]  }
 0x310   : > { %1193 = vadd.xlane.f32.xlu0 %v1175_v47  ;;  %1191 = vadd.xlane.f32.xlu1 %v1174_v53  ;;  %v10414_v56 = vsub.f32 %v1094_v20, %v1145_v52  ;;  %v8094_v47 = vld [vmem:[%s10291_s22 + $0x60] ss:$12 sps:$4 sm:$0xff]   ;;  %v8098_v52 = vld [vmem:[%s10291_s22 + $0x78] ss:$12 sps:$4 sm:$0xff]  }
 0x311   : > { %v10416_v57 = vsub.f32 %v1095_v21, %v1146_v54  ;;  %v1121_v58 = vpop.xlane.xlu0 %1120  ;;  %7362 = vmatprep.subr.bf16.mxu1 %v8093_v46  ;;  %v8099_v53 = vld [vmem:[%s10291_s22 + $0x94] ss:$12 sps:$4 sm:$0xff]  }
 0x312   : > { %v1123_v59 = vpop.xlane.xlu1 %1122  ;;  %v1147_v60 = vmul.f32 0.0078125, %v1121_v58  ;;  %v1177_v61 = vmul.f32 %v10414_v56, %v10414_v56  ;;  %v8101_v54 = vld [vmem:[%s10291_s22 + $0x80] ss:$12 sps:$4 sm:$0xff]  }
 0x313   : > { %v1148_v62 = vmul.f32 0.0078125, %v1123_v59  ;;  %v1178_v63 = vmul.f32 %v10416_v57, %v10416_v57  ;;  %7363 = vmatpush3.bf16.msra.mxu1 %v8093_v46  ;;  %v8103_v58 = vld [vmem:[%s10291_s22 + $0xac] ss:$12 sps:$4 sm:$0xff]  }
 0x314   : > { %1195 = vadd.xlane.f32.xlu1 %v1176_v55  ;;  %1197 = vadd.xlane.f32.xlu0 %v1177_v61  ;;  %v10423_v0 = vsub.f32 %v10364_v22, %v1147_v60  ;;  %v8102_v55 = vld [vmem:[%s10291_s22 + $0x90] ss:$12 sps:$4 sm:$0xff]   ;;  %v8105_v59 = vld [vmem:[%s10291_s22 + $0x98] ss:$12 sps:$4 sm:$0xff]   ;;  %v8106_v60 = vld [vmem:[%s10291_s22 + $0xa8] ss:$12 sps:$4 sm:$0xff]  }
 0x315   : > { %v10426_v1 = vsub.f32 %v10366_v23, %v1148_v62  ;;  %v1125_v2 = vpop.xlane.xlu0 %1124  ;;  %v8086_v23 = vld [vmem:[%s10291_s22 + $0x30] ss:$12 sps:$4 sm:$0xff]   ;;  %7364 = vmatprep.subr.bf16.mxu1 %v8097_v51  ;;  %v13021_v62 = vmov 0  }
 0x316   : > { %v1127_v3 = vpop.xlane.xlu1 %1126  ;;  %v1149_v4 = vmul.f32 0.0078125, %v1125_v2  ;;  %v1179_v5 = vmul.f32 %v10423_v0, %v10423_v0  ;;  %1519 = vmatpush1.bf16.msra.mxu0 %v8086_v23  ;;  %v8107_v61 = vld [vmem:[%s10291_s22 + $0xb0] ss:$12 sps:$4 sm:$0xff]   ;;  %1546 = vmatprep.mubr.bf16.mxu0 %v13021_v62 }
 0x317   : > { %v1150_v6 = vmul.f32 0.0078125, %v1127_v3  ;;  %v1180_v7 = vmul.f32 %v10426_v1, %v10426_v1  ;;  %1520 = vmatprep.subr.bf16.mxu0 %v8087_v34  ;;  %7365 = vmatpush3.bf16.msra.mxu1 %v8097_v51 }
 0x318   : > { %1199 = vadd.xlane.f32.xlu1 %v1178_v63  ;;  %1201 = vadd.xlane.f32.xlu0 %v1179_v5  ;;  %v10433_v8 = vsub.f32 %v10368_v24, %v1149_v4 }
 0x319   : > { %v10436_v9 = vsub.f32 %v10370_v25, %v1150_v6  ;;  %v1129_v11 = vpop.xlane.xlu0 %1128  ;;  %7366 = vmatprep.subr.bf16.mxu1 %v8101_v54 }
 0x31a   : > { %v1131_v12 = vpop.xlane.xlu1 %1130  ;;  %v1151_v13 = vmul.f32 0.0078125, %v1129_v11  ;;  %v1181_v14 = vmul.f32 %v10433_v8, %v10433_v8  ;;  %1521 = vmatpush1.bf16.msra.mxu0 %v8090_v38  ;;  %v10496_v38 = vld [vmem:[%s838_s12] ss:$0 sm:$0xff]  ;;  %s13303_s12 = scalar_lea.vmem [#allocation14], %s10280_s17 }
 0x31b   : > { %v1152_v15 = vmul.f32 0.0078125, %v1131_v12  ;;  %v1182_v18 = vmul.f32 %v10436_v9, %v10436_v9  ;;  %1522 = vmatprep.subr.bf16.mxu0 %v8091_v45  ;;  %7367 = vmatpush3.bf16.msra.mxu1 %v8101_v54 }
 0x31c   : > { %1203 = vadd.xlane.f32.xlu1 %v1180_v7  ;;  %1205 = vadd.xlane.f32.xlu0 %v1181_v14  ;;  %v10446_v19 = vsub.f32 %v10374_v26, %v1151_v13 }
 0x31d   : > { %v10449_v20 = vsub.f32 %v10376_v27, %v1152_v15  ;;  %v1133_v21 = vpop.xlane.xlu0 %1132  ;;  %7368 = vmatprep.subr.bf16.mxu1 %v8105_v59 }
 0x31e   : > { %v1135_v22 = vpop.xlane.xlu1 %1134  ;;  %v1153_v24 = vmul.f32 0.0078125, %v1133_v21  ;;  %v1183_v25 = vmul.f32 %v10446_v19, %v10446_v19  ;;  %1523 = vmatpush1.bf16.msra.mxu0 %v8094_v47 }
 0x31f   : > { %v1154_v32 = vmul.f32 0.0078125, %v1135_v22  ;;  %v1184_v26 = vmul.f32 %v10449_v20, %v10449_v20  ;;  %7369 = vmatpush3.bf16.msra.mxu1 %v8105_v59 }
 0x320   : > { %1207 = vadd.xlane.f32.xlu1 %v1182_v18  ;;  %1209 = vadd.xlane.f32.xlu0 %v1183_v25  ;;  %v10457_v27 = vsub.f32 %v10380_v28, %v1153_v24 }
 0x321   : > { %v10460_v33 = vsub.f32 %v10382_v29, %v1154_v32  ;;  %v1137_v36 = vpop.xlane.xlu0 %1136  ;;  %7370 = vmatprep.subr.bf16.mxu1 %v8107_v61 }
 0x322   : > { %v1139_v37 = vpop.xlane.xlu1 %1138  ;;  %v1155_v39 = vmul.f32 0.0078125, %v1137_v36  ;;  %v1185_v42 = vmul.f32 %v10457_v27, %v10457_v27 }
 0x323   : > { %v1156_v43 = vmul.f32 0.0078125, %v1139_v37  ;;  %v1186_v28 = vmul.f32 %v10460_v33, %v10460_v33  ;;  %7371 = vmatpush3.bf16.msra.mxu1 %v8107_v61 }
 0x324   : > { %1211 = vadd.xlane.f32.xlu1 %v1184_v26  ;;  %1213 = vadd.xlane.f32.xlu0 %v1185_v42  ;;  %v10470_v29 = vsub.f32 %v10386_v30, %v1155_v39 }
 0x325   : > { %v10473_v44 = vsub.f32 %v10388_v31, %v1156_v43  ;;  %v8095_v31 = vld [vmem:[%s10291_s22 + $0x7c] ss:$12 sps:$4 sm:$0xff]   ;;  %s13321_s22 = scalar_lea.vmem [#allocation17], %s10280_s17 }
 0x326   : > { %v1187_v50 = vmul.f32 %v10470_v29, %v10470_v29  ;;  %1524 = vmatprep.subr.bf16.mxu0 %v8095_v31  ;;  %v10502_v31 = vld [vmem:[%s846_s30] ss:$0 sm:$0xff]  ;;  %s13320_s30 = scalar_lea.vmem [#allocation15], %s10280_s17  ;;  %s13392_s17 = sld [smem:[#allocation45_spill]] }
 0x327   : > { %v1188_v30 = vmul.f32 %v10473_v44, %v10473_v44  ;;  %1525 = vmatpush1.bf16.msra.mxu0 %v8098_v52 }
 0x328   : > { %1215 = vadd.xlane.f32.xlu1 %v1186_v28  ;;  %1217 = vadd.xlane.f32.xlu0 %v1187_v50 }
 0x329   : > { %1526 = vmatprep.subr.bf16.mxu0 %v8099_v53 }
 0x32b   : > { %1527 = vmatpush1.bf16.msra.mxu0 %v8102_v55 }
 0x32c   : > { %1219 = vadd.xlane.f32.xlu1 %v1188_v30  ;;  %1528 = vmatprep.subr.bf16.mxu0 %v8103_v58  ;;  %p7005_p9 = scmp.ne.s32.totalorder %s13392_s17, 1 }
 0x32f   : > { %1529 = vmatpush1.bf16.msra.mxu0 %v8106_v60 }
 0x399   : > { %v1190_v63 = vpop.xlane.xlu0 %1189 }
 0x39a   : > { %v1221_v2 = vmul.f32 0.0078125, %v1190_v63 }
 0x39c   : > { %v1237_v3 = vadd.f32 1e-05, %v1221_v2 }
 0x39d   : > { %v1192_v4 = vpop.xlane.xlu1 %1191  ;;  %v1194_v5 = vpop.xlane.xlu0 %1193 }
 0x39e   : > { %8196 = vrsqrt.f32 %v1237_v3  ;;  %v1222_v6 = vmul.f32 0.0078125, %v1192_v4  ;;  %v1223_v7 = vmul.f32 0.0078125, %v1194_v5 }
 0x3a0   : > { %v1238_v10 = vadd.f32 1e-05, %v1222_v6  ;;  %v1239_v11 = vadd.f32 1e-05, %v1223_v7 }
 0x3a1   : > { %v1196_v12 = vpop.xlane.xlu1 %1195  ;;  %v1198_v13 = vpop.xlane.xlu0 %1197 }
 0x3a2   : > { %8198 = vrsqrt.f32 %v1238_v10  ;;  %v1224_v14 = vmul.f32 0.0078125, %v1196_v12  ;;  %v1225_v15 = vmul.f32 0.0078125, %v1198_v13 }
 0x3a3   : > { %8200 = vrsqrt.f32 %v1239_v11 }
 0x3a4   : > { %v1240_v16 = vadd.f32 1e-05, %v1224_v14  ;;  %v1241_v17 = vadd.f32 1e-05, %v1225_v15 }
 0x3a5   : > { %v1200_v18 = vpop.xlane.xlu1 %1199  ;;  %v1202_v21 = vpop.xlane.xlu0 %1201 }
 0x3a6   : > { %8202 = vrsqrt.f32 %v1240_v16  ;;  %v1226_v22 = vmul.f32 0.0078125, %v1200_v18  ;;  %v1227_v23 = vmul.f32 0.0078125, %v1202_v21 }
 0x3a7   : > { %8204 = vrsqrt.f32 %v1241_v17 }
 0x3a8   : > { %v8197_v24 = vpop.eup %8196  ;;  %v1242_v25 = vadd.f32 1e-05, %v1226_v22  ;;  %v1243_v32 = vadd.f32 1e-05, %v1227_v23 }
 0x3a9   : > { %v1204_v26 = vpop.xlane.xlu1 %1203  ;;  %v1206_v34 = vpop.xlane.xlu0 %1205  ;;  %v1269_v35 = vmul.f32 %v8197_v24, %v10398_v40 }
 0x3aa   : > { %8206 = vrsqrt.f32 %v1242_v25  ;;  %v1228_v36 = vmul.f32 0.0078125, %v1204_v26  ;;  %v1229_v37 = vmul.f32 0.0078125, %v1206_v34 }
 0x3ab   : > { %8208 = vrsqrt.f32 %v1243_v32  ;;  %v1291_v50 = vmul.f32 %v10496_v38, %v1269_v35 }
 0x3ac   : > { %v8199_v39 = vpop.eup %8198  ;;  %v1244_v42 = vadd.f32 1e-05, %v1228_v36  ;;  %v1245_v43 = vadd.f32 1e-05, %v1229_v37 }
 0x3ad   : > { %v8201_v28 = vpop.eup %8200  ;;  %v1208_v45 = vpop.xlane.xlu1 %1207  ;;  %v1270_v47 = vmul.f32 %v8199_v39, %v10406_v48  ;;  %v1313_v61 = vadd.f32 %v10502_v31, %v1291_v50 }
 0x3ae   : > { %v1210_v46 = vpop.xlane.xlu0 %1209  ;;  %8210 = vrsqrt.f32 %v1244_v42  ;;  %v1230_v40 = vmul.f32 0.0078125, %v1208_v45  ;;  %v1271_v51 = vmul.f32 %v8201_v28, %v10400_v41 }
 0x3af   : > { %v1231_v30 = vmul.f32 0.0078125, %v1210_v46  ;;  %8212 = vrsqrt.f32 %v1245_v43  ;;  %v1292_v52 = vmul.f32 %v10496_v38, %v1270_v47 }
 0x3b0   : > { %v8203_v53 = vpop.eup %8202  ;;  %v1246_v54 = vadd.f32 1e-05, %v1230_v40  ;;  %v1293_v58 = vmul.f32 %v10496_v38, %v1271_v51 }
 0x3b1   : > { %v1247_v55 = vadd.f32 1e-05, %v1231_v30  ;;  %v8205_v59 = vpop.eup %8204  ;;  %v1212_v48 = vpop.xlane.xlu1 %1211  ;;  %v1314_v63 = vadd.f32 %v10502_v31, %v1292_v52  ;;  %v1272_v2 = vmul.f32 %v8203_v53, %v10408_v49 }
 0x3b2   : > { %v1214_v60 = vpop.xlane.xlu0 %1213  ;;  %8214 = vrsqrt.f32 %v1246_v54  ;;  %v1232_v3 = vmul.f32 0.0078125, %v1212_v48  ;;  %v1273_v6 = vmul.f32 %v8205_v59, %v10414_v56  ;;  %v1315_v12 = vadd.f32 %v10502_v31, %v1293_v58 }
 0x3b3   : > { %v1233_v41 = vmul.f32 0.0078125, %v1214_v60  ;;  %8216 = vrsqrt.f32 %v1247_v55  ;;  %v1329_v4 = vpack.c.bf16 %v1314_v63, %v1313_v61  ;;  %v1294_v5 = vmul.f32 %v10496_v38, %v1272_v2 }
 0x3b4   : > { %v8207_v7 = vpop.eup %8206  ;;  %v1248_v10 = vadd.f32 1e-05, %v1232_v3  ;;  %v1295_v17 = vmul.f32 %v10496_v38, %v1273_v6 }
 0x3b5   : > { %v1249_v11 = vadd.f32 1e-05, %v1233_v41  ;;  %v8209_v13 = vpop.eup %8208  ;;  %v1216_v14 = vpop.xlane.xlu1 %1215  ;;  %1547 = vmatmul.mubr.bf16.vlgmr.msra.gmra.mrb[0].mxu0 %v1329_v4  ;;  %7372 = vmatprep.mubr.bf16.mxu1 %v1329_v4  ;;  %v1316_v49 = vadd.f32 %v10502_v31, %v1294_v5  ;;  %v1274_v16 = vmul.f32 %v8207_v7, %v10416_v57 }
 0x3b6   : > { %v1218_v15 = vpop.xlane.xlu0 %1217  ;;  %8218 = vrsqrt.f32 %v1248_v10  ;;  %v1234_v18 = vmul.f32 0.0078125, %v1216_v14  ;;  %1556 = vmatprep.mubr.bf16.mxu0 %v13021_v62  ;;  %v1275_v56 = vmul.f32 %v8209_v13, %v10423_v0  ;;  %v1317_v35 = vadd.f32 %v10502_v31, %v1295_v17 }
 0x3b7   : > { %v1235_v21 = vmul.f32 0.0078125, %v1218_v15  ;;  %8220 = vrsqrt.f32 %v1249_v11  ;;  %v1330_v22 = vpack.c.bf16 %v1316_v49, %v1315_v12  ;;  %v1296_v23 = vmul.f32 %v10496_v38, %v1274_v16  ;;  %v1369_v15 = vld [vmem:[%s10299_s5] sm:$0x7] }
 0x3b8   : > { %v8211_v24 = vpop.eup %8210  ;;  %v1250_v25 = vadd.f32 1e-05, %v1234_v18  ;;  %v1297_v26 = vmul.f32 %v10496_v38, %v1275_v56 }
 0x3b9   : > { %v1251_v32 = vadd.f32 1e-05, %v1235_v21  ;;  %v8213_v34 = vpop.eup %8212  ;;  %v1220_v57 = vpop.xlane.xlu1 %1219  ;;  %7373 = vmatmul.mubr.bf16.vlgmr.msra.gmra.mrb[0].mxu1 %v1330_v22  ;;  %v1318_v36 = vadd.f32 %v10502_v31, %v1296_v23  ;;  %v1276_v37 = vmul.f32 %v8211_v24, %v10426_v1 }
 0x3ba   : > { %8222 = vrsqrt.f32 %v1250_v25  ;;  %v1236_v0 = vmul.f32 0.0078125, %v1220_v57  ;;  %v1277_v39 = vmul.f32 %v8213_v34, %v10433_v8  ;;  %v1319_v46 = vadd.f32 %v10502_v31, %v1297_v26 }
 0x3bb   : > { %8224 = vrsqrt.f32 %v1251_v32  ;;  %v1331_v42 = vpack.c.bf16 %v1318_v36, %v1317_v35  ;;  %v1298_v43 = vmul.f32 %v10496_v38, %v1276_v37 }
 0x3bc   : > { %v8215_v28 = vpop.eup %8214  ;;  %v1252_v45 = vadd.f32 1e-05, %v1236_v0  ;;  %v1299_v1 = vmul.f32 %v10496_v38, %v1277_v39 }
 0x3bd   : > { %v8217_v47 = vpop.eup %8216  ;;  %1557 = vmatmul.mubr.bf16.gmra.mrb[4].mxu0 %v1330_v22  ;;  %7376 = vmatprep.mubr.bf16.mxu1 %v1331_v42  ;;  %v1320_v50 = vadd.f32 %v10502_v31, %v1298_v43  ;;  %v1278_v40 = vmul.f32 %v8215_v28, %v10436_v9 }
 0x3be   : > { %8226 = vrsqrt.f32 %v1252_v45  ;;  %1566 = vmatprep.mubr.bf16.mxu0 %v13021_v62  ;;  %v1279_v8 = vmul.f32 %v8217_v47, %v10446_v19  ;;  %v1321_v55 = vadd.f32 %v10502_v31, %v1299_v1 }
 0x3bf   : > { %v1332_v30 = vpack.c.bf16 %v1320_v50, %v1319_v46  ;;  %v1300_v51 = vmul.f32 %v10496_v38, %v1278_v40 }
 0x3c0   : > { %v8219_v52 = vpop.eup %8218  ;;  %v1301_v53 = vmul.f32 %v10496_v38, %v1279_v8 }
 0x3c1   : > { %v8221_v54 = vpop.eup %8220  ;;  %7377 = vmatmul.mubr.bf16.gmra.mrb[4].mxu1 %v1332_v30  ;;  %v1322_v58 = vadd.f32 %v10502_v31, %v1300_v51  ;;  %v1280_v9 = vmul.f32 %v8219_v52, %v10449_v20 }
 0x3c2   : > { %v1281_v59 = vmul.f32 %v8221_v54, %v10457_v27  ;;  %v1323_v61 = vadd.f32 %v10502_v31, %v1301_v53 }
 0x3c3   : > { %v1333_v48 = vpack.c.bf16 %v1322_v58, %v1321_v55  ;;  %v1302_v60 = vmul.f32 %v10496_v38, %v1280_v9 }
 0x3c4   : > { %v8223_v19 = vpop.eup %8222  ;;  %v1303_v41 = vmul.f32 %v10496_v38, %v1281_v59 }
 0x3c5   : > { %v8225_v63 = vpop.eup %8224  ;;  %1567 = vmatmul.mubr.bf16.gmra.mrb[8].mxu0 %v1331_v42  ;;  %7380 = vmatprep.mubr.bf16.mxu1 %v1333_v48  ;;  %v1324_v2 = vadd.f32 %v10502_v31, %v1302_v60  ;;  %v1282_v3 = vmul.f32 %v8223_v19, %v10460_v33 }
 0x3c6   : > { %1576 = vmatprep.mubr.bf16.mxu0 %v13021_v62  ;;  %v1283_v20 = vmul.f32 %v8225_v63, %v10470_v29  ;;  %v1325_v6 = vadd.f32 %v10502_v31, %v1303_v41 }
 0x3c7   : > { %v1334_v27 = vpack.c.bf16 %v1324_v2, %v1323_v61  ;;  %v1304_v4 = vmul.f32 %v10496_v38, %v1282_v3 }
 0x3c8   : > { %v8227_v5 = vpop.eup %8226  ;;  %v1305_v11 = vmul.f32 %v10496_v38, %v1283_v20 }
 0x3c9   : > { %7381 = vmatmul.mubr.bf16.gmra.mrb[8].mxu1 %v1334_v27  ;;  %v1326_v7 = vadd.f32 %v10502_v31, %v1304_v4  ;;  %v1284_v10 = vmul.f32 %v8227_v5, %v10473_v44  ;;  %v1371_v44 = vlaneseq }
 0x3ca   : > { %v1327_v29 = vadd.f32 %v10502_v31, %v1305_v11 }
 0x3cb   : > { %v1335_v33 = vpack.c.bf16 %v1326_v7, %v1325_v6  ;;  %v1306_v12 = vmul.f32 %v10496_v38, %v1284_v10  ;;  %v10557_v38 = vshrl.u32 %v1371_v44, 7 }
 0x3cd   : > { %1577 = vmatmul.mubr.bf16.gmra.mrb[12].mxu0 %v1332_v30  ;;  %7384 = vmatprep.mubr.bf16.mxu1 %v1335_v33  ;;  %v1328_v13 = vadd.f32 %v10502_v31, %v1306_v12  ;;  %13211 = vst [vmem:[#allocation53_spill] sm:$0xff] %v10557_v38  ;;  %v13020_v31 = vsub.s32 0, %v10557_v38  ;;  %v13018_v49 = vsub.s32 1, %v10557_v38  ;;  %v13019_v17 = vsub.s32 2, %v10557_v38 }
 0x3ce   : > { %1586 = vmatprep.mubr.bf16.mxu0 %v13021_v62 }
 0x3cf   : > { %v1336_v14 = vpack.c.bf16 %v1328_v13, %v1327_v29  ;;  %v10564_v16 = vrot.slane %v1369_v15, %v13020_v31  ;;  %v10569_v21 = vrot.slane %v1369_v15, %v13018_v49  ;;  %v10575_v32 = vrot.slane %v1369_v15, %v13019_v17 }
 0x3d1   : > { %7385 = vmatmul.mubr.bf16.gmra.mrb[12].mxu1 %v1336_v14 }
 0x3d5   : > { %1587 = vmatmul.mubr.bf16.gmra.mrb[16].mxu0 %v1333_v48 }
 0x3d6   : > { %1596 = vmatprep.mubr.bf16.mxu0 %v13021_v62 }
 0x3dd   : > { %1597 = vmatmul.mubr.bf16.gmra.mrb[20].mxu0 %v1334_v27 }
 0x3de   : > { %1606 = vmatprep.mubr.bf16.mxu0 %v13021_v62 }
 0x3e5   : > { %1607 = vmatmul.mubr.bf16.gmra.mrb[24].mxu0 %v1335_v33 }
 0x3e6   : > { %1616 = vmatprep.mubr.bf16.mxu0 %v13021_v62 }
 0x3ed   : > { %1617 = vmatmul.mubr.bf16.gmra.mrb[28].mxu0 %v1336_v14 }
 0x488   : > { %v1548_v18 = vpop.f32.mrb[0].mxu0 }
 0x489   : > { %v1549_v56 = vadd.f32 %v1548_v18, %v10564_v16  ;;  %v1550_v22 = vpop.f32.mrb[1].mxu0 }
 0x48a   : > { %v1552_v23 = vpop.f32.mrb[2].mxu0  ;;  %v1551_v26 = vadd.f32 %v1550_v22, %v10569_v21 }
 0x48b   : > { %v1553_v24 = vadd.f32 %v1552_v23, %v10564_v16  ;;  %v1554_v25 = vpop.f32.mrb[3].mxu0  ;;  %v1724_v35 = vmul.f32 0.17677669, %v1549_v56 }
 0x48c   : > { %v1555_v34 = vadd.f32 %v1554_v25, %v10569_v21  ;;  %v7374_v57 = vpop.f32.mrb[0].mxu1 }
 0x48d   : > { %v1725_v36 = vmul.f32 0.17677669, %v1553_v24  ;;  %v1661_v37 = vpop.f32.mrb[1].mxu1  ;;  %v1670_v43 = vadd.f32 %v7374_v57, %v10575_v32 }
 0x48e   : > { %v10579_v0 = vpack.c.bf16 %v1555_v34, %v1551_v26  ;;  %v7375_v39 = vpop.f32.mrb[2].mxu1  ;;  %v1662_v46 = vadd.f32 %v1661_v37, %v10575_v32 }
 0x48f   : > { %v10581_v42 = vpack.c.bf16 %v1725_v36, %v1724_v35  ;;  %v1673_v28 = vadd.f32 %v7375_v39, %v10575_v32  ;;  %v1664_v45 = vpop.f32.mrb[3].mxu1 }
 0x490   : > { %v1665_v47 = vadd.f32 %v1664_v45, %v10575_v32  ;;  %2266 = vrot.lane.b32.xlu0 %v10579_v0, %s9512_s7  ;;  %v1558_v50 = vpop.f32.mrb[4].mxu0  ;;  %7820 = vmatprep.subr.msk.bf16.mxu0 %vm1831_vm0, %v10579_v0  ;;  %v1857_v40 = vsel %vm1831_vm0, %v10579_v0, 0 }
 0x491   : > { %v10593_v1 = vpack.c.bf16 %v1673_v28, %v1670_v43  ;;  %v1559_v8 = vadd.f32 %v1558_v50, %v10564_v16  ;;  %v1560_v30 = vpop.f32.mrb[5].mxu0  ;;  %7389 = vmatpush3.bf16.xpose.msra.mxu0 %v1857_v40  ;;  %7404 = vmatprep.mubr.msk.bf16.mxu0 %vm1831_vm0, %v10581_v42 }
 0x492   : > { %v10598_v51 = vpack.c.bf16 %v1665_v47, %v1662_v46  ;;  %v1562_v52 = vpop.f32.mrb[6].mxu0  ;;  %v1561_v55 = vadd.f32 %v1560_v30, %v10569_v21 }
 0x493   : > { %v1563_v53 = vadd.f32 %v1562_v52, %v10564_v16  ;;  %v1564_v54 = vpop.f32.mrb[7].mxu0  ;;  %v1726_v59 = vmul.f32 0.17677669, %v1559_v8 }
 0x494   : > { %v1565_v58 = vadd.f32 %v1564_v54, %v10569_v21  ;;  %v7378_v9 = vpop.f32.mrb[4].mxu1  ;;  %7420 = vmatprep.subr.bf16.mxu1 %v10598_v51 }
 0x495   : > { %v1727_v48 = vmul.f32 0.17677669, %v1563_v53  ;;  %v1677_v60 = vpop.f32.mrb[5].mxu1  ;;  %7421 = vmatpush3.bf16.msra.mxu1 %v10598_v51  ;;  %v1686_v2 = vadd.f32 %v7378_v9, %v10575_v32 }
 0x496   : > { %v10605_v19 = vpack.c.bf16 %v1565_v58, %v1561_v55  ;;  %v7379_v61 = vpop.f32.mrb[6].mxu1  ;;  %7422 = vmatprep.subr.bf16.mxu1 %v10593_v1  ;;  %v1678_v20 = vadd.f32 %v1677_v60, %v10575_v32 }
 0x497   : > { %v10608_v63 = vpack.c.bf16 %v1727_v48, %v1726_v59  ;;  %v1689_v3 = vadd.f32 %v7379_v61, %v10575_v32  ;;  %v1680_v41 = vpop.f32.mrb[7].mxu1 }
 0x498   : > { %v1681_v27 = vadd.f32 %v1680_v41, %v10575_v32  ;;  %2268 = vrot.lane.b32.xlu1 %v10605_v19, %s9512_s7  ;;  %v1568_v4 = vpop.f32.mrb[8].mxu0  ;;  %7821 = vmatprep.subr.msk.bf16.mxu0 %vm1831_vm0, %v10605_v19  ;;  %v1860_v5 = vsel %vm1831_vm0, %v10605_v19, 0 }
 0x499   : > { %v10620_v6 = vpack.c.bf16 %v1689_v3, %v1686_v2  ;;  %v1569_v7 = vadd.f32 %v1568_v4, %v10564_v16  ;;  %v1570_v10 = vpop.f32.mrb[9].mxu0  ;;  %7391 = vmatpush3.bf16.xpose.msra.mxu0 %v1860_v5  ;;  %7423 = vmatpush3.bf16.msra.mxu1 %v10593_v1 }
 0x49a   : > { %v10624_v11 = vpack.c.bf16 %v1681_v27, %v1678_v20  ;;  %v1572_v33 = vpop.f32.mrb[10].mxu0  ;;  %v1571_v13 = vadd.f32 %v1570_v10, %v10569_v21 }
 0x49b   : > { %13212 = vst [vmem:[#allocation54_spill] sm:$0xff] %v10620_v6  ;;  %v1573_v12 = vadd.f32 %v1572_v33, %v10564_v16  ;;  %v1574_v29 = vpop.f32.mrb[11].mxu0  ;;  %v1728_v18 = vmul.f32 0.17677669, %v1569_v7 }
 0x49c   : > { %13213 = vst [vmem:[#allocation55_spill] sm:$0xff] %v10624_v11  ;;  %v1575_v14 = vadd.f32 %v1574_v29, %v10569_v21  ;;  %v7382_v15 = vpop.f32.mrb[8].mxu1  ;;  %7424 = vmatprep.subr.bf16.mxu1 %v10624_v11 }
 0x49d   : > { %v1729_v56 = vmul.f32 0.17677669, %v1573_v12  ;;  %v1693_v22 = vpop.f32.mrb[9].mxu1  ;;  %7425 = vmatpush3.bf16.msra.mxu1 %v10624_v11  ;;  %v1702_v26 = vadd.f32 %v7382_v15, %v10575_v32 }
 0x49e   : > { %v10631_v23 = vpack.c.bf16 %v1575_v14, %v1571_v13  ;;  %v7383_v24 = vpop.f32.mrb[10].mxu1  ;;  %7426 = vmatprep.subr.bf16.mxu1 %v10620_v6  ;;  %v1694_v35 = vadd.f32 %v1693_v22, %v10575_v32 }
 0x49f   : > { %v10634_v25 = vpack.c.bf16 %v1729_v56, %v1728_v18  ;;  %v1705_v34 = vadd.f32 %v7383_v24, %v10575_v32  ;;  %v1696_v57 = vpop.f32.mrb[11].mxu1 }
 0x4a0   : > { %13214 = vst [vmem:[#allocation56_spill] sm:$0xff] %v10631_v23  ;;  %v1697_v36 = vadd.f32 %v1696_v57, %v10575_v32  ;;  %v1578_v37 = vpop.f32.mrb[12].mxu0  ;;  %7822 = vmatprep.subr.msk.bf16.mxu0 %vm1831_vm0, %v10631_v23  ;;  %v1863_v39 = vsel %vm1831_vm0, %v10631_v23, 0 }
 0x4a1   : > { %v10644_v43 = vpack.c.bf16 %v1705_v34, %v1702_v26  ;;  %v1579_v28 = vadd.f32 %v1578_v37, %v10564_v16  ;;  %v1580_v45 = vpop.f32.mrb[13].mxu0  ;;  %7393 = vmatpush3.bf16.xpose.msra.mxu0 %v1863_v39  ;;  %7427 = vmatpush3.bf16.msra.mxu1 %v10620_v6 }
 0x4a2   : > { %v10648_v46 = vpack.c.bf16 %v1697_v36, %v1694_v35  ;;  %v1582_v47 = vpop.f32.mrb[14].mxu0  ;;  %v1581_v8 = vadd.f32 %v1580_v45, %v10569_v21 }
 0x4a3   : > { %13215 = vst [vmem:[#allocation57_spill] sm:$0xff] %v10644_v43  ;;  %v1583_v50 = vadd.f32 %v1582_v47, %v10564_v16  ;;  %v1584_v40 = vpop.f32.mrb[15].mxu0  ;;  %v1730_v53 = vmul.f32 0.17677669, %v1579_v28 }
 0x4a4   : > { %13216 = vst [vmem:[#allocation58_spill] sm:$0xff] %v10648_v46  ;;  %v1585_v30 = vadd.f32 %v1584_v40, %v10569_v21  ;;  %v7386_v52 = vpop.f32.mrb[12].mxu1  ;;  %7428 = vmatprep.subr.bf16.mxu1 %v10648_v46 }
 0x4a5   : > { %v1731_v54 = vmul.f32 0.17677669, %v1583_v50  ;;  %v1709_v55 = vpop.f32.mrb[13].mxu1  ;;  %7429 = vmatpush3.bf16.msra.mxu1 %v10648_v46  ;;  %v1718_v48 = vadd.f32 %v7386_v52, %v10575_v32 }
 0x4a6   : > { %v10655_v58 = vpack.c.bf16 %v1585_v30, %v1581_v8  ;;  %v7387_v9 = vpop.f32.mrb[14].mxu1  ;;  %7430 = vmatprep.subr.bf16.mxu1 %v10644_v43  ;;  %v1710_v2 = vadd.f32 %v1709_v55, %v10575_v32 }
 0x4a7   : > { %v10658_v59 = vpack.c.bf16 %v1731_v54, %v1730_v53  ;;  %v1721_v60 = vadd.f32 %v7387_v9, %v10575_v32  ;;  %v1712_v61 = vpop.f32.mrb[15].mxu1 }
 0x4a8   : > { %13217 = vst [vmem:[#allocation59_spill] sm:$0xff] %v10655_v58  ;;  %v1713_v3 = vadd.f32 %v1712_v61, %v10575_v32  ;;  %v1588_v41 = vpop.f32.mrb[16].mxu0  ;;  %7823 = vmatprep.subr.msk.bf16.mxu0 %vm1831_vm0, %v10655_v58  ;;  %v1866_v20 = vsel %vm1831_vm0, %v10655_v58, 0 }
 0x4a9   : > { %v10668_v27 = vpack.c.bf16 %v1721_v60, %v1718_v48  ;;  %v1589_v4 = vadd.f32 %v1588_v41, %v10564_v16  ;;  %v1590_v5 = vpop.f32.mrb[17].mxu0  ;;  %7395 = vmatpush3.bf16.xpose.msra.mxu0 %v1866_v20  ;;  %7431 = vmatpush3.bf16.msra.mxu1 %v10644_v43 }
 0x4aa   : > { %v10672_v7 = vpack.c.bf16 %v1713_v3, %v1710_v2  ;;  %v1592_v10 = vpop.f32.mrb[18].mxu0  ;;  %v1591_v12 = vadd.f32 %v1590_v5, %v10569_v21 }
 0x4ab   : > { %13218 = vst [vmem:[#allocation60_spill] sm:$0xff] %v10668_v27  ;;  %v1593_v32 = vadd.f32 %v1592_v10, %v10564_v16  ;;  %v1594_v33 = vpop.f32.mrb[19].mxu0  ;;  %v1732_v13 = vmul.f32 0.17677669, %v1589_v4 }
 0x4ac   : > { %13219 = vst [vmem:[#allocation61_spill] sm:$0xff] %v10672_v7  ;;  %v1595_v29 = vadd.f32 %v1594_v33, %v10569_v21  ;;  %7432 = vmatprep.subr.bf16.mxu1 %v10672_v7 }
 0x4ad   : > { %v1733_v14 = vmul.f32 0.17677669, %v1593_v32  ;;  %7433 = vmatpush3.bf16.msra.mxu1 %v10672_v7 }
 0x4ae   : > { %v10679_v15 = vpack.c.bf16 %v1595_v29, %v1591_v12  ;;  %7434 = vmatprep.subr.bf16.mxu1 %v10668_v27 }
 0x4af   : > { %v10682_v18 = vpack.c.bf16 %v1733_v14, %v1732_v13 }
 0x4b0   : > { %13220 = vst [vmem:[#allocation62_spill] sm:$0xff] %v10679_v15  ;;  %v1598_v56 = vpop.f32.mrb[20].mxu0  ;;  %7824 = vmatprep.subr.msk.bf16.mxu0 %vm1831_vm0, %v10679_v15  ;;  %v1869_v22 = vsel %vm1831_vm0, %v10679_v15, 0 }
 0x4b1   : > { %v1599_v24 = vadd.f32 %v1598_v56, %v10564_v16  ;;  %v1600_v26 = vpop.f32.mrb[21].mxu0  ;;  %7397 = vmatpush3.bf16.xpose.msra.mxu0 %v1869_v22  ;;  %7435 = vmatpush3.bf16.msra.mxu1 %v10668_v27 }
 0x4b2   : > { %v1602_v34 = vpop.f32.mrb[22].mxu0  ;;  %v1601_v36 = vadd.f32 %v1600_v26, %v10569_v21  ;;  %v1768_v26 = vadd.s32 24, %v10557_v38 }
 0x4b3   : > { %v1603_v57 = vadd.f32 %v1602_v34, %v10564_v16  ;;  %v1604_v35 = vpop.f32.mrb[23].mxu0  ;;  %v1734_v39 = vmul.f32 0.17677669, %v1599_v24  ;;  %v10745_v24 = vand.u32 127, %v1371_v44  ;;  %v1766_v34 = vadd.s32 8, %v10557_v38 }
 0x4b4   : > { %v1605_v37 = vadd.f32 %v1604_v35, %v10569_v21 }
 0x4b5   : > { %v1735_v28 = vmul.f32 0.17677669, %v1603_v57  ;;  %vm1786_vm2 = vcmp.le.s32.totalorder %v10745_v24, %v1768_v26  ;;  %v9513_v57 = vmov -1e+09   ;;  %vm1783_vm3 = vcmp.le.s32.totalorder %v10745_v24, %v10557_v38 }
 0x4b6   : > { %v10693_v45 = vpack.c.bf16 %v1605_v37, %v1601_v36  ;;  %v1771_v36 = vadd.s32 48, %v10557_v38  ;;  %v10758_v44 = vsel %vm1786_vm2, 0.0, %v9513_v57  ;;  %vm1784_vm4 = vcmp.le.s32.totalorder %v10745_v24, %v1766_v34 }
 0x4b7   : > { %v10695_v47 = vpack.c.bf16 %v1735_v28, %v1734_v39  ;;  %13222 = vst [vmem:[#allocation64_spill] sm:$0xff] %v10758_v44  ;;  %v1774_v26 = vadd.s32 72, %v10557_v38 }
 0x4b8   : > { %13221 = vst [vmem:[#allocation63_spill] sm:$0xff] %v10693_v45  ;;  %v1608_v50 = vpop.f32.mrb[24].mxu0  ;;  %7825 = vmatprep.subr.msk.bf16.mxu0 %vm1831_vm0, %v10693_v45  ;;  %v1872_v40 = vsel %vm1831_vm0, %v10693_v45, 0  ;;  %vm1789_vm5 = vcmp.le.s32.totalorder %v10745_v24, %v1771_v36 }
 0x4b9   : > { %v1609_v8 = vadd.f32 %v1608_v50, %v10564_v16  ;;  %v1610_v30 = vpop.f32.mrb[25].mxu0  ;;  %7399 = vmatpush3.bf16.xpose.msra.mxu0 %v1872_v40  ;;  %v1772_v50 = vadd.s32 56, %v10557_v38  ;;  %v10766_v40 = vsel %vm1783_vm3, 0.0, %v9513_v57  ;;  %vm1792_vm12 = vcmp.le.s32.totalorder %v10745_v24, %v1774_v26 }
 0x4ba   : > { %v1612_v52 = vpop.f32.mrb[26].mxu0  ;;  %v1611_v55 = vadd.f32 %v1610_v30, %v10569_v21 }
 0x4bb   : > { %v1613_v53 = vadd.f32 %v1612_v52, %v10564_v16  ;;  %v1614_v54 = vpop.f32.mrb[27].mxu0  ;;  %v1736_v48 = vmul.f32 0.17677669, %v1609_v8  ;;  %vm1790_vm6 = vcmp.le.s32.totalorder %v10745_v24, %v1772_v50 }
 0x4bc   : > { %v1615_v9 = vadd.f32 %v1614_v54, %v10569_v21  ;;  %v10775_v54 = vsel %vm1784_vm4, 0.0, %v9513_v57 }
 0x4bd   : > { %v1737_v60 = vmul.f32 0.17677669, %v1613_v53  ;;  %v1769_v53 = vadd.s32 32, %v10557_v38 }
 0x4be   : > { %v10705_v61 = vpack.c.bf16 %v1615_v9, %v1611_v55  ;;  %v1770_v9 = vadd.s32 40, %v10557_v38 }
 0x4bf   : > { %v10707_v2 = vpack.c.bf16 %v1737_v60, %v1736_v48  ;;  %v10784_v48 = vsel %vm1789_vm5, 0.0, %v9513_v57  ;;  %vm1787_vm7 = vcmp.le.s32.totalorder %v10745_v24, %v1769_v53 }
 0x4c0   : > { %v1618_v3 = vpop.f32.mrb[28].mxu0  ;;  %7826 = vmatprep.subr.msk.bf16.mxu0 %vm1831_vm0, %v10705_v61  ;;  %v1875_v41 = vsel %vm1831_vm0, %v10705_v61, 0  ;;  %13223 = vst [vmem:[#allocation65_spill] sm:$0xff] %v10784_v48  ;;  %vm1788_vm8 = vcmp.le.s32.totalorder %v10745_v24, %v1770_v9 }
 0x4c1   : > { %v1619_v20 = vadd.f32 %v1618_v3, %v10564_v16  ;;  %v1620_v4 = vpop.f32.mrb[29].mxu0  ;;  %7401 = vmatpush3.bf16.xpose.msra.mxu0 %v1875_v41  ;;  %v1775_v3 = vadd.s32 80, %v10557_v38 }
 0x4c2   : > { %v1622_v5 = vpop.f32.mrb[30].mxu0  ;;  %v1621_v33 = vadd.f32 %v1620_v4, %v10569_v21 }
 0x4c3   : > { %v1623_v10 = vadd.f32 %v1622_v5, %v10564_v16  ;;  %v1624_v32 = vpop.f32.mrb[31].mxu0  ;;  %v1738_v29 = vmul.f32 0.17677669, %v1619_v20  ;;  %v10793_v20 = vsel %vm1790_vm6, 0.0, %v9513_v57  ;;  %vm1793_vm9 = vcmp.le.s32.totalorder %v10745_v24, %v1775_v3 }
 0x4c4   : > { %v1625_v12 = vadd.f32 %v1624_v32, %v10569_v21  ;;  %v1767_v21 = vadd.s32 16, %v10557_v38  ;;  %13224 = vst [vmem:[#allocation66_spill] sm:$0xff] %v10793_v20  ;;  %v10802_v32 = vsel %vm1787_vm7, 0.0, %v9513_v57  ;;  %v10820_v34 = vsel %vm1793_vm9, 0.0, %v9513_v57 }
 0x4c5   : > { %v1739_v13 = vmul.f32 0.17677669, %v1623_v10  ;;  %v1776_v10 = vadd.s32 88, %v10557_v38  ;;  %13225 = vst [vmem:[#allocation67_spill] sm:$0xff] %v10802_v32  ;;  %13227 = vst [vmem:[#allocation69_spill] sm:$0xff] %v10820_v34 }
 0x4c6   : > { %v10717_v14 = vpack.c.bf16 %v1625_v12, %v1621_v33  ;;  %vm1785_vm1 = vcmp.le.s32.totalorder %v10745_v24, %v1767_v21 }
 0x4c7   : > { %v10719_v56 = vpack.c.bf16 %v1739_v13, %v1738_v29  ;;  %v10752_v35 = vsel %vm1785_vm1, 0.0, %v9513_v57  ;;  %v1773_v13 = vadd.s32 64, %v10557_v38  ;;  %vm1794_vm10 = vcmp.le.s32.totalorder %v10745_v24, %v1776_v10 }
 0x4c8   : > { %7827 = vmatprep.subr.msk.bf16.mxu0 %vm1831_vm0, %v10717_v14  ;;  %v1878_v22 = vsel %vm1831_vm0, %v10717_v14, 0  ;;  %v10829_v50 = vsel %vm1794_vm10, 0.0, %v9513_v57  ;;  %v10846_v10 = vsel %vm1792_vm12, 0.0, %v9513_v57 }
 0x4c9   : > { %7403 = vmatpush3.bf16.xpose.msra.mxu0 %v1878_v22  ;;  %v10811_v22 = vsel %vm1788_vm8, 0.0, %v9513_v57  ;;  %vm1791_vm11 = vcmp.le.s32.totalorder %v10745_v24, %v1773_v13  ;;  %13228 = vst [vmem:[#allocation70_spill] sm:$0xff] %v10829_v50  ;;  %13230 = vst [vmem:[#allocation72_spill] sm:$0xff] %v10846_v10 }
 0x4ca   : > { %13226 = vst [vmem:[#allocation68_spill] sm:$0xff] %v10811_v22  ;;  %v10837_v53 = vsel %vm1791_vm11, 0.0, %v9513_v57 }
 0x4cb   : > { %13229 = vst [vmem:[#allocation71_spill] sm:$0xff] %v10837_v53 }
 0x4d0   : > { %7405 = vmatmul.mubr.msk.bf16.vlgmr.msra.gmra.mrb[32].mxu0 %vm1831_vm0, %v10608_v63 }
 0x4d1   : > { %7408 = vmatprep.mubr.msk.bf16.mxu0 %vm1831_vm0, %v10634_v25 }
 0x4d8   : > { %7409 = vmatmul.mubr.msk.bf16.gmra.mrb[36].mxu0 %vm1831_vm0, %v10658_v59 }
 0x4d9   : > { %7412 = vmatprep.mubr.msk.bf16.mxu0 %vm1831_vm0, %v10682_v18 }
 0x4e0   : > { %7413 = vmatmul.mubr.msk.bf16.gmra.mrb[40].mxu0 %vm1831_vm0, %v10695_v47 }
 0x4e1   : > { %7416 = vmatprep.mubr.msk.bf16.mxu0 %vm1831_vm0, %v10707_v2 }
 0x4e8   : > { %7417 = vmatmul.mubr.msk.bf16.gmra.mrb[44].mxu0 %vm1831_vm0, %v10719_v56 }
 0x502   : > { %v10739_v16 = vpop.permute.xlu0 %2266 }
 0x503   : > { %7828 = vmatprep.subr.msk.bf16.mxu1 %vm1831_vm0, %v10739_v16 }
 0x5a3   : > { %v7406_v37 = vpop.f32.mrb[32].mxu0 }
 0x5a4   : > { %v10761_v39 = vadd.f32 %v7406_v37, %v10752_v35  ;;  %v1914_v28 = vpop.f32.mrb[33].mxu0  ;;  %v1779_v37 = vadd.s32 112, %v10557_v38 }
 0x5a5   : > { %v7407_v8 = vpop.f32.mrb[34].mxu0  ;;  %v10778_v55 = vadd.f32 %v1914_v28, %v10766_v40 }
 0x5a6   : > { %v10769_v30 = vadd.f32 %v7407_v8, %v10758_v44  ;;  %1981 = vmax.xlane.f32.xlu0 %v10761_v39  ;;  %v1917_v52 = vpop.f32.mrb[35].mxu0  ;;  %vm1797_vm13 = vcmp.le.s32.totalorder %v10745_v24, %v1779_v37 }
 0x5a7   : > { %v10787_v60 = vadd.f32 %v1917_v52, %v10775_v54 }
 0x5a8   : > { %1983 = vmax.xlane.f32.xlu1 %v10769_v30 }
 0x5aa   : > { %1977 = vmax.xlane.f32.xlu0 %v10778_v55 }
 0x5ab   : > { %v7410_v41 = vpop.f32.mrb[36].mxu0 }
 0x5ac   : > { %v10796_v4 = vadd.f32 %v7410_v41, %v10784_v48  ;;  %v1930_v5 = vpop.f32.mrb[37].mxu0  ;;  %1979 = vmax.xlane.f32.xlu1 %v10787_v60 }
 0x5ad   : > { %v7411_v33 = vpop.f32.mrb[38].mxu0  ;;  %v10814_v21 = vadd.f32 %v1930_v5, %v10802_v32  ;;  %v1777_v5 = vadd.s32 96, %v10557_v38 }
 0x5ae   : > { %v10805_v12 = vadd.f32 %v7411_v33, %v10793_v20  ;;  %v1933_v29 = vpop.f32.mrb[39].mxu0  ;;  %1989 = vmax.xlane.f32.xlu0 %v10796_v4 }
 0x5af   : > { %v10823_v36 = vadd.f32 %v1933_v29, %v10811_v22  ;;  %v10853_v29 = vsel %vm1797_vm13, 0.0, %v9513_v57  ;;  %vm1795_vm14 = vcmp.le.s32.totalorder %v10745_v24, %v1777_v5  ;;  %v1780_v5 = vadd.s32 120, %v10557_v38 }
 0x5b0   : > { %1991 = vmax.xlane.f32.xlu1 %v10805_v12  ;;  %13231 = vst [vmem:[#allocation73_spill] sm:$0xff] %v10853_v29 }
 0x5b1   : > { %vm1798_vm15 = vcmp.le.s32.totalorder %v10745_v24, %v1780_v5  ;;  %v10894_v5 = vpop.permute.xlu1 %2268 }
 0x5b2   : > { %1985 = vmax.xlane.f32.xlu0 %v10814_v21  ;;  %v10880_v17 = vsel %vm1798_vm15, 0.0, %v9513_v57 }
 0x5b3   : > { %v7414_v28 = vpop.f32.mrb[40].mxu0  ;;  %13233 = vst [vmem:[#allocation75_spill] sm:$0xff] %v10880_v17 }
 0x5b4   : > { %v10832_v8 = vadd.f32 %v7414_v28, %v10820_v34  ;;  %v1946_v52 = vpop.f32.mrb[41].mxu0  ;;  %1987 = vmax.xlane.f32.xlu1 %v10823_v36 }
 0x5b5   : > { %v7415_v9 = vpop.f32.mrb[42].mxu0  ;;  %v10849_v33 = vadd.f32 %v1946_v52, %v10837_v53  ;;  %v10865_v52 = vsel %vm1795_vm14, 0.0, %v9513_v57 }
 0x5b6   : > { %v10840_v3 = vadd.f32 %v7415_v9, %v10829_v50  ;;  %v1949_v41 = vpop.f32.mrb[43].mxu0  ;;  %1997 = vmax.xlane.f32.xlu0 %v10832_v8  ;;  %13232 = vst [vmem:[#allocation74_spill] sm:$0xff] %v10865_v52 }
 0x5b7   : > { %v10856_v13 = vadd.f32 %v1949_v41, %v10846_v10 }
 0x5b8   : > { %1999 = vmax.xlane.f32.xlu1 %v10840_v3 }
 0x5ba   : > { %1993 = vmax.xlane.f32.xlu0 %v10849_v33 }
 0x5bb   : > { %v7418_v26 = vpop.f32.mrb[44].mxu0 }
 0x5bc   : > { %v10861_v37 = vadd.f32 %v7418_v26, %v10853_v29  ;;  %1995 = vmax.xlane.f32.xlu1 %v10856_v13  ;;  %v1962_v28 = vpop.f32.mrb[45].mxu0  ;;  %v1778_v26 = vadd.s32 104, %v10557_v38 }
 0x5bd   : > { %v7419_v9 = vpop.f32.mrb[46].mxu0  ;;  %v10869_v41 = vadd.f32 %v1962_v28, %v10865_v52 }
 0x5be   : > { %2005 = vmax.xlane.f32.xlu0 %v10861_v37  ;;  %v1965_v49 = vpop.f32.mrb[47].mxu0  ;;  %vm1796_vm1 = vcmp.le.s32.totalorder %v10745_v24, %v1778_v26  ;;  %v10884_v28 = vadd.f32 %v7419_v9, %v10880_v17 }
 0x5bf   : > { %v10887_v31 = vsel %vm1796_vm1, 0.0, %v9513_v57 }
 0x5c0   : > { %13234 = vst [vmem:[#allocation76_spill] sm:$0xff] %v10887_v31  ;;  %v10891_v62 = vadd.f32 %v1965_v49, %v10887_v31 }
 0x5c2   : > { %2001 = vmax.xlane.f32.xlu0 %v10869_v41 }
 0x5cd   : > { %2272 = vrot.lane.b32.xlu1 %v10655_v58, %s9512_s7 }
 0x5d8   : > { %2270 = vrot.lane.b32.xlu0 %v10631_v23, %s9512_s7 }
 0x5f1   : > { %2007 = vmax.xlane.f32.xlu1 %v10884_v28 }
 0x5f5   : > { %2003 = vmax.xlane.f32.xlu1 %v10891_v62 }
 0x633   : > { %v1982_v38 = vpop.xlane.xlu0 %1981 }
 0x634   : > { %v2011_v23 = vsub.f32 %v10761_v39, %v1982_v38 }
 0x635   : > { %v1984_v58 = vpop.xlane.xlu1 %1983 }
 0x636   : > { %v2029_v24 = vmul.f32 1.442695, %v2011_v23  ;;  %v2012_v9 = vsub.f32 %v10769_v30, %v1984_v58 }
 0x637   : > { %v1978_v26 = vpop.xlane.xlu0 %1977 }
 0x638   : > { %8228 = vpow2.f32 %v2029_v24  ;;  %v2031_v57 = vmul.f32 1.442695, %v2012_v9  ;;  %v2009_v17 = vsub.f32 %v10778_v55, %v1978_v26 }
 0x639   : > { %v1980_v52 = vpop.xlane.xlu1 %1979 }
 0x63a   : > { %8230 = vpow2.f32 %v2031_v57  ;;  %v2025_v49 = vmul.f32 1.442695, %v2009_v17  ;;  %v2010_v31 = vsub.f32 %v10787_v60, %v1980_v52 }
 0x63b   : > { %v1990_v17 = vpop.xlane.xlu0 %1989 }
 0x63c   : > { %8232 = vpow2.f32 %v2025_v49  ;;  %v2027_v29 = vmul.f32 1.442695, %v2010_v31 }
 0x63d   : > { %v1992_v30 = vpop.xlane.xlu1 %1991 }
 0x63e   : > { %8234 = vpow2.f32 %v2027_v29  ;;  %v2015_v29 = vsub.f32 %v10796_v4, %v1990_v17  ;;  %v2016_v49 = vsub.f32 %v10805_v12, %v1992_v30 }
 0x63f   : > { %v1986_v39 = vpop.xlane.xlu0 %1985 }
 0x640   : > { %v2013_v52 = vsub.f32 %v10814_v21, %v1986_v39  ;;  %v2037_v9 = vmul.f32 1.442695, %v2015_v29  ;;  %v2039_v50 = vmul.f32 1.442695, %v2016_v49 }
 0x641   : > { %v1988_v60 = vpop.xlane.xlu1 %1987 }
 0x642   : > { %v10900_v53 = vpop.eup %8228  ;;  %v2014_v26 = vsub.f32 %v10823_v36, %v1988_v60  ;;  %v2033_v10 = vmul.f32 1.442695, %v2013_v52  ;;  %8236 = vpow2.f32 %v2037_v9 }
 0x643   : > { %2061 = vadd.xlane.f32.xlu0 %v10900_v53  ;;  %v1998_v31 = vpop.xlane.xlu0 %1997 }
 0x644   : > { %v10903_v38 = vpop.eup %8230  ;;  %8238 = vpow2.f32 %v2033_v10  ;;  %v2019_v32 = vsub.f32 %v10832_v8, %v1998_v31 }
 0x645   : > { %2063 = vadd.xlane.f32.xlu1 %v10903_v38  ;;  %v2000_v57 = vpop.xlane.xlu1 %1999 }
 0x646   : > { %v10906_v23 = vpop.eup %8232  ;;  %v2045_v36 = vmul.f32 1.442695, %v2019_v32  ;;  %v2020_v30 = vsub.f32 %v10840_v3, %v2000_v57 }
 0x647   : > { %2057 = vadd.xlane.f32.xlu0 %v10906_v23  ;;  %v1994_v55 = vpop.xlane.xlu0 %1993 }
 0x648   : > { %v10909_v58 = vpop.eup %8234  ;;  %v2017_v39 = vsub.f32 %v10849_v33, %v1994_v55 }
 0x649   : > { %2059 = vadd.xlane.f32.xlu1 %v10909_v58  ;;  %v1996_v4 = vpop.xlane.xlu1 %1995 }
 0x64a   : > { %v2041_v10 = vmul.f32 1.442695, %v2017_v39 }
 0x64b   : > { %v2006_v24 = vpop.xlane.xlu0 %2005 }
 0x64d   : > { %v10925_v60 = vpop.permute.xlu1 %2272 }
 0x64f   : > { %v2002_v34 = vpop.xlane.xlu0 %2001 }
 0x650   : > { %v2021_v17 = vsub.f32 %v10869_v41, %v2002_v34 }
 0x652   : > { %v2049_v12 = vmul.f32 1.442695, %v2021_v17 }
 0x653   : > { %v2271_v49 = vpop.permute.xlu0 %2270 }
 0x65a   : > { %2276 = vrot.lane.b32.xlu1 %v10693_v45, %s9512_s7  ;;  %v2035_v45 = vmul.f32 1.442695, %v2014_v26 }
 0x65c   : > { %8240 = vpow2.f32 %v2035_v45 }
 0x65d   : > { %2274 = vrot.lane.b32.xlu0 %v10679_v15, %s9512_s7  ;;  %v2023_v15 = vsub.f32 %v10861_v37, %v2006_v24  ;;  %8242 = vpow2.f32 %v2039_v50  ;;  %v10927_v37 = vpop.eup %8236  ;;  %v2018_v50 = vsub.f32 %v10856_v13, %v1996_v4 }
 0x65e   : > { %v10930_v45 = vpop.eup %8238 }
 0x65f   : > { %v2053_v21 = vmul.f32 1.442695, %v2023_v15  ;;  %v2047_v15 = vmul.f32 1.442695, %v2020_v30  ;;  %v2043_v55 = vmul.f32 1.442695, %v2018_v50 }
 0x661   : > { %8244 = vpow2.f32 %v2053_v21 }
 0x662   : > { %8246 = vpow2.f32 %v2045_v36 }
 0x663   : > { %8248 = vpow2.f32 %v2049_v12 }
 0x664   : > { %8250 = vpow2.f32 %v2041_v10 }
 0x665   : > { %8252 = vpow2.f32 %v2047_v15 }
 0x666   : > { %v10933_v32 = vpop.eup %8240 }
 0x667   : > { %v10938_v3 = vpop.eup %8242 }
 0x66b   : > { %v10941_v31 = vpop.eup %8244 }
 0x66c   : > { %v10945_v13 = vpop.eup %8246 }
 0x67c   : > { %2069 = vadd.xlane.f32.xlu0 %v10927_v37 }
 0x67e   : > { %v2008_v34 = vpop.xlane.xlu1 %2007  ;;  %2065 = vadd.xlane.f32.xlu1 %v10930_v45 }
 0x67f   : > { %v2024_v8 = vsub.f32 %v10884_v28, %v2008_v34  ;;  %v10948_v28 = vpop.eup %8248 }
 0x680   : > { %2067 = vadd.xlane.f32.xlu0 %v10933_v32  ;;  %v10951_v24 = vpop.eup %8250 }
 0x681   : > { %v2055_v33 = vmul.f32 1.442695, %v2024_v8  ;;  %v10954_v9 = vpop.eup %8252 }
 0x682   : > { %v2004_v41 = vpop.xlane.xlu1 %2003  ;;  %2071 = vadd.xlane.f32.xlu1 %v10938_v3 }
 0x683   : > { %8254 = vpow2.f32 %v2055_v33  ;;  %v2022_v29 = vsub.f32 %v10891_v62, %v2004_v41 }
 0x684   : > { %2085 = vadd.xlane.f32.xlu0 %v10941_v31  ;;  %8256 = vpow2.f32 %v2043_v55  ;;  %v2307_v55 = vsel %vm1831_vm0, %v10739_v16, 0 }
 0x685   : > { %v2051_v52 = vmul.f32 1.442695, %v2022_v29 }
 0x686   : > { %2077 = vadd.xlane.f32.xlu1 %v10945_v13 }
 0x687   : > { %8258 = vpow2.f32 %v2051_v52 }
 0x688   : > { %2081 = vadd.xlane.f32.xlu0 %v10948_v28 }
 0x68a   : > { %2073 = vadd.xlane.f32.xlu1 %v10951_v24 }
 0x68d   : > { %v10956_v62 = vpop.eup %8254 }
 0x68e   : > { %2079 = vadd.xlane.f32.xlu1 %v10954_v9  ;;  %2087 = vadd.xlane.f32.xlu0 %v10956_v62  ;;  %v10960_v26 = vpop.eup %8256 }
 0x691   : > { %v10963_v57 = vpop.eup %8258 }
 0x692   : > { %2075 = vadd.xlane.f32.xlu1 %v10960_v26 }
 0x696   : > { %2083 = vadd.xlane.f32.xlu1 %v10963_v57 }
 0x6a4   : > { %2278 = vrot.lane.b32.xlu0 %v10705_v61, %s9512_s7 }
 0x6a7   : > { %2280 = vrot.lane.b32.xlu1 %v10717_v14, %s9512_s7 }
 0x6a8   : > { %2242 = vrot.lane.b32.xlu0 %v10581_v42, %s9512_s7 }
 0x6ab   : > { %2244 = vrot.lane.b32.xlu1 %v10608_v63, %s9512_s7 }
 0x6ac   : > { %2246 = vrot.lane.b32.xlu0 %v10634_v25, %s9512_s7 }
 0x6af   : > { %2248 = vrot.lane.b32.xlu1 %v10658_v59, %s9512_s7 }
 0x6b0   : > { %2250 = vrot.lane.b32.xlu0 %v10682_v18, %s9512_s7 }
 0x6b3   : > { %2252 = vrot.lane.b32.xlu1 %v10695_v47, %s9512_s7 }
 0x6b4   : > { %2254 = vrot.lane.b32.xlu0 %v10707_v2, %s9512_s7 }
 0x6b7   : > { %2256 = vrot.lane.b32.xlu1 %v10719_v56, %s9512_s7 }
 0x6b8   : > { %2587 = vrot.lane.b32.xlu0 %v10598_v51, %s9512_s7 }
 0x6bb   : > { %2589 = vrot.lane.b32.xlu1 %v10593_v1, %s9512_s7 }
 0x6bc   : > { %2591 = vrot.lane.b32.xlu0 %v10624_v11, %s9512_s7 }
 0x6bf   : > { %2593 = vrot.lane.b32.xlu1 %v10620_v6, %s9512_s7 }
 0x6c0   : > { %2595 = vrot.lane.b32.xlu0 %v10648_v46, %s9512_s7 }
 0x6c3   : > { %2597 = vrot.lane.b32.xlu1 %v10644_v43, %s9512_s7 }
 0x6c4   : > { %2599 = vrot.lane.b32.xlu0 %v10672_v7, %s9512_s7  ;;  %v13249_v7 = vld [vmem:[#allocation71_spill] sm:$0xff] }
 0x6c7   : > { %2601 = vrot.lane.b32.xlu1 %v10668_v27, %s9512_s7 }
 0x6c8   : > { %2998 = vrot.lane.b32.xlu0 %v10579_v0, %s9514_s20 }
 0x6cb   : > { %3000 = vrot.lane.b32.xlu1 %v10605_v19, %s9514_s20 }
 0x6d0   : > { %v2062_v4 = vpop.xlane.xlu0 %2061 }
 0x6d2   : > { %v2064_v21 = vpop.xlane.xlu1 %2063 }
 0x6d3   : > { %8260 = vrcp.f32 %v2064_v21 }
 0x6d4   : > { %v2058_v17 = vpop.xlane.xlu0 %2057 }
 0x6d5   : > { %8262 = vrcp.f32 %v2058_v17 }
 0x6d6   : > { %8264 = vrcp.f32 %v2062_v4  ;;  %v2060_v36 = vpop.xlane.xlu1 %2059 }
 0x6d7   : > { %8266 = vrcp.f32 %v2060_v36 }
 0x6d8   : > { %v2275_v16 = vpop.permute.xlu0 %2274 }
 0x6d9   : > { %v2319_v29 = vsel %vm1831_vm0, %v2275_v16, 0 }
 0x6dd   : > { %v8261_v39 = vpop.eup %8260 }
 0x6de   : > { %v2108_v15 = vmul.f32 %v8261_v39, %v10903_v38  ;;  %v2310_v38 = vsel %vm1831_vm0, %v10894_v5, 0 }
 0x6df   : > { %v8263_v12 = vpop.eup %8262 }
 0x6e0   : > { %v8265_v30 = vpop.eup %8264  ;;  %v2105_v34 = vmul.f32 %v8263_v12, %v10906_v23  ;;  %v2313_v23 = vsel %vm1831_vm0, %v2271_v49, 0 }
 0x6e1   : > { %v8267_v10 = vpop.eup %8266  ;;  %v2107_v8 = vmul.f32 %v8265_v30, %v10900_v53  ;;  %v2316_v53 = vsel %vm1831_vm0, %v10925_v60, 0 }
 0x6e2   : > { %v2106_v50 = vmul.f32 %v8267_v10, %v10909_v58  ;;  %v2277_v58 = vpop.permute.xlu1 %2276 }
 0x6e3   : > { %v2122_v41 = vpack.c.bf16 %v2108_v15, %v2107_v8  ;;  %v2322_v21 = vsel %vm1831_vm0, %v2277_v58, 0 }
 0x6e4   : > { %v2121_v33 = vpack.c.bf16 %v2106_v50, %v2105_v34 }
 0x6e6   : > { %7436 = vmatprep.mubr.bf16.mxu1 %v2121_v33 }
 0x6e7   : > { %7437 = vmatmul.mubr.bf16.vlgmr.msra.gmra.mrb[16].mxu1 %v2122_v41 }
 0x6e8   : > { %7453 = vmatpush3.bf16.xpose.msra.mxu1 %v2307_v55 }
 0x6e9   : > { %7829 = vmatprep.subr.msk.bf16.mxu1 %vm1831_vm0, %v10894_v5 }
 0x6f0   : > { %7455 = vmatpush3.bf16.xpose.msra.mxu1 %v2310_v38 }
 0x6f1   : > { %7830 = vmatprep.subr.msk.bf16.mxu1 %vm1831_vm0, %v2271_v49 }
 0x6f8   : > { %7457 = vmatpush3.bf16.xpose.msra.mxu1 %v2313_v23 }
 0x6f9   : > { %7831 = vmatprep.subr.msk.bf16.mxu1 %vm1831_vm0, %v10925_v60 }
 0x700   : > { %7459 = vmatpush3.bf16.xpose.msra.mxu1 %v2316_v53 }
 0x701   : > { %7832 = vmatprep.subr.msk.bf16.mxu1 %vm1831_vm0, %v2275_v16 }
 0x708   : > { %7461 = vmatpush3.bf16.xpose.msra.mxu1 %v2319_v29 }
 0x709   : > { %7833 = vmatprep.subr.msk.bf16.mxu1 %vm1831_vm0, %v2277_v58  ;;  %v2070_v5 = vpop.xlane.xlu0 %2069 }
 0x70b   : > { %v2066_v52 = vpop.xlane.xlu1 %2065 }
 0x70c   : > { %8268 = vrcp.f32 %v2066_v52 }
 0x70d   : > { %8270 = vrcp.f32 %v2070_v5  ;;  %v2068_v49 = vpop.xlane.xlu0 %2067 }
 0x70e   : > { %8272 = vrcp.f32 %v2068_v49 }
 0x70f   : > { %v2072_v4 = vpop.xlane.xlu1 %2071 }
 0x710   : > { %8274 = vrcp.f32 %v2072_v4  ;;  %7463 = vmatpush3.bf16.xpose.msra.mxu1 %v2322_v21 }
 0x711   : > { %v2086_v60 = vpop.xlane.xlu0 %2085 }
 0x713   : > { %v2078_v17 = vpop.xlane.xlu1 %2077 }
 0x715   : > { %v2082_v12 = vpop.xlane.xlu0 %2081 }
 0x716   : > { %v8269_v36 = vpop.eup %8268 }
 0x717   : > { %v8271_v39 = vpop.eup %8270  ;;  %v2074_v30 = vpop.xlane.xlu1 %2073  ;;  %v2109_v15 = vmul.f32 %v8269_v36, %v10930_v45 }
 0x718   : > { %v8273_v10 = vpop.eup %8272  ;;  %v2111_v55 = vmul.f32 %v8271_v39, %v10927_v37 }
 0x719   : > { %v2110_v34 = vmul.f32 %v8273_v10, %v10933_v32 }
 0x71a   : > { %v8275_v50 = vpop.eup %8274 }
 0x71b   : > { %v2080_v8 = vpop.xlane.xlu1 %2079  ;;  %v2088_v33 = vpop.xlane.xlu0 %2087  ;;  %v2123_v41 = vpack.c.bf16 %v2110_v34, %v2109_v15  ;;  %v2112_v38 = vmul.f32 %v8275_v50, %v10938_v3 }
 0x71c   : > { %8276 = vrcp.f32 %v2080_v8 }
 0x71d   : > { %7440 = vmatprep.mubr.bf16.mxu1 %v2123_v41  ;;  %v2124_v23 = vpack.c.bf16 %v2112_v38, %v2111_v55  ;;  %8278 = vrcp.f32 %v2074_v30 }
 0x71e   : > { %8280 = vrcp.f32 %v2078_v17 }
 0x71f   : > { %v2076_v53 = vpop.xlane.xlu1 %2075  ;;  %7441 = vmatmul.mubr.bf16.gmra.mrb[20].mxu1 %v2124_v23  ;;  %v2279_v16 = vpop.permute.xlu0 %2278 }
 0x720   : > { %8282 = vrcp.f32 %v2076_v53  ;;  %7834 = vmatprep.subr.msk.bf16.mxu1 %vm1831_vm0, %v2279_v16  ;;  %v2325_v45 = vsel %vm1831_vm0, %v2279_v16, 0 }
 0x721   : > { %7465 = vmatpush3.bf16.xpose.msra.mxu1 %v2325_v45  ;;  %8284 = vrcp.f32 %v2082_v12 }
 0x723   : > { %v2084_v32 = vpop.xlane.xlu1 %2083  ;;  %v2243_v58 = vpop.permute.xlu0 %2242 }
 0x724   : > { %8286 = vrcp.f32 %v2084_v32 }
 0x725   : > { %8288 = vrcp.f32 %v2088_v33 }
 0x726   : > { %v8277_v37 = vpop.eup %8276  ;;  %8290 = vrcp.f32 %v2086_v60 }
 0x727   : > { %v2281_v3 = vpop.permute.xlu1 %2280  ;;  %v2247_v29 = vpop.permute.xlu0 %2246  ;;  %v2116_v21 = vmul.f32 %v8277_v37, %v10954_v9 }
 0x728   : > { %v8279_v5 = vpop.eup %8278  ;;  %7835 = vmatprep.subr.msk.bf16.mxu1 %vm1831_vm0, %v2281_v3  ;;  %v2328_v52 = vsel %vm1831_vm0, %v2281_v3, 0 }
 0x729   : > { %v8281_v49 = vpop.eup %8280  ;;  %7467 = vmatpush3.bf16.xpose.msra.mxu1 %v2328_v52  ;;  %v2113_v39 = vmul.f32 %v8279_v5, %v10951_v24 }
 0x72a   : > { %v8283_v4 = vpop.eup %8282  ;;  %v2115_v60 = vmul.f32 %v8281_v49, %v10945_v13 }
 0x72b   : > { %v2245_v17 = vpop.permute.xlu1 %2244  ;;  %v2251_v36 = vpop.permute.xlu0 %2250  ;;  %v2114_v12 = vmul.f32 %v8283_v4, %v10960_v26 }
 0x72c   : > { %v8285_v30 = vpop.eup %8284  ;;  %v2126_v34 = vpack.c.bf16 %v2116_v21, %v2115_v60 }
 0x72d   : > { %v2125_v10 = vpack.c.bf16 %v2114_v12, %v2113_v39  ;;  %v2117_v41 = vmul.f32 %v8285_v30, %v10948_v28  ;;  %v13247_v30 = vld [vmem:[#allocation69_spill] sm:$0xff] }
 0x72e   : > { %v8287_v15 = vpop.eup %8286 }
 0x72f   : > { %v8289_v50 = vpop.eup %8288  ;;  %v2249_v8 = vpop.permute.xlu1 %2248  ;;  %7444 = vmatprep.mubr.bf16.mxu1 %v2125_v10  ;;  %v2118_v9 = vmul.f32 %v8287_v15, %v10963_v57 }
 0x730   : > { %v2255_v33 = vpop.permute.xlu0 %2254  ;;  %7445 = vmatmul.mubr.bf16.gmra.mrb[24].mxu1 %v2126_v34  ;;  %v8291_v55 = vpop.eup %8290  ;;  %v2120_v24 = vmul.f32 %v8289_v50, %v10956_v62 }
 0x731   : > { %v2127_v38 = vpack.c.bf16 %v2118_v9, %v2117_v41  ;;  %v2119_v13 = vmul.f32 %v8291_v55, %v10941_v31 }
 0x733   : > { %7448 = vmatprep.mubr.bf16.mxu1 %v2127_v38  ;;  %v2253_v23 = vpop.permute.xlu1 %2252  ;;  %v2128_v53 = vpack.c.bf16 %v2120_v24, %v2119_v13  ;;  %v13245_v24 = vld [vmem:[#allocation67_spill] sm:$0xff] }
 0x734   : > { %v2588_v26 = vpop.permute.xlu0 %2587 }
 0x735   : > { %7484 = vmatprep.subr.bf16.mxu1 %v2588_v26 }
 0x737   : > { %v2257_v16 = vpop.permute.xlu1 %2256 }
 0x738   : > { %7449 = vmatmul.mubr.bf16.gmra.mrb[28].mxu1 %v2128_v53  ;;  %v2592_v57 = vpop.permute.xlu0 %2591 }
 0x739   : > { %7468 = vmatprep.mubr.msk.bf16.mxu1 %vm1831_vm0, %v2243_v58 }
 0x73b   : > { %v2590_v28 = vpop.permute.xlu1 %2589 }
 0x73c   : > { %v2596_v31 = vpop.permute.xlu0 %2595 }
 0x73f   : > { %v2594_v62 = vpop.permute.xlu1 %2593 }
 0x740   : > { %7469 = vmatmul.mubr.msk.bf16.vlgmr.msra.gmra.mrb[32].mxu1 %vm1831_vm0, %v2245_v17  ;;  %v2600_v32 = vpop.permute.xlu0 %2599 }
 0x741   : > { %7485 = vmatpush3.bf16.msra.mxu1 %v2588_v26  ;;  %7472 = vmatprep.mubr.msk.bf16.mxu1 %vm1831_vm0, %v2247_v29 }
 0x742   : > { %7486 = vmatprep.subr.bf16.mxu1 %v2590_v28 }
 0x743   : > { %v2598_v45 = vpop.permute.xlu1 %2597 }
 0x744   : > { %v11050_v37 = vpop.permute.xlu0 %2998 }
 0x745   : > { %7487 = vmatpush3.bf16.msra.mxu1 %v2590_v28 }
 0x746   : > { %7488 = vmatprep.subr.bf16.mxu1 %v2592_v57 }
 0x747   : > { %v2602_v58 = vpop.permute.xlu1 %2601 }
 0x748   : > { %7473 = vmatmul.mubr.msk.bf16.gmra.mrb[36].mxu1 %vm1831_vm0, %v2249_v8  ;;  %v13246_v8 = vld [vmem:[#allocation70_spill] sm:$0xff] }
 0x749   : > { %7489 = vmatpush3.bf16.msra.mxu1 %v2592_v57  ;;  %7476 = vmatprep.mubr.msk.bf16.mxu1 %vm1831_vm0, %v2251_v36 }
 0x74a   : > { %7490 = vmatprep.subr.bf16.mxu1 %v2594_v62 }
 0x74d   : > { %7491 = vmatpush3.bf16.msra.mxu1 %v2594_v62 }
 0x74e   : > { %7492 = vmatprep.subr.bf16.mxu1 %v2596_v31 }
 0x750   : > { %7477 = vmatmul.mubr.msk.bf16.gmra.mrb[40].mxu1 %vm1831_vm0, %v2253_v23 }
 0x751   : > { %7493 = vmatpush3.bf16.msra.mxu1 %v2596_v31  ;;  %7480 = vmatprep.mubr.msk.bf16.mxu1 %vm1831_vm0, %v2255_v33 }
 0x752   : > { %7494 = vmatprep.subr.bf16.mxu1 %v2598_v45 }
 0x755   : > { %7495 = vmatpush3.bf16.msra.mxu1 %v2598_v45 }
 0x756   : > { %7496 = vmatprep.subr.bf16.mxu1 %v2600_v32 }
 0x758   : > { %7481 = vmatmul.mubr.msk.bf16.gmra.mrb[44].mxu1 %vm1831_vm0, %v2257_v16 }
 0x759   : > { %7497 = vmatpush3.bf16.msra.mxu1 %v2600_v32 }
 0x75a   : > { %7498 = vmatprep.subr.bf16.mxu1 %v2602_v58 }
 0x75d   : > { %7499 = vmatpush3.bf16.msra.mxu1 %v2602_v58 }
 0x75e   : > { %7836 = vmatprep.subr.msk.bf16.mxu1 %vm1831_vm0, %v11050_v37 }
 0x7ba   : > { %v11054_v3 = vpop.f32.mrb[16].mxu1 }
 0x7bb   : > { %v11056_v29 = vpop.f32.mrb[17].mxu1 }
 0x7bc   : > { %v11058_v5 = vpop.f32.mrb[18].mxu1 }
 0x7bd   : > { %v11062_v49 = vpop.f32.mrb[19].mxu1 }
 0x7f2   : > { %v11066_v21 = vpop.f32.mrb[20].mxu1 }
 0x7f3   : > { %13235 = vst [vmem:[#allocation77_spill] sm:$0xff] %v11066_v21  ;;  %v11068_v17 = vpop.f32.mrb[21].mxu1 }
 0x7f4   : > { %v11070_v36 = vpop.f32.mrb[22].mxu1 }
 0x7f5   : > { %13236 = vst [vmem:[#allocation78_spill] sm:$0xff] %v11070_v36  ;;  %v11074_v12 = vpop.f32.mrb[23].mxu1 }
 0x803   : > { %v11078_v60 = vpop.f32.mrb[24].mxu1 }
 0x804   : > { %13237 = vst [vmem:[#allocation79_spill] sm:$0xff] %v11078_v60  ;;  %v11080_v10 = vpop.f32.mrb[25].mxu1 }
 0x805   : > { %13238 = vst [vmem:[#allocation80_spill] sm:$0xff] %v11080_v10  ;;  %v11082_v15 = vpop.f32.mrb[26].mxu1 }
 0x806   : > { %13239 = vst [vmem:[#allocation81_spill] sm:$0xff] %v11082_v15  ;;  %v11086_v50 = vpop.f32.mrb[27].mxu1 }
 0x807   : > { %13240 = vst [vmem:[#allocation82_spill] sm:$0xff] %v11086_v50 }
 0x80b   : > { %v11090_v33 = vpop.f32.mrb[28].mxu1 }
 0x80c   : > { %13241 = vst [vmem:[#allocation83_spill] sm:$0xff] %v11090_v33  ;;  %v11092_v41 = vpop.f32.mrb[29].mxu1 }
 0x80d   : > { %13242 = vst [vmem:[#allocation84_spill] sm:$0xff] %v11092_v41  ;;  %v11094_v9 = vpop.f32.mrb[30].mxu1 }
 0x80e   : > { %13243 = vst [vmem:[#allocation85_spill] sm:$0xff] %v11094_v9  ;;  %v11098_v38 = vpop.f32.mrb[31].mxu1  ;;  %v13253_v9 = vld [vmem:[#allocation56_spill] sm:$0xff] }
 0x80f   : > { %13244 = vst [vmem:[#allocation86_spill] sm:$0xff] %v11098_v38 }
 0x813   : > { %v7470_v26 = vpop.f32.mrb[32].mxu1 }
 0x814   : > { %v2373_v13 = vadd.f32 %v7470_v26, %v10752_v35  ;;  %v2364_v23 = vpop.f32.mrb[33].mxu1 }
 0x815   : > { %v7471_v53 = vpop.f32.mrb[34].mxu1  ;;  %v2365_v57 = vadd.f32 %v2364_v23, %v10766_v40 }
 0x816   : > { %2431 = vmax.xlane.f32.xlu0 %v2373_v13  ;;  %v2367_v16 = vpop.f32.mrb[35].mxu1  ;;  %v2376_v31 = vadd.f32 %v7471_v53, %v10758_v44 }
 0x817   : > { %v2368_v28 = vadd.f32 %v2367_v16, %v10775_v54 }
 0x819   : > { %2429 = vmax.xlane.f32.xlu1 %v2368_v28 }
 0x81a   : > { %2427 = vmax.xlane.f32.xlu0 %v2365_v57 }
 0x81b   : > { %v7474_v62 = vpop.f32.mrb[36].mxu1 }
 0x81c   : > { %v2380_v45 = vpop.f32.mrb[37].mxu1  ;;  %v11110_v55 = vadd.f32 %v7474_v62, %v10784_v48 }
 0x81d   : > { %v7475_v32 = vpop.f32.mrb[38].mxu1  ;;  %v11118_v53 = vadd.f32 %v2380_v45, %v13245_v24 }
 0x81e   : > { %v11107_v58 = vadd.f32 %v7475_v32, %v10793_v20  ;;  %2433 = vmax.xlane.f32.xlu0 %v2376_v31  ;;  %v2383_v26 = vpop.f32.mrb[39].mxu1 }
 0x81f   : > { %v11114_v16 = vadd.f32 %v2383_v26, %v10811_v22  ;;  %v13248_v26 = vld [vmem:[#allocation72_spill] sm:$0xff] }
 0x820   : > { %2441 = vmax.xlane.f32.xlu1 %v11107_v58 }
 0x822   : > { %2439 = vmax.xlane.f32.xlu0 %v11110_v55 }
 0x823   : > { %v7478_v23 = vpop.f32.mrb[40].mxu1 }
 0x824   : > { %2437 = vmax.xlane.f32.xlu1 %v11114_v16  ;;  %v2396_v32 = vpop.f32.mrb[41].mxu1  ;;  %v11126_v52 = vadd.f32 %v7478_v23, %v13247_v30  ;;  %v13250_v23 = vld [vmem:[#allocation73_spill] sm:$0xff] }
 0x825   : > { %v7479_v34 = vpop.f32.mrb[42].mxu1  ;;  %v11134_v27 = vadd.f32 %v2396_v32, %v13249_v7  ;;  %v13252_v32 = vld [vmem:[#allocation59_spill] sm:$0xff] }
 0x826   : > { %v11122_v39 = vadd.f32 %v7479_v34, %v13246_v8  ;;  %2435 = vmax.xlane.f32.xlu0 %v11118_v53  ;;  %v2399_v62 = vpop.f32.mrb[43].mxu1  ;;  %v13254_v7 = vld [vmem:[#allocation75_spill] sm:$0xff] }
 0x827   : > { %v11130_v4 = vadd.f32 %v2399_v62, %v13248_v26  ;;  %v13251_v62 = vld [vmem:[#allocation74_spill] sm:$0xff] }
 0x828   : > { %2449 = vmax.xlane.f32.xlu1 %v11122_v39 }
 0x82a   : > { %2447 = vmax.xlane.f32.xlu0 %v11126_v52 }
 0x82b   : > { %v7482_v45 = vpop.f32.mrb[44].mxu1 }
 0x82c   : > { %2445 = vmax.xlane.f32.xlu1 %v11130_v4  ;;  %v2412_v34 = vpop.f32.mrb[45].mxu1  ;;  %v11139_v46 = vadd.f32 %v7482_v45, %v13250_v23  ;;  %v13255_v45 = vld [vmem:[#allocation76_spill] sm:$0xff] }
 0x82d   : > { %v7483_v6 = vpop.f32.mrb[46].mxu1  ;;  %v11143_v33 = vadd.f32 %v2412_v34, %v13251_v62  ;;  %v11158_v34 = vpop.permute.xlu1 %3000 }
 0x82e   : > { %2443 = vmax.xlane.f32.xlu0 %v11134_v27  ;;  %v2415_v43 = vpop.f32.mrb[47].mxu1  ;;  %v11151_v41 = vadd.f32 %v7483_v6, %v13254_v7 }
 0x82f   : > { %v11155_v23 = vadd.f32 %v2415_v43, %v13255_v45 }
 0x832   : > { %2455 = vmax.xlane.f32.xlu0 %v11139_v46 }
 0x836   : > { %2451 = vmax.xlane.f32.xlu0 %v11143_v33 }
 0x83d   : > { %3004 = vrot.lane.b32.xlu1 %v13252_v32, %s9514_s20 }
 0x84c   : > { %3002 = vrot.lane.b32.xlu0 %v13253_v9, %s9514_s20 }
 0x861   : > { %2457 = vmax.xlane.f32.xlu1 %v11151_v41 }
 0x865   : > { %2453 = vmax.xlane.f32.xlu1 %v11155_v23 }
 0x8a3   : > { %v2432_v62 = vpop.xlane.xlu0 %2431 }
 0x8a4   : > { %v2461_v38 = vsub.f32 %v2373_v13, %v2432_v62 }
 0x8a6   : > { %v2479_v60 = vmul.f32 1.442695, %v2461_v38  ;;  %v2430_v15 = vpop.xlane.xlu1 %2429 }
 0x8a7   : > { %v2460_v26 = vsub.f32 %v2368_v28, %v2430_v15  ;;  %v2428_v30 = vpop.xlane.xlu0 %2427 }
 0x8a8   : > { %8292 = vpow2.f32 %v2479_v60  ;;  %v2459_v8 = vsub.f32 %v2365_v57, %v2428_v30  ;;  %v13257_v60 = vld [vmem:[#allocation63_spill] sm:$0xff] }
 0x8a9   : > { %v2477_v22 = vmul.f32 1.442695, %v2460_v26 }
 0x8aa   : > { %v2475_v6 = vmul.f32 1.442695, %v2459_v8 }
 0x8ab   : > { %8294 = vpow2.f32 %v2477_v22  ;;  %v2434_v7 = vpop.xlane.xlu0 %2433 }
 0x8ac   : > { %8296 = vpow2.f32 %v2475_v6  ;;  %v2462_v10 = vsub.f32 %v2376_v31, %v2434_v7  ;;  %v13256_v7 = vld [vmem:[#allocation62_spill] sm:$0xff] }
 0x8ad   : > { %v2442_v15 = vpop.xlane.xlu1 %2441 }
 0x8ae   : > { %v2481_v43 = vmul.f32 1.442695, %v2462_v10  ;;  %v2466_v21 = vsub.f32 %v11107_v58, %v2442_v15 }
 0x8af   : > { %v2440_v22 = vpop.xlane.xlu0 %2439 }
 0x8b0   : > { %8298 = vpow2.f32 %v2481_v43  ;;  %v2465_v13 = vsub.f32 %v11110_v55, %v2440_v22  ;;  %v2489_v24 = vmul.f32 1.442695, %v2466_v21 }
 0x8b1   : > { %v2438_v28 = vpop.xlane.xlu1 %2437 }
 0x8b2   : > { %v11160_v45 = vpop.eup %8292  ;;  %v2487_v31 = vmul.f32 1.442695, %v2465_v13  ;;  %v2464_v62 = vsub.f32 %v11114_v16, %v2438_v28 }
 0x8b3   : > { %2511 = vadd.xlane.f32.xlu1 %v11160_v45  ;;  %v2436_v10 = vpop.xlane.xlu0 %2435 }
 0x8b4   : > { %v2463_v26 = vsub.f32 %v11118_v53, %v2436_v10  ;;  %8300 = vpow2.f32 %v2487_v31  ;;  %v2485_v20 = vmul.f32 1.442695, %v2464_v62 }
 0x8b5   : > { %v11163_v50 = vpop.eup %8294  ;;  %v2450_v6 = vpop.xlane.xlu1 %2449 }
 0x8b6   : > { %v11165_v38 = vpop.eup %8296  ;;  %2509 = vadd.xlane.f32.xlu0 %v11163_v50  ;;  %v2483_v36 = vmul.f32 1.442695, %v2463_v26  ;;  %v2470_v58 = vsub.f32 %v11122_v39, %v2450_v6 }
 0x8b7   : > { %2507 = vadd.xlane.f32.xlu1 %v11165_v38  ;;  %v2448_v8 = vpop.xlane.xlu0 %2447 }
 0x8b8   : > { %v2469_v48 = vsub.f32 %v11126_v52, %v2448_v8  ;;  %8302 = vpow2.f32 %v2483_v36 }
 0x8b9   : > { %v2446_v44 = vpop.xlane.xlu1 %2445  ;;  %8304 = vpow2.f32 %v2485_v20 }
 0x8ba   : > { %v11169_v30 = vpop.eup %8298  ;;  %v2495_v22 = vmul.f32 1.442695, %v2469_v48  ;;  %8306 = vpow2.f32 %v2489_v24  ;;  %v2497_v48 = vmul.f32 1.442695, %v2470_v58 }
 0x8bb   : > { %2513 = vadd.xlane.f32.xlu1 %v11169_v30  ;;  %v2444_v57 = vpop.xlane.xlu0 %2443 }
 0x8bc   : > { %v2467_v53 = vsub.f32 %v11134_v27, %v2444_v57  ;;  %8308 = vpow2.f32 %v2495_v22  ;;  %v2468_v27 = vsub.f32 %v11130_v4, %v2446_v44 }
 0x8bd   : > { %v11187_v52 = vpop.permute.xlu1 %3004 }
 0x8be   : > { %v2491_v15 = vmul.f32 1.442695, %v2467_v53  ;;  %v11185_v28 = vpop.eup %8300 }
 0x8bf   : > { %v2456_v43 = vpop.xlane.xlu0 %2455 }
 0x8c0   : > { %v2473_v55 = vsub.f32 %v11139_v46, %v2456_v43 }
 0x8c2   : > { %v2503_v16 = vmul.f32 1.442695, %v2473_v55  ;;  %v11191_v20 = vpop.eup %8302 }
 0x8c3   : > { %v2452_v10 = vpop.xlane.xlu0 %2451  ;;  %v11193_v36 = vpop.eup %8304 }
 0x8c4   : > { %v2471_v13 = vsub.f32 %v11143_v33, %v2452_v10  ;;  %8310 = vpow2.f32 %v2503_v16  ;;  %v2493_v33 = vmul.f32 1.442695, %v2468_v27  ;;  %v11198_v8 = vpop.eup %8306 }
 0x8c5   : > { %8312 = vpow2.f32 %v2491_v15 }
 0x8c6   : > { %v2499_v46 = vmul.f32 1.442695, %v2471_v13  ;;  %v11200_v44 = vpop.eup %8308 }
 0x8c8   : > { %8314 = vpow2.f32 %v2499_v46  ;;  %v8108_v46 = vld [vmem:[%s10302_s2 + $0x10] sm:$0xff]  }
 0x8c9   : > { %8316 = vpow2.f32 %v2497_v48  ;;  %7516 = vmatprep.subr.bf16.mxu0 %v8108_v46 }
 0x8ca   : > { %7517 = vmatpush3.bf16.msra.mxu0 %v8108_v46 }
 0x8cc   : > { %3006 = vrot.lane.b32.xlu0 %v13256_v7, %s9514_s20  ;;  %3008 = vrot.lane.b32.xlu1 %v13257_v60, %s9514_s20 }
 0x8ce   : > { %v11205_v31 = vpop.eup %8310 }
 0x8cf   : > { %v11207_v26 = vpop.eup %8312 }
 0x8d2   : > { %v11211_v62 = vpop.eup %8314 }
 0x8d3   : > { %v11213_v6 = vpop.eup %8316 }
 0x8eb   : > { %2519 = vadd.xlane.f32.xlu0 %v11185_v28 }
 0x8ee   : > { %v2458_v21 = vpop.xlane.xlu1 %2457 }
 0x8ef   : > { %v2474_v39 = vsub.f32 %v11151_v41, %v2458_v21  ;;  %2515 = vadd.xlane.f32.xlu0 %v11191_v20 }
 0x8f0   : > { %2517 = vadd.xlane.f32.xlu1 %v11193_v36 }
 0x8f1   : > { %v2505_v24 = vmul.f32 1.442695, %v2474_v39 }
 0x8f2   : > { %v2454_v57 = vpop.xlane.xlu1 %2453 }
 0x8f3   : > { %8318 = vpow2.f32 %v2505_v24  ;;  %v2472_v4 = vsub.f32 %v11155_v23, %v2454_v57  ;;  %2521 = vadd.xlane.f32.xlu0 %v11198_v8 }
 0x8f4   : > { %2527 = vadd.xlane.f32.xlu1 %v11200_v44  ;;  %8320 = vpow2.f32 %v2493_v33 }
 0x8f5   : > { %v2501_v41 = vmul.f32 1.442695, %v2472_v4 }
 0x8f7   : > { %2535 = vadd.xlane.f32.xlu0 %v11205_v31  ;;  %8322 = vpow2.f32 %v2501_v41 }
 0x8f8   : > { %2523 = vadd.xlane.f32.xlu1 %v11207_v26 }
 0x8fb   : > { %2531 = vadd.xlane.f32.xlu0 %v11211_v62 }
 0x8fc   : > { %2529 = vadd.xlane.f32.xlu1 %v11213_v6 }
 0x8fd   : > { %v11217_v23 = vpop.eup %8318 }
 0x8fe   : > { %v11219_v43 = vpop.eup %8320 }
 0x8ff   : > { %2537 = vadd.xlane.f32.xlu0 %v11217_v23 }
 0x900   : > { %2525 = vadd.xlane.f32.xlu1 %v11219_v43 }
 0x901   : > { %v11223_v55 = vpop.eup %8322 }
 0x904   : > { %2533 = vadd.xlane.f32.xlu1 %v11223_v55 }
 0x915   : > { %3012 = vrot.lane.b32.xlu1 %v10717_v14, %s9514_s20  ;;  %3010 = vrot.lane.b32.xlu0 %v10705_v61, %s9514_s20 }
 0x919   : > { %2984 = vrot.lane.b32.xlu1 %v10608_v63, %s9514_s20  ;;  %2982 = vrot.lane.b32.xlu0 %v10581_v42, %s9514_s20 }
 0x91d   : > { %2988 = vrot.lane.b32.xlu1 %v10658_v59, %s9514_s20  ;;  %2986 = vrot.lane.b32.xlu0 %v10634_v25, %s9514_s20 }
 0x921   : > { %2992 = vrot.lane.b32.xlu1 %v10695_v47, %s9514_s20  ;;  %2990 = vrot.lane.b32.xlu0 %v10682_v18, %s9514_s20 }
 0x925   : > { %2996 = vrot.lane.b32.xlu1 %v10719_v56, %s9514_s20  ;;  %2994 = vrot.lane.b32.xlu0 %v10707_v2, %s9514_s20 }
 0x929   : > { %3607 = vrot.lane.b32.xlu1 %v10605_v19, %s9515_s0  ;;  %3605 = vrot.lane.b32.xlu0 %v10579_v0, %s9515_s0  ;;  %v3003_v0 = vpop.permute.xlu0 %3002 }
 0x92d   : > { %3611 = vrot.lane.b32.xlu1 %v13252_v32, %s9515_s0  ;;  %3609 = vrot.lane.b32.xlu0 %v13253_v9, %s9515_s0 }
 0x931   : > { %3615 = vrot.lane.b32.xlu1 %v13257_v60, %s9515_s0  ;;  %3613 = vrot.lane.b32.xlu0 %v13256_v7, %s9515_s0  ;;  %v3039_v60 = vsel %vm1831_vm0, %v11050_v37, 0 }
 0x935   : > { %3619 = vrot.lane.b32.xlu1 %v10717_v14, %s9515_s0  ;;  %3617 = vrot.lane.b32.xlu0 %v10705_v61, %s9515_s0 }
 0x939   : > { %3591 = vrot.lane.b32.xlu1 %v10608_v63, %s9515_s0  ;;  %3589 = vrot.lane.b32.xlu0 %v10581_v42, %s9515_s0 }
 0x93d   : > { %3595 = vrot.lane.b32.xlu1 %v10658_v59, %s9515_s0  ;;  %3593 = vrot.lane.b32.xlu0 %v10634_v25, %s9515_s0 }
 0x940   : > { %v2512_v19 = vpop.xlane.xlu1 %2511 }
 0x941   : > { %3599 = vrot.lane.b32.xlu1 %v10695_v47, %s9515_s0  ;;  %3597 = vrot.lane.b32.xlu0 %v10682_v18, %s9515_s0 }
 0x943   : > { %v2510_v61 = vpop.xlane.xlu0 %2509 }
 0x944   : > { %8324 = vrcp.f32 %v2510_v61  ;;  %v2508_v63 = vpop.xlane.xlu1 %2507 }
 0x945   : > { %8326 = vrcp.f32 %v2508_v63  ;;  %3603 = vrot.lane.b32.xlu1 %v10719_v56, %s9515_s0  ;;  %3601 = vrot.lane.b32.xlu0 %v10707_v2, %s9515_s0 }
 0x946   : > { %8328 = vrcp.f32 %v2512_v19 }
 0x947   : > { %v3007_v37 = vpop.permute.xlu0 %3006 }
 0x948   : > { %v2514_v42 = vpop.xlane.xlu1 %2513 }
 0x949   : > { %8330 = vrcp.f32 %v2514_v42  ;;  %3313 = vrot.lane.b32.xlu1 %v10593_v1, %s9514_s20  ;;  %3311 = vrot.lane.b32.xlu0 %v10598_v51, %s9514_s20 }
 0x94d   : > { %3315 = vrot.lane.b32.xlu0 %v10624_v11, %s9514_s20 }
 0x94e   : > { %v8325_v25 = vpop.eup %8324 }
 0x94f   : > { %v8327_v59 = vpop.eup %8326  ;;  %v2556_v18 = vmul.f32 %v8325_v25, %v11163_v50  ;;  %v3042_v50 = vsel %vm1831_vm0, %v11158_v34, 0 }
 0x950   : > { %v2555_v47 = vmul.f32 %v8327_v59, %v11165_v38  ;;  %v8329_v14 = vpop.eup %8328  ;;  %v3048_v38 = vsel %vm1831_vm0, %v11187_v52, 0 }
 0x951   : > { %v2557_v9 = vmul.f32 %v8329_v14, %v11160_v45  ;;  %v3045_v45 = vsel %vm1831_vm0, %v3003_v0, 0 }
 0x952   : > { %v2571_v2 = vpack.c.bf16 %v2556_v18, %v2555_v47 }
 0x953   : > { %v8331_v56 = vpop.eup %8330 }
 0x954   : > { %v2558_v32 = vmul.f32 %v8331_v56, %v11169_v30  ;;  %7500 = vmatprep.mubr.bf16.mxu1 %v2571_v2  ;;  %v3051_v30 = vsel %vm1831_vm0, %v3007_v37, 0 }
 0x956   : > { %v2572_v7 = vpack.c.bf16 %v2558_v32, %v2557_v9 }
 0x958   : > { %7501 = vmatmul.mubr.bf16.vlgmr.msra.gmra.mrb[48].mxu1 %v2572_v7 }
 0x959   : > { %7557 = vmatpush3.bf16.xpose.msra.mxu1 %v3039_v60 }
 0x95a   : > { %7837 = vmatprep.subr.msk.bf16.mxu1 %vm1831_vm0, %v11158_v34  ;;  %v3009_v34 = vpop.permute.xlu1 %3008 }
 0x95b   : > { %v3054_v16 = vsel %vm1831_vm0, %v3009_v34, 0 }
 0x961   : > { %7559 = vmatpush3.bf16.xpose.msra.mxu1 %v3042_v50 }
 0x962   : > { %7838 = vmatprep.subr.msk.bf16.mxu1 %vm1831_vm0, %v3003_v0 }
 0x969   : > { %7561 = vmatpush3.bf16.xpose.msra.mxu1 %v3045_v45 }
 0x96a   : > { %7839 = vmatprep.subr.msk.bf16.mxu1 %vm1831_vm0, %v11187_v52 }
 0x971   : > { %7563 = vmatpush3.bf16.xpose.msra.mxu1 %v3048_v38 }
 0x972   : > { %7840 = vmatprep.subr.msk.bf16.mxu1 %vm1831_vm0, %v3007_v37 }
 0x978   : > { %v2520_v22 = vpop.xlane.xlu0 %2519 }
 0x979   : > { %7565 = vmatpush3.bf16.xpose.msra.mxu1 %v3051_v30 }
 0x97a   : > { %7841 = vmatprep.subr.msk.bf16.mxu1 %vm1831_vm0, %v3009_v34 }
 0x97c   : > { %v2516_v53 = vpop.xlane.xlu0 %2515 }
 0x97d   : > { %8332 = vrcp.f32 %v2516_v53  ;;  %v2518_v10 = vpop.xlane.xlu1 %2517 }
 0x97e   : > { %8334 = vrcp.f32 %v2518_v10 }
 0x97f   : > { %8336 = vrcp.f32 %v2520_v22 }
 0x980   : > { %v2522_v13 = vpop.xlane.xlu0 %2521 }
 0x981   : > { %7567 = vmatpush3.bf16.xpose.msra.mxu1 %v3054_v16  ;;  %8338 = vrcp.f32 %v2522_v13  ;;  %v2528_v58 = vpop.xlane.xlu1 %2527 }
 0x984   : > { %v2536_v15 = vpop.xlane.xlu0 %2535 }
 0x985   : > { %v2524_v52 = vpop.xlane.xlu1 %2523 }
 0x987   : > { %v8333_v48 = vpop.eup %8332 }
 0x988   : > { %v8335_v27 = vpop.eup %8334  ;;  %v2532_v21 = vpop.xlane.xlu0 %2531  ;;  %v2559_v39 = vmul.f32 %v8333_v48, %v11191_v20 }
 0x989   : > { %v8337_v33 = vpop.eup %8336  ;;  %v2530_v24 = vpop.xlane.xlu1 %2529  ;;  %v2560_v57 = vmul.f32 %v8335_v27, %v11193_v36 }
 0x98a   : > { %8340 = vrcp.f32 %v2530_v24  ;;  %v2561_v19 = vmul.f32 %v8337_v33, %v11185_v28 }
 0x98b   : > { %v8339_v4 = vpop.eup %8338  ;;  %v2573_v41 = vpack.c.bf16 %v2560_v57, %v2559_v39  ;;  %8342 = vrcp.f32 %v2524_v52 }
 0x98c   : > { %v2538_v0 = vpop.xlane.xlu0 %2537  ;;  %v2562_v61 = vmul.f32 %v8339_v4, %v11198_v8  ;;  %8344 = vrcp.f32 %v2528_v58 }
 0x98d   : > { %v2526_v63 = vpop.xlane.xlu1 %2525  ;;  %7504 = vmatprep.mubr.bf16.mxu1 %v2573_v41 }
 0x98e   : > { %8346 = vrcp.f32 %v2526_v63  ;;  %v2574_v20 = vpack.c.bf16 %v2562_v61, %v2561_v19 }
 0x98f   : > { %8348 = vrcp.f32 %v2532_v21 }
 0x990   : > { %7505 = vmatmul.mubr.bf16.gmra.mrb[52].mxu1 %v2574_v20  ;;  %v3011_v42 = vpop.permute.xlu0 %3010 }
 0x991   : > { %v2534_v25 = vpop.xlane.xlu1 %2533  ;;  %7842 = vmatprep.subr.msk.bf16.mxu1 %vm1831_vm0, %v3011_v42  ;;  %v3057_v36 = vsel %vm1831_vm0, %v3011_v42, 0 }
 0x992   : > { %8350 = vrcp.f32 %v2534_v25  ;;  %7569 = vmatpush3.bf16.xpose.msra.mxu1 %v3057_v36 }
 0x993   : > { %8352 = vrcp.f32 %v2538_v0 }
 0x994   : > { %v2983_v59 = vpop.permute.xlu0 %2982  ;;  %v8341_v28 = vpop.eup %8340  ;;  %8354 = vrcp.f32 %v2536_v15 }
 0x995   : > { %v3013_v8 = vpop.permute.xlu1 %3012  ;;  %v8343_v18 = vpop.eup %8342  ;;  %v2566_v56 = vmul.f32 %v8341_v28, %v11213_v6 }
 0x996   : > { %7843 = vmatprep.subr.msk.bf16.mxu1 %vm1831_vm0, %v3013_v8  ;;  %v8345_v47 = vpop.eup %8344  ;;  %v3060_v32 = vsel %vm1831_vm0, %v3013_v8, 0  ;;  %v2563_v7 = vmul.f32 %v8343_v18, %v11207_v26 }
 0x997   : > { %v2565_v45 = vmul.f32 %v8345_v47, %v11200_v44  ;;  %v13258_v47 = vmov 0  }
 0x998   : > { %v8347_v14 = vpop.eup %8346  ;;  %v2987_v2 = vpop.permute.xlu0 %2986 }
 0x999   : > { %v2985_v9 = vpop.permute.xlu1 %2984  ;;  %v2564_v60 = vmul.f32 %v8347_v14, %v11219_v43  ;;  %v8349_v50 = vpop.eup %8348  ;;  %v2576_v22 = vpack.c.bf16 %v2566_v56, %v2565_v45 }
 0x99a   : > { %7571 = vmatpush3.bf16.xpose.msra.mxu1 %v3060_v32  ;;  %v2567_v6 = vmul.f32 %v8349_v50, %v11211_v62 }
 0x99b   : > { %v2575_v38 = vpack.c.bf16 %v2564_v60, %v2563_v7  ;;  %v8111_v60 = vld [vmem:[%s10302_s2 + $0x8] sm:$0xff]  }
 0x99c   : > { %v8351_v37 = vpop.eup %8350  ;;  %v2991_v30 = vpop.permute.xlu0 %2990 }
 0x99d   : > { %v8353_v34 = vpop.eup %8352  ;;  %v2989_v53 = vpop.permute.xlu1 %2988  ;;  %7508 = vmatprep.mubr.bf16.mxu1 %v2575_v38  ;;  %v2568_v10 = vmul.f32 %v8351_v37, %v11223_v55  ;;  %v8109_v55 = vld [vmem:[%s10302_s2 + $0x18] sm:$0xff]  }
 0x99e   : > { %7509 = vmatmul.mubr.bf16.gmra.mrb[56].mxu1 %v2576_v22  ;;  %v8355_v26 = vpop.eup %8354  ;;  %v2570_v13 = vmul.f32 %v8353_v34, %v11217_v23  ;;  %7518 = vmatprep.subr.bf16.mxu0 %v8109_v55 }
 0x99f   : > { %v2577_v16 = vpack.c.bf16 %v2568_v10, %v2567_v6  ;;  %v2569_v44 = vmul.f32 %v8355_v26, %v11205_v31  ;;  %7519 = vmatpush3.bf16.msra.mxu0 %v8109_v55  ;;  %v8110_v31 = vld [vmem:[%s10302_s2] sm:$0xff]   ;;  %v13259_v55 = vpack.c.bf16 %v11062_v49, %v11056_v29  ;;  %v13260_v29 = vpack.c.bf16 %v11058_v5, %v11054_v3 }
 0x9a0   : > { %v2995_v43 = vpop.permute.xlu0 %2994  ;;  %7536 = vmatprep.subr.bf16.mxu0 %v8110_v31 }
 0x9a1   : > { %7512 = vmatprep.mubr.bf16.mxu1 %v2577_v16  ;;  %v2993_v58 = vpop.permute.xlu1 %2992  ;;  %v2578_v52 = vpack.c.bf16 %v2570_v13, %v2569_v44 }
 0x9a4   : > { %v3606_v15 = vpop.permute.xlu0 %3605 }
 0x9a5   : > { %7844 = vmatprep.subr.msk.bf16.mxu1 %vm1831_vm0, %v3606_v15  ;;  %v2997_v62 = vpop.permute.xlu1 %2996  ;;  %v3646_v46 = vsel %vm1831_vm0, %v3606_v15, 0 }
 0x9a6   : > { %7513 = vmatmul.mubr.bf16.gmra.mrb[60].mxu1 %v2578_v52 }
 0x9a7   : > { %7572 = vmatprep.mubr.msk.bf16.mxu1 %vm1831_vm0, %v2983_v59 }
 0x9a8   : > { %v3610_v23 = vpop.permute.xlu0 %3609 }
 0x9a9   : > { %v3608_v48 = vpop.permute.xlu1 %3607  ;;  %v3652_v39 = vsel %vm1831_vm0, %v3610_v23, 0 }
 0x9aa   : > { %v3649_v27 = vsel %vm1831_vm0, %v3608_v48, 0 }
 0x9ac   : > { %v3614_v21 = vpop.permute.xlu0 %3613 }
 0x9ad   : > { %v3612_v33 = vpop.permute.xlu1 %3611  ;;  %v3658_v41 = vsel %vm1831_vm0, %v3614_v21, 0 }
 0x9ae   : > { %7573 = vmatmul.mubr.msk.bf16.vlgmr.msra.gmra.mrb[64].mxu1 %vm1831_vm0, %v2985_v9  ;;  %v3655_v4 = vsel %vm1831_vm0, %v3612_v33, 0 }
 0x9af   : > { %7641 = vmatpush3.bf16.xpose.msra.mxu1 %v3646_v46  ;;  %7576 = vmatprep.mubr.msk.bf16.mxu1 %vm1831_vm0, %v2987_v2 }
 0x9b0   : > { %7845 = vmatprep.subr.msk.bf16.mxu1 %vm1831_vm0, %v3608_v48  ;;  %v3618_v24 = vpop.permute.xlu0 %3617 }
 0x9b1   : > { %v3616_v0 = vpop.permute.xlu1 %3615  ;;  %v3664_v61 = vsel %vm1831_vm0, %v3618_v24, 0 }
 0x9b2   : > { %v3661_v19 = vsel %vm1831_vm0, %v3616_v0, 0 }
 0x9b4   : > { %v3590_v57 = vpop.permute.xlu0 %3589 }
 0x9b5   : > { %v3620_v63 = vpop.permute.xlu1 %3619 }
 0x9b6   : > { %7577 = vmatmul.mubr.msk.bf16.gmra.mrb[68].mxu1 %vm1831_vm0, %v2989_v53  ;;  %v3667_v20 = vsel %vm1831_vm0, %v3620_v63, 0 }
 0x9b7   : > { %7643 = vmatpush3.bf16.xpose.msra.mxu1 %v3649_v27  ;;  %7580 = vmatprep.mubr.msk.bf16.mxu1 %vm1831_vm0, %v2991_v30 }
 0x9b8   : > { %7846 = vmatprep.subr.msk.bf16.mxu1 %vm1831_vm0, %v3610_v23  ;;  %v3594_v25 = vpop.permute.xlu0 %3593 }
 0x9b9   : > { %v3592_v42 = vpop.permute.xlu1 %3591 }
 0x9bc   : > { %v3598_v59 = vpop.permute.xlu0 %3597 }
 0x9bd   : > { %v3596_v36 = vpop.permute.xlu1 %3595 }
 0x9be   : > { %7581 = vmatmul.mubr.msk.bf16.gmra.mrb[72].mxu1 %vm1831_vm0, %v2993_v58 }
 0x9bf   : > { %7645 = vmatpush3.bf16.xpose.msra.mxu1 %v3652_v39  ;;  %7584 = vmatprep.mubr.msk.bf16.mxu1 %vm1831_vm0, %v2995_v43 }
 0x9c0   : > { %7847 = vmatprep.subr.msk.bf16.mxu1 %vm1831_vm0, %v3612_v33  ;;  %v3602_v8 = vpop.permute.xlu0 %3601  ;;  %v13261_v33 = vpack.c.bf16 %v11074_v12, %v11068_v17  ;;  %v13264_v17 = vld [vmem:[#allocation65_spill] sm:$0xff] }
 0x9c1   : > { %v3600_v28 = vpop.permute.xlu1 %3599 }
 0x9c4   : > { %v3312_v50 = vpop.permute.xlu0 %3311 }
 0x9c5   : > { %v3604_v18 = vpop.permute.xlu1 %3603 }
 0x9c6   : > { %7585 = vmatmul.mubr.msk.bf16.gmra.mrb[76].mxu1 %vm1831_vm0, %v2997_v62 }
 0x9c7   : > { %7647 = vmatpush3.bf16.xpose.msra.mxu1 %v3655_v4  ;;  %7656 = vmatprep.mubr.msk.bf16.mxu1 %vm1831_vm0, %v3590_v57  ;;  %v13262_v57 = vld [vmem:[#allocation64_spill] sm:$0xff] }
 0x9c8   : > { %7848 = vmatprep.subr.msk.bf16.mxu1 %vm1831_vm0, %v3614_v21 }
 0x9c9   : > { %v3314_v49 = vpop.permute.xlu1 %3313 }
 0x9cf   : > { %7649 = vmatpush3.bf16.xpose.msra.mxu1 %v3658_v41 }
 0x9d0   : > { %7849 = vmatprep.subr.msk.bf16.mxu1 %vm1831_vm0, %v3616_v0  ;;  %v13263_v0 = vld [vmem:[#allocation67_spill] sm:$0xff] }
 0x9d7   : > { %7651 = vmatpush3.bf16.xpose.msra.mxu1 %v3661_v19 }
 0x9d8   : > { %7850 = vmatprep.subr.msk.bf16.mxu1 %vm1831_vm0, %v3618_v24 }
 0x9df   : > { %7653 = vmatpush3.bf16.xpose.msra.mxu1 %v3664_v61  ;;  %v3316_v61 = vpop.permute.xlu0 %3315 }
 0x9e0   : > { %7851 = vmatprep.subr.msk.bf16.mxu1 %vm1831_vm0, %v3620_v63  ;;  %v13265_v63 = vld [vmem:[#allocation66_spill] sm:$0xff] }
 0x9e7   : > { %7655 = vmatpush3.bf16.xpose.msra.mxu1 %v3667_v20 }
 0x9ee   : > { %7657 = vmatmul.mubr.msk.bf16.vlgmr.msra.gmra.mrb[80].mxu1 %vm1831_vm0, %v3592_v42  ;;  %v13266_v42 = vld [vmem:[#allocation78_spill] sm:$0xff] }
 0x9ef   : > { %7660 = vmatprep.mubr.msk.bf16.mxu1 %vm1831_vm0, %v3594_v25  ;;  %v13267_v25 = vld [vmem:[#allocation77_spill] sm:$0xff] }
 0x9f6   : > { %7661 = vmatmul.mubr.msk.bf16.gmra.mrb[84].mxu1 %vm1831_vm0, %v3596_v36  ;;  %v13268_v36 = vpack.c.bf16 %v13266_v42, %v13267_v25 }
 0x9f7   : > { %7664 = vmatprep.mubr.msk.bf16.mxu1 %vm1831_vm0, %v3598_v59  ;;  %v13269_v59 = vld [vmem:[#allocation82_spill] sm:$0xff] }
 0x9fe   : > { %7665 = vmatmul.mubr.msk.bf16.gmra.mrb[88].mxu1 %vm1831_vm0, %v3600_v28  ;;  %v13270_v28 = vld [vmem:[#allocation80_spill] sm:$0xff] }
 0x9ff   : > { %7668 = vmatprep.mubr.msk.bf16.mxu1 %vm1831_vm0, %v3602_v8  ;;  %v13271_v8 = vpack.c.bf16 %v13269_v59, %v13270_v28 }
 0xa06   : > { %7669 = vmatmul.mubr.msk.bf16.gmra.mrb[92].mxu1 %vm1831_vm0, %v3604_v18 }
 0xa07   : > { %4711 = vmatprep.mubr.bf16.mxu1 %v13258_v47 }
 0xa2b   : > { %v7502_v14 = vpop.f32.mrb[48].mxu1 }
 0xa2c   : > { %v2645_v2 = vpop.f32.mrb[49].mxu1 }
 0xa2d   : > { %v7503_v56 = vpop.f32.mrb[50].mxu1 }
 0xa2e   : > { %v2709_v9 = vpack.c.bf16 %v7503_v56, %v7502_v14  ;;  %v2648_v32 = vpop.f32.mrb[51].mxu1  ;;  %v13272_v14 = vld [vmem:[#allocation68_spill] sm:$0xff] }
 0xa2f   : > { %v2708_v7 = vpack.c.bf16 %v2648_v32, %v2645_v2  ;;  %v13273_v32 = vld [vmem:[#allocation70_spill] sm:$0xff] }
 0xa31   : > { %7520 = vmatprep.mubr.msk.bf16.mxu0 %vm1831_vm0, %v2708_v7 }
 0xa32   : > { %7521 = vmatmul.mubr.msk.bf16.vlgmr.msra.gmra.mrb[48].mxu0 %vm1831_vm0, %v2709_v9 }
 0xa33   : > { %7537 = vmatpush3.bf16.msra.mxu0 %v8110_v31 }
 0xa34   : > { %7538 = vmatprep.subr.bf16.mxu0 %v8111_v60 }
 0xa37   : > { %7539 = vmatpush3.bf16.msra.mxu0 %v8111_v60 }
 0xa38   : > { %7588 = vmatprep.subr.bf16.mxu0 %v3312_v50 }
 0xa63   : > { %v7506_v45 = vpop.f32.mrb[52].mxu1 }
 0xa64   : > { %v2661_v38 = vpop.f32.mrb[53].mxu1 }
 0xa65   : > { %v7507_v37 = vpop.f32.mrb[54].mxu1 }
 0xa66   : > { %v2711_v30 = vpack.c.bf16 %v7507_v37, %v7506_v45  ;;  %v2664_v22 = vpop.f32.mrb[55].mxu1 }
 0xa67   : > { %v2710_v34 = vpack.c.bf16 %v2664_v22, %v2661_v38  ;;  %v13275_v38 = vld [vmem:[#allocation72_spill] sm:$0xff]  ;;  %v13277_v22 = vld [vmem:[#allocation79_spill] sm:$0xff] }
 0xa69   : > { %7524 = vmatprep.mubr.msk.bf16.mxu0 %vm1831_vm0, %v2710_v34 }
 0xa6a   : > { %7525 = vmatmul.mubr.msk.bf16.gmra.mrb[52].mxu0 %vm1831_vm0, %v2711_v30  ;;  %v13276_v30 = vld [vmem:[#allocation81_spill] sm:$0xff] }
 0xa6b   : > { %v13278_v34 = vpack.c.bf16 %v13276_v30, %v13277_v22 }
 0xa71   : > { %v7510_v53 = vpop.f32.mrb[56].mxu1 }
 0xa72   : > { %v2677_v6 = vpop.f32.mrb[57].mxu1 }
 0xa73   : > { %v7511_v10 = vpop.f32.mrb[58].mxu1 }
 0xa74   : > { %v2713_v26 = vpack.c.bf16 %v7511_v10, %v7510_v53  ;;  %v2680_v16 = vpop.f32.mrb[59].mxu1  ;;  %v13279_v53 = vld [vmem:[#allocation86_spill] sm:$0xff] }
 0xa75   : > { %v2712_v43 = vpack.c.bf16 %v2680_v16, %v2677_v6  ;;  %v13280_v6 = vld [vmem:[#allocation84_spill] sm:$0xff]  ;;  %v13282_v16 = vld [vmem:[#allocation71_spill] sm:$0xff] }
 0xa76   : > { %v13281_v10 = vpack.c.bf16 %v13279_v53, %v13280_v6 }
 0xa77   : > { %7528 = vmatprep.mubr.msk.bf16.mxu0 %vm1831_vm0, %v2712_v43 }
 0xa78   : > { %7529 = vmatmul.mubr.msk.bf16.gmra.mrb[56].mxu0 %vm1831_vm0, %v2713_v26 }
 0xa79   : > { %v7514_v13 = vpop.f32.mrb[60].mxu1 }
 0xa7a   : > { %v2693_v44 = vpop.f32.mrb[61].mxu1 }
 0xa7b   : > { %v7515_v58 = vpop.f32.mrb[62].mxu1 }
 0xa7c   : > { %v2715_v15 = vpack.c.bf16 %v7515_v58, %v7514_v13  ;;  %v2696_v52 = vpop.f32.mrb[63].mxu1 }
 0xa7d   : > { %v2714_v62 = vpack.c.bf16 %v2696_v52, %v2693_v44  ;;  %v13283_v44 = vld [vmem:[#allocation74_spill] sm:$0xff] }
 0xa7f   : > { %7532 = vmatprep.mubr.msk.bf16.mxu0 %vm1831_vm0, %v2714_v62  ;;  %v13284_v62 = vld [vmem:[#allocation73_spill] sm:$0xff] }
 0xa80   : > { %7533 = vmatmul.mubr.msk.bf16.gmra.mrb[60].mxu0 %vm1831_vm0, %v2715_v15 }
 0xa81   : > { %7540 = vmatprep.mubr.msk.bf16.mxu0 %vm1831_vm0, %v13259_v55  ;;  %v7574_v46 = vpop.f32.mrb[64].mxu1 }
 0xa82   : > { %v11370_v48 = vadd.f32 %v7574_v46, %v10752_v35  ;;  %v3096_v31 = vpop.f32.mrb[65].mxu1  ;;  %v13285_v46 = vld [vmem:[#allocation75_spill] sm:$0xff] }
 0xa83   : > { %v7575_v23 = vpop.f32.mrb[66].mxu1  ;;  %v11377_v39 = vadd.f32 %v3096_v31, %v10766_v40 }
 0xa84   : > { %3163 = vmax.xlane.f32.xlu0 %v11370_v48  ;;  %v3099_v27 = vpop.f32.mrb[67].mxu1  ;;  %v11390_v4 = vadd.f32 %v7575_v23, %v13262_v57  ;;  %v13286_v23 = vld [vmem:[#allocation85_spill] sm:$0xff] }
 0xa85   : > { %v11374_v21 = vadd.f32 %v3099_v27, %v10775_v54  ;;  %v13287_v27 = vld [vmem:[#allocation83_spill] sm:$0xff] }
 0xa87   : > { %3161 = vmax.xlane.f32.xlu1 %v11374_v21 }
 0xa88   : > { %7541 = vmatmul.mubr.msk.bf16.vlgmr.msra.gmra.mrb[48].mxu0 %vm1831_vm0, %v13260_v29  ;;  %3159 = vmax.xlane.f32.xlu0 %v11377_v39  ;;  %v13288_v29 = vpack.c.bf16 %v13286_v23, %v13287_v27 }
 0xa89   : > { %7589 = vmatpush3.bf16.msra.mxu0 %v3312_v50  ;;  %7544 = vmatprep.mubr.msk.bf16.mxu0 %vm1831_vm0, %v13261_v33  ;;  %v7578_v24 = vpop.f32.mrb[68].mxu1  ;;  %v13274_v50 = vld [vmem:[#allocation69_spill] sm:$0xff] }
 0xa8a   : > { %7590 = vmatprep.subr.bf16.mxu0 %v3314_v49  ;;  %v3112_v41 = vpop.f32.mrb[69].mxu1  ;;  %v11398_v12 = vadd.f32 %v7578_v24, %v13264_v17  ;;  %v13290_v24 = vld [vmem:[#allocation58_spill] sm:$0xff] }
 0xa8b   : > { %v11393_v19 = vadd.f32 %v3112_v41, %v13263_v0  ;;  %v7579_v3 = vpop.f32.mrb[70].mxu1  ;;  %v13291_v41 = vld [vmem:[#allocation57_spill] sm:$0xff] }
 0xa8c   : > { %3165 = vmax.xlane.f32.xlu0 %v11390_v4  ;;  %v3115_v5 = vpop.f32.mrb[71].mxu1  ;;  %v11401_v20 = vadd.f32 %v7579_v3, %v13265_v63  ;;  %v13292_v3 = vld [vmem:[#allocation54_spill] sm:$0xff] }
 0xa8d   : > { %7591 = vmatpush3.bf16.msra.mxu0 %v3314_v49  ;;  %3167 = vmax.xlane.f32.xlu1 %v11393_v19  ;;  %v11413_v2 = vadd.f32 %v3115_v5, %v13272_v14  ;;  %v13289_v49 = vld [vmem:[#allocation76_spill] sm:$0xff] }
 0xa8e   : > { %7592 = vmatprep.subr.bf16.mxu0 %v3316_v61 }
 0xa90   : > { %7545 = vmatmul.mubr.msk.bf16.gmra.mrb[52].mxu0 %vm1831_vm0, %v13268_v36  ;;  %3171 = vmax.xlane.f32.xlu0 %v11398_v12 }
 0xa91   : > { %7593 = vmatpush3.bf16.msra.mxu0 %v3316_v61  ;;  %7548 = vmatprep.mubr.msk.bf16.mxu0 %vm1831_vm0, %v13271_v8  ;;  %v7582_v18 = vpop.f32.mrb[72].mxu1 }
 0xa92   : > { %3173 = vmax.xlane.f32.xlu1 %v11401_v20  ;;  %v3128_v56 = vpop.f32.mrb[73].mxu1  ;;  %v11421_v45 = vadd.f32 %v7582_v18, %v13274_v50 }
 0xa93   : > { %v7583_v9 = vpop.f32.mrb[74].mxu1  ;;  %v11437_v43 = vadd.f32 %v3128_v56, %v13282_v16 }
 0xa94   : > { %v11417_v7 = vadd.f32 %v7583_v9, %v13273_v32  ;;  %3169 = vmax.xlane.f32.xlu0 %v11413_v2  ;;  %v3131_v60 = vpop.f32.mrb[75].mxu1 }
 0xa95   : > { %v11425_v37 = vadd.f32 %v3131_v60, %v13275_v38 }
 0xa96   : > { %3181 = vmax.xlane.f32.xlu1 %v11417_v7 }
 0xa98   : > { %7549 = vmatmul.mubr.msk.bf16.gmra.mrb[56].mxu0 %vm1831_vm0, %v13278_v34  ;;  %3179 = vmax.xlane.f32.xlu0 %v11421_v45 }
 0xa99   : > { %7552 = vmatprep.mubr.msk.bf16.mxu0 %vm1831_vm0, %v13281_v10  ;;  %v7586_v26 = vpop.f32.mrb[76].mxu1 }
 0xa9a   : > { %3177 = vmax.xlane.f32.xlu1 %v11425_v37  ;;  %v3144_v13 = vpop.f32.mrb[77].mxu1  ;;  %v11445_v55 = vadd.f32 %v7586_v26, %v13284_v62 }
 0xa9b   : > { %v11441_v58 = vadd.f32 %v3144_v13, %v13283_v44  ;;  %v7587_v15 = vpop.f32.mrb[78].mxu1 }
 0xa9c   : > { %3175 = vmax.xlane.f32.xlu0 %v11437_v43  ;;  %v3147_v52 = vpop.f32.mrb[79].mxu1  ;;  %v11449_v31 = vadd.f32 %v7587_v15, %v13285_v46 }
 0xa9d   : > { %v11457_v33 = vadd.f32 %v3147_v52, %v13289_v49 }
 0xa9e   : > { %3183 = vmax.xlane.f32.xlu1 %v11441_v58 }
 0xaa0   : > { %7553 = vmatmul.mubr.msk.bf16.gmra.mrb[60].mxu0 %vm1831_vm0, %v13288_v29  ;;  %3187 = vmax.xlane.f32.xlu0 %v11445_v55 }
 0xaa2   : > { %3189 = vmax.xlane.f32.xlu1 %v11449_v31 }
 0xaa4   : > { %3185 = vmax.xlane.f32.xlu0 %v11457_v33 }
 0xab3   : > { %3319 = vrot.lane.b32.xlu1 %v13290_v24, %s9514_s20 }
 0xab7   : > { %3321 = vrot.lane.b32.xlu1 %v13291_v41, %s9514_s20 }
 0xaba   : > { %3317 = vrot.lane.b32.xlu0 %v13292_v3, %s9514_s20 }
 0xac1   : > { %v11467_v5 = vpop.f32.mrb[80].mxu1 }
 0xac2   : > { %v11469_v61 = vpop.f32.mrb[81].mxu1 }
 0xac3   : > { %v11471_v42 = vpop.f32.mrb[82].mxu1 }
 0xac4   : > { %v11473_v25 = vpop.f32.mrb[83].mxu1 }
 0xac9   : > { %v11475_v36 = vpop.f32.mrb[84].mxu1 }
 0xaca   : > { %v11477_v59 = vpop.f32.mrb[85].mxu1 }
 0xacb   : > { %v11479_v28 = vpop.f32.mrb[86].mxu1 }
 0xacc   : > { %v11481_v8 = vpop.f32.mrb[87].mxu1 }
 0xad1   : > { %v11483_v18 = vpop.f32.mrb[88].mxu1 }
 0xad2   : > { %v11485_v56 = vpop.f32.mrb[89].mxu1 }
 0xad3   : > { %v11487_v9 = vpop.f32.mrb[90].mxu1 }
 0xad4   : > { %v11489_v60 = vpop.f32.mrb[91].mxu1 }
 0xad9   : > { %v11491_v30 = vpop.f32.mrb[92].mxu1 }
 0xada   : > { %v11493_v22 = vpop.f32.mrb[93].mxu1 }
 0xadb   : > { %v11495_v34 = vpop.f32.mrb[94].mxu1 }
 0xadc   : > { %13293 = vst [vmem:[#allocation59_spill] sm:$0xff] %v11495_v34  ;;  %v11497_v53 = vpop.f32.mrb[95].mxu1 }
 0xadd   : > { %13294 = vst [vmem:[#allocation56_spill] sm:$0xff] %v11497_v53 }
 0xb11   : > { %v3164_v6 = vpop.xlane.xlu0 %3163 }
 0xb12   : > { %v3193_v10 = vsub.f32 %v11370_v48, %v3164_v6 }
 0xb14   : > { %v3211_v26 = vmul.f32 1.442695, %v3193_v10  ;;  %v3162_v15 = vpop.xlane.xlu1 %3161 }
 0xb15   : > { %v3160_v13 = vpop.xlane.xlu0 %3159  ;;  %v3192_v27 = vsub.f32 %v11374_v21, %v3162_v15 }
 0xb16   : > { %8356 = vpow2.f32 %v3211_v26  ;;  %v3191_v52 = vsub.f32 %v11377_v39, %v3160_v13 }
 0xb17   : > { %v3209_v34 = vmul.f32 1.442695, %v3192_v27 }
 0xb18   : > { %v3207_v23 = vmul.f32 1.442695, %v3191_v52 }
 0xb19   : > { %v3166_v29 = vpop.xlane.xlu0 %3165 }
 0xb1a   : > { %8358 = vpow2.f32 %v3207_v23  ;;  %v3194_v47 = vsub.f32 %v11390_v4, %v3166_v29  ;;  %v3168_v41 = vpop.xlane.xlu1 %3167 }
 0xb1b   : > { %v3195_v46 = vsub.f32 %v11393_v19, %v3168_v41 }
 0xb1c   : > { %v3213_v11 = vmul.f32 1.442695, %v3194_v47 }
 0xb1d   : > { %v3172_v53 = vpop.xlane.xlu0 %3171  ;;  %v3215_v26 = vmul.f32 1.442695, %v3195_v46 }
 0xb1e   : > { %8360 = vpow2.f32 %v3213_v11  ;;  %v3197_v48 = vsub.f32 %v11398_v12, %v3172_v53 }
 0xb1f   : > { %v3174_v6 = vpop.xlane.xlu1 %3173  ;;  %8362 = vpow2.f32 %v3209_v34 }
 0xb20   : > { %v11505_v10 = vpop.eup %8356  ;;  %v3219_v39 = vmul.f32 1.442695, %v3197_v48  ;;  %v3198_v4 = vsub.f32 %v11401_v20, %v3174_v6 }
 0xb21   : > { %3243 = vadd.xlane.f32.xlu1 %v11505_v10  ;;  %v3170_v21 = vpop.xlane.xlu0 %3169 }
 0xb22   : > { %8364 = vpow2.f32 %v3219_v39  ;;  %v3196_v47 = vsub.f32 %v11413_v2, %v3170_v21  ;;  %v3221_v41 = vmul.f32 1.442695, %v3198_v4 }
 0xb23   : > { %v3182_v13 = vpop.xlane.xlu1 %3181  ;;  %8366 = vpow2.f32 %v3215_v26 }
 0xb24   : > { %v11510_v19 = vpop.eup %8358  ;;  %v3217_v11 = vmul.f32 1.442695, %v3196_v47  ;;  %v3202_v15 = vsub.f32 %v11417_v7, %v3182_v13 }
 0xb25   : > { %3239 = vadd.xlane.f32.xlu1 %v11510_v19  ;;  %v3180_v12 = vpop.xlane.xlu0 %3179 }
 0xb26   : > { %8368 = vpow2.f32 %v3217_v11  ;;  %v3201_v46 = vsub.f32 %v11421_v45, %v3180_v12  ;;  %v3229_v6 = vmul.f32 1.442695, %v3202_v15 }
 0xb27   : > { %v3178_v34 = vpop.xlane.xlu1 %3177  ;;  %8370 = vpow2.f32 %v3221_v41 }
 0xb28   : > { %v11514_v53 = vpop.eup %8360  ;;  %v3227_v20 = vmul.f32 1.442695, %v3201_v46  ;;  %v3200_v45 = vsub.f32 %v11425_v37, %v3178_v34 }
 0xb29   : > { %3245 = vadd.xlane.f32.xlu1 %v11514_v53  ;;  %v3176_v2 = vpop.xlane.xlu0 %3175  ;;  %v11519_v23 = vpop.eup %8362 }
 0xb2a   : > { %v3199_v52 = vsub.f32 %v11437_v43, %v3176_v2  ;;  %8372 = vpow2.f32 %v3227_v20  ;;  %v3225_v13 = vmul.f32 1.442695, %v3200_v45 }
 0xb2b   : > { %v3184_v27 = vpop.xlane.xlu1 %3183 }
 0xb2c   : > { %v11521_v29 = vpop.eup %8364  ;;  %v3223_v48 = vmul.f32 1.442695, %v3199_v52  ;;  %v3203_v39 = vsub.f32 %v11441_v58, %v3184_v27  ;;  %v13295_v27 = vld [vmem:[#allocation60_spill] sm:$0xff] }
 0xb2d   : > { %3241 = vadd.xlane.f32.xlu1 %v11519_v23  ;;  %3251 = vadd.xlane.f32.xlu0 %v11521_v29  ;;  %v3188_v7 = vpop.xlane.xlu0 %3187  ;;  %v11528_v26 = vpop.eup %8366 }
 0xb2e   : > { %8374 = vpow2.f32 %v3223_v48  ;;  %v3205_v43 = vsub.f32 %v11445_v55, %v3188_v7  ;;  %v3231_v11 = vmul.f32 1.442695, %v3203_v39  ;;  %v13296_v48 = vld [vmem:[#allocation61_spill] sm:$0xff] }
 0xb2f   : > { %v3190_v21 = vpop.xlane.xlu1 %3189  ;;  %8376 = vpow2.f32 %v3229_v6 }
 0xb30   : > { %v11530_v4 = vpop.eup %8368  ;;  %v3235_v47 = vmul.f32 1.442695, %v3205_v43  ;;  %v3206_v45 = vsub.f32 %v11449_v31, %v3190_v21  ;;  %v11563_v43 = vadd.f32 %v11477_v59, %v13263_v0  ;;  %v11579_v0 = vadd.f32 %v11469_v61, %v10766_v40 }
 0xb31   : > { %3247 = vadd.xlane.f32.xlu0 %v11528_v26  ;;  %3249 = vadd.xlane.f32.xlu1 %v11530_v4  ;;  %v3186_v37 = vpop.xlane.xlu0 %3185  ;;  %v11534_v12 = vpop.eup %8370  ;;  %v11584_v31 = vadd.f32 %v11473_v25, %v10775_v54  ;;  %v11594_v59 = vadd.f32 %v11471_v42, %v13262_v57  ;;  %v11601_v40 = vadd.f32 %v11481_v8, %v13272_v14  ;;  %v13297_v14 = vld [vmem:[#allocation56_spill] sm:$0xff] }
 0xb32   : > { %8378 = vpow2.f32 %v3235_v47  ;;  %v3204_v6 = vsub.f32 %v11457_v33, %v3186_v37  ;;  %v3237_v39 = vmul.f32 1.442695, %v3206_v45  ;;  %v11627_v54 = vadd.f32 %v11489_v60, %v13275_v38  ;;  %v13300_v60 = vld [vmem:[#allocation55_spill] sm:$0xff] }
 0xb33   : > { %8380 = vpow2.f32 %v3225_v13  ;;  %v3320_v58 = vpop.permute.xlu1 %3319  ;;  %v11571_v13 = vadd.f32 %v11491_v30, %v13284_v62  ;;  %v11589_v62 = vadd.f32 %v11467_v5, %v10752_v35  ;;  %v11608_v35 = vadd.f32 %v11475_v36, %v13264_v17 }
 0xb34   : > { %8382 = vpow2.f32 %v3231_v11  ;;  %v11537_v41 = vpop.eup %8372  ;;  %v3233_v7 = vmul.f32 1.442695, %v3204_v6  ;;  %v11632_v57 = vadd.f32 %v11483_v18, %v13274_v50  ;;  %v11637_v17 = vadd.f32 %v11487_v9, %v13273_v32 }
 0xb35   : > { %3253 = vadd.xlane.f32.xlu0 %v11534_v12  ;;  %v3318_v55 = vpop.permute.xlu0 %3317  ;;  %v11647_v38 = vadd.f32 %v13297_v14, %v13289_v49 }
 0xb36   : > { %7594 = vmatprep.subr.bf16.mxu0 %v3318_v55  ;;  %8384 = vpow2.f32 %v3233_v7  ;;  %v8112_v7 = vld [vmem:[%s10302_s2 + $0x20] sm:$0xff]  }
 0xb37   : > { %7595 = vmatpush3.bf16.msra.mxu0 %v3318_v55  ;;  %v3322_v15 = vpop.permute.xlu1 %3321  ;;  %8386 = vpow2.f32 %v3237_v39 }
 0xb38   : > { %v11539_v46 = vpop.eup %8374  ;;  %7596 = vmatprep.subr.bf16.mxu0 %v3320_v58 }
 0xb39   : > { %3259 = vadd.xlane.f32.xlu0 %v11537_v41  ;;  %3255 = vadd.xlane.f32.xlu1 %v11539_v46  ;;  %v11543_v34 = vpop.eup %8376 }
 0xb3b   : > { %7597 = vmatpush3.bf16.msra.mxu0 %v3320_v58 }
 0xb3c   : > { %v11545_v20 = vpop.eup %8378  ;;  %7598 = vmatprep.subr.bf16.mxu0 %v3322_v15 }
 0xb3d   : > { %3261 = vadd.xlane.f32.xlu0 %v11543_v34  ;;  %3267 = vadd.xlane.f32.xlu1 %v11545_v20  ;;  %v11549_v2 = vpop.eup %8380 }
 0xb3e   : > { %v11551_v52 = vpop.eup %8382 }
 0xb3f   : > { %7599 = vmatpush3.bf16.msra.mxu0 %v3322_v15 }
 0xb40   : > { %v11565_v47 = vpop.eup %8384 }
 0xb41   : > { %3257 = vadd.xlane.f32.xlu0 %v11549_v2  ;;  %3263 = vadd.xlane.f32.xlu1 %v11551_v52  ;;  %v11573_v33 = vpop.eup %8386 }
 0xb52   : > { %3325 = vrot.lane.b32.xlu1 %v13295_v27, %s9514_s20 }
 0xb57   : > { %3323 = vrot.lane.b32.xlu0 %v13296_v48, %s9514_s20 }
 0xb76   : > { %3774 = vmax.xlane.f32.xlu1 %v11563_v43  ;;  %3265 = vadd.xlane.f32.xlu0 %v11565_v47 }
 0xb7a   : > { %3794 = vmax.xlane.f32.xlu1 %v11571_v13  ;;  %3269 = vadd.xlane.f32.xlu0 %v11573_v33 }
 0xb7e   : > { %3766 = vmax.xlane.f32.xlu0 %v11579_v0 }
 0xb82   : > { %3768 = vmax.xlane.f32.xlu0 %v11584_v31 }
 0xb86   : > { %3770 = vmax.xlane.f32.xlu0 %v11589_v62 }
 0xb8a   : > { %3772 = vmax.xlane.f32.xlu0 %v11594_v59 }
 0xb8b   : > { %3918 = vrot.lane.b32.xlu1 %v10598_v51, %s9515_s0  ;;  %v11615_v51 = vadd.f32 %v11479_v28, %v13265_v63  ;;  %v11642_v63 = vadd.f32 %v11493_v22, %v13283_v44 }
 0xb8e   : > { %3776 = vmax.xlane.f32.xlu0 %v11601_v40 }
 0xb8f   : > { %3920 = vrot.lane.b32.xlu1 %v10593_v1, %s9515_s0  ;;  %v11622_v1 = vadd.f32 %v11485_v56, %v13282_v16  ;;  %v13298_v16 = vld [vmem:[#allocation75_spill] sm:$0xff] }
 0xb92   : > { %3778 = vmax.xlane.f32.xlu0 %v11608_v35 }
 0xb93   : > { %3924 = vrot.lane.b32.xlu1 %v13292_v3, %s9515_s0 }
 0xb96   : > { %3780 = vmax.xlane.f32.xlu0 %v11615_v51 }
 0xb97   : > { %3926 = vrot.lane.b32.xlu1 %v13290_v24, %s9515_s0  ;;  %v13299_v24 = vld [vmem:[#allocation59_spill] sm:$0xff] }
 0xb98   : > { %v11652_v3 = vadd.f32 %v13299_v24, %v13298_v16  ;;  %v8113_v24 = vld [vmem:[%s10302_s2 + $0x28] sm:$0xff]  }
 0xb9a   : > { %3782 = vmax.xlane.f32.xlu0 %v11622_v1 }
 0xb9e   : > { %3784 = vmax.xlane.f32.xlu0 %v11627_v54 }
 0xba2   : > { %3786 = vmax.xlane.f32.xlu0 %v11632_v57 }
 0xba6   : > { %3788 = vmax.xlane.f32.xlu0 %v11637_v17 }
 0xbaa   : > { %3790 = vmax.xlane.f32.xlu0 %v11642_v63 }
 0xbae   : > { %v3244_v50 = vpop.xlane.xlu1 %3243  ;;  %3792 = vmax.xlane.f32.xlu0 %v11647_v38 }
 0xbb2   : > { %v3240_v32 = vpop.xlane.xlu1 %3239  ;;  %3796 = vmax.xlane.f32.xlu0 %v11652_v3 }
 0xbb3   : > { %8388 = vrcp.f32 %v3240_v32 }
 0xbb6   : > { %v3246_v5 = vpop.xlane.xlu1 %3245 }
 0xbba   : > { %v3242_v44 = vpop.xlane.xlu1 %3241  ;;  %v3252_v61 = vpop.xlane.xlu0 %3251 }
 0xbbb   : > { %8390 = vrcp.f32 %v3242_v44 }
 0xbbc   : > { %8392 = vrcp.f32 %v3246_v5 }
 0xbbd   : > { %v8389_v49 = vpop.eup %8388 }
 0xbbe   : > { %v3248_v42 = vpop.xlane.xlu0 %3247  ;;  %v3250_v25 = vpop.xlane.xlu1 %3249  ;;  %v3287_v56 = vmul.f32 %v8389_v49, %v11510_v19 }
 0xbbf   : > { %8394 = vrcp.f32 %v3250_v25 }
 0xbc0   : > { %8396 = vrcp.f32 %v3248_v42 }
 0xbc1   : > { %8398 = vrcp.f32 %v3244_v50 }
 0xbc2   : > { %v3254_v36 = vpop.xlane.xlu0 %3253 }
 0xbc3   : > { %8400 = vrcp.f32 %v3254_v36 }
 0xbc5   : > { %v8391_v28 = vpop.eup %8390 }
 0xbc6   : > { %v3256_v8 = vpop.xlane.xlu1 %3255  ;;  %v3260_v18 = vpop.xlane.xlu0 %3259  ;;  %v3288_v9 = vmul.f32 %v8391_v28, %v11519_v23 }
 0xbc7   : > { %v8393_v58 = vpop.eup %8392 }
 0xbc8   : > { %3922 = vrot.lane.b32.xlu0 %v13300_v60, %s9515_s0  ;;  %v3303_v30 = vpack.c.bf16 %v3288_v9, %v3287_v56  ;;  %v3290_v45 = vmul.f32 %v8393_v58, %v11514_v53 }
 0xbc9   : > { %v8395_v19 = vpop.eup %8394 }
 0xbca   : > { %7604 = vmatprep.mubr.bf16.mxu0 %v3303_v30  ;;  %v3268_v22 = vpop.xlane.xlu1 %3267  ;;  %v3262_v21 = vpop.xlane.xlu0 %3261  ;;  %v3292_v14 = vmul.f32 %v8395_v19, %v11530_v4 }
 0xbcb   : > { %v8397_v55 = vpop.eup %8396 }
 0xbcc   : > { %v8399_v15 = vpop.eup %8398  ;;  %v3291_v39 = vmul.f32 %v8397_v55, %v11528_v26 }
 0xbcd   : > { %v3289_v50 = vmul.f32 %v8399_v15, %v11505_v10  ;;  %v8401_v32 = vpop.eup %8400 }
 0xbce   : > { %v3264_v37 = vpop.xlane.xlu1 %3263  ;;  %v3258_v11 = vpop.xlane.xlu0 %3257  ;;  %v3305_v5 = vpack.c.bf16 %v3292_v14, %v3291_v39  ;;  %v3294_v26 = vmul.f32 %v8401_v32, %v11534_v12 }
 0xbcf   : > { %8402 = vrcp.f32 %v3258_v11  ;;  %v3304_v16 = vpack.c.bf16 %v3290_v45, %v3289_v50 }
 0xbd0   : > { %8404 = vrcp.f32 %v3252_v61 }
 0xbd1   : > { %8406 = vrcp.f32 %v3256_v8 }
 0xbd2   : > { %v3324_v23 = vpop.permute.xlu0 %3323  ;;  %v3326_v6 = vpop.permute.xlu1 %3325  ;;  %8408 = vrcp.f32 %v3262_v21 }
 0xbd3   : > { %7600 = vmatprep.subr.bf16.mxu0 %v3324_v23  ;;  %8410 = vrcp.f32 %v3260_v18 }
 0xbd4   : > { %7601 = vmatpush3.bf16.msra.mxu0 %v3324_v23  ;;  %8412 = vrcp.f32 %v3264_v37 }
 0xbd5   : > { %7602 = vmatprep.subr.bf16.mxu0 %v3326_v6 }
 0xbd8   : > { %7603 = vmatpush3.bf16.msra.mxu0 %v3326_v6 }
 0xbd9   : > { %7620 = vmatprep.subr.bf16.mxu0 %v8112_v7  ;;  %v8403_v44 = vpop.eup %8402 }
 0xbda   : > { %v8405_v61 = vpop.eup %8404  ;;  %v3296_v4 = vmul.f32 %v8403_v44, %v11549_v2 }
 0xbdb   : > { %7605 = vmatmul.mubr.bf16.vlgmr.msra.gmra.mrb[64].mxu0 %v3304_v16  ;;  %v8407_v53 = vpop.eup %8406  ;;  %v3293_v10 = vmul.f32 %v8405_v61, %v11521_v29 }
 0xbdc   : > { %7608 = vmatprep.mubr.bf16.mxu0 %v3305_v5  ;;  %7621 = vmatpush3.bf16.msra.mxu0 %v8112_v7  ;;  %v3295_v42 = vmul.f32 %v8407_v53, %v11539_v46  ;;  %v8409_v36 = vpop.eup %8408 }
 0xbdd   : > { %7622 = vmatprep.subr.bf16.mxu0 %v8113_v24  ;;  %v3306_v25 = vpack.c.bf16 %v3294_v26, %v3293_v10  ;;  %v8411_v28 = vpop.eup %8410  ;;  %v3298_v8 = vmul.f32 %v8409_v36, %v11543_v34  ;;  %v13301_v36 = vld [vmem:[#allocation57_spill] sm:$0xff] }
 0xbde   : > { %v3307_v49 = vpack.c.bf16 %v3296_v4, %v3295_v42  ;;  %v3297_v18 = vmul.f32 %v8411_v28, %v11537_v41  ;;  %v8413_v30 = vpop.eup %8412 }
 0xbdf   : > { %v3299_v41 = vmul.f32 %v8413_v30, %v11551_v52 }
 0xbe0   : > { %7623 = vmatpush3.bf16.msra.mxu0 %v8113_v24  ;;  %v3308_v56 = vpack.c.bf16 %v3298_v8, %v3297_v18 }
 0xbe3   : > { %7609 = vmatmul.mubr.bf16.gmra.mrb[68].mxu0 %v3306_v25 }
 0xbe4   : > { %7612 = vmatprep.mubr.bf16.mxu0 %v3307_v49 }
 0xbeb   : > { %7613 = vmatmul.mubr.bf16.gmra.mrb[72].mxu0 %v3308_v56 }
 0xc03   : > { %v3775_v12 = vpop.xlane.xlu1 %3774  ;;  %v3266_v2 = vpop.xlane.xlu0 %3265 }
 0xc04   : > { %8414 = vrcp.f32 %v3266_v2 }
 0xc05   : > { %8416 = vrcp.f32 %v3268_v22 }
 0xc07   : > { %v11671_v29 = vpop.xlane.xlu1 %3794  ;;  %v3270_v46 = vpop.xlane.xlu0 %3269 }
 0xc08   : > { %8418 = vrcp.f32 %v3270_v46 }
 0xc0b   : > { %v11673_v9 = vpop.permute.xlu1 %3918  ;;  %v3767_v60 = vpop.xlane.xlu0 %3766 }
 0xc0c   : > { %7672 = vmatprep.subr.bf16.mxu0 %v11673_v9  ;;  %v3798_v23 = vsub.f32 %v11579_v0, %v3767_v60  ;;  %v3802_v0 = vsub.f32 %v11563_v43, %v3775_v12 }
 0xc0e   : > { %v8415_v34 = vpop.eup %8414  ;;  %v3814_v14 = vmul.f32 1.442695, %v3798_v23  ;;  %v3822_v44 = vmul.f32 1.442695, %v3802_v0 }
 0xc0f   : > { %v3769_v21 = vpop.xlane.xlu0 %3768  ;;  %v3300_v37 = vmul.f32 %v8415_v34, %v11565_v47  ;;  %v8417_v11 = vpop.eup %8416 }
 0xc10   : > { %v3301_v15 = vmul.f32 %v8417_v11, %v11545_v20  ;;  %v3799_v47 = vsub.f32 %v11584_v31, %v3769_v21  ;;  %v3921_v23 = vpop.permute.xlu1 %3920 }
 0xc11   : > { %v3309_v58 = vpack.c.bf16 %v3300_v37, %v3299_v41 }
 0xc12   : > { %v8419_v19 = vpop.eup %8418 }
 0xc13   : > { %7616 = vmatprep.mubr.bf16.mxu0 %v3309_v58  ;;  %v3771_v22 = vpop.xlane.xlu0 %3770  ;;  %v3302_v6 = vmul.f32 %v8419_v19, %v11573_v33 }
 0xc14   : > { %v3800_v55 = vsub.f32 %v11589_v62, %v3771_v22  ;;  %v3816_v62 = vmul.f32 1.442695, %v3799_v47 }
 0xc15   : > { %v3310_v7 = vpack.c.bf16 %v3302_v6, %v3301_v15 }
 0xc16   : > { %v3818_v45 = vmul.f32 1.442695, %v3800_v55 }
 0xc17   : > { %v3773_v39 = vpop.xlane.xlu0 %3772  ;;  %7617 = vmatmul.mubr.bf16.gmra.mrb[76].mxu0 %v3310_v7 }
 0xc18   : > { %8420 = vpow2.f32 %v3818_v45  ;;  %v3801_v52 = vsub.f32 %v11594_v59, %v3773_v39  ;;  %v3925_v39 = vpop.permute.xlu1 %3924 }
 0xc19   : > { %8422 = vpow2.f32 %v3814_v14 }
 0xc1a   : > { %v3820_v16 = vmul.f32 1.442695, %v3801_v52 }
 0xc1b   : > { %v3777_v50 = vpop.xlane.xlu0 %3776 }
 0xc1c   : > { %8424 = vpow2.f32 %v3820_v16  ;;  %v3803_v20 = vsub.f32 %v11601_v40, %v3777_v50  ;;  %v3927_v0 = vpop.permute.xlu1 %3926 }
 0xc1d   : > { %8426 = vpow2.f32 %v3816_v62 }
 0xc1e   : > { %v3824_v59 = vmul.f32 1.442695, %v3803_v20 }
 0xc1f   : > { %v3779_v24 = vpop.xlane.xlu0 %3778 }
 0xc20   : > { %v3804_v33 = vsub.f32 %v11608_v35, %v3779_v24 }
 0xc22   : > { %v11687_v32 = vpop.eup %8420  ;;  %v3826_v5 = vmul.f32 1.442695, %v3804_v33 }
 0xc23   : > { %3850 = vadd.xlane.f32.xlu0 %v11687_v32  ;;  %v3781_v31 = vpop.xlane.xlu0 %3780  ;;  %v11691_v43 = vpop.eup %8422 }
 0xc24   : > { %8428 = vpow2.f32 %v3826_v5  ;;  %v3805_v61 = vsub.f32 %v11615_v51, %v3781_v31 }
 0xc25   : > { %8430 = vpow2.f32 %v3822_v44 }
 0xc26   : > { %8432 = vpow2.f32 %v3824_v59  ;;  %v3828_v40 = vmul.f32 1.442695, %v3805_v61  ;;  %v11694_v35 = vpop.eup %8424 }
 0xc27   : > { %3846 = vadd.xlane.f32.xlu0 %v11691_v43  ;;  %v11697_v53 = vpop.eup %8426  ;;  %v3783_v42 = vpop.xlane.xlu0 %3782 }
 0xc28   : > { %8434 = vpow2.f32 %v3828_v40  ;;  %v3806_v8 = vsub.f32 %v11622_v1, %v3783_v42  ;;  %v3812_v1 = vsub.f32 %v11571_v13, %v11671_v29 }
 0xc2a   : > { %v3830_v56 = vmul.f32 1.442695, %v3806_v8 }
 0xc2b   : > { %3852 = vadd.xlane.f32.xlu0 %v11694_v35  ;;  %v3785_v25 = vpop.xlane.xlu0 %3784 }
 0xc2c   : > { %v3807_v2 = vsub.f32 %v11627_v54, %v3785_v25  ;;  %8436 = vpow2.f32 %v3830_v56 }
 0xc2e   : > { %v11699_v26 = vpop.eup %8428  ;;  %v3832_v30 = vmul.f32 1.442695, %v3807_v2  ;;  %v8114_v2 = vld [vmem:[%s10302_s2 + $0x30] sm:$0xff]  }
 0xc2f   : > { %3848 = vadd.xlane.f32.xlu0 %v11697_v53  ;;  %3858 = vadd.xlane.f32.xlu1 %v11699_v26  ;;  %v11703_v51 = vpop.eup %8430  ;;  %v3787_v49 = vpop.xlane.xlu0 %3786 }
 0xc30   : > { %v11705_v4 = vpop.eup %8432  ;;  %v3808_v12 = vsub.f32 %v11632_v57, %v3787_v49 }
 0xc32   : > { %v11709_v10 = vpop.eup %8434  ;;  %v3834_v60 = vmul.f32 1.442695, %v3808_v12 }
 0xc33   : > { %3856 = vadd.xlane.f32.xlu0 %v11705_v4  ;;  %3854 = vadd.xlane.f32.xlu1 %v11703_v51  ;;  %v3789_v28 = vpop.xlane.xlu0 %3788 }
 0xc34   : > { %8438 = vpow2.f32 %v3834_v60 }
 0xc35   : > { %8440 = vpow2.f32 %v3832_v30 }
 0xc36   : > { %v11727_v11 = vpop.eup %8436 }
 0xc37   : > { %3860 = vadd.xlane.f32.xlu1 %v11709_v10  ;;  %v3791_v18 = vpop.xlane.xlu0 %3790 }
 0xc38   : > { %v3810_v34 = vsub.f32 %v11642_v63, %v3791_v18 }
 0xc3a   : > { %v3838_v57 = vmul.f32 1.442695, %v3810_v34 }
 0xc3b   : > { %v3793_v46 = vpop.xlane.xlu0 %3792 }
 0xc3e   : > { %v11730_v58 = vpop.eup %8438 }
 0xc3f   : > { %v3797_v41 = vpop.xlane.xlu0 %3796  ;;  %v11733_v13 = vpop.eup %8440 }
 0xc40   : > { %v3813_v37 = vsub.f32 %v11652_v3, %v3797_v41 }
 0xc42   : > { %v3844_v63 = vmul.f32 1.442695, %v3813_v37 }
 0xc43   : > { %v3923_v55 = vpop.permute.xlu0 %3922 }
 0xc48   : > { %3930 = vrot.lane.b32.xlu1 %v13296_v48, %s9515_s0  ;;  %v3809_v48 = vsub.f32 %v11637_v17, %v3789_v28  ;;  %v3842_v17 = vmul.f32 1.442695, %v3812_v1 }
 0xc49   : > { %3928 = vrot.lane.b32.xlu0 %v13301_v36, %s9515_s0 }
 0xc4a   : > { %v3836_v21 = vmul.f32 1.442695, %v3809_v48 }
 0xc4c   : > { %3932 = vrot.lane.b32.xlu1 %v13295_v27, %s9515_s0  ;;  %v3811_v27 = vsub.f32 %v11647_v38, %v3793_v46  ;;  %8442 = vpow2.f32 %v3836_v21 }
 0xc4d   : > { %8444 = vpow2.f32 %v3838_v57 }
 0xc4e   : > { %v3840_v54 = vmul.f32 1.442695, %v3811_v27 }
 0xc50   : > { %8446 = vpow2.f32 %v3840_v54 }
 0xc51   : > { %8448 = vpow2.f32 %v3842_v17 }
 0xc52   : > { %8450 = vpow2.f32 %v3844_v63 }
 0xc56   : > { %v11735_v38 = vpop.eup %8442 }
 0xc57   : > { %v11739_v3 = vpop.eup %8444 }
 0xc5a   : > { %v11741_v29 = vpop.eup %8446 }
 0xc5b   : > { %v11745_v19 = vpop.eup %8448 }
 0xc5c   : > { %v11747_v22 = vpop.eup %8450 }
 0xc68   : > { %3862 = vadd.xlane.f32.xlu0 %v11727_v11 }
 0xc6c   : > { %3866 = vadd.xlane.f32.xlu0 %v11730_v58 }
 0xc70   : > { %3864 = vadd.xlane.f32.xlu1 %v11733_v13  ;;  %3868 = vadd.xlane.f32.xlu0 %v11735_v38 }
 0xc74   : > { %3870 = vadd.xlane.f32.xlu1 %v11739_v3  ;;  %3872 = vadd.xlane.f32.xlu0 %v11741_v29 }
 0xc78   : > { %3874 = vadd.xlane.f32.xlu1 %v11745_v19  ;;  %3876 = vadd.xlane.f32.xlu0 %v11747_v22 }
 0xcae   : > { %v7606_v15 = vpop.f32.mrb[64].mxu0 }
 0xcaf   : > { %v3369_v6 = vpop.f32.mrb[65].mxu0 }
 0xcb0   : > { %v7607_v45 = vpop.f32.mrb[66].mxu0  ;;  %v3851_v7 = vpop.xlane.xlu0 %3850 }
 0xcb1   : > { %v3433_v14 = vpack.c.bf16 %v7607_v45, %v7606_v15  ;;  %v3372_v52 = vpop.f32.mrb[67].mxu0 }
 0xcb2   : > { %v3432_v47 = vpack.c.bf16 %v3372_v52, %v3369_v6 }
 0xcb4   : > { %7624 = vmatprep.mubr.msk.bf16.mxu0 %vm1831_vm0, %v3432_v47  ;;  %v3847_v50 = vpop.xlane.xlu0 %3846 }
 0xcb5   : > { %7625 = vmatmul.mubr.msk.bf16.vlgmr.msra.gmra.mrb[48].mxu0 %vm1831_vm0, %v3433_v14 }
 0xcb6   : > { %7673 = vmatpush3.bf16.msra.mxu0 %v11673_v9  ;;  %v7610_v16 = vpop.f32.mrb[68].mxu0 }
 0xcb7   : > { %7674 = vmatprep.subr.bf16.mxu0 %v3921_v23  ;;  %v3385_v62 = vpop.f32.mrb[69].mxu0 }
 0xcb8   : > { %v7611_v24 = vpop.f32.mrb[70].mxu0  ;;  %v3853_v20 = vpop.xlane.xlu0 %3852 }
 0xcb9   : > { %v3435_v33 = vpack.c.bf16 %v7611_v24, %v7610_v16  ;;  %v3388_v5 = vpop.f32.mrb[71].mxu0 }
 0xcba   : > { %v3434_v44 = vpack.c.bf16 %v3388_v5, %v3385_v62  ;;  %7675 = vmatpush3.bf16.msra.mxu0 %v3921_v23 }
 0xcbb   : > { %7676 = vmatprep.subr.bf16.mxu0 %v3923_v55 }
 0xcbc   : > { %7628 = vmatprep.mubr.msk.bf16.mxu0 %vm1831_vm0, %v3434_v44  ;;  %v3859_v31 = vpop.xlane.xlu1 %3858  ;;  %v3849_v59 = vpop.xlane.xlu0 %3848 }
 0xcbd   : > { %7629 = vmatmul.mubr.msk.bf16.gmra.mrb[52].mxu0 %vm1831_vm0, %v3435_v33  ;;  %8452 = vrcp.f32 %v3849_v59 }
 0xcbe   : > { %7677 = vmatpush3.bf16.msra.mxu0 %v3923_v55  ;;  %v7614_v61 = vpop.f32.mrb[72].mxu0  ;;  %8454 = vrcp.f32 %v3847_v50 }
 0xcbf   : > { %7678 = vmatprep.subr.bf16.mxu0 %v3925_v39  ;;  %v3401_v9 = vpop.f32.mrb[73].mxu0  ;;  %8456 = vrcp.f32 %v3853_v20 }
 0xcc0   : > { %v7615_v40 = vpop.f32.mrb[74].mxu0  ;;  %v3855_v42 = vpop.xlane.xlu1 %3854 }
 0xcc1   : > { %v3437_v25 = vpack.c.bf16 %v7615_v40, %v7614_v61  ;;  %v3857_v36 = vpop.xlane.xlu0 %3856  ;;  %v3404_v49 = vpop.f32.mrb[75].mxu0  ;;  %8458 = vrcp.f32 %v3855_v42 }
 0xcc2   : > { %v3436_v28 = vpack.c.bf16 %v3404_v49, %v3401_v9  ;;  %7679 = vmatpush3.bf16.msra.mxu0 %v3925_v39  ;;  %8460 = vrcp.f32 %v3857_v36 }
 0xcc3   : > { %7680 = vmatprep.subr.bf16.mxu0 %v3927_v0  ;;  %8462 = vrcp.f32 %v3851_v7  ;;  %v8115_v7 = vld [vmem:[%s10302_s2 + $0x38] sm:$0xff]  }
 0xcc4   : > { %7632 = vmatprep.mubr.msk.bf16.mxu0 %vm1831_vm0, %v3436_v28  ;;  %v3861_v8 = vpop.xlane.xlu1 %3860 }
 0xcc5   : > { %v3929_v18 = vpop.permute.xlu0 %3928  ;;  %7633 = vmatmul.mubr.msk.bf16.gmra.mrb[56].mxu0 %vm1831_vm0, %v3437_v25  ;;  %8464 = vrcp.f32 %v3861_v8 }
 0xcc6   : > { %7681 = vmatpush3.bf16.msra.mxu0 %v3927_v0  ;;  %8466 = vrcp.f32 %v3859_v31 }
 0xcc7   : > { %7682 = vmatprep.subr.bf16.mxu0 %v3929_v18  ;;  %v8453_v46 = vpop.eup %8452 }
 0xcc8   : > { %v3931_v56 = vpop.permute.xlu1 %3930  ;;  %v8455_v48 = vpop.eup %8454  ;;  %v3895_v21 = vmul.f32 %v8453_v46, %v11697_v53 }
 0xcc9   : > { %v3894_v57 = vmul.f32 %v8455_v48, %v11691_v43  ;;  %v8457_v54 = vpop.eup %8456 }
 0xcca   : > { %7683 = vmatpush3.bf16.msra.mxu0 %v3929_v18  ;;  %v3897_v53 = vmul.f32 %v8457_v54, %v11694_v35 }
 0xccb   : > { %7684 = vmatprep.subr.bf16.mxu0 %v3931_v56  ;;  %v8459_v37 = vpop.eup %8458  ;;  %v3910_v17 = vpack.c.bf16 %v3895_v21, %v3894_v57 }
 0xccc   : > { %v3933_v12 = vpop.permute.xlu1 %3932  ;;  %v8461_v63 = vpop.eup %8460  ;;  %v3898_v15 = vmul.f32 %v8459_v37, %v11703_v51 }
 0xccd   : > { %v8463_v23 = vpop.eup %8462  ;;  %v3899_v6 = vmul.f32 %v8461_v63, %v11705_v4 }
 0xcce   : > { %7685 = vmatpush3.bf16.msra.mxu0 %v3931_v56  ;;  %v3896_v43 = vmul.f32 %v8463_v23, %v11687_v32 }
 0xccf   : > { %7686 = vmatprep.subr.bf16.mxu0 %v3933_v12  ;;  %v8465_v39 = vpop.eup %8464  ;;  %v3912_v52 = vpack.c.bf16 %v3899_v6, %v3898_v15 }
 0xcd0   : > { %v3911_v45 = vpack.c.bf16 %v3897_v53, %v3896_v43  ;;  %v8467_v47 = vpop.eup %8466  ;;  %v3901_v50 = vmul.f32 %v8465_v39, %v11709_v10  ;;  %v13302_v53 = vmov 0  }
 0xcd1   : > { %v3900_v4 = vmul.f32 %v8467_v47, %v11699_v26 }
 0xcd2   : > { %7687 = vmatpush3.bf16.msra.mxu0 %v3933_v12 }
 0xcd3   : > { %7704 = vmatprep.subr.bf16.mxu0 %v8114_v2  ;;  %v3913_v32 = vpack.c.bf16 %v3901_v50, %v3900_v4  ;;  %v8774_v4 = vld [vmem:[#allocation2 + $0x10] sm:$0xff] }
 0xcea   : > { %v7618_v60 = vpop.f32.mrb[76].mxu0 }
 0xceb   : > { %v3417_v30 = vpop.f32.mrb[77].mxu0 }
 0xcec   : > { %v7619_v34 = vpop.f32.mrb[78].mxu0 }
 0xced   : > { %v3439_v27 = vpack.c.bf16 %v7619_v34, %v7618_v60  ;;  %v3420_v41 = vpop.f32.mrb[79].mxu0 }
 0xcee   : > { %v3438_v1 = vpack.c.bf16 %v3420_v41, %v3417_v30 }
 0xcf0   : > { %7636 = vmatprep.mubr.msk.bf16.mxu0 %vm1831_vm0, %v3438_v1 }
 0xcf1   : > { %7637 = vmatmul.mubr.msk.bf16.gmra.mrb[60].mxu0 %vm1831_vm0, %v3439_v27 }
 0xcf2   : > { %7688 = vmatprep.mubr.bf16.mxu0 %v3910_v17 }
 0xcf5   : > { %v3863_v55 = vpop.xlane.xlu0 %3862 }
 0xcf6   : > { %8468 = vrcp.f32 %v3863_v55  ;;  %v11789_v55 = vld [vmem:[%s13303_s12] ss:$0 sm:$0xff] }
 0xcf9   : > { %v3867_v14 = vpop.xlane.xlu0 %3866  ;;  %7689 = vmatmul.mubr.bf16.vlgmr.msra.gmra.mrb[80].mxu0 %v3911_v45 }
 0xcfa   : > { %7692 = vmatprep.mubr.bf16.mxu0 %v3912_v52  ;;  %7705 = vmatpush3.bf16.msra.mxu0 %v8114_v2  ;;  %8470 = vrcp.f32 %v3867_v14  ;;  %v8772_v14 = vld [vmem:[#allocation2] sm:$0xff] }
 0xcfb   : > { %7706 = vmatprep.subr.bf16.mxu0 %v8115_v7 }
 0xcfd   : > { %v3865_v35 = vpop.xlane.xlu1 %3864  ;;  %v3869_v51 = vpop.xlane.xlu0 %3868 }
 0xcfe   : > { %8472 = vrcp.f32 %v3865_v35  ;;  %7707 = vmatpush3.bf16.msra.mxu0 %v8115_v7  ;;  %v8773_v35 = vld [vmem:[#allocation2 + $0x8] sm:$0xff] }
 0xcff   : > { %8474 = vrcp.f32 %v3869_v51 }
 0xd00   : > { %v8469_v20 = vpop.eup %8468 }
 0xd01   : > { %v3871_v16 = vpop.xlane.xlu1 %3870  ;;  %v3873_v0 = vpop.xlane.xlu0 %3872  ;;  %7693 = vmatmul.mubr.bf16.gmra.mrb[84].mxu0 %v3913_v32  ;;  %v3902_v44 = vmul.f32 %v8469_v20, %v11727_v11 }
 0xd02   : > { %8476 = vrcp.f32 %v3871_v16 }
 0xd03   : > { %8478 = vrcp.f32 %v3873_v0 }
 0xd04   : > { %v8471_v10 = vpop.eup %8470 }
 0xd05   : > { %v3875_v62 = vpop.xlane.xlu1 %3874  ;;  %v3877_v24 = vpop.xlane.xlu0 %3876  ;;  %v3904_v31 = vmul.f32 %v8471_v10, %v11730_v58 }
 0xd06   : > { %8480 = vrcp.f32 %v3875_v62  ;;  %v8775_v62 = vld [vmem:[#allocation2 + $0x18] sm:$0xff] }
 0xd07   : > { %8482 = vrcp.f32 %v3877_v24 }
 0xd08   : > { %v8473_v33 = vpop.eup %8472 }
 0xd09   : > { %v8475_v5 = vpop.eup %8474  ;;  %v3903_v26 = vmul.f32 %v8473_v33, %v11733_v13 }
 0xd0a   : > { %v3905_v59 = vmul.f32 %v8475_v5, %v11735_v38 }
 0xd0b   : > { %v3914_v61 = vpack.c.bf16 %v3903_v26, %v3902_v44  ;;  %v8776_v44 = vld [vmem:[#allocation2 + $0x20] sm:$0xff] }
 0xd0c   : > { %v8477_v9 = vpop.eup %8476  ;;  %v3915_v40 = vpack.c.bf16 %v3905_v59, %v3904_v31 }
 0xd0d   : > { %v8479_v42 = vpop.eup %8478  ;;  %7696 = vmatprep.mubr.bf16.mxu0 %v3914_v61  ;;  %v3906_v25 = vmul.f32 %v8477_v9, %v11739_v3  ;;  %v8777_v61 = vld [vmem:[#allocation2 + $0x28] sm:$0xff] }
 0xd0e   : > { %7697 = vmatmul.mubr.bf16.gmra.mrb[88].mxu0 %v3915_v40  ;;  %v3907_v36 = vmul.f32 %v8479_v42, %v11741_v29  ;;  %v8778_v40 = vld [vmem:[#allocation2 + $0x30] sm:$0xff] }
 0xd10   : > { %v8481_v49 = vpop.eup %8480  ;;  %v3916_v28 = vpack.c.bf16 %v3907_v36, %v3906_v25  ;;  %v8779_v25 = vld [vmem:[#allocation2 + $0x38] sm:$0xff] }
 0xd11   : > { %v8483_v8 = vpop.eup %8482  ;;  %v3908_v11 = vmul.f32 %v8481_v49, %v11745_v19 }
 0xd12   : > { %7700 = vmatprep.mubr.bf16.mxu0 %v3916_v28  ;;  %v3909_v58 = vmul.f32 %v8483_v8, %v11747_v22 }
 0xd14   : > { %v3917_v13 = vpack.c.bf16 %v3909_v58, %v3908_v11 }
 0xd16   : > { %7701 = vmatmul.mubr.bf16.gmra.mrb[92].mxu0 %v3917_v13 }
 0xdcc   : > { %v7690_v38 = vpop.f32.mrb[80].mxu0 }
 0xdcd   : > { %v3976_v18 = vpop.f32.mrb[81].mxu0 }
 0xdce   : > { %v7691_v56 = vpop.f32.mrb[82].mxu0 }
 0xdcf   : > { %v4040_v12 = vpack.c.bf16 %v7691_v56, %v7690_v38  ;;  %v3979_v2 = vpop.f32.mrb[83].mxu0  ;;  %v8780_v38 = vld [vmem:[#allocation2 + $0x40] sm:$0xff] }
 0xdd0   : > { %v4039_v46 = vpack.c.bf16 %v3979_v2, %v3976_v18  ;;  %v8781_v2 = vld [vmem:[#allocation2 + $0x48] sm:$0xff] }
 0xdd2   : > { %7708 = vmatprep.mubr.msk.bf16.mxu0 %vm1831_vm0, %v4039_v46 }
 0xdd3   : > { %7709 = vmatmul.mubr.msk.bf16.vlgmr.msra.gmra.mrb[48].mxu0 %vm1831_vm0, %v4040_v12 }
 0xdd4   : > { %v7694_v3 = vpop.f32.mrb[84].mxu0 }
 0xdd5   : > { %v3992_v29 = vpop.f32.mrb[85].mxu0 }
 0xdd6   : > { %v7695_v60 = vpop.f32.mrb[86].mxu0 }
 0xdd7   : > { %v4042_v48 = vpack.c.bf16 %v7695_v60, %v7694_v3  ;;  %v3995_v19 = vpop.f32.mrb[87].mxu0  ;;  %v8782_v3 = vld [vmem:[#allocation2 + $0x50] sm:$0xff] }
 0xdd8   : > { %v4041_v30 = vpack.c.bf16 %v3995_v19, %v3992_v29  ;;  %v8783_v19 = vld [vmem:[#allocation2 + $0x58] sm:$0xff] }
 0xdda   : > { %7712 = vmatprep.mubr.msk.bf16.mxu0 %vm1831_vm0, %v4041_v30 }
 0xddb   : > { %7713 = vmatmul.mubr.msk.bf16.gmra.mrb[52].mxu0 %vm1831_vm0, %v4042_v48 }
 0xde1   : > { %v7698_v22 = vpop.f32.mrb[88].mxu0 }
 0xde2   : > { %v4008_v34 = vpop.f32.mrb[89].mxu0 }
 0xde3   : > { %v7699_v21 = vpop.f32.mrb[90].mxu0 }
 0xde4   : > { %v4044_v27 = vpack.c.bf16 %v7699_v21, %v7698_v22  ;;  %v4011_v41 = vpop.f32.mrb[91].mxu0 }
 0xde5   : > { %v4043_v1 = vpack.c.bf16 %v4011_v41, %v4008_v34  ;;  %v8784_v41 = vld [vmem:[#allocation2 + $0x60] sm:$0xff] }
 0xde7   : > { %7716 = vmatprep.mubr.msk.bf16.mxu0 %vm1831_vm0, %v4043_v1 }
 0xde8   : > { %7717 = vmatmul.mubr.msk.bf16.gmra.mrb[56].mxu0 %vm1831_vm0, %v4044_v27 }
 0xde9   : > { %v7702_v57 = vpop.f32.mrb[92].mxu0 }
 0xdea   : > { %v4024_v54 = vpop.f32.mrb[93].mxu0 }
 0xdeb   : > { %v7703_v37 = vpop.f32.mrb[94].mxu0 }
 0xdec   : > { %v4046_v17 = vpack.c.bf16 %v7703_v37, %v7702_v57  ;;  %v4027_v63 = vpop.f32.mrb[95].mxu0  ;;  %v8785_v37 = vld [vmem:[#allocation2 + $0x68] sm:$0xff] }
 0xded   : > { %v4045_v23 = vpack.c.bf16 %v4027_v63, %v4024_v54  ;;  %v8786_v63 = vld [vmem:[#allocation2 + $0x70] sm:$0xff] }
 0xdef   : > { %7720 = vmatprep.mubr.msk.bf16.mxu0 %vm1831_vm0, %v4045_v23 }
 0xdf0   : > { %7721 = vmatmul.mubr.msk.bf16.gmra.mrb[60].mxu0 %vm1831_vm0, %v4046_v17 }
 0xdf1   : > { %4824 = vmatprep.mubr.bf16.mxu0 %v13302_v53 }
 0xea6   : > { %v7710_v15 = vpop.f32.mrb[48].mxu0 }
 0xea7   : > { %v4117_v6 = vpop.f32.mrb[49].mxu0  ;;  %v4205_v39 = vadd.f32 %v7710_v15, %v11789_v55  ;;  %v8787_v15 = vld [vmem:[#allocation2 + $0x78] sm:$0xff] }
 0xea8   : > { %v4203_v43 = vadd.f32 %v11789_v55, %v4117_v6  ;;  %v7711_v45 = vpop.f32.mrb[50].mxu0 }
 0xea9   : > { %v4120_v7 = vpop.f32.mrb[51].mxu0  ;;  %v4206_v50 = vadd.f32 %v7711_v45, %v11789_v55  ;;  %v11800_v32 = vadd.f32 %v8774_v4, %v4205_v39  ;;  %v8119_v45 = vld [vmem:[%s10318_s16 + $0x8] ss:$16 sps:$4 sm:$0xff]   ;;  %v8124_v39 = vld [vmem:[%s10318_s16 + $0x24] ss:$16 sps:$4 sm:$0xff]  }
 0xeaa   : > { %v11793_v52 = vadd.f32 %v8772_v14, %v4203_v43  ;;  %v4204_v47 = vadd.f32 %v11789_v55, %v4120_v7  ;;  %v8118_v43 = vld [vmem:[%s10318_s16 + $0x4] ss:$16 sps:$4 sm:$0xff]   ;;  %v8121_v7 = vld [vmem:[%s10318_s16 + $0xc] ss:$16 sps:$4 sm:$0xff]  }
 0xeab   : > { %13306 = vst [vmem:[#allocation64_spill] sm:$0xff] %v11800_v32  ;;  %v11803_v24 = vadd.f32 %v8775_v62, %v4206_v50  ;;  %4679 = vmatprep.subr.bf16.mxu1 %v8118_v43  ;;  %v8127_v14 = vld [vmem:[%s10318_s16 + $0x2c] ss:$16 sps:$4 sm:$0xff]   ;;  %4792 = vmatprep.subr.bf16.mxu0 %v8121_v7  ;;  %v8125_v50 = vld [vmem:[%s10318_s16 + $0x28] ss:$16 sps:$4 sm:$0xff]  }
 0xeac   : > { %13304 = vst [vmem:[#allocation62_spill] sm:$0xff] %v11793_v52  ;;  %v11797_v51 = vadd.f32 %v8773_v35, %v4204_v47  ;;  %4237 = vadd.xlane.f32.xlu1 %v11793_v52  ;;  %v8122_v47 = vld [vmem:[%s10318_s16 + $0x20] ss:$16 sps:$4 sm:$0xff]   ;;  %4793 = vmatpush1.bf16.msra.mxu0 %v8119_v45 }
 0xead   : > { %13307 = vst [vmem:[#allocation67_spill] sm:$0xff] %v11803_v24  ;;  %4794 = vmatprep.subr.bf16.mxu0 %v8127_v14 }
 0xeae   : > { %13305 = vst [vmem:[#allocation63_spill] sm:$0xff] %v11797_v51  ;;  %4239 = vadd.xlane.f32.xlu0 %v11797_v51  ;;  %v7714_v16 = vpop.f32.mrb[52].mxu0 }
 0xeaf   : > { %v4133_v0 = vpop.f32.mrb[53].mxu0  ;;  %v4209_v5 = vadd.f32 %v7714_v16, %v11789_v55 }
 0xeb0   : > { %v4207_v20 = vadd.f32 %v11789_v55, %v4133_v0  ;;  %4241 = vadd.xlane.f32.xlu1 %v11800_v32  ;;  %v7715_v10 = vpop.f32.mrb[54].mxu0  ;;  %4795 = vmatpush1.bf16.msra.mxu0 %v8125_v50  ;;  %v8139_v50 = vld [vmem:[%s10318_s16 + $0x6c] ss:$16 sps:$4 sm:$0xff]  }
 0xeb1   : > { %v4136_v33 = vpop.f32.mrb[55].mxu0  ;;  %v4210_v59 = vadd.f32 %v7715_v10, %v11789_v55  ;;  %v11816_v42 = vadd.f32 %v8778_v40, %v4209_v5 }
 0xeb2   : > { %v11808_v26 = vadd.f32 %v8776_v44, %v4207_v20  ;;  %v4208_v31 = vadd.f32 %v11789_v55, %v4136_v33  ;;  %4243 = vadd.xlane.f32.xlu0 %v11803_v24 }
 0xeb3   : > { %13310 = vst [vmem:[#allocation78_spill] sm:$0xff] %v11816_v42  ;;  %v11819_v36 = vadd.f32 %v8779_v25, %v4210_v59 }
 0xeb4   : > { %13308 = vst [vmem:[#allocation65_spill] sm:$0xff] %v11808_v26  ;;  %v11813_v9 = vadd.f32 %v8777_v61, %v4208_v31  ;;  %4245 = vadd.xlane.f32.xlu1 %v11808_v26 }
 0xeb5   : > { %13311 = vst [vmem:[#allocation77_spill] sm:$0xff] %v11819_v36 }
 0xeb6   : > { %13309 = vst [vmem:[#allocation66_spill] sm:$0xff] %v11813_v9  ;;  %4247 = vadd.xlane.f32.xlu0 %v11813_v9 }
 0xeb8   : > { %4249 = vadd.xlane.f32.xlu1 %v11816_v42 }
 0xeba   : > { %4251 = vadd.xlane.f32.xlu0 %v11819_v36 }
 0xebb   : > { %v7718_v49 = vpop.f32.mrb[56].mxu0 }
 0xebc   : > { %v4149_v28 = vpop.f32.mrb[57].mxu0  ;;  %v4213_v13 = vadd.f32 %v7718_v49, %v11789_v55 }
 0xebd   : > { %v4211_v8 = vadd.f32 %v11789_v55, %v4149_v28  ;;  %v7719_v11 = vpop.f32.mrb[58].mxu0 }
 0xebe   : > { %v4152_v58 = vpop.f32.mrb[59].mxu0  ;;  %v4214_v12 = vadd.f32 %v7719_v11, %v11789_v55  ;;  %v11832_v29 = vadd.f32 %v8782_v3, %v4213_v13 }
 0xebf   : > { %v11825_v18 = vadd.f32 %v8780_v38, %v4211_v8  ;;  %v4212_v56 = vadd.f32 %v11789_v55, %v4152_v58 }
 0xec0   : > { %13314 = vst [vmem:[#allocation68_spill] sm:$0xff] %v11832_v29  ;;  %v11835_v30 = vadd.f32 %v8783_v19, %v4214_v12 }
 0xec1   : > { %13312 = vst [vmem:[#allocation82_spill] sm:$0xff] %v11825_v18  ;;  %v11829_v46 = vadd.f32 %v8781_v2, %v4212_v56  ;;  %4253 = vadd.xlane.f32.xlu1 %v11825_v18 }
 0xec2   : > { %13315 = vst [vmem:[#allocation70_spill] sm:$0xff] %v11835_v30 }
 0xec3   : > { %13313 = vst [vmem:[#allocation80_spill] sm:$0xff] %v11829_v46  ;;  %4255 = vadd.xlane.f32.xlu0 %v11829_v46  ;;  %v7722_v60 = vpop.f32.mrb[60].mxu0 }
 0xec4   : > { %v4165_v48 = vpop.f32.mrb[61].mxu0  ;;  %v4217_v27 = vadd.f32 %v7722_v60, %v11789_v55 }
 0xec5   : > { %v4215_v22 = vadd.f32 %v11789_v55, %v4165_v48  ;;  %4257 = vadd.xlane.f32.xlu1 %v11832_v29  ;;  %v7723_v34 = vpop.f32.mrb[62].mxu0 }
 0xec6   : > { %v4168_v21 = vpop.f32.mrb[63].mxu0  ;;  %v4218_v54 = vadd.f32 %v7723_v34, %v11789_v55  ;;  %v11848_v23 = vadd.f32 %v8786_v63, %v4217_v27  ;;  %v8128_v63 = vld [vmem:[%s10318_s16 + $0x40] ss:$16 sps:$4 sm:$0xff]  }
 0xec7   : > { %v11840_v1 = vadd.f32 %v8784_v41, %v4215_v22  ;;  %v4216_v57 = vadd.f32 %v11789_v55, %v4168_v21  ;;  %4259 = vadd.xlane.f32.xlu0 %v11835_v30  ;;  %v8116_v55 = vld [vmem:[%s10318_s16] ss:$16 sps:$4 sm:$0xff]  }
 0xec8   : > { %13318 = vst [vmem:[#allocation81_spill] sm:$0xff] %v11848_v23  ;;  %v11851_v6 = vadd.f32 %v8787_v15, %v4218_v54  ;;  %4680 = vmatpush1.bf16.msra.mxu1 %v8116_v55  ;;  %v8133_v54 = vld [vmem:[%s10318_s16 + $0x4c] ss:$16 sps:$4 sm:$0xff]   ;;  %v8131_v15 = vld [vmem:[%s10318_s16 + $0x48] ss:$16 sps:$4 sm:$0xff]  }
 0xec9   : > { %13316 = vst [vmem:[#allocation69_spill] sm:$0xff] %v11840_v1  ;;  %v11845_v17 = vadd.f32 %v8785_v37, %v4216_v57  ;;  %4261 = vadd.xlane.f32.xlu1 %v11840_v1  ;;  %4681 = vmatprep.subr.bf16.mxu1 %v8124_v39  ;;  %v8130_v57 = vld [vmem:[%s10318_s16 + $0x44] ss:$16 sps:$4 sm:$0xff]  }
 0xeca   : > { %13319 = vst [vmem:[#allocation79_spill] sm:$0xff] %v11851_v6  ;;  %4796 = vmatprep.subr.bf16.mxu0 %v8133_v54 }
 0xecb   : > { %13317 = vst [vmem:[#allocation72_spill] sm:$0xff] %v11845_v17  ;;  %4263 = vadd.xlane.f32.xlu0 %v11845_v17  ;;  %4797 = vmatpush1.bf16.msra.mxu0 %v8131_v15 }
 0xecc   : > { %4682 = vmatpush1.bf16.msra.mxu1 %v8122_v47  ;;  %v8136_v47 = vld [vmem:[%s10318_s16 + $0x64] ss:$16 sps:$4 sm:$0xff]   ;;  %4798 = vmatprep.subr.bf16.mxu0 %v8139_v50 }
 0xecd   : > { %4265 = vadd.xlane.f32.xlu1 %v11848_v23  ;;  %4683 = vmatprep.subr.bf16.mxu1 %v8130_v57  ;;  %v8149_v57 = vld [vmem:[%s10318_s16 + $0xa8] ss:$16 sps:$4 sm:$0xff]  }
 0xecf   : > { %4267 = vadd.xlane.f32.xlu0 %v11851_v6 }
 0xed0   : > { %4684 = vmatpush1.bf16.msra.mxu1 %v8128_v63 }
 0xed1   : > { %4685 = vmatprep.subr.bf16.mxu1 %v8136_v47  ;;  %v8155_v47 = vld [vmem:[%s10318_s16 + $0xc8] ss:$16 sps:$4 sm:$0xff]  }
 0xf39   : > { %v4238_v35 = vpop.xlane.xlu1 %4237 }
 0xf3a   : > { %v4269_v4 = vmul.f32 0.0078125, %v4238_v35 }
 0xf3b   : > { %v4240_v16 = vpop.xlane.xlu0 %4239 }
 0xf3c   : > { %v11864_v0 = vsub.f32 %v11793_v52, %v4269_v4  ;;  %v4270_v62 = vmul.f32 0.0078125, %v4240_v16  ;;  %v8134_v4 = vld [vmem:[%s10318_s16 + $0x60] ss:$16 sps:$4 sm:$0xff]   ;;  %v8137_v16 = vld [vmem:[%s10318_s16 + $0x68] ss:$16 sps:$4 sm:$0xff]  }
 0xf3d   : > { %v4242_v20 = vpop.xlane.xlu1 %4241  ;;  %4686 = vmatpush1.bf16.msra.mxu1 %v8134_v4  ;;  %4799 = vmatpush1.bf16.msra.mxu0 %v8137_v16  ;;  %v8163_v4 = vld [vmem:[%s10318_s16 + $0xec] ss:$16 sps:$4 sm:$0xff]   ;;  %v8158_v16 = vld [vmem:[%s10318_s16 + $0xe0] ss:$16 sps:$4 sm:$0xff]  }
 0xf3e   : > { %v11867_v10 = vsub.f32 %v11797_v51, %v4270_v62  ;;  %v4271_v33 = vmul.f32 0.0078125, %v4242_v20  ;;  %v4301_v5 = vmul.f32 %v11864_v0, %v11864_v0 }
 0xf3f   : > { %v4244_v44 = vpop.xlane.xlu0 %4243 }
 0xf40   : > { %v11872_v31 = vsub.f32 %v11800_v32, %v4271_v33  ;;  %v4272_v59 = vmul.f32 0.0078125, %v4244_v44  ;;  %4317 = vadd.xlane.f32.xlu1 %v4301_v5  ;;  %v4302_v61 = vmul.f32 %v11867_v10, %v11867_v10 }
 0xf41   : > { %v4246_v40 = vpop.xlane.xlu1 %4245 }
 0xf42   : > { %v11877_v25 = vsub.f32 %v11803_v24, %v4272_v59  ;;  %v4273_v49 = vmul.f32 0.0078125, %v4246_v40  ;;  %4319 = vadd.xlane.f32.xlu0 %v4302_v61  ;;  %v4303_v28 = vmul.f32 %v11872_v31, %v11872_v31  ;;  %v8142_v40 = vld [vmem:[%s10318_s16 + $0x84] ss:$16 sps:$4 sm:$0xff]  }
 0xf43   : > { %v4248_v8 = vpop.xlane.xlu0 %4247  ;;  %4687 = vmatprep.subr.bf16.mxu1 %v8142_v40 }
 0xf44   : > { %v11882_v11 = vsub.f32 %v11808_v26, %v4273_v49  ;;  %v4274_v58 = vmul.f32 0.0078125, %v4248_v8  ;;  %4321 = vadd.xlane.f32.xlu1 %v4303_v28  ;;  %v4304_v13 = vmul.f32 %v11877_v25, %v11877_v25  ;;  %v8145_v49 = vld [vmem:[%s10318_s16 + $0x8c] ss:$16 sps:$4 sm:$0xff]   ;;  %v8140_v8 = vld [vmem:[%s10318_s16 + $0x80] ss:$16 sps:$4 sm:$0xff]  }
 0xf45   : > { %v4250_v38 = vpop.xlane.xlu1 %4249  ;;  %4800 = vmatprep.subr.bf16.mxu0 %v8145_v49  ;;  %4688 = vmatpush1.bf16.msra.mxu1 %v8140_v8 }
 0xf46   : > { %v11887_v56 = vsub.f32 %v11813_v9, %v4274_v58  ;;  %v4275_v12 = vmul.f32 0.0078125, %v4250_v38  ;;  %4323 = vadd.xlane.f32.xlu0 %v4304_v13  ;;  %v4305_v2 = vmul.f32 %v11882_v11, %v11882_v11  ;;  %v8143_v58 = vld [vmem:[%s10318_s16 + $0x88] ss:$16 sps:$4 sm:$0xff]  }
 0xf47   : > { %v4252_v3 = vpop.xlane.xlu0 %4251  ;;  %4801 = vmatpush1.bf16.msra.mxu0 %v8143_v58 }
 0xf48   : > { %v11892_v60 = vsub.f32 %v11816_v42, %v4275_v12  ;;  %v4276_v48 = vmul.f32 0.0078125, %v4252_v3  ;;  %4325 = vadd.xlane.f32.xlu1 %v4305_v2  ;;  %v4306_v19 = vmul.f32 %v11887_v56, %v11887_v56 }
 0xf4a   : > { %v11897_v22 = vsub.f32 %v11819_v36, %v4276_v48  ;;  %4327 = vadd.xlane.f32.xlu0 %v4306_v19  ;;  %v4307_v34 = vmul.f32 %v11892_v60, %v11892_v60 }
 0xf4c   : > { %4329 = vadd.xlane.f32.xlu1 %v4307_v34  ;;  %v4308_v21 = vmul.f32 %v11897_v22, %v11897_v22  ;;  %v8148_v34 = vld [vmem:[%s10318_s16 + $0xa4] ss:$16 sps:$4 sm:$0xff]  }
 0xf4d   : > { %4689 = vmatprep.subr.bf16.mxu1 %v8148_v34 }
 0xf4e   : > { %v4254_v27 = vpop.xlane.xlu1 %4253  ;;  %4331 = vadd.xlane.f32.xlu0 %v4308_v21  ;;  %v8151_v21 = vld [vmem:[%s10318_s16 + $0xac] ss:$16 sps:$4 sm:$0xff]  }
 0xf4f   : > { %v4277_v41 = vmul.f32 0.0078125, %v4254_v27  ;;  %4802 = vmatprep.subr.bf16.mxu0 %v8151_v21 }
 0xf50   : > { %v4256_v37 = vpop.xlane.xlu0 %4255  ;;  %4803 = vmatpush1.bf16.msra.mxu0 %v8149_v57 }
 0xf51   : > { %v11908_v55 = vsub.f32 %v11825_v18, %v4277_v41  ;;  %v4278_v43 = vmul.f32 0.0078125, %v4256_v37  ;;  %v8146_v41 = vld [vmem:[%s10318_s16 + $0xa0] ss:$16 sps:$4 sm:$0xff]  }
 0xf52   : > { %v4258_v45 = vpop.xlane.xlu1 %4257  ;;  %4690 = vmatpush1.bf16.msra.mxu1 %v8146_v41 }
 0xf53   : > { %v11911_v7 = vsub.f32 %v11829_v46, %v4278_v43  ;;  %v4279_v39 = vmul.f32 0.0078125, %v4258_v45  ;;  %v4309_v14 = vmul.f32 %v11908_v55, %v11908_v55  ;;  %v8154_v45 = vld [vmem:[%s10318_s16 + $0xc4] ss:$16 sps:$4 sm:$0xff]  }
 0xf54   : > { %v4260_v35 = vpop.xlane.xlu0 %4259  ;;  %4691 = vmatprep.subr.bf16.mxu1 %v8154_v45 }
 0xf55   : > { %v11920_v62 = vsub.f32 %v11832_v29, %v4279_v39  ;;  %v4280_v20 = vmul.f32 0.0078125, %v4260_v35  ;;  %4333 = vadd.xlane.f32.xlu1 %v4309_v14  ;;  %v4310_v33 = vmul.f32 %v11911_v7, %v11911_v7  ;;  %v8157_v39 = vld [vmem:[%s10318_s16 + $0xcc] ss:$16 sps:$4 sm:$0xff]   ;;  %v8152_v14 = vld [vmem:[%s10318_s16 + $0xc0] ss:$16 sps:$4 sm:$0xff]  }
 0xf56   : > { %v4262_v5 = vpop.xlane.xlu1 %4261  ;;  %4804 = vmatprep.subr.bf16.mxu0 %v8157_v39  ;;  %4692 = vmatpush1.bf16.msra.mxu1 %v8152_v14  ;;  %v8160_v35 = vld [vmem:[%s10318_s16 + $0xe4] ss:$16 sps:$4 sm:$0xff]   ;;  %v11971_v39 = vld [vmem:[%s13320_s30] ss:$0 sm:$0xff] }
 0xf57   : > { %v11925_v44 = vsub.f32 %v11835_v30, %v4280_v20  ;;  %v4281_v59 = vmul.f32 0.0078125, %v4262_v5  ;;  %4335 = vadd.xlane.f32.xlu0 %v4310_v33  ;;  %v4311_v61 = vmul.f32 %v11920_v62, %v11920_v62  ;;  %4805 = vmatpush1.bf16.msra.mxu0 %v8155_v47  ;;  %v8161_v20 = vld [vmem:[%s10318_s16 + $0xe8] ss:$16 sps:$4 sm:$0xff]  }
 0xf58   : > { %v4264_v28 = vpop.xlane.xlu0 %4263  ;;  %4693 = vmatprep.subr.bf16.mxu1 %v8160_v35  ;;  %4806 = vmatprep.subr.bf16.mxu0 %v8163_v4  ;;  %v8164_v33 = vld [vmem:[%s10328_s10 + $0x40] sm:$0xff]  }
 0xf59   : > { %v11934_v13 = vsub.f32 %v11840_v1, %v4281_v59  ;;  %v4282_v38 = vmul.f32 0.0078125, %v4264_v28  ;;  %4337 = vadd.xlane.f32.xlu1 %v4311_v61  ;;  %v4312_v12 = vmul.f32 %v11925_v44, %v11925_v44  ;;  %v8166_v5 = vld [vmem:[%s10328_s10 + $0xc0] sm:$0xff]  }
 0xf5a   : > { %v4266_v2 = vpop.xlane.xlu1 %4265  ;;  %4694 = vmatpush1.bf16.msra.mxu1 %v8158_v16 }
 0xf5b   : > { %v11939_v3 = vsub.f32 %v11845_v17, %v4282_v38  ;;  %v4283_v48 = vmul.f32 0.0078125, %v4266_v2  ;;  %4339 = vadd.xlane.f32.xlu0 %v4312_v12  ;;  %v4313_v19 = vmul.f32 %v11934_v13, %v11934_v13  ;;  %4807 = vmatpush1.bf16.msra.mxu0 %v8161_v20 }
 0xf5c   : > { %v4268_v27 = vpop.xlane.xlu0 %4267  ;;  %7212 = vmatprep.subr.bf16.mxu1 %v8164_v33  ;;  %7276 = vmatprep.subr.bf16.mxu0 %v8166_v5  ;;  %v11978_v5 = vld [vmem:[%s13321_s22] ss:$0 sm:$0xff] }
 0xf5d   : > { %v11948_v54 = vsub.f32 %v11848_v23, %v4283_v48  ;;  %v4284_v37 = vmul.f32 0.0078125, %v4268_v27  ;;  %4341 = vadd.xlane.f32.xlu1 %v4313_v19  ;;  %v4314_v63 = vmul.f32 %v11939_v3, %v11939_v3 }
 0xf5f   : > { %v11953_v15 = vsub.f32 %v11851_v6, %v4284_v37  ;;  %4343 = vadd.xlane.f32.xlu0 %v4314_v63  ;;  %v4315_v43 = vmul.f32 %v11948_v54, %v11948_v54 }
 0xf61   : > { %4345 = vadd.xlane.f32.xlu1 %v4315_v43  ;;  %v4316_v50 = vmul.f32 %v11953_v15, %v11953_v15 }
 0xf63   : > { %4347 = vadd.xlane.f32.xlu0 %v4316_v50 }
 0xfcd   : > { %v4318_v59 = vpop.xlane.xlu1 %4317 }
 0xfce   : > { %v4349_v61 = vmul.f32 0.0078125, %v4318_v59 }
 0xfcf   : > { %v4320_v40 = vpop.xlane.xlu0 %4319 }
 0xfd0   : > { %v4365_v49 = vadd.f32 1e-05, %v4349_v61  ;;  %v4350_v28 = vmul.f32 0.0078125, %v4320_v40 }
 0xfd1   : > { %v4322_v8 = vpop.xlane.xlu1 %4321 }
 0xfd2   : > { %8484 = vrsqrt.f32 %v4365_v49  ;;  %v4366_v58 = vadd.f32 1e-05, %v4350_v28  ;;  %v4351_v38 = vmul.f32 0.0078125, %v4322_v8 }
 0xfd3   : > { %v4324_v12 = vpop.xlane.xlu0 %4323 }
 0xfd4   : > { %8486 = vrsqrt.f32 %v4366_v58  ;;  %v4367_v2 = vadd.f32 1e-05, %v4351_v38  ;;  %v4352_v48 = vmul.f32 0.0078125, %v4324_v12 }
 0xfd5   : > { %v4326_v19 = vpop.xlane.xlu1 %4325 }
 0xfd6   : > { %8488 = vrsqrt.f32 %v4367_v2  ;;  %v4368_v34 = vadd.f32 1e-05, %v4352_v48  ;;  %v4353_v21 = vmul.f32 0.0078125, %v4326_v19  ;;  %v8165_v48 = vld [vmem:[%s10328_s10] sm:$0xff]  }
 0xfd7   : > { %v4328_v27 = vpop.xlane.xlu0 %4327 }
 0xfd8   : > { %8490 = vrsqrt.f32 %v4368_v34  ;;  %v4354_v41 = vmul.f32 0.0078125, %v4328_v27  ;;  %v4369_v57 = vadd.f32 1e-05, %v4353_v21  ;;  %v8167_v21 = vld [vmem:[%s10328_s10 + $0x80] sm:$0xff]   ;;  %v8168_v27 = vld [vmem:[%s10328_s10 + $0x48] sm:$0xff]  }
 0xfd9   : > { %v4330_v63 = vpop.xlane.xlu1 %4329 }
 0xfda   : > { %v4370_v37 = vadd.f32 1e-05, %v4354_v41  ;;  %v4355_v35 = vmul.f32 0.0078125, %v4330_v63  ;;  %v8170_v41 = vld [vmem:[%s10328_s10 + $0xc8] sm:$0xff]  }
 0xfdb   : > { %v4332_v43 = vpop.xlane.xlu0 %4331 }
 0xfdc   : > { %v8485_v45 = vpop.eup %8484  ;;  %8492 = vrsqrt.f32 %v4370_v37  ;;  %v4356_v14 = vmul.f32 0.0078125, %v4332_v43  ;;  %v4371_v40 = vadd.f32 1e-05, %v4355_v35 }
 0xfdd   : > { %v4397_v47 = vmul.f32 %v8485_v45, %v11864_v0  ;;  %8494 = vrsqrt.f32 %v4369_v57  ;;  %v8169_v45 = vld [vmem:[%s10328_s10 + $0x8] sm:$0xff]  }
 0xfde   : > { %v8487_v50 = vpop.eup %8486  ;;  %v4372_v33 = vadd.f32 1e-05, %v4356_v14 }
 0xfdf   : > { %v4419_v4 = vmul.f32 %v11971_v39, %v4397_v47  ;;  %v4398_v16 = vmul.f32 %v8487_v50, %v11867_v10  ;;  %v8171_v47 = vld [vmem:[%s10328_s10 + $0x88] sm:$0xff]   ;;  %v8172_v50 = vld [vmem:[%s10328_s10 + $0x50] sm:$0xff]  }
 0xfe0   : > { %v8489_v20 = vpop.eup %8488  ;;  %8496 = vrsqrt.f32 %v4372_v33 }
 0xfe1   : > { %v4420_v59 = vmul.f32 %v11971_v39, %v4398_v16  ;;  %v4441_v28 = vadd.f32 %v11978_v5, %v4419_v4  ;;  %v4399_v10 = vmul.f32 %v8489_v20, %v11872_v31  ;;  %8498 = vrsqrt.f32 %v4371_v40 }
 0xfe2   : > { %v8491_v61 = vpop.eup %8490  ;;  %v4334_v0 = vpop.xlane.xlu1 %4333 }
 0xfe3   : > { %v4442_v8 = vadd.f32 %v11978_v5, %v4420_v59  ;;  %v4400_v58 = vmul.f32 %v8491_v61, %v11877_v25  ;;  %v4357_v34 = vmul.f32 0.0078125, %v4334_v0  ;;  %v4421_v31 = vmul.f32 %v11971_v39, %v4399_v10  ;;  %v8173_v59 = vld [vmem:[%s10328_s10 + $0x10] sm:$0xff]  }
 0xfe4   : > { %v4336_v49 = vpop.xlane.xlu0 %4335  ;;  %v8174_v61 = vld [vmem:[%s10328_s10 + $0xd0] sm:$0xff]  }
 0xfe5   : > { %v4358_v38 = vmul.f32 0.0078125, %v4336_v49  ;;  %v4457_v12 = vpack.c.bf16 %v4442_v8, %v4441_v28  ;;  %v4422_v2 = vmul.f32 %v11971_v39, %v4400_v58  ;;  %v4373_v14 = vadd.f32 1e-05, %v4357_v34  ;;  %v8175_v49 = vld [vmem:[%s10328_s10 + $0x90] sm:$0xff]   ;;  %v8176_v28 = vld [vmem:[%s10328_s10 + $0x58] sm:$0xff]  }
 0xfe6   : > { %v8493_v19 = vpop.eup %8492  ;;  %v4338_v35 = vpop.xlane.xlu1 %4337  ;;  %v4443_v4 = vadd.f32 %v11978_v5, %v4421_v31 }
 0xfe7   : > { %4712 = vmatmul.mubr.bf16.vlgmr.msra.gmra.mrb[96].mxu1 %v4457_v12  ;;  %4825 = vmatmul.mubr.bf16.vlgmr.msra.gmra.mrb[96].mxu0 %v4457_v12  ;;  %v8495_v25 = vpop.eup %8494  ;;  %v4374_v57 = vadd.f32 1e-05, %v4358_v38  ;;  %v4444_v63 = vadd.f32 %v11978_v5, %v4422_v2  ;;  %v4402_v43 = vmul.f32 %v8493_v19, %v11887_v56  ;;  %v4359_v0 = vmul.f32 0.0078125, %v4338_v35 }
 0xfe8   : > { %4721 = vmatprep.mubr.bf16.mxu1 %v13302_v53  ;;  %4834 = vmatprep.mubr.bf16.mxu0 %v13302_v53  ;;  %v4340_v37 = vpop.xlane.xlu0 %4339  ;;  %v4401_v16 = vmul.f32 %v8495_v25, %v11882_v11 }
 0xfe9   : > { %7213 = vmatpush3.bf16.msra.mxu1 %v8165_v48  ;;  %7277 = vmatpush3.bf16.msra.mxu0 %v8167_v21  ;;  %8500 = vrsqrt.f32 %v4374_v57  ;;  %v4360_v20 = vmul.f32 0.0078125, %v4340_v37  ;;  %v4458_v56 = vpack.c.bf16 %v4444_v63, %v4443_v4  ;;  %v4424_v33 = vmul.f32 %v11971_v39, %v4402_v43 }
 0xfea   : > { %7214 = vmatprep.subr.bf16.mxu1 %v8168_v27  ;;  %7278 = vmatprep.subr.bf16.mxu0 %v8170_v41  ;;  %v8497_v40 = vpop.eup %8496  ;;  %8502 = vrsqrt.f32 %v4373_v14  ;;  %v4423_v11 = vmul.f32 %v11971_v39, %v4401_v16  ;;  %v4375_v2 = vadd.f32 1e-05, %v4359_v0  ;;  %v4342_v48 = vpop.xlane.xlu1 %4341 }
 0xfeb   : > { %v8499_v8 = vpop.eup %8498  ;;  %v4376_v10 = vadd.f32 1e-05, %v4360_v20  ;;  %v4446_v38 = vadd.f32 %v11978_v5, %v4424_v33  ;;  %v4404_v12 = vmul.f32 %v8497_v40, %v11897_v22  ;;  %v4361_v25 = vmul.f32 0.0078125, %v4342_v48 }
 0xfec   : > { %v4344_v58 = vpop.xlane.xlu0 %4343  ;;  %v4445_v19 = vadd.f32 %v11978_v5, %v4423_v11  ;;  %v4403_v34 = vmul.f32 %v8499_v8, %v11892_v60 }
 0xfed   : > { %7215 = vmatpush3.bf16.msra.mxu1 %v8169_v45  ;;  %7279 = vmatpush3.bf16.msra.mxu0 %v8171_v47  ;;  %8504 = vrsqrt.f32 %v4376_v10  ;;  %v4362_v21 = vmul.f32 0.0078125, %v4344_v58  ;;  %v4426_v31 = vmul.f32 %v11971_v39, %v4404_v12  ;;  %v4377_v45 = vadd.f32 1e-05, %v4361_v25 }
 0xfee   : > { %7216 = vmatprep.subr.bf16.mxu1 %v8172_v50  ;;  %7280 = vmatprep.subr.bf16.mxu0 %v8174_v61  ;;  %v4459_v27 = vpack.c.bf16 %v4446_v38, %v4445_v19  ;;  %8506 = vrsqrt.f32 %v4375_v2  ;;  %v4425_v22 = vmul.f32 %v11971_v39, %v4403_v34  ;;  %v4346_v14 = vpop.xlane.xlu1 %4345 }
 0xfef   : > { %4722 = vmatmul.mubr.bf16.gmra.mrb[100].mxu1 %v4458_v56  ;;  %4835 = vmatmul.mubr.bf16.gmra.mrb[100].mxu0 %v4458_v56  ;;  %v4378_v37 = vadd.f32 1e-05, %v4362_v21  ;;  %v4448_v60 = vadd.f32 %v11978_v5, %v4426_v31  ;;  %v4363_v56 = vmul.f32 0.0078125, %v4346_v14  ;;  %v8186_v14 = vld [vmem:[%s10328_s10 + $0xe8] sm:$0xff]  }
 0xff0   : > { %4731 = vmatprep.mubr.bf16.mxu1 %v13302_v53  ;;  %4844 = vmatprep.mubr.bf16.mxu0 %v13302_v53  ;;  %v4348_v63 = vpop.xlane.xlu0 %4347  ;;  %v4447_v47 = vadd.f32 %v11978_v5, %v4425_v22 }
 0xff1   : > { %7217 = vmatpush3.bf16.msra.mxu1 %v8173_v59  ;;  %7281 = vmatpush3.bf16.msra.mxu0 %v8175_v49  ;;  %8508 = vrsqrt.f32 %v4378_v37  ;;  %v4364_v35 = vmul.f32 0.0078125, %v4348_v63  ;;  %v4379_v40 = vadd.f32 1e-05, %v4363_v56  ;;  %v8177_v37 = vld [vmem:[%s10328_s10 + $0x18] sm:$0xff]  }
 0xff2   : > { %7218 = vmatprep.subr.bf16.mxu1 %v8176_v28  ;;  %v4460_v4 = vpack.c.bf16 %v4448_v60, %v4447_v47  ;;  %8510 = vrsqrt.f32 %v4377_v45  ;;  %v8178_v63 = vld [vmem:[%s10328_s10 + $0xd8] sm:$0xff]   ;;  %v8180_v60 = vld [vmem:[%s10328_s10 + $0x60] sm:$0xff]   ;;  %v8184_v45 = vld [vmem:[%s10328_s10 + $0x68] sm:$0xff]  }
 0xff3   : > { %v8501_v41 = vpop.eup %8500  ;;  %7282 = vmatprep.subr.bf16.mxu0 %v8178_v63  ;;  %v8185_v47 = vld [vmem:[%s10328_s10 + $0x28] sm:$0xff]   ;;  %v8192_v56 = vld [vmem:[%s10328_s10 + $0x78] sm:$0xff]  }
 0xff4   : > { %v8503_v57 = vpop.eup %8502  ;;  %v4406_v43 = vmul.f32 %v8501_v41, %v11911_v7  ;;  %v4380_v7 = vadd.f32 1e-05, %v4364_v35  ;;  %v8188_v35 = vld [vmem:[%s10328_s10 + $0x70] sm:$0xff]  }
 0xff5   : > { %v4405_v50 = vmul.f32 %v8503_v57, %v11908_v55  ;;  %7219 = vmatpush3.bf16.msra.mxu1 %v8177_v37 }
 0xff6   : > { %v4428_v16 = vmul.f32 %v11971_v39, %v4406_v43  ;;  %8512 = vrsqrt.f32 %v4380_v7  ;;  %v8181_v43 = vld [vmem:[%s10328_s10 + $0x20] sm:$0xff]   ;;  %7220 = vmatprep.subr.bf16.mxu1 %v8180_v60  ;;  %v8195_v7 = vld [vmem:[%s10328_s10 + $0xb8] sm:$0xff]  }
 0xff7   : > { %4732 = vmatmul.mubr.bf16.gmra.mrb[104].mxu1 %v4459_v27  ;;  %4845 = vmatmul.mubr.bf16.gmra.mrb[104].mxu0 %v4459_v27  ;;  %v8505_v20 = vpop.eup %8504  ;;  %v4427_v33 = vmul.f32 %v11971_v39, %v4405_v50  ;;  %8514 = vrsqrt.f32 %v4379_v40  ;;  %v8187_v50 = vld [vmem:[%s10328_s10 + $0xa8] sm:$0xff]  }
 0xff8   : > { %4741 = vmatprep.mubr.bf16.mxu1 %v13302_v53  ;;  %4854 = vmatprep.mubr.bf16.mxu0 %v13302_v53  ;;  %v8507_v59 = vpop.eup %8506  ;;  %v4450_v55 = vadd.f32 %v11978_v5, %v4428_v16  ;;  %v4408_v61 = vmul.f32 %v8505_v20, %v11925_v44  ;;  %v8190_v16 = vld [vmem:[%s10328_s10 + $0xf0] sm:$0xff]  }
 0xff9   : > { %v4449_v0 = vadd.f32 %v11978_v5, %v4427_v33  ;;  %v4407_v49 = vmul.f32 %v8507_v59, %v11920_v62  ;;  %7221 = vmatpush3.bf16.msra.mxu1 %v8181_v43  ;;  %v8191_v20 = vld [vmem:[%s10328_s10 + $0xb0] sm:$0xff]   ;;  %v8194_v33 = vld [vmem:[%s10328_s10 + $0xf8] sm:$0xff]  }
 0xffa   : > { %v4430_v11 = vmul.f32 %v11971_v39, %v4408_v61  ;;  %7222 = vmatprep.subr.bf16.mxu1 %v8184_v45  ;;  %v8193_v59 = vld [vmem:[%s10328_s10 + $0x38] sm:$0xff]   ;;  %v13322_v61 = vld [vmem:[#allocation53_spill] sm:$0xff] }
 0xffb   : > { %v4461_v28 = vpack.c.bf16 %v4450_v55, %v4449_v0  ;;  %v8509_v8 = vpop.eup %8508  ;;  %v4429_v10 = vmul.f32 %v11971_v39, %v4407_v49  ;;  %v4497_v55 = vld [vmem:[%s10325_s14] sm:$0xf]  ;;  %v4513_v40 = vsub.s32 3, %v13322_v61  ;;  %v13323_v0 = vsub.s32 0, %v13322_v61 }
 0xffc   : > { %v8511_v58 = vpop.eup %8510  ;;  %v4452_v44 = vadd.f32 %v11978_v5, %v4430_v11  ;;  %v4410_v38 = vmul.f32 %v8509_v8, %v11939_v3  ;;  %v13325_v8 = vsub.s32 1, %v13322_v61 }
 0xffd   : > { %v4451_v62 = vadd.f32 %v11978_v5, %v4429_v10  ;;  %v4409_v12 = vmul.f32 %v8511_v58, %v11934_v13  ;;  %7223 = vmatpush3.bf16.msra.mxu1 %v8185_v47  ;;  %v12073_v49 = vrot.slane %v4497_v55, %v13323_v0  ;;  %v12083_v58 = vrot.slane %v4497_v55, %v4513_v40 }
 0xffe   : > { %v4432_v48 = vmul.f32 %v11971_v39, %v4410_v38  ;;  %7224 = vmatprep.subr.bf16.mxu1 %v8188_v35  ;;  %v12081_v10 = vrot.slane %v4497_v55, %v13325_v8 }
 0xfff   : > { %4742 = vmatmul.mubr.bf16.gmra.mrb[108].mxu1 %v4460_v4  ;;  %4855 = vmatmul.mubr.bf16.gmra.mrb[108].mxu0 %v4460_v4  ;;  %v4462_v2 = vpack.c.bf16 %v4452_v44, %v4451_v62  ;;  %v4431_v34 = vmul.f32 %v11971_v39, %v4409_v12  ;;  %v8189_v4 = vld [vmem:[%s10328_s10 + $0x30] sm:$0xff]  }
0x1000   : > { %4751 = vmatprep.mubr.bf16.mxu1 %v13302_v53  ;;  %4864 = vmatprep.mubr.bf16.mxu0 %v13302_v53  ;;  %v8513_v19 = vpop.eup %8512  ;;  %v4454_v27 = vadd.f32 %v11978_v5, %v4432_v48 }
0x1001   : > { %v8515_v21 = vpop.eup %8514  ;;  %v4412_v3 = vmul.f32 %v8513_v19, %v11953_v15  ;;  %v4453_v13 = vadd.f32 %v11978_v5, %v4431_v34  ;;  %7225 = vmatpush3.bf16.msra.mxu1 %v8189_v4 }
0x1002   : > { %v4411_v31 = vmul.f32 %v8515_v21, %v11948_v54  ;;  %7226 = vmatprep.subr.bf16.mxu1 %v8192_v56 }
0x1003   : > { %v4463_v41 = vpack.c.bf16 %v4454_v27, %v4453_v13  ;;  %v4434_v25 = vmul.f32 %v11971_v39, %v4412_v3 }
0x1004   : > { %v4433_v22 = vmul.f32 %v11971_v39, %v4411_v31  ;;  %v8179_v39 = vld [vmem:[%s10328_s10 + $0x98] sm:$0xff]  }
0x1005   : > { %v4456_v15 = vadd.f32 %v11978_v5, %v4434_v25  ;;  %7283 = vmatpush3.bf16.msra.mxu0 %v8179_v39  ;;  %7227 = vmatpush3.bf16.msra.mxu1 %v8193_v59 }
0x1006   : > { %v4455_v57 = vadd.f32 %v11978_v5, %v4433_v22  ;;  %v8183_v5 = vld [vmem:[%s10328_s10 + $0xa0] sm:$0xff]  }
0x1007   : > { %4752 = vmatmul.mubr.bf16.gmra.mrb[112].mxu1 %v4461_v28  ;;  %4865 = vmatmul.mubr.bf16.gmra.mrb[112].mxu0 %v4461_v28  ;;  %v13324_v28 = vsub.s32 2, %v13322_v61 }
0x1008   : > { %4761 = vmatprep.mubr.bf16.mxu1 %v13302_v53  ;;  %4874 = vmatprep.mubr.bf16.mxu0 %v13302_v53  ;;  %v4464_v54 = vpack.c.bf16 %v4456_v15, %v4455_v57 }
0x1009   : > { %v12077_v11 = vrot.slane %v4497_v55, %v13324_v28 }
0x100f   : > { %4762 = vmatmul.mubr.bf16.gmra.mrb[116].mxu1 %v4462_v2  ;;  %4875 = vmatmul.mubr.bf16.gmra.mrb[116].mxu0 %v4462_v2 }
0x1010   : > { %4771 = vmatprep.mubr.bf16.mxu1 %v13302_v53  ;;  %4884 = vmatprep.mubr.bf16.mxu0 %v13302_v53 }
0x1017   : > { %4772 = vmatmul.mubr.bf16.gmra.mrb[120].mxu1 %v4463_v41  ;;  %4885 = vmatmul.mubr.bf16.gmra.mrb[120].mxu0 %v4463_v41 }
0x1018   : > { %4781 = vmatprep.mubr.bf16.mxu1 %v13302_v53  ;;  %4894 = vmatprep.mubr.bf16.mxu0 %v13302_v53  ;;  %v8182_v53 = vld [vmem:[%s10328_s10 + $0xe0] sm:$0xff]  }
0x1019   : > { %7284 = vmatprep.subr.bf16.mxu0 %v8182_v53 }
0x101a   : > { %7285 = vmatpush3.bf16.msra.mxu0 %v8183_v5 }
0x101b   : > { %7286 = vmatprep.subr.bf16.mxu0 %v8186_v14 }
0x101e   : > { %7287 = vmatpush3.bf16.msra.mxu0 %v8187_v50 }
0x101f   : > { %4782 = vmatmul.mubr.bf16.gmra.mrb[124].mxu1 %v4464_v54  ;;  %4895 = vmatmul.mubr.bf16.gmra.mrb[124].mxu0 %v4464_v54 }
0x1020   : > { %7288 = vmatprep.subr.bf16.mxu0 %v8190_v16 }
0x1022   : > { %7289 = vmatpush3.bf16.msra.mxu0 %v8191_v20 }
0x1023   : > { %7290 = vmatprep.subr.bf16.mxu0 %v8194_v33 }
0x1026   : > { %7291 = vmatpush3.bf16.msra.mxu0 %v8195_v7 }
0x10ba   : > { %v4713_v44 = vpop.f32.mrb[96].mxu1  ;;  %v4826_v38 = vpop.f32.mrb[96].mxu0 }
0x10bb   : > { %v12086_v62 = vadd.f32 %v4713_v44, %v12073_v49  ;;  %v12089_v12 = vadd.f32 %v4826_v38, %v12077_v11  ;;  %v4715_v2 = vpop.f32.mrb[97].mxu1  ;;  %v4828_v48 = vpop.f32.mrb[97].mxu0 }
0x10bc   : > { %v12092_v19 = vadd.f32 %v4715_v2, %v12081_v10  ;;  %v12095_v34 = vadd.f32 %v4828_v48, %v12083_v58  ;;  %v4717_v21 = vpop.f32.mrb[98].mxu1  ;;  %v4830_v27 = vpop.f32.mrb[98].mxu0 }
0x10bd   : > { %v6908_v3 = vmul.f32 -1.702, %v12086_v62  ;;  %v6910_v13 = vmul.f32 -1.702, %v12089_v12  ;;  %v12100_v31 = vadd.f32 %v4717_v21, %v12073_v49  ;;  %v12103_v41 = vadd.f32 %v4830_v27, %v12077_v11  ;;  %v4719_v25 = vpop.f32.mrb[99].mxu1  ;;  %v4832_v22 = vpop.f32.mrb[99].mxu0 }
0x10be   : > { %v6909_v15 = vmul.f32 -1.702, %v12092_v19  ;;  %v6911_v57 = vmul.f32 -1.702, %v12095_v34  ;;  %v12108_v54 = vadd.f32 %v4719_v25, %v12081_v10  ;;  %v12111_v37 = vadd.f32 %v4832_v22, %v12083_v58 }
0x10bf   : > { %v5033_v63 = vmul.f32 1.442695, %v6908_v3  ;;  %v5037_v39 = vmul.f32 1.442695, %v6910_v13  ;;  %v6912_v60 = vmul.f32 -1.702, %v12100_v31 }
0x10c0   : > { %v5035_v53 = vmul.f32 1.442695, %v6909_v15  ;;  %v5039_v43 = vmul.f32 1.442695, %v6911_v57  ;;  %v6914_v5 = vmul.f32 -1.702, %v12103_v41 }
0x10c1   : > { %8516 = vpow2.f32 %v5033_v63  ;;  %v5041_v45 = vmul.f32 1.442695, %v6912_v60  ;;  %v6913_v14 = vmul.f32 -1.702, %v12108_v54  ;;  %v6915_v47 = vmul.f32 -1.702, %v12111_v37 }
0x10c2   : > { %8518 = vpow2.f32 %v5037_v39  ;;  %v5045_v50 = vmul.f32 1.442695, %v6914_v5  ;;  %v4723_v35 = vpop.f32.mrb[100].mxu1  ;;  %v4836_v4 = vpop.f32.mrb[100].mxu0 }
0x10c3   : > { %8520 = vpow2.f32 %v5035_v53  ;;  %v5043_v16 = vmul.f32 1.442695, %v6913_v14  ;;  %v5047_v20 = vmul.f32 1.442695, %v6915_v47  ;;  %v12118_v56 = vadd.f32 %v4723_v35, %v12073_v49  ;;  %v4725_v33 = vpop.f32.mrb[101].mxu1  ;;  %v4838_v59 = vpop.f32.mrb[101].mxu0 }
0x10c4   : > { %8522 = vpow2.f32 %v5039_v43  ;;  %v12121_v7 = vadd.f32 %v4836_v4, %v12077_v11  ;;  %v12124_v55 = vadd.f32 %v4725_v33, %v12081_v10  ;;  %v12127_v61 = vadd.f32 %v4838_v59, %v12083_v58  ;;  %v4727_v40 = vpop.f32.mrb[102].mxu1  ;;  %v4840_v0 = vpop.f32.mrb[102].mxu0 }
0x10c5   : > { %8524 = vpow2.f32 %v5041_v45  ;;  %v6916_v28 = vmul.f32 -1.702, %v12118_v56  ;;  %v12131_v8 = vadd.f32 %v4727_v40, %v12073_v49  ;;  %v4729_v44 = vpop.f32.mrb[103].mxu1  ;;  %v4842_v38 = vpop.f32.mrb[103].mxu0  ;;  %v12138_v57 = vadd.f32 %v4840_v0, %v12077_v11 }
0x10c6   : > { %8526 = vpow2.f32 %v5045_v50  ;;  %v6918_v2 = vmul.f32 -1.702, %v12121_v7  ;;  %v6917_v48 = vmul.f32 -1.702, %v12124_v55  ;;  %v6919_v21 = vmul.f32 -1.702, %v12127_v61 }
0x10c7   : > { %8528 = vpow2.f32 %v5043_v16  ;;  %v5049_v27 = vmul.f32 1.442695, %v6916_v28  ;;  %v6920_v3 = vmul.f32 -1.702, %v12131_v8  ;;  %v12141_v14 = vadd.f32 %v4729_v44, %v12081_v10 }
0x10c8   : > { %8530 = vpow2.f32 %v5047_v20  ;;  %v5053_v13 = vmul.f32 1.442695, %v6918_v2  ;;  %v5051_v25 = vmul.f32 1.442695, %v6917_v48  ;;  %v5055_v22 = vmul.f32 1.442695, %v6919_v21 }
0x10c9   : > { %8532 = vpow2.f32 %v5049_v27  ;;  %v5057_v15 = vmul.f32 1.442695, %v6920_v3  ;;  %v6922_v59 = vmul.f32 -1.702, %v12138_v57  ;;  %v12145_v2 = vadd.f32 %v4842_v38, %v12083_v58 }
0x10ca   : > { %8534 = vpow2.f32 %v5053_v13  ;;  %v4733_v63 = vpop.f32.mrb[104].mxu1  ;;  %v4846_v39 = vpop.f32.mrb[104].mxu0  ;;  %v6921_v21 = vmul.f32 -1.702, %v12141_v14 }
0x10cb   : > { %v8517_v60 = vpop.eup %8516  ;;  %8536 = vpow2.f32 %v5051_v25  ;;  %v4735_v53 = vpop.f32.mrb[105].mxu1  ;;  %v12149_v13 = vadd.f32 %v4733_v63, %v12073_v49  ;;  %v12152_v25 = vadd.f32 %v4846_v39, %v12077_v11 }
0x10cc   : > { %v4848_v43 = vpop.f32.mrb[105].mxu0  ;;  %v8519_v5 = vpop.eup %8518  ;;  %v5161_v45 = vadd.f32 1.0, %v8517_v60  ;;  %8538 = vpow2.f32 %v5055_v22  ;;  %v5061_v60 = vmul.f32 1.442695, %v6922_v59  ;;  %v12155_v38 = vadd.f32 %v4735_v53, %v12081_v10 }
0x10cd   : > { %v4737_v47 = vpop.f32.mrb[106].mxu1  ;;  %v4850_v50 = vpop.f32.mrb[106].mxu0  ;;  %v5163_v4 = vadd.f32 1.0, %v8519_v5  ;;  %8540 = vpow2.f32 %v5057_v15  ;;  %13326 = vst [vmem:[#allocation86_spill] sm:$0xff] %v12152_v25  ;;  %v12159_v63 = vadd.f32 %v4848_v43, %v12083_v58  ;;  %v6926_v43 = vmul.f32 -1.702, %v12152_v25 }
0x10ce   : > { %v8521_v35 = vpop.eup %8520  ;;  %v4739_v16 = vpop.f32.mrb[107].mxu1  ;;  %8542 = vrcp.f32 %v5161_v45  ;;  %13327 = vst [vmem:[#allocation84_spill] sm:$0xff] %v12155_v38  ;;  %v12166_v53 = vadd.f32 %v4737_v47, %v12073_v49 }
0x10cf   : > { %v8523_v20 = vpop.eup %8522  ;;  %v5162_v33 = vadd.f32 1.0, %v8521_v35  ;;  %v4852_v40 = vpop.f32.mrb[107].mxu0  ;;  %8544 = vrcp.f32 %v5163_v4  ;;  %13328 = vst [vmem:[#allocation71_spill] sm:$0xff] %v12159_v63 }
0x10d0   : > { %v8525_v0 = vpop.eup %8524  ;;  %v5164_v28 = vadd.f32 1.0, %v8523_v20  ;;  %v6923_v20 = vmul.f32 -1.702, %v12145_v2  ;;  %13329 = vst [vmem:[#allocation74_spill] sm:$0xff] %v12166_v53 }
0x10d1   : > { %v8527_v44 = vpop.eup %8526  ;;  %8546 = vrcp.f32 %v5162_v33  ;;  %v5165_v48 = vadd.f32 1.0, %v8525_v0 }
0x10d2   : > { %v8529_v27 = vpop.eup %8528  ;;  %8548 = vrcp.f32 %v5164_v28  ;;  %v5167_v3 = vadd.f32 1.0, %v8527_v44  ;;  %v4743_v5 = vpop.f32.mrb[108].mxu1  ;;  %v5059_v28 = vmul.f32 1.442695, %v6921_v21  ;;  %v5063_v46 = vmul.f32 1.442695, %v6923_v20 }
0x10d3   : > { %v8531_v22 = vpop.eup %8530  ;;  %8550 = vrcp.f32 %v5165_v48  ;;  %v5166_v15 = vadd.f32 1.0, %v8529_v27  ;;  %v4856_v45 = vpop.f32.mrb[108].mxu0 }
0x10d4   : > { %v8533_v35 = vpop.eup %8532  ;;  %8552 = vrcp.f32 %v5167_v3  ;;  %v5168_v4 = vadd.f32 1.0, %v8531_v22  ;;  %v12161_v33 = vpop.f32.mrb[109].mxu1  ;;  %v6924_v3 = vmul.f32 -1.702, %v12149_v13 }
0x10d5   : > { %v12163_v39 = vpop.f32.mrb[109].mxu0  ;;  %v8535_v0 = vpop.eup %8534  ;;  %8554 = vrcp.f32 %v5166_v15  ;;  %v5169_v59 = vadd.f32 1.0, %v8533_v35  ;;  %v6925_v15 = vmul.f32 -1.702, %v12155_v38 }
0x10d6   : > { %v12168_v44 = vpop.f32.mrb[110].mxu1  ;;  %v8537_v48 = vpop.eup %8536  ;;  %8556 = vrcp.f32 %v5168_v4  ;;  %v5171_v27 = vadd.f32 1.0, %v8535_v0  ;;  %v6927_v4 = vmul.f32 -1.702, %v12159_v63  ;;  %v12181_v0 = vadd.f32 %v4850_v50, %v12077_v11 }
0x10d7   : > { %v12172_v22 = vpop.f32.mrb[110].mxu0  ;;  %v8539_v6 = vpop.eup %8538  ;;  %8558 = vrcp.f32 %v5169_v59  ;;  %v5170_v23 = vadd.f32 1.0, %v8537_v48  ;;  %v6928_v59 = vmul.f32 -1.702, %v12166_v53  ;;  %v12185_v48 = vadd.f32 %v4739_v16, %v12081_v10 }
0x10d8   : > { %v12175_v21 = vpop.f32.mrb[111].mxu1  ;;  %v12177_v47 = vpop.f32.mrb[111].mxu0  ;;  %8560 = vrcp.f32 %v5171_v27  ;;  %v5172_v17 = vadd.f32 1.0, %v8539_v6  ;;  %13330 = vst [vmem:[#allocation73_spill] sm:$0xff] %v12181_v0  ;;  %v5065_v18 = vmul.f32 1.442695, %v6924_v3  ;;  %v12188_v27 = vadd.f32 %v4852_v40, %v12083_v58 }
0x10d9   : > { %v8541_v35 = vpop.eup %8540  ;;  %8562 = vrcp.f32 %v5170_v23  ;;  %13331 = vst [vmem:[#allocation85_spill] sm:$0xff] %v12185_v48  ;;  %v5069_v50 = vmul.f32 1.442695, %v6926_v43  ;;  %v5067_v36 = vmul.f32 1.442695, %v6925_v15  ;;  %v12193_v23 = vadd.f32 %v4743_v5, %v12073_v49 }
0x10da   : > { %v8543_v1 = vpop.eup %8542  ;;  %v5173_v30 = vadd.f32 1.0, %v8541_v35  ;;  %8564 = vrcp.f32 %v5172_v17  ;;  %13332 = vst [vmem:[#allocation83_spill] sm:$0xff] %v12188_v27  ;;  %v12195_v35 = vpop.f32.mrb[112].mxu1  ;;  %v5071_v17 = vmul.f32 1.442695, %v6927_v4  ;;  %v12203_v40 = vadd.f32 %v4856_v45, %v12077_v11 }
0x10db   : > { %v8545_v29 = vpop.eup %8544  ;;  %13333 = vst [vmem:[#allocation76_spill] sm:$0xff] %v12193_v23  ;;  %v12197_v42 = vpop.f32.mrb[112].mxu0  ;;  %v6930_v20 = vmul.f32 -1.702, %v12181_v0  ;;  %v5073_v5 = vmul.f32 1.442695, %v6928_v59  ;;  %v12215_v4 = vmul.f32 %v8543_v1, %v12086_v62 }
0x10dc   : > { %v12190_v6 = vpop.eup %8546  ;;  %8566 = vrcp.f32 %v5173_v30  ;;  %13334 = vst [vmem:[#allocation58_spill] sm:$0xff] %v12203_v40  ;;  %v12205_v3 = vpop.f32.mrb[113].mxu1  ;;  %v6929_v15 = vmul.f32 -1.702, %v12185_v48  ;;  %v6931_v24 = vmul.f32 -1.702, %v12188_v27  ;;  %v12226_v51 = vmul.f32 %v8545_v29, %v12089_v12 }
0x10dd   : > { %v12199_v16 = vpop.eup %8548  ;;  %8568 = vpow2.f32 %v5061_v60  ;;  %v12207_v30 = vpop.f32.mrb[113].mxu0  ;;  %v6932_v1 = vmul.f32 -1.702, %v12193_v23 }
0x10de   : > { %v8551_v43 = vpop.eup %8550  ;;  %8570 = vpow2.f32 %v5059_v28  ;;  %v12210_v9 = vpop.f32.mrb[114].mxu1  ;;  %v5075_v12 = vmul.f32 1.442695, %v6929_v15 }
0x10df   : > { %v12212_v26 = vpop.f32.mrb[114].mxu0  ;;  %v8553_v60 = vpop.eup %8552  ;;  %v12218_v45 = vmul.f32 %v8551_v43, %v12100_v31  ;;  %8572 = vpow2.f32 %v5063_v46  ;;  %v5077_v31 = vmul.f32 1.442695, %v6930_v20  ;;  %v6934_v43 = vmul.f32 -1.702, %v12203_v40 }
0x10e0   : > { %v12221_v32 = vpop.f32.mrb[115].mxu1  ;;  %v12223_v28 = vpop.f32.mrb[115].mxu0  ;;  %v12229_v52 = vmul.f32 %v8553_v60, %v12103_v41  ;;  %8574 = vpow2.f32 %v5065_v18  ;;  %v5079_v18 = vmul.f32 1.442695, %v6931_v24  ;;  %v5081_v23 = vmul.f32 1.442695, %v6932_v1 }
0x10e1   : > { %v8555_v59 = vpop.eup %8554  ;;  %8576 = vpow2.f32 %v5069_v50  ;;  %v5085_v40 = vmul.f32 1.442695, %v6934_v43 }
0x10e2   : > { %v12232_v62 = vpop.eup %8556  ;;  %8578 = vpow2.f32 %v5067_v36  ;;  %v12245_v46 = vpop.f32.mrb[116].mxu1  ;;  %v12253_v36 = vadd.f32 %v12161_v33, %v12081_v10  ;;  %v12271_v33 = vadd.f32 %v12168_v44, %v12073_v49 }
0x10e3   : > { %v12237_v0 = vpop.eup %8558  ;;  %8580 = vpow2.f32 %v5071_v17  ;;  %v12247_v50 = vpop.f32.mrb[116].mxu0 }
0x10e4   : > { %v12241_v41 = vpop.eup %8560  ;;  %8582 = vpow2.f32 %v5073_v5  ;;  %13335 = vst [vmem:[#allocation54_spill] sm:$0xff] %v12253_v36  ;;  %v12255_v15 = vpop.f32.mrb[117].mxu1  ;;  %13338 = vst [vmem:[#allocation56_spill] sm:$0xff] %v12271_v33 }
0x10e5   : > { %v12243_v60 = vpop.eup %8562  ;;  %8584 = vpow2.f32 %v5077_v31  ;;  %v12257_v17 = vpop.f32.mrb[117].mxu0  ;;  %v12267_v31 = vadd.f32 %v12163_v39, %v12083_v58  ;;  %v5354_v39 = vmul.f32 %v12190_v6, %v12092_v19 }
0x10e6   : > { %v12249_v20 = vpop.eup %8564  ;;  %8586 = vpow2.f32 %v5075_v12  ;;  %v12261_v5 = vpop.f32.mrb[118].mxu1 }
0x10e7   : > { %v12259_v24 = vpop.eup %8566  ;;  %v12263_v1 = vpop.f32.mrb[118].mxu0  ;;  %8588 = vpow2.f32 %v5079_v18  ;;  %13337 = vst [vmem:[#allocation61_spill] sm:$0xff] %v12267_v31  ;;  %v6933_v18 = vmul.f32 -1.702, %v12253_v36 }
0x10e8   : > { %13336 = vst [vmem:[#allocation60_spill] sm:$0xff] %v12263_v1  ;;  %v8569_v29 = vpop.eup %8568  ;;  %v12273_v43 = vpop.f32.mrb[119].mxu1  ;;  %8590 = vpow2.f32 %v5081_v23 }
0x10e9   : > { %13339 = vst [vmem:[#allocation75_spill] sm:$0xff] %v12273_v43  ;;  %v12275_v27 = vpop.f32.mrb[119].mxu0  ;;  %v8571_v48 = vpop.eup %8570  ;;  %v5175_v12 = vadd.f32 1.0, %v8569_v29  ;;  %8592 = vpow2.f32 %v5085_v40  ;;  %v6935_v43 = vmul.f32 -1.702, %v12267_v31  ;;  %v12286_v40 = vadd.f32 %v12172_v22, %v12077_v11 }
0x10ea   : > { %13340 = vst [vmem:[#allocation59_spill] sm:$0xff] %v12275_v27  ;;  %v8573_v53 = vpop.eup %8572  ;;  %v5174_v63 = vadd.f32 1.0, %v8571_v48  ;;  %v6936_v27 = vmul.f32 -1.702, %v12271_v33  ;;  %v5356_v48 = vmul.f32 %v12199_v16, %v12095_v34  ;;  %v12288_v19 = vpop.f32.mrb[120].mxu1  ;;  %v5360_v34 = vmul.f32 %v12232_v62, %v12111_v37 }
0x10eb   : > { %v8575_v1 = vpop.eup %8574  ;;  %8594 = vrcp.f32 %v5175_v12  ;;  %v5176_v38 = vadd.f32 1.0, %v8573_v53  ;;  %13341 = vst [vmem:[#allocation55_spill] sm:$0xff] %v12286_v40  ;;  %v12291_v12 = vpop.f32.mrb[120].mxu0  ;;  %v12299_v22 = vadd.f32 %v12175_v21, %v12081_v10  ;;  %v6938_v37 = vmul.f32 -1.702, %v12286_v40 }
0x10ec   : > { %v8577_v44 = vpop.eup %8576  ;;  %8596 = vrcp.f32 %v5174_v63  ;;  %v5177_v25 = vadd.f32 1.0, %v8575_v1  ;;  %v5358_v63 = vmul.f32 %v8555_v59, %v12108_v54  ;;  %v5083_v1 = vmul.f32 1.442695, %v6933_v18  ;;  %v12293_v33 = vpop.f32.mrb[121].mxu1 }
0x10ed   : > { %v8579_v29 = vpop.eup %8578  ;;  %8598 = vrcp.f32 %v5176_v38  ;;  %v5179_v23 = vadd.f32 1.0, %v8577_v44  ;;  %v12301_v16 = vpop.f32.mrb[121].mxu0  ;;  %v5087_v59 = vmul.f32 1.442695, %v6935_v43  ;;  %v5089_v18 = vmul.f32 1.442695, %v6936_v27 }
0x10ee   : > { %v8581_v53 = vpop.eup %8580  ;;  %8600 = vrcp.f32 %v5177_v25  ;;  %v5178_v6 = vadd.f32 1.0, %v8579_v29  ;;  %v12303_v44 = vpop.f32.mrb[122].mxu1  ;;  %v12308_v62 = vadd.f32 %v12177_v47, %v12083_v58  ;;  %v12316_v27 = vadd.f32 %v12195_v35, %v12073_v49 }
0x10ef   : > { %v8583_v31 = vpop.eup %8582  ;;  %8602 = vrcp.f32 %v5179_v23  ;;  %v5180_v38 = vadd.f32 1.0, %v8581_v53  ;;  %v12310_v21 = vpop.f32.mrb[122].mxu0  ;;  %v5418_v43 = vpack.c.bf16 %v5358_v63, %v5354_v39  ;;  %v6937_v47 = vmul.f32 -1.702, %v12299_v22 }
0x10f0   : > { %v8585_v54 = vpop.eup %8584  ;;  %8604 = vrcp.f32 %v5178_v6  ;;  %v5181_v25 = vadd.f32 1.0, %v8583_v31  ;;  %v12312_v23 = vpop.f32.mrb[123].mxu1  ;;  %v12323_v40 = vadd.f32 %v12197_v42, %v12077_v11  ;;  %v5420_v35 = vpack.c.bf16 %v5360_v34, %v5356_v48 }
0x10f1   : > { %v8587_v29 = vpop.eup %8586  ;;  %8606 = vrcp.f32 %v5180_v38  ;;  %v5183_v36 = vadd.f32 1.0, %v8585_v54  ;;  %13342 = vst [vmem:[#allocation57_spill] sm:$0xff] %v12312_v23  ;;  %v12318_v6 = vpop.f32.mrb[123].mxu0  ;;  %5744 = vmatprep.mubr.bf16.mxu1 %v5418_v43  ;;  %v13344_v42 = vpack.c.bf16 %v12218_v45, %v12215_v4  ;;  %v12342_v48 = vadd.f32 %v12210_v9, %v12073_v49 }
0x10f2   : > { %v8589_v53 = vpop.eup %8588  ;;  %8608 = vrcp.f32 %v5181_v25  ;;  %v5182_v31 = vadd.f32 1.0, %v8587_v29  ;;  %v12327_v29 = vadd.f32 %v12205_v3, %v12081_v10  ;;  %v6940_v3 = vmul.f32 -1.702, %v12316_v27  ;;  %5841 = vmatprep.mubr.bf16.mxu0 %v5420_v35 }
0x10f3   : > { %v8591_v38 = vpop.eup %8590  ;;  %8610 = vrcp.f32 %v5183_v36  ;;  %v5184_v54 = vadd.f32 1.0, %v8589_v53  ;;  %v6939_v36 = vmul.f32 -1.702, %v12308_v62  ;;  %v12332_v53 = vadd.f32 %v12207_v30, %v12083_v58  ;;  %5745 = vmatmul.mubr.bf16.vlgmr.msra.gmra.mrb[128].mxu1 %v13344_v42  ;;  %v12348_v30 = vpop.f32.mrb[124].mxu0 }
0x10f4   : > { %v8593_v23 = vpop.eup %8592  ;;  %8612 = vrcp.f32 %v5182_v31  ;;  %v5185_v25 = vadd.f32 1.0, %v8591_v38  ;;  %v12337_v31 = vpop.f32.mrb[124].mxu1  ;;  %v12346_v34 = vadd.f32 %v12212_v26, %v12077_v11  ;;  %v12354_v45 = vmul.f32 %v12237_v0, %v12118_v56 }
0x10f5   : > { %v8595_v39 = vpop.eup %8594  ;;  %8614 = vrcp.f32 %v5184_v54  ;;  %v5187_v63 = vadd.f32 1.0, %v8593_v23  ;;  %13343 = vst [vmem:[#allocation53_spill] sm:$0xff] %v12332_v53  ;;  %v12350_v23 = vpop.f32.mrb[125].mxu1  ;;  %v5093_v43 = vmul.f32 1.442695, %v6938_v37  ;;  %v13346_v9 = vpack.c.bf16 %v12229_v52, %v12226_v51 }
0x10f6   : > { %v8597_v38 = vpop.eup %8596  ;;  %8616 = vrcp.f32 %v5185_v25  ;;  %13345 = vst [vmem:[#allocation87_spill] sm:$0xff] %v12350_v23  ;;  %v6942_v54 = vmul.f32 -1.702, %v12323_v40  ;;  %v12360_v26 = vpop.f32.mrb[125].mxu0  ;;  %v5091_v42 = vmul.f32 1.442695, %v6937_v47  ;;  %v12369_v56 = vadd.f32 %v12221_v32, %v12081_v10 }
0x10f7   : > { %v8599_v4 = vpop.eup %8598  ;;  %8618 = vrcp.f32 %v5187_v63  ;;  %5842 = vmatmul.mubr.bf16.vlgmr.msra.gmra.mrb[128].mxu0 %v13346_v9  ;;  %13347 = vst [vmem:[#allocation88_spill] sm:$0xff] %v12360_v26  ;;  %v12362_v25 = vpop.f32.mrb[126].mxu1  ;;  %v6941_v23 = vmul.f32 -1.702, %v12327_v29  ;;  %v5362_v51 = vmul.f32 %v12243_v60, %v12124_v55  ;;  %v5095_v63 = vmul.f32 1.442695, %v6939_v36 }
0x10f8   : > { %13348 = vst [vmem:[#allocation89_spill] sm:$0xff] %v12362_v25  ;;  %v12364_v35 = vpop.eup %8600  ;;  %8620 = vpow2.f32 %v5083_v1  ;;  %v12371_v0 = vpop.f32.mrb[126].mxu0  ;;  %v6943_v1 = vmul.f32 -1.702, %v12332_v53  ;;  %v5097_v32 = vmul.f32 1.442695, %v6940_v3  ;;  %v5364_v26 = vmul.f32 %v12249_v20, %v12127_v61 }
0x10f9   : > { %13349 = vst [vmem:[#allocation90_spill] sm:$0xff] %v12371_v0  ;;  %v12373_v37 = vpop.f32.mrb[127].mxu1  ;;  %v12375_v52 = vpop.eup %8602  ;;  %8622 = vpow2.f32 %v5087_v59  ;;  %v6944_v25 = vmul.f32 -1.702, %v12342_v48  ;;  %v6946_v0 = vmul.f32 -1.702, %v12346_v34  ;;  %v12392_v60 = vadd.f32 %v12223_v28, %v12083_v58 }
0x10fa   : > { %13350 = vst [vmem:[#allocation91_spill] sm:$0xff] %v12373_v37  ;;  %v12380_v47 = vpop.f32.mrb[127].mxu0  ;;  %v12382_v9 = vpop.eup %8604  ;;  %8624 = vpow2.f32 %v5089_v18  ;;  %v5101_v55 = vmul.f32 1.442695, %v6942_v54  ;;  %v5366_v18 = vmul.f32 %v8597_v38, %v12141_v14  ;;  %v5099_v36 = vmul.f32 1.442695, %v6941_v23 }
0x10fb   : > { %13351 = vst [vmem:[#allocation92_spill] sm:$0xff] %v12380_v47  ;;  %v12386_v37 = vpop.eup %8606  ;;  %8626 = vpow2.f32 %v5093_v43  ;;  %v6945_v3 = vmul.f32 -1.702, %v12369_v56  ;;  %v5365_v53 = vmul.f32 %v12259_v24, %v12131_v8  ;;  %v5103_v61 = vmul.f32 1.442695, %v6943_v1 }
0x10fc   : > { %v12394_v59 = vpop.eup %8608  ;;  %8628 = vpow2.f32 %v5091_v42  ;;  %v12404_v20 = vadd.f32 %v12245_v46, %v12073_v49  ;;  %v5368_v43 = vmul.f32 %v8599_v4, %v12145_v2  ;;  %v5105_v14 = vmul.f32 1.442695, %v6944_v25 }
0x10fd   : > { %v12398_v47 = vpop.eup %8610  ;;  %8630 = vpow2.f32 %v5095_v63  ;;  %v5109_v38 = vmul.f32 1.442695, %v6946_v0  ;;  %v5367_v54 = vmul.f32 %v8595_v39, %v12138_v57  ;;  %v6947_v8 = vmul.f32 -1.702, %v12392_v60 }
0x10fe   : > { %v12406_v28 = vpop.eup %8612  ;;  %8632 = vpow2.f32 %v5097_v32  ;;  %v12415_v24 = vadd.f32 %v12247_v50, %v12077_v11  ;;  %v5107_v42 = vmul.f32 1.442695, %v6945_v3  ;;  %v12421_v2 = vadd.f32 %v12255_v15, %v12081_v10 }
0x10ff   : > { %v12409_v23 = vpop.eup %8614  ;;  %8634 = vpow2.f32 %v5101_v55  ;;  %v5422_v4 = vpack.c.bf16 %v5366_v18, %v5362_v51  ;;  %v5363_v57 = vmul.f32 %v12241_v41, %v12121_v7  ;;  %v6948_v39 = vmul.f32 -1.702, %v12404_v20 }
0x1100   : > { %v12417_v46 = vpop.eup %8616  ;;  %8636 = vpow2.f32 %v5099_v36  ;;  %v12430_v50 = vadd.f32 %v12257_v17, %v12083_v58  ;;  %v5424_v63 = vpack.c.bf16 %v5368_v43, %v5364_v26  ;;  %v5421_v15 = vpack.c.bf16 %v5365_v53, %v12354_v45 }
0x1101   : > { %v12423_v25 = vpop.eup %8618  ;;  %8638 = vpow2.f32 %v5103_v61  ;;  %5752 = vmatprep.mubr.bf16.mxu1 %v5422_v4  ;;  %v6950_v32 = vmul.f32 -1.702, %v12415_v24  ;;  %v5423_v55 = vpack.c.bf16 %v5367_v54, %v5363_v57  ;;  %v12434_v18 = vmul.f32 1.442695, %v6947_v8  ;;  %v13352_v54 = vld [vmem:[#allocation86_spill] sm:$0xff]  ;;  %v13353_v57 = vld [vmem:[#allocation84_spill] sm:$0xff] }
0x1102   : > { %v8621_v0 = vpop.eup %8620  ;;  %8640 = vpow2.f32 %v5105_v14  ;;  %v6949_v36 = vmul.f32 -1.702, %v12421_v2  ;;  %5849 = vmatprep.mubr.bf16.mxu0 %v5424_v63  ;;  %5753 = vmatmul.mubr.bf16.gmra.mrb[132].mxu1 %v5421_v15  ;;  %v12437_v3 = vmul.f32 1.442695, %v6948_v39  ;;  %v12441_v53 = vadd.f32 %v12261_v5, %v12073_v49  ;;  %v13354_v63 = vld [vmem:[#allocation71_spill] sm:$0xff] }
0x1103   : > { %v8623_v1 = vpop.eup %8622  ;;  %v5186_v51 = vadd.f32 1.0, %v8621_v0  ;;  %8642 = vpow2.f32 %v5109_v38  ;;  %5850 = vmatmul.mubr.bf16.gmra.mrb[132].mxu0 %v5423_v55  ;;  %v12445_v61 = vmul.f32 %v12364_v35, %v12149_v13  ;;  %v6951_v14 = vmul.f32 -1.702, %v12430_v50  ;;  %v13355_v55 = vld [vmem:[#allocation74_spill] sm:$0xff] }
0x1104   : > { %v8625_v7 = vpop.eup %8624  ;;  %v5188_v41 = vadd.f32 1.0, %v8623_v1  ;;  %8644 = vpow2.f32 %v5107_v42  ;;  %v12450_v8 = vmul.f32 %v12375_v52, %v13352_v54  ;;  %v12452_v4 = vmul.f32 1.442695, %v6950_v32  ;;  %v13359_v54 = vld [vmem:[#allocation83_spill] sm:$0xff] }
0x1105   : > { %v8627_v17 = vpop.eup %8626  ;;  %8646 = vrcp.f32 %v5186_v51  ;;  %v5189_v26 = vadd.f32 1.0, %v8625_v7  ;;  %v5370_v39 = vmul.f32 %v12382_v9, %v13353_v57  ;;  %v12456_v35 = vmul.f32 1.442695, %v6949_v36  ;;  %v13356_v9 = vld [vmem:[#allocation60_spill] sm:$0xff] }
0x1106   : > { %v8629_v45 = vpop.eup %8628  ;;  %8648 = vrcp.f32 %v5188_v41  ;;  %v5191_v43 = vadd.f32 1.0, %v8627_v17  ;;  %v5372_v15 = vmul.f32 %v12386_v37, %v13354_v63  ;;  %v6952_v52 = vmul.f32 -1.702, %v12441_v53  ;;  %v13357_v17 = vld [vmem:[#allocation85_spill] sm:$0xff] }
0x1107   : > { %v8631_v38 = vpop.eup %8630  ;;  %8650 = vrcp.f32 %v5189_v26  ;;  %v5190_v42 = vadd.f32 1.0, %v8629_v45  ;;  %v5373_v32 = vmul.f32 %v12394_v59, %v13355_v55  ;;  %v12465_v41 = vadd.f32 %v13356_v9, %v12077_v11  ;;  %v13358_v45 = vld [vmem:[#allocation75_spill] sm:$0xff] }
0x1108   : > { %v8633_v5 = vpop.eup %8632  ;;  %8652 = vrcp.f32 %v5191_v43  ;;  %v5192_v13 = vadd.f32 1.0, %v8631_v38  ;;  %v5374_v26 = vmul.f32 %v12406_v28, %v13357_v17  ;;  %v12471_v43 = vadd.f32 %v13358_v45, %v12081_v10 }
0x1109   : > { %v8635_v0 = vpop.eup %8634  ;;  %8654 = vrcp.f32 %v5190_v42  ;;  %v5193_v1 = vadd.f32 1.0, %v8633_v5  ;;  %v5376_v59 = vmul.f32 %v12409_v23, %v13359_v54  ;;  %v13360_v5 = vld [vmem:[#allocation59_spill] sm:$0xff]  ;;  %v12487_v23 = vadd.f32 %v12291_v12, %v12077_v11 }
0x110a   : > { %v8637_v51 = vpop.eup %8636  ;;  %8656 = vrcp.f32 %v5192_v13  ;;  %v5195_v7 = vadd.f32 1.0, %v8635_v0  ;;  %v12477_v57 = vadd.f32 %v13360_v5, %v12083_v58  ;;  %v13361_v0 = vld [vmem:[#allocation73_spill] sm:$0xff]  ;;  %v5425_v12 = vpack.c.bf16 %v5373_v32, %v12445_v61 }
0x110b   : > { %v8639_v36 = vpop.eup %8638  ;;  %8658 = vrcp.f32 %v5193_v1  ;;  %v5194_v37 = vadd.f32 1.0, %v8637_v51  ;;  %v5375_v28 = vmul.f32 %v12398_v47, %v13361_v0  ;;  %v12483_v1 = vadd.f32 %v12288_v19, %v12073_v49 }
0x110c   : > { %v8641_v38 = vpop.eup %8640  ;;  %8660 = vrcp.f32 %v5195_v7  ;;  %v5196_v42 = vadd.f32 1.0, %v8639_v36  ;;  %v12491_v7 = vadd.f32 %v12293_v33, %v12081_v10  ;;  %v12495_v36 = vadd.f32 %v12301_v16, %v12083_v58 }
0x110d   : > { %v8643_v13 = vpop.eup %8642  ;;  %8662 = vrcp.f32 %v5194_v37  ;;  %v5197_v63 = vadd.f32 1.0, %v8641_v38  ;;  %v5426_v19 = vpack.c.bf16 %v5374_v26, %v5370_v39  ;;  %v6954_v37 = vmul.f32 -1.702, %v12465_v41 }
0x110e   : > { %v8645_v51 = vpop.eup %8644  ;;  %8664 = vrcp.f32 %v5196_v42  ;;  %v5199_v55 = vadd.f32 1.0, %v8643_v13  ;;  %v5428_v45 = vpack.c.bf16 %v5376_v59, %v5372_v15  ;;  %v5119_v54 = vmul.f32 1.442695, %v6951_v14  ;;  %v13362_v13 = vld [vmem:[#allocation76_spill] sm:$0xff] }
0x110f   : > { %v8647_v9 = vpop.eup %8646  ;;  %8666 = vrcp.f32 %v5197_v63  ;;  %v5198_v47 = vadd.f32 1.0, %v8645_v51  ;;  %v6953_v33 = vmul.f32 -1.702, %v12471_v43  ;;  %5760 = vmatprep.mubr.bf16.mxu1 %v5426_v19  ;;  %v5427_v42 = vpack.c.bf16 %v5375_v28, %v12450_v8  ;;  %v13363_v63 = vld [vmem:[#allocation58_spill] sm:$0xff] }
0x1110   : > { %v8649_v17 = vpop.eup %8648  ;;  %8668 = vrcp.f32 %v5199_v55  ;;  %v5121_v16 = vmul.f32 1.442695, %v6952_v52  ;;  %v6955_v39 = vmul.f32 -1.702, %v12477_v57  ;;  %v6956_v26 = vmul.f32 -1.702, %v12483_v1  ;;  %5857 = vmatprep.mubr.bf16.mxu0 %v5428_v45  ;;  %5761 = vmatmul.mubr.bf16.gmra.mrb[136].mxu1 %v5425_v12 }
0x1111   : > { %v8651_v38 = vpop.eup %8650  ;;  %8670 = vrcp.f32 %v5198_v47  ;;  %v6958_v61 = vmul.f32 -1.702, %v12487_v23  ;;  %v6957_v14 = vmul.f32 -1.702, %v12491_v7  ;;  %v6959_v32 = vmul.f32 -1.702, %v12495_v36  ;;  %5858 = vmatmul.mubr.bf16.gmra.mrb[136].mxu0 %v5427_v42 }
0x1112   : > { %v8653_v5 = vpop.eup %8652  ;;  %8672 = vpow2.f32 %v12434_v18  ;;  %v5125_v18 = vmul.f32 1.442695, %v6954_v37  ;;  %v12511_v52 = vadd.f32 %v12303_v44, %v12073_v49  ;;  %v5377_v0 = vmul.f32 %v12417_v46, %v13362_v13  ;;  %v13364_v12 = vld [vmem:[#allocation57_spill] sm:$0xff] }
0x1113   : > { %v8655_v15 = vpop.eup %8654  ;;  %8674 = vpow2.f32 %v12437_v3  ;;  %v5123_v3 = vmul.f32 1.442695, %v6953_v33  ;;  %v5379_v51 = vmul.f32 %v12423_v25, %v13363_v63  ;;  %v5127_v55 = vmul.f32 1.442695, %v6955_v39  ;;  %v13365_v33 = vld [vmem:[#allocation54_spill] sm:$0xff]  ;;  %v13368_v63 = vld [vmem:[#allocation55_spill] sm:$0xff] }
0x1114   : > { %v8657_v8 = vpop.eup %8656  ;;  %8676 = vpow2.f32 %v12452_v4  ;;  %v5129_v47 = vmul.f32 1.442695, %v6956_v26  ;;  %v5133_v19 = vmul.f32 1.442695, %v6958_v61  ;;  %v5131_v37 = vmul.f32 1.442695, %v6957_v14 }
0x1115   : > { %v8659_v59 = vpop.eup %8658  ;;  %8678 = vpow2.f32 %v12456_v35  ;;  %v5135_v44 = vmul.f32 1.442695, %v6959_v32  ;;  %v6960_v46 = vmul.f32 -1.702, %v12511_v52  ;;  %v12523_v35 = vadd.f32 %v12310_v21, %v12077_v11  ;;  %v13366_v61 = vld [vmem:[#allocation61_spill] sm:$0xff]  ;;  %v13367_v32 = vld [vmem:[#allocation56_spill] sm:$0xff] }
0x1116   : > { %v8661_v28 = vpop.eup %8660  ;;  %8680 = vpow2.f32 %v5119_v54  ;;  %v12527_v25 = vadd.f32 %v13364_v12, %v12081_v10  ;;  %v5378_v42 = vmul.f32 %v8647_v9, %v13365_v33  ;;  %v12533_v39 = vadd.f32 %v12318_v6, %v12083_v58 }
0x1117   : > { %v8663_v4 = vpop.eup %8662  ;;  %8682 = vpow2.f32 %v5121_v16  ;;  %v5382_v16 = vmul.f32 %v8655_v15, %v12299_v22  ;;  %v5380_v14 = vmul.f32 %v8649_v17, %v13366_v61  ;;  %v5381_v21 = vmul.f32 %v8651_v38, %v13367_v32 }
0x1118   : > { %v12518_v45 = vpop.eup %8664  ;;  %8684 = vpow2.f32 %v5125_v18  ;;  %v5384_v18 = vmul.f32 %v8657_v8, %v12308_v62  ;;  %v5383_v12 = vmul.f32 %v8653_v5, %v13368_v63  ;;  %v12540_v9 = vmul.f32 %v8659_v59, %v12316_v27 }
0x1119   : > { %v8667_v54 = vpop.eup %8666  ;;  %8686 = vpow2.f32 %v5123_v3  ;;  %v12543_v22 = vmul.f32 %v8661_v28, %v12323_v40  ;;  %v5386_v5 = vmul.f32 %v8663_v4, %v12327_v29  ;;  %v5430_v27 = vpack.c.bf16 %v5382_v16, %v5378_v42 }
0x111a   : > { %v8669_v26 = vpop.eup %8668  ;;  %8688 = vpow2.f32 %v5127_v55  ;;  %v12546_v15 = vmul.f32 %v8667_v54, %v12342_v48  ;;  %v5432_v3 = vpack.c.bf16 %v5384_v18, %v5380_v14  ;;  %v5429_v28 = vpack.c.bf16 %v5381_v21, %v5377_v0 }
0x111b   : > { %v8671_v13 = vpop.eup %8670  ;;  %8690 = vpow2.f32 %v5129_v47  ;;  %v12549_v17 = vmul.f32 %v8669_v26, %v12346_v34  ;;  %5768 = vmatprep.mubr.bf16.mxu1 %v5430_v27  ;;  %v5431_v34 = vpack.c.bf16 %v5383_v12, %v5379_v51  ;;  %v6961_v33 = vmul.f32 -1.702, %v12527_v25  ;;  %v13369_v12 = vld [vmem:[#allocation87_spill] sm:$0xff] }
0x111c   : > { %v8673_v6 = vpop.eup %8672  ;;  %v5390_v62 = vmul.f32 %v8671_v13, %v12369_v56  ;;  %8692 = vpow2.f32 %v5133_v19  ;;  %5865 = vmatprep.mubr.bf16.mxu0 %v5432_v3  ;;  %5769 = vmatmul.mubr.bf16.gmra.mrb[140].mxu1 %v5429_v28  ;;  %v5433_v29 = vpack.c.bf16 %v12546_v15, %v12540_v9  ;;  %v5137_v26 = vmul.f32 1.442695, %v6960_v46  ;;  %v13370_v46 = vld [vmem:[#allocation88_spill] sm:$0xff] }
0x111d   : > { %v8675_v38 = vpop.eup %8674  ;;  %v5200_v8 = vadd.f32 1.0, %v8673_v6  ;;  %8694 = vpow2.f32 %v5131_v37  ;;  %v5435_v4 = vpack.c.bf16 %v12549_v17, %v12543_v22  ;;  %5866 = vmatmul.mubr.bf16.gmra.mrb[140].mxu0 %v5431_v34  ;;  %v6963_v61 = vmul.f32 -1.702, %v12533_v39  ;;  %v13373_v34 = vld [vmem:[#allocation91_spill] sm:$0xff] }
0x111e   : > { %v8677_v59 = vpop.eup %8676  ;;  %v5201_v40 = vadd.f32 1.0, %v8675_v38  ;;  %8696 = vpow2.f32 %v5135_v44  ;;  %v5434_v47 = vpack.c.bf16 %v5390_v62, %v5386_v5  ;;  %v6962_v44 = vmul.f32 -1.702, %v12523_v35  ;;  %v13371_v38 = vld [vmem:[#allocation89_spill] sm:$0xff] }
0x111f   : > { %v8679_v55 = vpop.eup %8678  ;;  %8698 = vrcp.f32 %v5200_v8  ;;  %v5203_v48 = vadd.f32 1.0, %v8677_v59  ;;  %v12562_v21 = vadd.f32 %v12337_v31, %v12073_v49  ;;  %v12566_v18 = vadd.f32 %v12348_v30, %v12077_v11  ;;  %v13372_v59 = vld [vmem:[#allocation90_spill] sm:$0xff] }
0x1120   : > { %v8681_v54 = vpop.eup %8680  ;;  %8700 = vrcp.f32 %v5201_v40  ;;  %v5202_v56 = vadd.f32 1.0, %v8679_v55  ;;  %5776 = vmatprep.mubr.bf16.mxu1 %v5434_v47  ;;  %v12570_v9 = vadd.f32 %v13369_v12, %v12081_v10  ;;  %v12574_v6 = vadd.f32 %v13370_v46, %v12083_v58 }
0x1121   : > { %v8683_v19 = vpop.eup %8682  ;;  %8702 = vrcp.f32 %v5203_v48  ;;  %v5204_v0 = vadd.f32 1.0, %v8681_v54  ;;  %v5141_v31 = vmul.f32 1.442695, %v6962_v44  ;;  %v12578_v5 = vadd.f32 %v13371_v38, %v12073_v49  ;;  %v13374_v54 = vld [vmem:[#allocation53_spill] sm:$0xff]  ;;  %v13375_v44 = vld [vmem:[#allocation92_spill] sm:$0xff] }
0x1122   : > { %v8685_v37 = vpop.eup %8684  ;;  %8704 = vrcp.f32 %v5202_v56  ;;  %v5205_v51 = vadd.f32 1.0, %v8683_v19  ;;  %v5139_v27 = vmul.f32 1.442695, %v6961_v33  ;;  %v12582_v40 = vadd.f32 %v13372_v59, %v12077_v11 }
0x1123   : > { %v8687_v42 = vpop.eup %8686  ;;  %8706 = vrcp.f32 %v5204_v0  ;;  %v5207_v16 = vadd.f32 1.0, %v8685_v37  ;;  %v6964_v55 = vmul.f32 -1.702, %v12562_v21  ;;  %v6966_v48 = vmul.f32 -1.702, %v12566_v18 }
0x1124   : > { %v8689_v14 = vpop.eup %8688  ;;  %8708 = vrcp.f32 %v5205_v51  ;;  %v5206_v32 = vadd.f32 1.0, %v8687_v42  ;;  %v12588_v47 = vadd.f32 %v13373_v34, %v12081_v10  ;;  %5777 = vmatmul.mubr.bf16.gmra.mrb[144].mxu1 %v5433_v29  ;;  %v5388_v56 = vmul.f32 %v12518_v45, %v13374_v54 }
0x1125   : > { %v8691_v13 = vpop.eup %8690  ;;  %8710 = vrcp.f32 %v5207_v16  ;;  %v5208_v63 = vadd.f32 1.0, %v8689_v14  ;;  %v6965_v19 = vmul.f32 -1.702, %v12570_v9  ;;  %v6967_v11 = vmul.f32 -1.702, %v12574_v6 }
0x1126   : > { %v8693_v15 = vpop.eup %8692  ;;  %8712 = vrcp.f32 %v5206_v32  ;;  %v5209_v62 = vadd.f32 1.0, %v8691_v13  ;;  %v6968_v51 = vmul.f32 -1.702, %v12578_v5  ;;  %v12598_v10 = vadd.f32 %v13375_v44, %v12083_v58 }
0x1127   : > { %v8695_v30 = vpop.eup %8694  ;;  %8714 = vrcp.f32 %v5208_v63  ;;  %v5211_v8 = vadd.f32 1.0, %v8693_v15  ;;  %v5143_v33 = vmul.f32 1.442695, %v6963_v61  ;;  %v6970_v45 = vmul.f32 -1.702, %v12582_v40 }
0x1128   : > { %v8697_v3 = vpop.eup %8696  ;;  %v5210_v28 = vadd.f32 1.0, %v8695_v30  ;;  %8716 = vrcp.f32 %v5209_v62  ;;  %v5145_v16 = vmul.f32 1.442695, %v6964_v55  ;;  %v6969_v14 = vmul.f32 -1.702, %v12588_v47 }
0x1129   : > { %v8699_v49 = vpop.eup %8698  ;;  %8718 = vrcp.f32 %v5211_v8  ;;  %v5147_v63 = vmul.f32 1.442695, %v6965_v19  ;;  %v5151_v46 = vmul.f32 1.442695, %v6967_v11  ;;  %v5153_v58 = vmul.f32 1.442695, %v6968_v51 }
0x112a   : > { %v8701_v0 = vpop.eup %8700  ;;  %v5392_v37 = vmul.f32 %v8699_v49, %v12392_v60  ;;  %8720 = vrcp.f32 %v5210_v28  ;;  %v5149_v60 = vmul.f32 1.442695, %v6966_v48  ;;  %v6971_v15 = vmul.f32 -1.702, %v12598_v10 }
0x112b   : > { %v8703_v29 = vpop.eup %8702  ;;  %8722 = vpow2.f32 %v5137_v26  ;;  %v5393_v62 = vmul.f32 %v8701_v0, %v12404_v20  ;;  %v5157_v38 = vmul.f32 1.442695, %v6970_v45  ;;  %v5212_v34 = vadd.f32 1.0, %v8697_v3 }
0x112c   : > { %v8705_v42 = vpop.eup %8704  ;;  %v5436_v32 = vpack.c.bf16 %v5392_v37, %v5388_v56  ;;  %8724 = vpow2.f32 %v5141_v31  ;;  %v5395_v30 = vmul.f32 %v8703_v29, %v12415_v24  ;;  %v5159_v24 = vmul.f32 1.442695, %v6971_v15 }
0x112d   : > { %v8707_v13 = vpop.eup %8706  ;;  %8726 = vpow2.f32 %v5139_v27  ;;  %v5155_v27 = vmul.f32 1.442695, %v6969_v14  ;;  %v5394_v28 = vmul.f32 %v8705_v42, %v12421_v2 }
0x112e   : > { %v8709_v12 = vpop.eup %8708  ;;  %5873 = vmatprep.mubr.bf16.mxu0 %v5436_v32  ;;  %8728 = vpow2.f32 %v5143_v33  ;;  %v5396_v55 = vmul.f32 %v8707_v13, %v12430_v50 }
0x112f   : > { %v8711_v61 = vpop.eup %8710  ;;  %v5397_v26 = vmul.f32 %v8709_v12, %v12441_v53  ;;  %5874 = vmatmul.mubr.bf16.gmra.mrb[144].mxu0 %v5435_v4  ;;  %8730 = vpow2.f32 %v5145_v16 }
0x1130   : > { %v8713_v31 = vpop.eup %8712  ;;  %v5399_v8 = vmul.f32 %v8711_v61, %v12465_v41  ;;  %8732 = vpow2.f32 %v5149_v60 }
0x1131   : > { %v8715_v59 = vpop.eup %8714  ;;  %v5398_v20 = vmul.f32 %v8713_v31, %v12471_v43  ;;  %v5437_v53 = vpack.c.bf16 %v5397_v26, %v5393_v62  ;;  %8734 = vpow2.f32 %v5147_v63 }
0x1132   : > { %v5400_v48 = vmul.f32 %v8715_v59, %v12477_v57  ;;  %v5439_v22 = vpack.c.bf16 %v5399_v8, %v5395_v30  ;;  %v8717_v17 = vpop.eup %8716  ;;  %8736 = vpow2.f32 %v5151_v46 }
0x1133   : > { %v5438_v4 = vpack.c.bf16 %v5398_v20, %v5394_v28  ;;  %v8719_v41 = vpop.eup %8718  ;;  %8738 = vpow2.f32 %v5153_v58  ;;  %v5401_v62 = vmul.f32 %v8717_v17, %v12483_v1 }
0x1134   : > { %v5440_v49 = vpack.c.bf16 %v5400_v48, %v5396_v55  ;;  %v8721_v54 = vpop.eup %8720  ;;  %8740 = vpow2.f32 %v5157_v38  ;;  %v5403_v31 = vmul.f32 %v8719_v41, %v12487_v23 }
0x1135   : > { %5784 = vmatprep.mubr.bf16.mxu1 %v5438_v4  ;;  %v8723_v2 = vpop.eup %8722  ;;  %8742 = vpow2.f32 %v5155_v27  ;;  %v5402_v27 = vmul.f32 %v8721_v54, %v12491_v7 }
0x1136   : > { %5881 = vmatprep.mubr.bf16.mxu0 %v5440_v49  ;;  %5785 = vmatmul.mubr.bf16.gmra.mrb[148].mxu1 %v5437_v53  ;;  %v8725_v50 = vpop.eup %8724  ;;  %v5213_v43 = vadd.f32 1.0, %v8723_v2  ;;  %8744 = vpow2.f32 %v5159_v24 }
0x1137   : > { %5882 = vmatmul.mubr.bf16.gmra.mrb[148].mxu0 %v5439_v22  ;;  %v8727_v57 = vpop.eup %8726  ;;  %8746 = vrcp.f32 %v5212_v34  ;;  %v5215_v56 = vadd.f32 1.0, %v8725_v50 }
0x1138   : > { %v8729_v19 = vpop.eup %8728  ;;  %8748 = vrcp.f32 %v5213_v43  ;;  %v5214_v11 = vadd.f32 1.0, %v8727_v57 }
0x1139   : > { %v8731_v3 = vpop.eup %8730  ;;  %8750 = vrcp.f32 %v5215_v56  ;;  %v5216_v0 = vadd.f32 1.0, %v8729_v19 }
0x113a   : > { %v8733_v37 = vpop.eup %8732  ;;  %8752 = vrcp.f32 %v5214_v11  ;;  %v5217_v51 = vadd.f32 1.0, %v8731_v3 }
0x113b   : > { %v8735_v44 = vpop.eup %8734  ;;  %8754 = vrcp.f32 %v5216_v0  ;;  %v5219_v29 = vadd.f32 1.0, %v8733_v37 }
0x113c   : > { %v8737_v33 = vpop.eup %8736  ;;  %8756 = vrcp.f32 %v5217_v51  ;;  %v5218_v45 = vadd.f32 1.0, %v8735_v44 }
0x113d   : > { %v8739_v42 = vpop.eup %8738  ;;  %8758 = vrcp.f32 %v5219_v29  ;;  %v5220_v16 = vadd.f32 1.0, %v8737_v33  ;;  %v13376_v33 = vld [vmem:[#allocation62_spill] sm:$0xff] }
0x113e   : > { %v8741_v14 = vpop.eup %8740  ;;  %8760 = vrcp.f32 %v5218_v45  ;;  %v5221_v32 = vadd.f32 1.0, %v8739_v42 }
0x113f   : > { %v8743_v13 = vpop.eup %8742  ;;  %8762 = vrcp.f32 %v5220_v16  ;;  %v5223_v60 = vadd.f32 1.0, %v8741_v14  ;;  %v13377_v16 = vld [vmem:[#allocation63_spill] sm:$0xff] }
0x1140   : > { %v8745_v63 = vpop.eup %8744  ;;  %8764 = vrcp.f32 %v5221_v32  ;;  %v5222_v12 = vadd.f32 1.0, %v8743_v13 }
0x1141   : > { %v8747_v46 = vpop.eup %8746  ;;  %8766 = vrcp.f32 %v5223_v60  ;;  %v5224_v58 = vadd.f32 1.0, %v8745_v63 }
0x1142   : > { %v8749_v15 = vpop.eup %8748  ;;  %8768 = vrcp.f32 %v5222_v12  ;;  %v5404_v53 = vmul.f32 %v8747_v46, %v12495_v36 }
0x1143   : > { %v8751_v61 = vpop.eup %8750  ;;  %v5405_v26 = vmul.f32 %v8749_v15, %v12511_v52  ;;  %8770 = vrcp.f32 %v5224_v58 }
0x1144   : > { %v8753_v38 = vpop.eup %8752  ;;  %v5407_v30 = vmul.f32 %v8751_v61, %v12523_v35 }
0x1145   : > { %v8755_v8 = vpop.eup %8754  ;;  %v5406_v59 = vmul.f32 %v8753_v38, %v12527_v25  ;;  %v5441_v28 = vpack.c.bf16 %v5405_v26, %v5401_v62 }
0x1146   : > { %v8757_v20 = vpop.eup %8756  ;;  %v5408_v55 = vmul.f32 %v8755_v8, %v12533_v39  ;;  %v5443_v1 = vpack.c.bf16 %v5407_v30, %v5403_v31 }
0x1147   : > { %v8759_v48 = vpop.eup %8758  ;;  %v5442_v52 = vpack.c.bf16 %v5406_v59, %v5402_v27  ;;  %v5409_v7 = vmul.f32 %v8757_v20, %v12562_v21  ;;  %v13378_v27 = vld [vmem:[#allocation64_spill] sm:$0xff]  ;;  %v13379_v20 = vld [vmem:[#allocation67_spill] sm:$0xff] }
0x1148   : > { %v8761_v22 = vpop.eup %8760  ;;  %v5444_v17 = vpack.c.bf16 %v5408_v55, %v5404_v53  ;;  %v5411_v36 = vmul.f32 %v8759_v48, %v12566_v18 }
0x1149   : > { %v8763_v24 = vpop.eup %8762  ;;  %5792 = vmatprep.mubr.bf16.mxu1 %v5442_v52  ;;  %v5410_v34 = vmul.f32 %v8761_v22, %v12570_v9 }
0x114a   : > { %v8765_v23 = vpop.eup %8764  ;;  %5889 = vmatprep.mubr.bf16.mxu0 %v5444_v17  ;;  %5793 = vmatmul.mubr.bf16.gmra.mrb[152].mxu1 %v5441_v28  ;;  %v5412_v2 = vmul.f32 %v8763_v24, %v12574_v6 }
0x114b   : > { %v8767_v35 = vpop.eup %8766  ;;  %v5413_v25 = vmul.f32 %v8765_v23, %v12578_v5  ;;  %5890 = vmatmul.mubr.bf16.gmra.mrb[152].mxu0 %v5443_v1 }
0x114c   : > { %v8769_v4 = vpop.eup %8768  ;;  %v5415_v39 = vmul.f32 %v8767_v35, %v12582_v40  ;;  %v12632_v40 = vld [vmem:[%s932_s24] ss:$0 sm:$0xff] }
0x114d   : > { %v8771_v41 = vpop.eup %8770  ;;  %v5414_v49 = vmul.f32 %v8769_v4, %v12588_v47  ;;  %v5445_v54 = vpack.c.bf16 %v5413_v25, %v5409_v7 }
0x114e   : > { %v5416_v50 = vmul.f32 %v8771_v41, %v12598_v10  ;;  %v5447_v21 = vpack.c.bf16 %v5415_v39, %v5411_v36 }
0x114f   : > { %v5446_v43 = vpack.c.bf16 %v5414_v49, %v5410_v34  ;;  %v13380_v34 = vld [vmem:[#allocation65_spill] sm:$0xff] }
0x1150   : > { %v5448_v5 = vpack.c.bf16 %v5416_v50, %v5412_v2  ;;  %v13381_v2 = vld [vmem:[#allocation66_spill] sm:$0xff] }
0x1151   : > { %5800 = vmatprep.mubr.bf16.mxu1 %v5446_v43 }
0x1152   : > { %5897 = vmatprep.mubr.bf16.mxu0 %v5448_v5  ;;  %5801 = vmatmul.mubr.bf16.gmra.mrb[156].mxu1 %v5445_v54 }
0x1153   : > { %5898 = vmatmul.mubr.bf16.gmra.mrb[156].mxu0 %v5447_v21 }
0x11c6   : > { %v7228_v18 = vpop.f32.mrb[128].mxu1 }
0x11c7   : > { %v7229_v57 = vpop.f32.mrb[129].mxu1 }
0x11c8   : > { %v7230_v56 = vadd.f32 %v7229_v57, %v7228_v18  ;;  %v7231_v47 = vpop.f32.mrb[130].mxu1 }
0x11c9   : > { %v7232_v11 = vpop.f32.mrb[131].mxu1 }
0x11ca   : > { %v7292_v9 = vpop.f32.mrb[128].mxu0  ;;  %v5747_v6 = vadd.f32 %v7230_v56, %v12632_v40  ;;  %v7233_v0 = vadd.f32 %v7232_v11, %v7231_v47 }
0x11cb   : > { %v7293_v19 = vpop.f32.mrb[129].mxu0 }
0x11cc   : > { %v7294_v10 = vadd.f32 %v7293_v19, %v7292_v9  ;;  %v7295_v3 = vpop.f32.mrb[130].mxu0  ;;  %v5750_v44 = vadd.f32 %v7233_v0, %v12632_v40 }
0x11cd   : > { %v7296_v37 = vpop.f32.mrb[131].mxu0 }
0x11ce   : > { %v5844_v51 = vadd.f32 %v7294_v10, %v5747_v6  ;;  %v7297_v29 = vadd.f32 %v7296_v37, %v7295_v3 }
0x11d0   : > { %v12637_v45 = vadd.f32 %v5844_v51, %v13376_v33  ;;  %v5847_v42 = vadd.f32 %v7297_v29, %v5750_v44  ;;  %v13382_v51 = vld [vmem:[#allocation78_spill] sm:$0xff] }
0x11d2   : > { %5922 = vst [vmem:[#allocation2] sm:$0xff] %v12637_v45  ;;  %v12641_v14 = vadd.f32 %v5847_v42, %v13377_v16  ;;  %v13383_v16 = vld [vmem:[#allocation77_spill] sm:$0xff]  ;;  %5944 = vadd.xlane.f32.xlu0 (!%p7005_p9), %v12637_v45 }
0x11d4   : > { %5923 = vst [vmem:[#allocation2 + $0x8] sm:$0xff] %v12641_v14 }
0x11d5   : > { %v7234_v32 = vpop.f32.mrb[132].mxu1 }
0x11d6   : > { %v7298_v13 = vpop.f32.mrb[132].mxu0  ;;  %v7235_v60 = vpop.f32.mrb[133].mxu1  ;;  %5946 = vadd.xlane.f32.xlu0 (!%p7005_p9), %v12641_v14 }
0x11d7   : > { %v7236_v63 = vadd.f32 %v7235_v60, %v7234_v32  ;;  %v7299_v12 = vpop.f32.mrb[133].mxu0  ;;  %v7237_v46 = vpop.f32.mrb[134].mxu1 }
0x11d8   : > { %v7300_v58 = vadd.f32 %v7299_v12, %v7298_v13  ;;  %v7301_v15 = vpop.f32.mrb[134].mxu0  ;;  %v7238_v61 = vpop.f32.mrb[135].mxu1 }
0x11d9   : > { %v5755_v62 = vadd.f32 %v7236_v63, %v12632_v40  ;;  %v7239_v26 = vadd.f32 %v7238_v61, %v7237_v46  ;;  %v7302_v38 = vpop.f32.mrb[135].mxu0 }
0x11da   : > { %v7303_v31 = vadd.f32 %v7302_v38, %v7301_v15 }
0x11db   : > { %v5852_v30 = vadd.f32 %v7300_v58, %v5755_v62  ;;  %v5758_v8 = vadd.f32 %v7239_v26, %v12632_v40 }
0x11dd   : > { %v12647_v59 = vadd.f32 %v5852_v30, %v13378_v27  ;;  %v5855_v28 = vadd.f32 %v7303_v31, %v5758_v8  ;;  %v13384_v8 = vld [vmem:[#allocation82_spill] sm:$0xff] }
0x11df   : > { %5924 = vst [vmem:[#allocation2 + $0x10] sm:$0xff] %v12647_v59  ;;  %v12651_v53 = vadd.f32 %v5855_v28, %v13379_v20  ;;  %5948 = vadd.xlane.f32.xlu0 (!%p7005_p9), %v12647_v59 }
0x11e1   : > { %5925 = vst [vmem:[#allocation2 + $0x18] sm:$0xff] %v12651_v53 }
0x11e3   : > { %v7240_v55 = vpop.f32.mrb[136].mxu1 }
0x11e4   : > { %v7304_v1 = vpop.f32.mrb[136].mxu0  ;;  %v7241_v48 = vpop.f32.mrb[137].mxu1 }
0x11e5   : > { %v7242_v52 = vadd.f32 %v7241_v48, %v7240_v55  ;;  %v7305_v22 = vpop.f32.mrb[137].mxu0  ;;  %v7243_v17 = vpop.f32.mrb[138].mxu1  ;;  %v13385_v55 = vld [vmem:[#allocation80_spill] sm:$0xff] }
0x11e6   : > { %v7306_v24 = vadd.f32 %v7305_v22, %v7304_v1  ;;  %v7307_v23 = vpop.f32.mrb[138].mxu0  ;;  %v7244_v35 = vpop.f32.mrb[139].mxu1 }
0x11e7   : > { %v5763_v7 = vadd.f32 %v7242_v52, %v12632_v40  ;;  %v7245_v25 = vadd.f32 %v7244_v35, %v7243_v17  ;;  %v7308_v4 = vpop.f32.mrb[139].mxu0 }
0x11e8   : > { %v7309_v36 = vadd.f32 %v7308_v4, %v7307_v23 }
0x11e9   : > { %v5860_v39 = vadd.f32 %v7306_v24, %v5763_v7  ;;  %v5766_v41 = vadd.f32 %v7245_v25, %v12632_v40 }
0x11eb   : > { %v12657_v49 = vadd.f32 %v5860_v39, %v13380_v34  ;;  %v5863_v54 = vadd.f32 %v7309_v36, %v5766_v41 }
0x11ed   : > { %5926 = vst [vmem:[#allocation2 + $0x20] sm:$0xff] %v12657_v49  ;;  %v12661_v50 = vadd.f32 %v5863_v54, %v13381_v2  ;;  %v13386_v54 = vld [vmem:[#allocation68_spill] sm:$0xff] }
0x11ef   : > { %5927 = vst [vmem:[#allocation2 + $0x28] sm:$0xff] %v12661_v50  ;;  %v7246_v21 = vpop.f32.mrb[140].mxu1 }
0x11f0   : > { %v7310_v43 = vpop.f32.mrb[140].mxu0  ;;  %v7247_v5 = vpop.f32.mrb[141].mxu1 }
0x11f1   : > { %v7248_v18 = vadd.f32 %v7247_v5, %v7246_v21  ;;  %v7311_v57 = vpop.f32.mrb[141].mxu0  ;;  %v7249_v9 = vpop.f32.mrb[142].mxu1 }
0x11f2   : > { %v7312_v56 = vadd.f32 %v7311_v57, %v7310_v43  ;;  %v7313_v47 = vpop.f32.mrb[142].mxu0  ;;  %v7250_v19 = vpop.f32.mrb[143].mxu1  ;;  %v13387_v43 = vld [vmem:[#allocation70_spill] sm:$0xff] }
0x11f3   : > { %v5771_v11 = vadd.f32 %v7248_v18, %v12632_v40  ;;  %v7251_v6 = vadd.f32 %v7250_v19, %v7249_v9  ;;  %v7314_v10 = vpop.f32.mrb[143].mxu0 }
0x11f4   : > { %v7315_v3 = vadd.f32 %v7314_v10, %v7313_v47 }
0x11f5   : > { %v5868_v0 = vadd.f32 %v7312_v56, %v5771_v11  ;;  %v5774_v37 = vadd.f32 %v7251_v6, %v12632_v40 }
0x11f7   : > { %v12667_v44 = vadd.f32 %v5868_v0, %v13382_v51  ;;  %v5871_v29 = vadd.f32 %v7315_v3, %v5774_v37  ;;  %v7252_v33 = vpop.f32.mrb[144].mxu1 }
0x11f8   : > { %v7253_v42 = vpop.f32.mrb[145].mxu1 }
0x11f9   : > { %5928 = vst [vmem:[#allocation2 + $0x30] sm:$0xff] %v12667_v44  ;;  %v12671_v32 = vadd.f32 %v5871_v29, %v13383_v16  ;;  %v7254_v13 = vadd.f32 %v7253_v42, %v7252_v33  ;;  %v7255_v60 = vpop.f32.mrb[146].mxu1  ;;  %v13388_v42 = vld [vmem:[#allocation69_spill] sm:$0xff] }
0x11fa   : > { %v7256_v63 = vpop.f32.mrb[147].mxu1 }
0x11fb   : > { %5929 = vst [vmem:[#allocation2 + $0x38] sm:$0xff] %v12671_v32  ;;  %v7257_v12 = vadd.f32 %v7256_v63, %v7255_v60  ;;  %v5779_v58 = vadd.f32 %v7254_v13, %v12632_v40 }
0x11fd   : > { %v5782_v26 = vadd.f32 %v7257_v12, %v12632_v40 }
0x1202   : > { %v7316_v46 = vpop.f32.mrb[144].mxu0 }
0x1203   : > { %v7317_v15 = vpop.f32.mrb[145].mxu0 }
0x1204   : > { %v7318_v61 = vadd.f32 %v7317_v15, %v7316_v46  ;;  %v7319_v62 = vpop.f32.mrb[146].mxu0  ;;  %v13389_v46 = vld [vmem:[#allocation72_spill] sm:$0xff] }
0x1205   : > { %v7320_v38 = vpop.f32.mrb[147].mxu0 }
0x1206   : > { %v5876_v31 = vadd.f32 %v7318_v61, %v5779_v58  ;;  %v7321_v30 = vadd.f32 %v7320_v38, %v7319_v62 }
0x1208   : > { %v12677_v27 = vadd.f32 %v5876_v31, %v13384_v8  ;;  %v5879_v28 = vadd.f32 %v7321_v30, %v5782_v26 }
0x1209   : > { %v7258_v20 = vpop.f32.mrb[148].mxu1 }
0x120a   : > { %5930 = vst [vmem:[#allocation2 + $0x40] sm:$0xff] %v12677_v27  ;;  %v12681_v1 = vadd.f32 %v5879_v28, %v13385_v55  ;;  %v7322_v48 = vpop.f32.mrb[148].mxu0  ;;  %v7259_v52 = vpop.f32.mrb[149].mxu1  ;;  %5960 = vadd.xlane.f32.xlu1 (!%p7005_p9), %v12677_v27 }
0x120b   : > { %v7260_v22 = vadd.f32 %v7259_v52, %v7258_v20  ;;  %v7323_v17 = vpop.f32.mrb[149].mxu0  ;;  %v7261_v24 = vpop.f32.mrb[150].mxu1  ;;  %v13390_v52 = vld [vmem:[#allocation81_spill] sm:$0xff] }
0x120c   : > { %5931 = vst [vmem:[#allocation2 + $0x48] sm:$0xff] %v12681_v1  ;;  %v7324_v23 = vadd.f32 %v7323_v17, %v7322_v48  ;;  %v7325_v35 = vpop.f32.mrb[150].mxu0  ;;  %v7262_v7 = vpop.f32.mrb[151].mxu1 }
0x120d   : > { %v5787_v25 = vadd.f32 %v7260_v22, %v12632_v40  ;;  %v7263_v4 = vadd.f32 %v7262_v7, %v7261_v24  ;;  %v7326_v36 = vpop.f32.mrb[151].mxu0  ;;  %v13391_v24 = vld [vmem:[#allocation79_spill] sm:$0xff] }
0x120e   : > { %v7327_v39 = vadd.f32 %v7326_v36, %v7325_v35  ;;  %5962 = vadd.xlane.f32.xlu1 (!%p7005_p9), %v12681_v1 }
0x120f   : > { %v5884_v41 = vadd.f32 %v7324_v23, %v5787_v25  ;;  %v5790_v34 = vadd.f32 %v7263_v4, %v12632_v40 }
0x1211   : > { %v12687_v2 = vadd.f32 %v5884_v41, %v13386_v54  ;;  %v5887_v21 = vadd.f32 %v7327_v39, %v5790_v34 }
0x1212   : > { %5950 = vadd.xlane.f32.xlu1 (!%p7005_p9), %v12651_v53 }
0x1213   : > { %5932 = vst [vmem:[#allocation2 + $0x50] sm:$0xff] %v12687_v2  ;;  %v12691_v5 = vadd.f32 %v5887_v21, %v13387_v43  ;;  %5964 = vadd.xlane.f32.xlu0 (!%p7005_p9), %v12687_v2 }
0x1215   : > { %5933 = vst [vmem:[#allocation2 + $0x58] sm:$0xff] %v12691_v5 }
0x1216   : > { %5966 = vadd.xlane.f32.xlu1 (!%p7005_p9), %v12691_v5 }
0x1217   : > { %5952 = vadd.xlane.f32.xlu0 (!%p7005_p9), %v12657_v49 }
0x121a   : > { %5954 = vadd.xlane.f32.xlu1 (!%p7005_p9), %v12661_v50 }
0x121d   : > { %v7264_v18 = vpop.f32.mrb[152].mxu1 }
0x121e   : > { %v7328_v57 = vpop.f32.mrb[152].mxu0  ;;  %v7265_v9 = vpop.f32.mrb[153].mxu1 }
0x121f   : > { %v7266_v56 = vadd.f32 %v7265_v9, %v7264_v18  ;;  %v7329_v47 = vpop.f32.mrb[153].mxu0  ;;  %v7267_v19 = vpop.f32.mrb[154].mxu1 }
0x1220   : > { %v7330_v11 = vadd.f32 %v7329_v47, %v7328_v57  ;;  %v7331_v6 = vpop.f32.mrb[154].mxu0  ;;  %v7268_v10 = vpop.f32.mrb[155].mxu1 }
0x1221   : > { %v5795_v3 = vadd.f32 %v7266_v56, %v12632_v40  ;;  %v7269_v0 = vadd.f32 %v7268_v10, %v7267_v19  ;;  %v7332_v37 = vpop.f32.mrb[155].mxu0 }
0x1222   : > { %v7333_v51 = vadd.f32 %v7332_v37, %v7331_v6 }
0x1223   : > { %v5892_v29 = vadd.f32 %v7330_v11, %v5795_v3  ;;  %v5798_v33 = vadd.f32 %v7269_v0, %v12632_v40 }
0x1225   : > { %v12697_v16 = vadd.f32 %v5892_v29, %v13388_v42  ;;  %v5895_v13 = vadd.f32 %v7333_v51, %v5798_v33  ;;  %v7270_v60 = vpop.f32.mrb[156].mxu1 }
0x1226   : > { %v7334_v63 = vpop.f32.mrb[156].mxu0  ;;  %v7271_v12 = vpop.f32.mrb[157].mxu1 }
0x1227   : > { %5934 = vst [vmem:[#allocation2 + $0x60] sm:$0xff] %v12697_v16  ;;  %v12701_v58 = vadd.f32 %v5895_v13, %v13389_v46  ;;  %v7272_v15 = vadd.f32 %v7271_v12, %v7270_v60  ;;  %v7335_v61 = vpop.f32.mrb[157].mxu0  ;;  %v7273_v62 = vpop.f32.mrb[158].mxu1  ;;  %5968 = vadd.xlane.f32.xlu0 (!%p7005_p9), %v12697_v16 }
0x1228   : > { %v7336_v26 = vadd.f32 %v7335_v61, %v7334_v63  ;;  %v7337_v38 = vpop.f32.mrb[158].mxu0  ;;  %v7274_v31 = vpop.f32.mrb[159].mxu1 }
0x1229   : > { %5935 = vst [vmem:[#allocation2 + $0x68] sm:$0xff] %v12701_v58  ;;  %v5803_v30 = vadd.f32 %v7272_v15, %v12632_v40  ;;  %v7275_v8 = vadd.f32 %v7274_v31, %v7273_v62  ;;  %v7338_v28 = vpop.f32.mrb[159].mxu0  ;;  %5970 = vadd.xlane.f32.xlu1 (!%p7005_p9), %v12701_v58 }
0x122a   : > { %v7339_v20 = vadd.f32 %v7338_v28, %v7337_v38 }
0x122b   : > { %v5900_v55 = vadd.f32 %v7336_v26, %v5803_v30  ;;  %v5806_v48 = vadd.f32 %v7275_v8, %v12632_v40  ;;  %5941 = sbr.rel (%p7005_p9) target bundleno = 5188 (0x1444), region = 164  ;;  %5956 = vadd.xlane.f32.xlu0 (!%p7005_p9), %v12667_v44  ;;  %v8788_v26 = vld [vmem:[#allocation27] sm:$0xff] (!%p7005_p9)  }
0x122c   : > { %7724 = vmatprep.subr.bf16.mxu0 (!%p7005_p9), %v8788_v26  ;;  %7804 = vmatprep.subr.bf16.mxu1 (!%p7005_p9), %v8788_v26 }
0x122d   : > { %v12707_v22 = vadd.f32 %v5900_v55, %v13390_v52  ;;  %v5903_v17 = vadd.f32 %v7339_v20, %v5806_v48  ;;  %5958 = vadd.xlane.f32.xlu1 (!%p7005_p9), %v12671_v32  ;;  %7725 = vmatpush3.bf16.msra.mxu0 (!%p7005_p9), %v8788_v26  ;;  %v8789_v55 = vld [vmem:[#allocation27 + $0x8] sm:$0xff] (!%p7005_p9)  }
0x122e   : > { %7812 = vmatpush3.bf16.msra.mxu1 (!%p7005_p9), %v8788_v26  ;;  %7726 = vmatprep.subr.bf16.mxu0 (!%p7005_p9), %v8789_v55 }
0x122f   : > { %5936 = vst [vmem:[#allocation2 + $0x70] sm:$0xff] %v12707_v22  ;;  %v12711_v23 = vadd.f32 %v5903_v17, %v13391_v24  ;;  %5972 = vadd.xlane.f32.xlu0 (!%p7005_p9), %v12707_v22  ;;  %7805 = vmatprep.subr.bf16.mxu1 (!%p7005_p9), %v8789_v55 }
0x1231   : > { %5937 = vst [vmem:[#allocation2 + $0x78] sm:$0xff] %v12711_v23  ;;  %5974 = vadd.xlane.f32.xlu1 (!%p7005_p9), %v12711_v23  ;;  %7727 = vmatpush3.bf16.msra.mxu0 (!%p7005_p9), %v8789_v55 }
0x1232   : > { %7813 = vmatpush3.bf16.msra.mxu1 %v8789_v55 }
0x125f   : > { %v5945_v40 = vpop.xlane.xlu0 %5944 }
0x1260   : > { %v5976_v7 = vmul.f32 0.0078125, %v5945_v40 }
0x1262   : > { %v12732_v4 = vsub.f32 %v12637_v45, %v5976_v7  ;;  %v8790_v7 = vld [vmem:[#allocation27 + $0x10] sm:$0xff]  }
0x1263   : > { %v5947_v39 = vpop.xlane.xlu0 %5946  ;;  %7728 = vmatprep.subr.bf16.mxu0 %v8790_v7  ;;  %7806 = vmatprep.subr.bf16.mxu1 %v8790_v7 }
0x1264   : > { %v5977_v34 = vmul.f32 0.0078125, %v5947_v39  ;;  %v6008_v54 = vmul.f32 %v12732_v4, %v12732_v4  ;;  %7729 = vmatpush3.bf16.msra.mxu0 %v8790_v7  ;;  %7814 = vmatpush3.bf16.msra.mxu1 %v8790_v7  ;;  %v8791_v39 = vld [vmem:[#allocation27 + $0x18] sm:$0xff]  }
0x1265   : > { %7730 = vmatprep.subr.bf16.mxu0 %v8791_v39  ;;  %7807 = vmatprep.subr.bf16.mxu1 %v8791_v39 }
0x1266   : > { %v12740_v43 = vsub.f32 %v12641_v14, %v5977_v34  ;;  %6024 = vadd.xlane.f32.xlu0 %v6008_v54  ;;  %v8794_v34 = vld [vmem:[#allocation27 + $0x30] sm:$0xff]   ;;  %v8795_v54 = vld [vmem:[#allocation27 + $0x38] sm:$0xff]  }
0x1268   : > { %v6009_v56 = vmul.f32 %v12740_v43, %v12740_v43  ;;  %7731 = vmatpush3.bf16.msra.mxu0 %v8791_v39  ;;  %7815 = vmatpush3.bf16.msra.mxu1 %v8791_v39 }
0x126a   : > { %6026 = vadd.xlane.f32.xlu1 %v6009_v56 }
0x126c   : > { %v5949_v57 = vpop.xlane.xlu0 %5948 }
0x126d   : > { %v5978_v9 = vmul.f32 0.0078125, %v5949_v57 }
0x126f   : > { %v12750_v19 = vsub.f32 %v12647_v59, %v5978_v9 }
0x1271   : > { %v6010_v3 = vmul.f32 %v12750_v19, %v12750_v19 }
0x1297   : > { %v5961_v35 = vpop.xlane.xlu1 %5960 }
0x1298   : > { %v5984_v25 = vmul.f32 0.0078125, %v5961_v35 }
0x129a   : > { %v12735_v36 = vsub.f32 %v12677_v27, %v5984_v25 }
0x129b   : > { %v5963_v41 = vpop.xlane.xlu1 %5962 }
0x129c   : > { %v5985_v21 = vmul.f32 0.0078125, %v5963_v41  ;;  %v6016_v45 = vmul.f32 %v12735_v36, %v12735_v36  ;;  %v8793_v41 = vld [vmem:[#allocation27 + $0x28] sm:$0xff]  }
0x129e   : > { %v12743_v18 = vsub.f32 %v12681_v1, %v5985_v21  ;;  %6040 = vadd.xlane.f32.xlu0 %v6016_v45 }
0x129f   : > { %v5951_v27 = vpop.xlane.xlu1 %5950 }
0x12a0   : > { %v5979_v47 = vmul.f32 0.0078125, %v5951_v27  ;;  %v6017_v1 = vmul.f32 %v12743_v18, %v12743_v18  ;;  %v5965_v11 = vpop.xlane.xlu0 %5964 }
0x12a1   : > { %v5986_v10 = vmul.f32 0.0078125, %v5965_v11 }
0x12a2   : > { %v12753_v14 = vsub.f32 %v12651_v53, %v5979_v47  ;;  %6042 = vadd.xlane.f32.xlu1 %v6017_v1  ;;  %6028 = vadd.xlane.f32.xlu0 %v6010_v3 }
0x12a3   : > { %v5967_v6 = vpop.xlane.xlu1 %5966  ;;  %v12760_v37 = vsub.f32 %v12687_v2, %v5986_v10 }
0x12a4   : > { %v5987_v0 = vmul.f32 0.0078125, %v5967_v6  ;;  %v6011_v53 = vmul.f32 %v12753_v14, %v12753_v14  ;;  %v5953_v51 = vpop.xlane.xlu0 %5952 }
0x12a5   : > { %v5980_v33 = vmul.f32 0.0078125, %v5953_v51  ;;  %v6018_v42 = vmul.f32 %v12760_v37, %v12760_v37 }
0x12a6   : > { %v12763_v59 = vsub.f32 %v12691_v5, %v5987_v0  ;;  %6030 = vadd.xlane.f32.xlu1 %v6011_v53 }
0x12a7   : > { %v5955_v29 = vpop.xlane.xlu1 %5954  ;;  %v12770_v60 = vsub.f32 %v12657_v49, %v5980_v33  ;;  %6044 = vadd.xlane.f32.xlu0 %v6018_v42 }
0x12a8   : > { %v5981_v13 = vmul.f32 0.0078125, %v5955_v29  ;;  %v6019_v5 = vmul.f32 %v12763_v59, %v12763_v59 }
0x12a9   : > { %v6012_v15 = vmul.f32 %v12770_v60, %v12770_v60 }
0x12aa   : > { %v12773_v2 = vsub.f32 %v12661_v50, %v5981_v13  ;;  %6046 = vadd.xlane.f32.xlu1 %v6019_v5 }
0x12ab   : > { %6032 = vadd.xlane.f32.xlu0 %v6012_v15 }
0x12ac   : > { %v6013_v50 = vmul.f32 %v12773_v2, %v12773_v2 }
0x12ae   : > { %6034 = vadd.xlane.f32.xlu1 %v6013_v50 }
0x12b4   : > { %v5969_v63 = vpop.xlane.xlu0 %5968 }
0x12b5   : > { %v5988_v46 = vmul.f32 0.0078125, %v5969_v63 }
0x12b6   : > { %v5971_v12 = vpop.xlane.xlu1 %5970 }
0x12b7   : > { %v5989_v61 = vmul.f32 0.0078125, %v5971_v12  ;;  %v12780_v62 = vsub.f32 %v12697_v16, %v5988_v46 }
0x12b8   : > { %v5957_v38 = vpop.xlane.xlu0 %5956 }
0x12b9   : > { %v12783_v49 = vsub.f32 %v12701_v58, %v5989_v61  ;;  %v5982_v30 = vmul.f32 0.0078125, %v5957_v38  ;;  %v6020_v8 = vmul.f32 %v12780_v62, %v12780_v62  ;;  %v12812_v38 = vld [vmem:[#allocation24] ss:$0 sm:$0xff] }
0x12ba   : > { %v5959_v31 = vpop.xlane.xlu1 %5958 }
0x12bb   : > { %v5983_v28 = vmul.f32 0.0078125, %v5959_v31  ;;  %v12790_v16 = vsub.f32 %v12667_v44, %v5982_v30  ;;  %6048 = vadd.xlane.f32.xlu0 %v6020_v8  ;;  %v6021_v20 = vmul.f32 %v12783_v49, %v12783_v49 }
0x12bc   : > { %v5973_v48 = vpop.xlane.xlu0 %5972 }
0x12bd   : > { %v12793_v58 = vsub.f32 %v12671_v32, %v5983_v28  ;;  %v5990_v17 = vmul.f32 0.0078125, %v5973_v48  ;;  %v6014_v24 = vmul.f32 %v12790_v16, %v12790_v16  ;;  %6050 = vadd.xlane.f32.xlu1 %v6021_v20 }
0x12be   : > { %v5975_v52 = vpop.xlane.xlu1 %5974 }
0x12bf   : > { %v5991_v40 = vmul.f32 0.0078125, %v5975_v52  ;;  %v12800_v44 = vsub.f32 %v12707_v22, %v5990_v17  ;;  %6036 = vadd.xlane.f32.xlu0 %v6014_v24  ;;  %v6015_v35 = vmul.f32 %v12793_v58, %v12793_v58 }
0x12c1   : > { %v12803_v32 = vsub.f32 %v12711_v23, %v5991_v40  ;;  %v6022_v25 = vmul.f32 %v12800_v44, %v12800_v44  ;;  %6038 = vadd.xlane.f32.xlu1 %v6015_v35  ;;  %v8792_v23 = vld [vmem:[#allocation27 + $0x20] sm:$0xff]  }
0x12c2   : > { %7732 = vmatprep.subr.bf16.mxu0 %v8792_v23  ;;  %7808 = vmatprep.subr.bf16.mxu1 %v8792_v23 }
0x12c3   : > { %6052 = vadd.xlane.f32.xlu0 %v6022_v25  ;;  %v6023_v22 = vmul.f32 %v12803_v32, %v12803_v32  ;;  %7733 = vmatpush3.bf16.msra.mxu0 %v8792_v23 }
0x12c4   : > { %7816 = vmatpush3.bf16.msra.mxu1 %v8792_v23  ;;  %7734 = vmatprep.subr.bf16.mxu0 %v8793_v41 }
0x12c5   : > { %6054 = vadd.xlane.f32.xlu1 %v6023_v22  ;;  %7809 = vmatprep.subr.bf16.mxu1 %v8793_v41 }
0x12c7   : > { %7735 = vmatpush3.bf16.msra.mxu0 %v8793_v41 }
0x12c8   : > { %7817 = vmatpush3.bf16.msra.mxu1 %v8793_v41  ;;  %7736 = vmatprep.subr.bf16.mxu0 %v8794_v34 }
0x12c9   : > { %7810 = vmatprep.subr.bf16.mxu1 %v8794_v34 }
0x12cb   : > { %7737 = vmatpush3.bf16.msra.mxu0 %v8794_v34 }
0x12cc   : > { %7818 = vmatpush3.bf16.msra.mxu1 %v8794_v34  ;;  %7738 = vmatprep.subr.bf16.mxu0 %v8795_v54 }
0x12cd   : > { %7811 = vmatprep.subr.bf16.mxu1 %v8795_v54 }
0x12cf   : > { %7739 = vmatpush3.bf16.msra.mxu0 %v8795_v54 }
0x12d0   : > { %7819 = vmatpush3.bf16.msra.mxu1 %v8795_v54 }
0x12f3   : > { %v6025_v21 = vpop.xlane.xlu0 %6024 }
0x12f4   : > { %v6056_v45 = vmul.f32 0.0078125, %v6025_v21 }
0x12f6   : > { %v6072_v57 = vadd.f32 1e-05, %v6056_v45 }
0x12f7   : > { %v6027_v27 = vpop.xlane.xlu1 %6026 }
0x12f8   : > { %8796 = vrsqrt.f32 %v6072_v57  ;;  %v6057_v56 = vmul.f32 0.0078125, %v6027_v27 }
0x12fa   : > { %v6073_v1 = vadd.f32 1e-05, %v6057_v56 }
0x12fc   : > { %8798 = vrsqrt.f32 %v6073_v1 }
0x1302   : > { %v8797_v5 = vpop.eup %8796 }
0x1303   : > { %v6104_v61 = vmul.f32 %v8797_v5, %v12732_v4  ;;  %v12816_v4 = vld [vmem:[#allocation26] ss:$0 sm:$0xff] }
0x1305   : > { %v6126_v52 = vmul.f32 %v12812_v38, %v6104_v61 }
0x1306   : > { %v8799_v31 = vpop.eup %8798 }
0x1307   : > { %v6105_v48 = vmul.f32 %v8799_v31, %v12740_v43  ;;  %v6148_v43 = vadd.f32 %v12816_v4, %v6126_v52 }
0x1309   : > { %v6127_v35 = vmul.f32 %v12812_v38, %v6105_v48 }
0x130b   : > { %v6149_v34 = vadd.f32 %v12816_v4, %v6127_v35 }
0x130d   : > { %v6164_v57 = vpack.c.bf16 %v6149_v34, %v6148_v43 }
0x130f   : > { %7740 = vmatprep.mubr.bf16.mxu0 %v6164_v57 }
0x132b   : > { %v6041_v9 = vpop.xlane.xlu0 %6040 }
0x132c   : > { %v6064_v47 = vmul.f32 0.0078125, %v6041_v9 }
0x132e   : > { %v6080_v11 = vadd.f32 1e-05, %v6064_v47 }
0x132f   : > { %v6043_v6 = vpop.xlane.xlu1 %6042  ;;  %v6029_v10 = vpop.xlane.xlu0 %6028 }
0x1330   : > { %v6065_v3 = vmul.f32 0.0078125, %v6043_v6  ;;  %v6058_v0 = vmul.f32 0.0078125, %v6029_v10  ;;  %8800 = vrsqrt.f32 %v6080_v11 }
0x1332   : > { %v6081_v53 = vadd.f32 1e-05, %v6065_v3  ;;  %v6074_v51 = vadd.f32 1e-05, %v6058_v0 }
0x1333   : > { %v6031_v29 = vpop.xlane.xlu1 %6030 }
0x1334   : > { %v6045_v33 = vpop.xlane.xlu0 %6044  ;;  %8802 = vrsqrt.f32 %v6081_v53  ;;  %v6059_v42 = vmul.f32 0.0078125, %v6031_v29 }
0x1335   : > { %v6066_v13 = vmul.f32 0.0078125, %v6045_v33  ;;  %8804 = vrsqrt.f32 %v6074_v51 }
0x1336   : > { %v6075_v63 = vadd.f32 1e-05, %v6059_v42 }
0x1337   : > { %v6082_v12 = vadd.f32 1e-05, %v6066_v13  ;;  %v6047_v46 = vpop.xlane.xlu1 %6046 }
0x1338   : > { %v6033_v15 = vpop.xlane.xlu0 %6032  ;;  %8806 = vrsqrt.f32 %v6075_v63  ;;  %v6067_v50 = vmul.f32 0.0078125, %v6047_v46 }
0x1339   : > { %v6060_v26 = vmul.f32 0.0078125, %v6033_v15  ;;  %8808 = vrsqrt.f32 %v6082_v12 }
0x133a   : > { %v6083_v30 = vadd.f32 1e-05, %v6067_v50  ;;  %v8801_v28 = vpop.eup %8800 }
0x133b   : > { %v6076_v8 = vadd.f32 1e-05, %v6060_v26  ;;  %v6035_v20 = vpop.xlane.xlu1 %6034  ;;  %v6112_v40 = vmul.f32 %v8801_v28, %v12735_v36 }
0x133c   : > { %8810 = vrsqrt.f32 %v6083_v30  ;;  %v6061_v17 = vmul.f32 0.0078125, %v6035_v20 }
0x133d   : > { %8812 = vrsqrt.f32 %v6076_v8  ;;  %v6134_v21 = vmul.f32 %v12812_v38, %v6112_v40 }
0x133e   : > { %v8803_v7 = vpop.eup %8802  ;;  %v6077_v25 = vadd.f32 1e-05, %v6061_v17 }
0x133f   : > { %v8805_v39 = vpop.eup %8804  ;;  %v6113_v54 = vmul.f32 %v8803_v7, %v12743_v18  ;;  %v6156_v18 = vadd.f32 %v12816_v4, %v6134_v21 }
0x1340   : > { %8814 = vrsqrt.f32 %v6077_v25  ;;  %v6106_v9 = vmul.f32 %v8805_v39, %v12750_v19 }
0x1341   : > { %v6135_v27 = vmul.f32 %v12812_v38, %v6113_v54 }
0x1342   : > { %v8807_v56 = vpop.eup %8806  ;;  %v6128_v53 = vmul.f32 %v12812_v38, %v6106_v9 }
0x1343   : > { %v8809_v11 = vpop.eup %8808  ;;  %v6157_v3 = vadd.f32 %v12816_v4, %v6135_v27  ;;  %v6107_v0 = vmul.f32 %v8807_v56, %v12753_v14 }
0x1344   : > { %v6114_v19 = vmul.f32 %v8809_v11, %v12760_v37  ;;  %v6150_v15 = vadd.f32 %v12816_v4, %v6128_v53 }
0x1345   : > { %v6168_v33 = vpack.c.bf16 %v6157_v3, %v6156_v18  ;;  %v6129_v42 = vmul.f32 %v12812_v38, %v6107_v0 }
0x1346   : > { %v8811_v13 = vpop.eup %8810  ;;  %v6136_v50 = vmul.f32 %v12812_v38, %v6114_v19 }
0x1347   : > { %v8813_v12 = vpop.eup %8812  ;;  %7748 = vmatprep.mubr.bf16.mxu1 %v6168_v33  ;;  %v6151_v14 = vadd.f32 %v12816_v4, %v6129_v42  ;;  %v6115_v61 = vmul.f32 %v8811_v13, %v12763_v59 }
0x1348   : > { %v6049_v55 = vpop.xlane.xlu0 %6048  ;;  %v6108_v26 = vmul.f32 %v8813_v12, %v12770_v60 }
0x1349   : > { %v6068_v24 = vmul.f32 0.0078125, %v6049_v55  ;;  %v6165_v31 = vpack.c.bf16 %v6151_v14, %v6150_v15  ;;  %v6137_v30 = vmul.f32 %v12812_v38, %v6115_v61  ;;  %v6158_v55 = vadd.f32 %v12816_v4, %v6136_v50 }
0x134a   : > { %v6051_v23 = vpop.xlane.xlu1 %6050  ;;  %v8815_v8 = vpop.eup %8814  ;;  %v6130_v52 = vmul.f32 %v12812_v38, %v6108_v26 }
0x134b   : > { %v6084_v22 = vadd.f32 1e-05, %v6068_v24  ;;  %v6069_v45 = vmul.f32 0.0078125, %v6051_v23  ;;  %7741 = vmatmul.mubr.bf16.vlgmr.msra.gmra.mrb[0].mxu0 %v6165_v31  ;;  %v6159_v48 = vadd.f32 %v12816_v4, %v6137_v30  ;;  %v6109_v59 = vmul.f32 %v8815_v8, %v12773_v2 }
0x134c   : > { %v6037_v41 = vpop.xlane.xlu0 %6036  ;;  %v6152_v7 = vadd.f32 %v12816_v4, %v6130_v52 }
0x134d   : > { %v6062_v36 = vmul.f32 0.0078125, %v6037_v41  ;;  %8816 = vrsqrt.f32 %v6084_v22  ;;  %v6085_v47 = vadd.f32 1e-05, %v6069_v45  ;;  %v6169_v60 = vpack.c.bf16 %v6159_v48, %v6158_v55 }
0x134e   : > { %v6039_v6 = vpop.xlane.xlu1 %6038  ;;  %v6131_v24 = vmul.f32 %v12812_v38, %v6109_v59 }
0x134f   : > { %v6078_v1 = vadd.f32 1e-05, %v6062_v36  ;;  %8818 = vrsqrt.f32 %v6085_v47  ;;  %v6063_v51 = vmul.f32 0.0078125, %v6039_v6  ;;  %7749 = vmatmul.mubr.bf16.vlgmr.msra.gmra.mrb[0].mxu1 %v6169_v60 }
0x1350   : > { %v6053_v10 = vpop.xlane.xlu0 %6052  ;;  %v6153_v25 = vadd.f32 %v12816_v4, %v6131_v24 }
0x1351   : > { %v6070_v29 = vmul.f32 0.0078125, %v6053_v10  ;;  %8820 = vrsqrt.f32 %v6078_v1  ;;  %v6079_v5 = vadd.f32 1e-05, %v6063_v51  ;;  %v7008_v10 = vld [vmem:[#allocation29] ss:$0 sm:$0xff] }
0x1352   : > { %v6055_v46 = vpop.xlane.xlu1 %6054  ;;  %v6166_v23 = vpack.c.bf16 %v6153_v25, %v6152_v7 }
0x1353   : > { %v6086_v63 = vadd.f32 1e-05, %v6070_v29  ;;  %8822 = vrsqrt.f32 %v6079_v5  ;;  %v6071_v37 = vmul.f32 0.0078125, %v6055_v46 }
0x1354   : > { %7744 = vmatprep.mubr.bf16.mxu0 %v6166_v23 }
0x1355   : > { %8824 = vrsqrt.f32 %v6086_v63  ;;  %v6087_v28 = vadd.f32 1e-05, %v6071_v37 }
0x1357   : > { %v8817_v20 = vpop.eup %8816  ;;  %8826 = vrsqrt.f32 %v6087_v28 }
0x1358   : > { %v6116_v17 = vmul.f32 %v8817_v20, %v12780_v62 }
0x1359   : > { %v8819_v40 = vpop.eup %8818 }
0x135a   : > { %v6117_v22 = vmul.f32 %v8819_v40, %v12783_v49  ;;  %v6138_v39 = vmul.f32 %v12812_v38, %v6116_v17 }
0x135b   : > { %v8821_v35 = vpop.eup %8820 }
0x135c   : > { %v6110_v2 = vmul.f32 %v8821_v35, %v12790_v16  ;;  %v6139_v41 = vmul.f32 %v12812_v38, %v6117_v22  ;;  %v6160_v34 = vadd.f32 %v12816_v4, %v6138_v39 }
0x135d   : > { %v8823_v62 = vpop.eup %8822 }
0x135e   : > { %v6161_v54 = vadd.f32 %v12816_v4, %v6139_v41  ;;  %v6111_v21 = vmul.f32 %v8823_v62, %v12793_v58  ;;  %v6132_v45 = vmul.f32 %v12812_v38, %v6110_v2 }
0x135f   : > { %v8825_v43 = vpop.eup %8824 }
0x1360   : > { %v6118_v49 = vmul.f32 %v8825_v43, %v12800_v44  ;;  %v6170_v36 = vpack.c.bf16 %v6161_v54, %v6160_v34  ;;  %v6133_v57 = vmul.f32 %v12812_v38, %v6111_v21  ;;  %v6154_v27 = vadd.f32 %v12816_v4, %v6132_v45 }
0x1361   : > { %v8827_v16 = vpop.eup %8826 }
0x1362   : > { %7752 = vmatprep.mubr.bf16.mxu1 %v6170_v36  ;;  %v6155_v9 = vadd.f32 %v12816_v4, %v6133_v57  ;;  %v6119_v56 = vmul.f32 %v8827_v16, %v12803_v32  ;;  %v6140_v47 = vmul.f32 %v12812_v38, %v6118_v49 }
0x1364   : > { %v6167_v1 = vpack.c.bf16 %v6155_v9, %v6154_v27  ;;  %v6141_v58 = vmul.f32 %v12812_v38, %v6119_v56  ;;  %v6162_v44 = vadd.f32 %v12816_v4, %v6140_v47 }
0x1366   : > { %7745 = vmatmul.mubr.bf16.gmra.mrb[4].mxu0 %v6167_v1  ;;  %v6163_v11 = vadd.f32 %v12816_v4, %v6141_v58 }
0x1368   : > { %v6171_v6 = vpack.c.bf16 %v6163_v11, %v6162_v44 }
0x136a   : > { %7753 = vmatmul.mubr.bf16.gmra.mrb[4].mxu1 %v6171_v6 }
0x141e   : > { %v7742_v18 = vpop.f32.mrb[0].mxu0 }
0x141f   : > { %v6286_v3 = vadd.f32 %v7742_v18, %v7008_v10  ;;  %v6277_v32 = vpop.f32.mrb[1].mxu0 }
0x1420   : > { %v6278_v0 = vadd.f32 %v7008_v10, %v6277_v32  ;;  %v7743_v53 = vpop.f32.mrb[2].mxu0 }
0x1421   : > { %6342 = vst [vmem:[%s10345_s19 + $0x10] sm:$0xff] %v6286_v3  ;;  %v6289_v51 = vadd.f32 %v7743_v53, %v7008_v10  ;;  %v6280_v38 = vpop.f32.mrb[3].mxu0 }
0x1422   : > { %6340 = vst [vmem:[%s10345_s19] sm:$0xff] %v6278_v0  ;;  %v6281_v29 = vadd.f32 %v7008_v10, %v6280_v38  ;;  %v7750_v19 = vpop.f32.mrb[0].mxu1 }
0x1423   : > { %6343 = vst [vmem:[%s10345_s19 + $0x18] sm:$0xff] %v6289_v51  ;;  %v6318_v4 = vadd.f32 %v7750_v19, %v7008_v10  ;;  %v6309_v33 = vpop.f32.mrb[1].mxu1 }
0x1424   : > { %6341 = vst [vmem:[%s10345_s19 + $0x8] sm:$0xff] %v6281_v29  ;;  %v6310_v42 = vadd.f32 %v7008_v10, %v6309_v33  ;;  %v7751_v13 = vpop.f32.mrb[2].mxu1 }
0x1425   : > { %6350 = vst [vmem:[%s10345_s19 + $0x50] sm:$0xff] %v6318_v4  ;;  %v6321_v5 = vadd.f32 %v7751_v13, %v7008_v10  ;;  %v6312_v63 = vpop.f32.mrb[3].mxu1 }
0x1426   : > { %6348 = vst [vmem:[%s10345_s19 + $0x40] sm:$0xff] %v6310_v42  ;;  %v6313_v12 = vadd.f32 %v7008_v10, %v6312_v63 }
0x1427   : > { %6351 = vst [vmem:[%s10345_s19 + $0x58] sm:$0xff] %v6321_v5 }
0x1428   : > { %6349 = vst [vmem:[%s10345_s19 + $0x48] sm:$0xff] %v6313_v12 }
0x1439   : > { %v7746_v46 = vpop.f32.mrb[4].mxu0 }
0x143a   : > { %v6302_v15 = vadd.f32 %v7746_v46, %v7008_v10  ;;  %v6293_v14 = vpop.f32.mrb[5].mxu0 }
0x143b   : > { %v6294_v61 = vadd.f32 %v7008_v10, %v6293_v14  ;;  %v7747_v50 = vpop.f32.mrb[6].mxu0 }
0x143c   : > { %6346 = vst [vmem:[%s10345_s19 + $0x30] sm:$0xff] %v6302_v15  ;;  %v6305_v37 = vadd.f32 %v7747_v50, %v7008_v10  ;;  %v6296_v26 = vpop.f32.mrb[7].mxu0 }
0x143d   : > { %6344 = vst [vmem:[%s10345_s19 + $0x20] sm:$0xff] %v6294_v61  ;;  %v6297_v31 = vadd.f32 %v7008_v10, %v6296_v26  ;;  %v7754_v30 = vpop.f32.mrb[4].mxu1 }
0x143e   : > { %6347 = vst [vmem:[%s10345_s19 + $0x38] sm:$0xff] %v6305_v37  ;;  %v6334_v8 = vadd.f32 %v7754_v30, %v7008_v10  ;;  %v6325_v28 = vpop.f32.mrb[5].mxu1 }
0x143f   : > { %6345 = vst [vmem:[%s10345_s19 + $0x28] sm:$0xff] %v6297_v31  ;;  %v6326_v20 = vadd.f32 %v7008_v10, %v6325_v28  ;;  %v7755_v55 = vpop.f32.mrb[6].mxu1 }
0x1440   : > { %6354 = vst [vmem:[%s10345_s19 + $0x70] sm:$0xff] %v6334_v8  ;;  %v6337_v48 = vadd.f32 %v7755_v55, %v7008_v10  ;;  %v6328_v59 = vpop.f32.mrb[7].mxu1 }
0x1441   : > { %6352 = vst [vmem:[%s10345_s19 + $0x60] sm:$0xff] %v6326_v20  ;;  %v6329_v52 = vadd.f32 %v7008_v10, %v6328_v59 }
0x1442   : > { %6355 = vst [vmem:[%s10345_s19 + $0x78] sm:$0xff] %v6337_v48 }
0x1443   : > { %6353 = vst [vmem:[%s10345_s19 + $0x68] sm:$0xff] %v6329_v52 }
0x1444 PF: > { %s13393_s5 = sld [smem:[#allocation46_spill]]  ;;  %s13394_s27 = sld [smem:[#allocation110_spill]] }
0x1445   : > { %s6370_s26 = sshll.u32 %s10345_s19, 4  ;;  %s6357_s11 = scalar_lea.sflag [#allocation5], %s10264_s25  ;;  %s12886_s26 = int_to_ptr.vmem [resolvable:$true] %s6370_s26 }
0x1446   : > { %s9330_s4 = scalar_lea.vmem %s12886_s26, 2048  ;;  %p13396_p2 = scmp.ne.s32.totalorder %s13171_s28, 0 }
0x1447   : > { %p9331_p3 = scmp.ne.s32.totalorder %s12886_s26, %s9330_s4  ;;  %s9516_s15 = smov [#allocation30]  }
0x1448   : > { %s9334_s7 = sshll.u32 %s9516_s15, 4  ;;  %s9335_s7 = int_to_ptr.vmem [resolvable:$false] %s9334_s7 }
0x1449   : > { %p9332_p6 = pnand %p9331_p3, %p13396_p2  ;;  %s9336_s20 = scalar_lea.vmem %s9335_s7, 4096 }
0x144a   : > { %s7027_s2 = sshll.u32 %s13393_s5, 11  ;;  %s13395_s16 = smov %s13394_s27 }
0x144b   : > { %s12883_s24 = scalar_lea.hbm %s13394_s27, %s7027_s2  ;;  %p9333_p4 = pneg %p9332_p6 }
0x144c   : > { %p9337_p7 = scmp.lt.s32.totalorder %s12886_s26, %s9335_s7  ;;  %p9338_p1 = scmp.lt.s32.totalorder %s9336_s20, %s9330_s4 }
0x144e   : > { %p9339_p8 = por %p9338_p1, %p9337_p7 }
0x1450   : > { %p9340_p11 = pnand %p9339_p8, %p9333_p4 }
0x1452   : > { %9343 = shalt.err (!%p9340_p11)
}
0x1453   : > { %s9344_s19 = scalar_lea.hbm %s12883_s24, 2048  ;;  %s9348_s30 = scalar_lea.hbm %s13395_s16, 4096 }
0x1454   : > { %p9345_p5 = scmp.ne.s32.totalorder %s12883_s24, %s9344_s19  ;;  %p9349_p0 = scmp.lt.u32.totalorder %s12883_s24, %s13395_s16 }
0x1455   : > { %p9350_p10 = scmp.lt.u32.totalorder %s9348_s30, %s9344_s19  ;;  %p9352_p3 = scmp.lt.u32.totalorder %s9344_s19, %s12883_s24 }
0x1456   : > { %p9346_p13 = pnand %p9345_p5, %p13396_p2 }
0x1457   : > { %p9351_p9 = por %p9350_p10, %p9349_p0 }
0x1458   : > { %p9347_p12 = pneg %p9346_p13 }
0x1459   : > { %p9353_p6 = por %p9352_p3, %p9351_p9 }
0x145b   : > { %p9354_p4 = pnand %p9353_p6, %p9347_p12 }
0x145d   : > { %9357 = shalt.err (!%p9354_p4)
}
0x145e   : > { %s9517_s5 = smov 128   ;;  %s9518_s2 = smov 8  }
0x145f   : > { %7900 = dma.vmem_to_hbm [thread:$0]  (%p13396_p2), %s12886_s26, 2048, %s12883_s24, %s6357_s11, %s9517_s5, %s9517_s5, %s9518_s2  }
0x1460 PF: > { %s13397_s10 = sld [smem:[#allocation43_spill]]  ;;  %p7968_p7 = scmp.ge.s32.totalorder %s9484_s1, 2 }
0x1461   : > { %p13398_p1 = scmp.ne.s32.totalorder %s13172_s3, 0 }
0x1463   : > { %p7956_p8 = pnand %p7968_p7, %p13398_p1 }
0x1466   : > { %s6385_s14 = sand.u32 1, %s13397_s10  }
0x1467   : > { %s6386_s27 = scalar_lea.sflag [#allocation5], %s6385_s14 }
0x1468   : > { %9439 = dma.done.wait (!%p7956_p8), %s6386_s27, 2048  }
0x1469   : > { %9441 = vsyncadd (!%p7956_p8), %s6386_s27, 4294965248  ;;  %s53_s1 = sadd.s32 1, %s9484_s1   ;;  %s13399_s24 = sld [smem:[#allocation41_spill]] }
0x146a   : > { %p50_p11 = scmp.ge.s32.totalorder %s53_s1, 6   ;;  %s13400_s25 = sld [smem:[#allocation42_spill]] }
0x146b   : > { %s13401_s27 = sld [smem:[#allocation44_spill]]  ;;  %s13402_s30 = sld [smem:[#allocation47_spill]] }
0x146c   : > { %s13403_s11 = sld [smem:[#allocation51_spill]]  ;;  %s13404_s19 = sld [smem:[#allocation52_spill]] }
0x146d   : > { %s13405_s26 = smov %s13417_s23  ;;  %s13406_s28 = smov %s9464_s29 }
0x146e   : > { %s13407_s29 = smov %s10055_s13  ;;  %s13408_s0 = smov %s9476_s18 }
0x146f   :  { %52 = sbr.rel (!%p50_p11) target bundleno = 42 (0x2a), region = 301 }
0x1472   : > { %s13409_s18 = smov %s13403_s11 }
0x1476   :  { %6391 = vsyncpa [#allocation4], 1 }
0x1477   :  { %6393 = vsyncpa [#allocation4 + $0x1], 1 }
0x1478   :  { %6394 = vsyncpa [#allocation7], 1 }
0x1479   :  { %6396 = vsyncpa [#allocation7 + $0x1], 1 }
0x147a   :  { %6397 = vsyncpa [#allocation10], 1 }
0x147b   :  { %6399 = vsyncpa [#allocation10 + $0x1], 1 }
0x147c   :  { %6400 = vsyncpa [#allocation13], 1 }
0x147d   :  { %6402 = vsyncpa [#allocation13 + $0x1], 1 }
0x147e   :  { %6403 = vsyncpa [#allocation16], 1 }
0x147f   :  { %6405 = vsyncpa [#allocation16 + $0x1], 1 }
0x1480   :  { %6406 = vsyncpa [#allocation19], 1 }
0x1481   :  { %6408 = vsyncpa [#allocation19 + $0x1], 1 }
0x1482   :  { %6409 = vsyncpa [#allocation22], 1 }
0x1483   :  { %6411 = vsyncpa [#allocation22 + $0x1], 1 }
0x1484   :  { %6412 = vsyncpa [#allocation25], 1 }
0x1485   :  { %6413 = vsyncpa [#allocation28], 1 }
0x1486   :  { %6414 = vsyncpa [#allocation5], 1 }
0x1487   :  { %6416 = vsyncpa [#allocation5 + $0x1], 1 }

</bundles_post_ra>
